<compile_context>
chip_gen: v7x
topology: tpu7x:2x2x1
jax: 0.10.0
libtpu: 0.0.40
codegen_flags: <defaults>
</compile_context>

<pallas_src>
import functools
import math

import jax
import jax.numpy as jnp
from jax.experimental import pallas as pl
from jax.experimental.pallas import tpu as pltpu


# ----------------------------- in-kernel helpers -----------------------------

def _erf(x):
    # Abramowitz & Stegun 7.1.26 (|err| < 1.5e-7), built from exp/mul/add/select.
    # Exact divide kept here (one divide per GELU tile) to stay close to torch's erf-GELU.
    a1, a2, a3, a4, a5 = (0.254829592, -0.284496736, 1.421413741,
                          -1.453152027, 1.061405429)
    p = 0.3275911
    sgn = jnp.where(x >= 0.0, 1.0, -1.0)
    ax = jnp.abs(x)
    t = 1.0 / (1.0 + p * ax)
    poly = ((((a5 * t + a4) * t + a3) * t + a2) * t + a1) * t
    return sgn * (1.0 - poly * jnp.exp(-ax * ax))


def _gelu_exact(x):
    # nn.GELU() default = exact erf-based GELU
    return 0.5 * x * (1.0 + _erf(x * (1.0 / math.sqrt(2.0))))


def _layernorm(x, gamma, beta, eps=1e-5):
    mean = jnp.mean(x, axis=-1, keepdims=True)
    var = jnp.mean((x - mean) ** 2, axis=-1, keepdims=True)
    return (x - mean) * jax.lax.rsqrt(var + eps) * gamma + beta


# ----------------------------- fused forward kernel -----------------------------

def fused_encoder_kernel(n_valid,
                         x_ref,
                         wq_ref, bq_ref, wk_ref, bk_ref, wv_ref, bv_ref,
                         wo_ref, bo_ref,
                         g1_ref, be1_ref, g2_ref, be2_ref,
                         w1_ref, bm1_ref, w2_ref, bm2_ref,
                         wcls_ref, bcls_ref,
                         out_ref):
    num_layers, num_heads, d_model, d_k = wq_ref.shape
    lp = x_ref.shape[1]                                     # padded seq length
    scale = 1.0 / math.sqrt(d_k)

    x = x_ref[0]                                            # (Lp, D) f32, one batch item

    # Key-validity mask: padded positions (>= L+1) never attended to. Hoisted out of loops.
    col = jax.lax.broadcasted_iota(jnp.int32, (lp, lp), 1)
    kmask = col < n_valid                                   # (Lp, Lp)

    for layer in range(num_layers):                         # static unroll over 4 layers
        # ---- LayerNorm1 + multi-head attention (pre-norm) ----
        y = _layernorm(x, g1_ref[layer], be1_ref[layer])
        attn = jnp.zeros((lp, d_model), jnp.float32)
        for h in range(num_heads):                          # head index is a leading axis
            q = jnp.dot(y, wq_ref[layer, h],
                        preferred_element_type=jnp.float32) + bq_ref[layer, h]
            k = jnp.dot(y, wk_ref[layer, h],
                        preferred_element_type=jnp.float32) + bk_ref[layer, h]
            v = jnp.dot(y, wv_ref[layer, h],
                        preferred_element_type=jnp.float32) + bv_ref[layer, h]
            # scores q @ k^T without an explicit transpose
            s = jax.lax.dot_general(q, k, (((1,), (1,)), ((), ())),
                                    preferred_element_type=jnp.float32) * scale
            s = jnp.where(kmask, s, -1e30)
            p = jnp.exp(s - jnp.max(s, axis=-1, keepdims=True))
            a = p * pl.reciprocal(jnp.sum(p, axis=-1, keepdims=True), approx=True)
            z = jnp.dot(a, v, preferred_element_type=jnp.float32)       # (Lp, d_k)
            # concat-free output projection: accumulate z_h @ Wproj[h]
            attn = attn + jnp.dot(z, wo_ref[layer, h],
                                  preferred_element_type=jnp.float32)   # (Lp, D)
        x = x + attn + bo_ref[layer]

        # ---- LayerNorm2 + MLP (pre-norm) ----
        y2 = _layernorm(x, g2_ref[layer], be2_ref[layer])
        hdn = jnp.dot(y2, w1_ref[layer],
                      preferred_element_type=jnp.float32) + bm1_ref[layer]
        hdn = _gelu_exact(hdn)
        x = x + jnp.dot(hdn, w2_ref[layer],
                        preferred_element_type=jnp.float32) + bm2_ref[layer]

    # ---- classifier on the cls-token row only (fused; masked (1, C) store accepted) ----
    cls = x[0:1, :]                                         # (1, D)
    out_ref[0] = jnp.dot(cls, wcls_ref[...],
                         preferred_element_type=jnp.float32) + bcls_ref[...]


# ----------------------------- wrapper -----------------------------

def _replicated_spec(shape):
    zeros = (0,) * len(shape)
    return pl.BlockSpec(shape, lambda b: zeros)             # same full block every step


def encoder_transformer_forward(x, cls_token, packed, wcls_t, bcls):
    """use_cls_token=True path: prepend cls token, run 4 fused layers, classify row 0."""
    B, L, D = x.shape
    n_valid = L + 1
    lp = ((n_valid + 7) // 8) * 8                           # pad seq to a sublane multiple
    C = wcls_t.shape[1]

    cls_b = jnp.broadcast_to(cls_token.astype(jnp.float32), (B, 1, D))
    pad = jnp.zeros((B, lp - n_valid, D), jnp.float32)
    xp = jnp.concatenate([cls_b, x.astype(jnp.float32), pad], axis=1)   # (B, Lp, D)

    kernel = functools.partial(fused_encoder_kernel, n_valid)
    weights = (*packed, wcls_t, bcls)

    out = pl.pallas_call(
        kernel,
        grid=(B,),                                          # batch axis -> 2nd TC on v7x
        out_shape=jax.ShapeDtypeStruct((B, 1, C), jnp.float32),
        in_specs=[pl.BlockSpec((1, lp, D), lambda b: (b, 0, 0))]
                 + [_replicated_spec(w.shape) for w in weights],
        out_specs=pl.BlockSpec((1, 1, C), lambda b: (b, 0, 0)),
        compiler_params=pltpu.CompilerParams(
            dimension_semantics=("parallel",)),
    )(xp, *weights)
    return out[:, 0, :]                                     # (B, num_classes)
    # TODO(synk): AdaptiveAvgPool1d branch (use_cls_token=False) not exercised here.


# ----------------------------- parameter init & packing -----------------------------

def make_layer_params(key, d_model, dim_mlp):
    ks = jax.random.split(key, 8)
    s = 0.02
    return dict(
        wqkv_t=jax.random.normal(ks[0], (d_model, 3 * d_model), jnp.float32) * s,
        bqkv=jax.random.normal(ks[1], (3 * d_model,), jnp.float32) * s,
        wproj_t=jax.random.normal(ks[2], (d_model, d_model), jnp.float32) * s,
        bproj=jax.random.normal(ks[3], (d_model,), jnp.float32) * s,
        g1=jnp.ones((d_model,), jnp.float32),
        be1=jnp.zeros((d_model,), jnp.float32),
        g2=jnp.ones((d_model,), jnp.float32),
        be2=jnp.zeros((d_model,), jnp.float32),
        w1_t=jax.random.normal(ks[4], (d_model, dim_mlp), jnp.float32) * s,
        bm1=jax.random.normal(ks[5], (dim_mlp,), jnp.float32) * s,
        w2_t=jax.random.normal(ks[6], (dim_mlp, d_model), jnp.float32) * s,
        bm2=jax.random.normal(ks[7], (d_model,), jnp.float32) * s,
    )


def pack_params(layer_params, num_heads):
    """Stack per-layer PyTorch-style weights and re-lay them out per head.

    Win (D, 3D) -> Q/K/V slabs (NL, H, D, d_k) (head index leading -> no in-kernel
    lane-axis slicing); proj (D, D) -> (NL, H, d_k, D) so the head concat becomes a
    sum of per-head matmuls. Done once in the wrapper.
    """
    nl = len(layer_params)
    d_model = layer_params[0]['wproj_t'].shape[0]
    d_k = d_model // num_heads

    def st(name):
        return jnp.stack([p[name] for p in layer_params])

    wqkv = st('wqkv_t')                                  # (NL, D, 3D)
    bqkv = st('bqkv')                                    # (NL, 3D)

    def head_slab(w_col):                                # (NL, D, D) -> (NL, H, D, d_k)
        return w_col.reshape(nl, d_model, num_heads, d_k).transpose(0, 2, 1, 3)

    def head_bias(b_col):                                # (NL, D) -> (NL, H, 1, d_k)
        return b_col.reshape(nl, num_heads, 1, d_k)

    wq = head_slab(wqkv[:, :, 0:d_model])
    wk = head_slab(wqkv[:, :, d_model:2 * d_model])
    wv = head_slab(wqkv[:, :, 2 * d_model:3 * d_model])
    bq = head_bias(bqkv[:, 0:d_model])
    bk = head_bias(bqkv[:, d_model:2 * d_model])
    bv = head_bias(bqkv[:, 2 * d_model:3 * d_model])

    wo = st('wproj_t').reshape(nl, num_heads, d_k, d_model)   # (NL, H, d_k, D)
    bo = st('bproj').reshape(nl, 1, d_model)

    g1 = st('g1').reshape(nl, 1, d_model)
    be1 = st('be1').reshape(nl, 1, d_model)
    g2 = st('g2').reshape(nl, 1, d_model)
    be2 = st('be2').reshape(nl, 1, d_model)

    w1 = st('w1_t')                                      # (NL, D, MLP)
    bm1 = st('bm1').reshape(nl, 1, -1)
    w2 = st('w2_t')                                      # (NL, MLP, D)
    bm2 = st('bm2').reshape(nl, 1, d_model)

    return (wq, bq, wk, bk, wv, bv, wo, bo, g1, be1, g2, be2, w1, bm1, w2, bm2)


# ----------------------------- main -----------------------------

if __name__ == "__main__":
    B, L, D, H, MLP, C, NL = 2, 8, 32, 4, 64, 10, 4

    key = jax.random.PRNGKey(0)
    keys = jax.random.split(key, 3 + NL)

    x = jax.random.normal(keys[0], (B, L, D), jnp.float32)
    cls_token = jax.random.normal(keys[1], (1, 1, D), jnp.float32)
    layer_params = [make_layer_params(keys[2 + i], D, MLP) for i in range(NL)]
    kcls = jax.random.split(keys[-1], 2)
    wcls_t = jax.random.normal(kcls[0], (D, C), jnp.float32) * 0.02
    bcls = jax.random.normal(kcls[1], (1, C), jnp.float32) * 0.02

    packed = pack_params(layer_params, num_heads=H)

    fwd = jax.jit(encoder_transformer_forward)
    logits = fwd(x, cls_token, packed, wcls_t, bcls)
    jax.block_until_ready(logits)
    assert logits.shape == (B, C)
    print("KERNEL_OK")
</pallas_src>

<mosaic_0001>
module attributes {stable_mosaic.version = 11 : i64} {
  func.func @fused_encoder_kernel(%arg0: i32, %arg1: memref<1x16x32xf32, #tpu.memory_space<vmem>>, %arg2: memref<4x4x32x8xf32, #tpu.memory_space<vmem>>, %arg3: memref<4x4x1x8xf32, #tpu.memory_space<vmem>>, %arg4: memref<4x4x32x8xf32, #tpu.memory_space<vmem>>, %arg5: memref<4x4x1x8xf32, #tpu.memory_space<vmem>>, %arg6: memref<4x4x32x8xf32, #tpu.memory_space<vmem>>, %arg7: memref<4x4x1x8xf32, #tpu.memory_space<vmem>>, %arg8: memref<4x4x8x32xf32, #tpu.memory_space<vmem>>, %arg9: memref<4x1x32xf32, #tpu.memory_space<vmem>>, %arg10: memref<4x1x32xf32, #tpu.memory_space<vmem>>, %arg11: memref<4x1x32xf32, #tpu.memory_space<vmem>>, %arg12: memref<4x1x32xf32, #tpu.memory_space<vmem>>, %arg13: memref<4x1x32xf32, #tpu.memory_space<vmem>>, %arg14: memref<4x32x64xf32, #tpu.memory_space<vmem>>, %arg15: memref<4x1x64xf32, #tpu.memory_space<vmem>>, %arg16: memref<4x64x32xf32, #tpu.memory_space<vmem>>, %arg17: memref<4x1x32xf32, #tpu.memory_space<vmem>>, %arg18: memref<32x10xf32, #tpu.memory_space<vmem>>, %arg19: memref<1x10xf32, #tpu.memory_space<vmem>>, %arg20: memref<1x1x10xf32, #tpu.memory_space<vmem>>) attributes {dimension_semantics = [#tpu.dimension_semantics<parallel>], iteration_bounds = array<i64: 2>, scalar_prefetch = 0 : i64, scratch_operands = 0 : i64, tpu.core_type = #tpu.core_type<tc>, window_params = [{transform_indices = @transform_0, window_bounds = array<i64: 1, 16, 32>}, {pipeline_mode = #tpu.pipeline_mode<synchronous>, transform_indices = @transform_1, window_bounds = array<i64: 4, 4, 32, 8>}, {pipeline_mode = #tpu.pipeline_mode<synchronous>, transform_indices = @transform_2, window_bounds = array<i64: 4, 4, 1, 8>}, {pipeline_mode = #tpu.pipeline_mode<synchronous>, transform_indices = @transform_3, window_bounds = array<i64: 4, 4, 32, 8>}, {pipeline_mode = #tpu.pipeline_mode<synchronous>, transform_indices = @transform_4, window_bounds = array<i64: 4, 4, 1, 8>}, {pipeline_mode = #tpu.pipeline_mode<synchronous>, transform_indices = @transform_5, window_bounds = array<i64: 4, 4, 32, 8>}, {pipeline_mode = #tpu.pipeline_mode<synchronous>, transform_indices = @transform_6, window_bounds = array<i64: 4, 4, 1, 8>}, {pipeline_mode = #tpu.pipeline_mode<synchronous>, transform_indices = @transform_7, window_bounds = array<i64: 4, 4, 8, 32>}, {pipeline_mode = #tpu.pipeline_mode<synchronous>, transform_indices = @transform_8, window_bounds = array<i64: 4, 1, 32>}, {pipeline_mode = #tpu.pipeline_mode<synchronous>, transform_indices = @transform_9, window_bounds = array<i64: 4, 1, 32>}, {pipeline_mode = #tpu.pipeline_mode<synchronous>, transform_indices = @transform_10, window_bounds = array<i64: 4, 1, 32>}, {pipeline_mode = #tpu.pipeline_mode<synchronous>, transform_indices = @transform_11, window_bounds = array<i64: 4, 1, 32>}, {pipeline_mode = #tpu.pipeline_mode<synchronous>, transform_indices = @transform_12, window_bounds = array<i64: 4, 1, 32>}, {pipeline_mode = #tpu.pipeline_mode<synchronous>, transform_indices = @transform_13, window_bounds = array<i64: 4, 32, 64>}, {pipeline_mode = #tpu.pipeline_mode<synchronous>, transform_indices = @transform_14, window_bounds = array<i64: 4, 1, 64>}, {pipeline_mode = #tpu.pipeline_mode<synchronous>, transform_indices = @transform_15, window_bounds = array<i64: 4, 64, 32>}, {pipeline_mode = #tpu.pipeline_mode<synchronous>, transform_indices = @transform_16, window_bounds = array<i64: 4, 1, 32>}, {pipeline_mode = #tpu.pipeline_mode<synchronous>, transform_indices = @transform_17, window_bounds = array<i64: 32, 10>}, {pipeline_mode = #tpu.pipeline_mode<synchronous>, transform_indices = @transform_18, window_bounds = array<i64: 1, 10>}, {transform_indices = @transform_19, window_bounds = array<i64: 1, 1, 10>}]} {
    %c0 = arith.constant 0 : index
    %c0_0 = arith.constant 0 : index
    %c0_1 = arith.constant 0 : index
    %0 = vector.load %arg1[%c0, %c0_0, %c0_1] : memref<1x16x32xf32, #tpu.memory_space<vmem>>, vector<1x16x32xf32>
    %1 = vector.shape_cast %0 : vector<1x16x32xf32> to vector<16x32xf32>
    %2 = tpu.iota {dimensions = array<i32: 1>} : vector<16x16xi32>
    %c9_i32 = arith.constant 9 : i32
    %3 = vector.broadcast %c9_i32 : i32 to vector<16x16xi32>
    %4 = arith.cmpi slt, %2, %3 : vector<16x16xi32>
    %c0_2 = arith.constant 0 : index
    %c0_3 = arith.constant 0 : index
    %c0_4 = arith.constant 0 : index
    %5 = vector.load %arg10[%c0_2, %c0_3, %c0_4] : memref<4x1x32xf32, #tpu.memory_space<vmem>>, vector<1x1x32xf32>
    %6 = vector.shape_cast %5 : vector<1x1x32xf32> to vector<1x32xf32>
    %c0_5 = arith.constant 0 : index
    %c0_6 = arith.constant 0 : index
    %c0_7 = arith.constant 0 : index
    %7 = vector.load %arg11[%c0_5, %c0_6, %c0_7] : memref<4x1x32xf32, #tpu.memory_space<vmem>>, vector<1x1x32xf32>
    %8 = vector.shape_cast %7 : vector<1x1x32xf32> to vector<1x32xf32>
    %cst = arith.constant dense<0.000000e+00> : vector<16xf32>
    %9 = vector.multi_reduction <add>, %1, %cst [1] : vector<16x32xf32> to vector<16xf32>
    %10 = vector.shape_cast %9 : vector<16xf32> to vector<16x1xf32>
    %cst_8 = arith.constant 3.200000e+01 : f32
    %11 = vector.broadcast %cst_8 : f32 to vector<16x1xf32>
    %12 = arith.divf %10, %11 : vector<16x1xf32>
    %13 = vector.broadcast %12 : vector<16x1xf32> to vector<16x32xf32>
    %14 = arith.subf %1, %13 : vector<16x32xf32>
    %15 = arith.mulf %14, %14 : vector<16x32xf32>
    %cst_9 = arith.constant dense<0.000000e+00> : vector<16xf32>
    %16 = vector.multi_reduction <add>, %15, %cst_9 [1] : vector<16x32xf32> to vector<16xf32>
    %17 = vector.shape_cast %16 : vector<16xf32> to vector<16x1xf32>
    %cst_10 = arith.constant 3.200000e+01 : f32
    %18 = vector.broadcast %cst_10 : f32 to vector<16x1xf32>
    %19 = arith.divf %17, %18 : vector<16x1xf32>
    %20 = vector.broadcast %12 : vector<16x1xf32> to vector<16x32xf32>
    %21 = arith.subf %1, %20 : vector<16x32xf32>
    %cst_11 = arith.constant 9.99999974E-6 : f32
    %22 = vector.broadcast %cst_11 : f32 to vector<16x1xf32>
    %23 = arith.addf %19, %22 : vector<16x1xf32>
    %24 = math.rsqrt %23 : vector<16x1xf32>
    %25 = vector.broadcast %24 : vector<16x1xf32> to vector<16x32xf32>
    %26 = arith.mulf %21, %25 : vector<16x32xf32>
    %27 = vector.broadcast %6 : vector<1x32xf32> to vector<16x32xf32>
    %28 = arith.mulf %26, %27 : vector<16x32xf32>
    %29 = vector.broadcast %8 : vector<1x32xf32> to vector<16x32xf32>
    %30 = arith.addf %28, %29 : vector<16x32xf32>
    %cst_12 = arith.constant 0.000000e+00 : f32
    %31 = vector.broadcast %cst_12 : f32 to vector<16x32xf32>
    %c0_13 = arith.constant 0 : index
    %c0_14 = arith.constant 0 : index
    %c0_15 = arith.constant 0 : index
    %c0_16 = arith.constant 0 : index
    %32 = vector.load %arg2[%c0_13, %c0_14, %c0_15, %c0_16] : memref<4x4x32x8xf32, #tpu.memory_space<vmem>>, vector<1x1x32x8xf32>
    %33 = vector.shape_cast %32 : vector<1x1x32x8xf32> to vector<32x8xf32>
    %cst_17 = arith.constant dense<0.000000e+00> : vector<16x8xf32>
    %34 = tpu.matmul %30, %33, %cst_17 {dimension_numbers = #tpu.dot_dimension_numbers<[1], [0], [0], [1], [0, 0, 1, 1], [], []>} : vector<16x32xf32>, vector<32x8xf32>, vector<16x8xf32> -> vector<16x8xf32>
    %c0_18 = arith.constant 0 : index
    %c0_19 = arith.constant 0 : index
    %c0_20 = arith.constant 0 : index
    %c0_21 = arith.constant 0 : index
    %35 = vector.load %arg3[%c0_18, %c0_19, %c0_20, %c0_21] : memref<4x4x1x8xf32, #tpu.memory_space<vmem>>, vector<1x1x1x8xf32>
    %36 = vector.shape_cast %35 : vector<1x1x1x8xf32> to vector<1x8xf32>
    %37 = vector.broadcast %36 : vector<1x8xf32> to vector<16x8xf32>
    %38 = arith.addf %34, %37 : vector<16x8xf32>
    %c0_22 = arith.constant 0 : index
    %c0_23 = arith.constant 0 : index
    %c0_24 = arith.constant 0 : index
    %c0_25 = arith.constant 0 : index
    %39 = vector.load %arg4[%c0_22, %c0_23, %c0_24, %c0_25] : memref<4x4x32x8xf32, #tpu.memory_space<vmem>>, vector<1x1x32x8xf32>
    %40 = vector.shape_cast %39 : vector<1x1x32x8xf32> to vector<32x8xf32>
    %cst_26 = arith.constant dense<0.000000e+00> : vector<16x8xf32>
    %41 = tpu.matmul %30, %40, %cst_26 {dimension_numbers = #tpu.dot_dimension_numbers<[1], [0], [0], [1], [0, 0, 1, 1], [], []>} : vector<16x32xf32>, vector<32x8xf32>, vector<16x8xf32> -> vector<16x8xf32>
    %c0_27 = arith.constant 0 : index
    %c0_28 = arith.constant 0 : index
    %c0_29 = arith.constant 0 : index
    %c0_30 = arith.constant 0 : index
    %42 = vector.load %arg5[%c0_27, %c0_28, %c0_29, %c0_30] : memref<4x4x1x8xf32, #tpu.memory_space<vmem>>, vector<1x1x1x8xf32>
    %43 = vector.shape_cast %42 : vector<1x1x1x8xf32> to vector<1x8xf32>
    %44 = vector.broadcast %43 : vector<1x8xf32> to vector<16x8xf32>
    %45 = arith.addf %41, %44 : vector<16x8xf32>
    %c0_31 = arith.constant 0 : index
    %c0_32 = arith.constant 0 : index
    %c0_33 = arith.constant 0 : index
    %c0_34 = arith.constant 0 : index
    %46 = vector.load %arg6[%c0_31, %c0_32, %c0_33, %c0_34] : memref<4x4x32x8xf32, #tpu.memory_space<vmem>>, vector<1x1x32x8xf32>
    %47 = vector.shape_cast %46 : vector<1x1x32x8xf32> to vector<32x8xf32>
    %cst_35 = arith.constant dense<0.000000e+00> : vector<16x8xf32>
    %48 = tpu.matmul %30, %47, %cst_35 {dimension_numbers = #tpu.dot_dimension_numbers<[1], [0], [0], [1], [0, 0, 1, 1], [], []>} : vector<16x32xf32>, vector<32x8xf32>, vector<16x8xf32> -> vector<16x8xf32>
    %c0_36 = arith.constant 0 : index
    %c0_37 = arith.constant 0 : index
    %c0_38 = arith.constant 0 : index
    %c0_39 = arith.constant 0 : index
    %49 = vector.load %arg7[%c0_36, %c0_37, %c0_38, %c0_39] : memref<4x4x1x8xf32, #tpu.memory_space<vmem>>, vector<1x1x1x8xf32>
    %50 = vector.shape_cast %49 : vector<1x1x1x8xf32> to vector<1x8xf32>
    %51 = vector.broadcast %50 : vector<1x8xf32> to vector<16x8xf32>
    %52 = arith.addf %48, %51 : vector<16x8xf32>
    %cst_40 = arith.constant dense<0.000000e+00> : vector<16x16xf32>
    %53 = tpu.matmul %38, %45, %cst_40 {dimension_numbers = #tpu.dot_dimension_numbers<[1], [1], [0], [0], [0, 0, 1, 0], [], []>} : vector<16x8xf32>, vector<16x8xf32>, vector<16x16xf32> -> vector<16x16xf32>
    %cst_41 = arith.constant 0.353553385 : f32
    %54 = vector.broadcast %cst_41 : f32 to vector<16x16xf32>
    %55 = arith.mulf %53, %54 : vector<16x16xf32>
    %cst_42 = arith.constant -1.000000e+30 : f32
    %56 = vector.broadcast %cst_42 : f32 to vector<16x16xf32>
    %57 = arith.select %4, %55, %56 : vector<16x16xi1>, vector<16x16xf32>
    %cst_43 = arith.constant dense<0xFF800000> : vector<16xf32>
    %58 = vector.multi_reduction <maximumf>, %57, %cst_43 [1] : vector<16x16xf32> to vector<16xf32>
    %59 = vector.shape_cast %58 : vector<16xf32> to vector<16x1xf32>
    %60 = vector.broadcast %59 : vector<16x1xf32> to vector<16x16xf32>
    %61 = arith.subf %57, %60 : vector<16x16xf32>
    %62 = math.exp %61 : vector<16x16xf32>
    %cst_44 = arith.constant dense<0.000000e+00> : vector<16xf32>
    %63 = vector.multi_reduction <add>, %62, %cst_44 [1] : vector<16x16xf32> to vector<16xf32>
    %64 = vector.shape_cast %63 : vector<16xf32> to vector<16x1xf32>
    %65 = tpu.reciprocal %64 {approx = true} : vector<16x1xf32> -> vector<16x1xf32>
    %66 = vector.broadcast %65 : vector<16x1xf32> to vector<16x16xf32>
    %67 = arith.mulf %62, %66 : vector<16x16xf32>
    %cst_45 = arith.constant dense<0.000000e+00> : vector<16x8xf32>
    %68 = tpu.matmul %67, %52, %cst_45 {dimension_numbers = #tpu.dot_dimension_numbers<[1], [0], [0], [1], [0, 0, 1, 1], [], []>} : vector<16x16xf32>, vector<16x8xf32>, vector<16x8xf32> -> vector<16x8xf32>
    %c0_46 = arith.constant 0 : index
    %c0_47 = arith.constant 0 : index
    %c0_48 = arith.constant 0 : index
    %c0_49 = arith.constant 0 : index
    %69 = vector.load %arg8[%c0_46, %c0_47, %c0_48, %c0_49] : memref<4x4x8x32xf32, #tpu.memory_space<vmem>>, vector<1x1x8x32xf32>
    %70 = vector.shape_cast %69 : vector<1x1x8x32xf32> to vector<8x32xf32>
    %cst_50 = arith.constant dense<0.000000e+00> : vector<16x32xf32>
    %71 = tpu.matmul %68, %70, %cst_50 {dimension_numbers = #tpu.dot_dimension_numbers<[1], [0], [0], [1], [0, 0, 1, 1], [], []>} : vector<16x8xf32>, vector<8x32xf32>, vector<16x32xf32> -> vector<16x32xf32>
    %72 = arith.addf %31, %71 : vector<16x32xf32>
    %c0_51 = arith.constant 0 : index
    %c1 = arith.constant 1 : index
    %c0_52 = arith.constant 0 : index
    %c0_53 = arith.constant 0 : index
    %73 = vector.load %arg2[%c0_51, %c1, %c0_52, %c0_53] : memref<4x4x32x8xf32, #tpu.memory_space<vmem>>, vector<1x1x32x8xf32>
    %74 = vector.shape_cast %73 : vector<1x1x32x8xf32> to vector<32x8xf32>
    %cst_54 = arith.constant dense<0.000000e+00> : vector<16x8xf32>
    %75 = tpu.matmul %30, %74, %cst_54 {dimension_numbers = #tpu.dot_dimension_numbers<[1], [0], [0], [1], [0, 0, 1, 1], [], []>} : vector<16x32xf32>, vector<32x8xf32>, vector<16x8xf32> -> vector<16x8xf32>
    %c0_55 = arith.constant 0 : index
    %c1_56 = arith.constant 1 : index
    %c0_57 = arith.constant 0 : index
    %c0_58 = arith.constant 0 : index
    %76 = vector.load %arg3[%c0_55, %c1_56, %c0_57, %c0_58] : memref<4x4x1x8xf32, #tpu.memory_space<vmem>>, vector<1x1x1x8xf32>
    %77 = vector.shape_cast %76 : vector<1x1x1x8xf32> to vector<1x8xf32>
    %78 = vector.broadcast %77 : vector<1x8xf32> to vector<16x8xf32>
    %79 = arith.addf %75, %78 : vector<16x8xf32>
    %c0_59 = arith.constant 0 : index
    %c1_60 = arith.constant 1 : index
    %c0_61 = arith.constant 0 : index
    %c0_62 = arith.constant 0 : index
    %80 = vector.load %arg4[%c0_59, %c1_60, %c0_61, %c0_62] : memref<4x4x32x8xf32, #tpu.memory_space<vmem>>, vector<1x1x32x8xf32>
    %81 = vector.shape_cast %80 : vector<1x1x32x8xf32> to vector<32x8xf32>
    %cst_63 = arith.constant dense<0.000000e+00> : vector<16x8xf32>
    %82 = tpu.matmul %30, %81, %cst_63 {dimension_numbers = #tpu.dot_dimension_numbers<[1], [0], [0], [1], [0, 0, 1, 1], [], []>} : vector<16x32xf32>, vector<32x8xf32>, vector<16x8xf32> -> vector<16x8xf32>
    %c0_64 = arith.constant 0 : index
    %c1_65 = arith.constant 1 : index
    %c0_66 = arith.constant 0 : index
    %c0_67 = arith.constant 0 : index
    %83 = vector.load %arg5[%c0_64, %c1_65, %c0_66, %c0_67] : memref<4x4x1x8xf32, #tpu.memory_space<vmem>>, vector<1x1x1x8xf32>
    %84 = vector.shape_cast %83 : vector<1x1x1x8xf32> to vector<1x8xf32>
    %85 = vector.broadcast %84 : vector<1x8xf32> to vector<16x8xf32>
    %86 = arith.addf %82, %85 : vector<16x8xf32>
    %c0_68 = arith.constant 0 : index
    %c1_69 = arith.constant 1 : index
    %c0_70 = arith.constant 0 : index
    %c0_71 = arith.constant 0 : index
    %87 = vector.load %arg6[%c0_68, %c1_69, %c0_70, %c0_71] : memref<4x4x32x8xf32, #tpu.memory_space<vmem>>, vector<1x1x32x8xf32>
    %88 = vector.shape_cast %87 : vector<1x1x32x8xf32> to vector<32x8xf32>
    %cst_72 = arith.constant dense<0.000000e+00> : vector<16x8xf32>
    %89 = tpu.matmul %30, %88, %cst_72 {dimension_numbers = #tpu.dot_dimension_numbers<[1], [0], [0], [1], [0, 0, 1, 1], [], []>} : vector<16x32xf32>, vector<32x8xf32>, vector<16x8xf32> -> vector<16x8xf32>
    %c0_73 = arith.constant 0 : index
    %c1_74 = arith.constant 1 : index
    %c0_75 = arith.constant 0 : index
    %c0_76 = arith.constant 0 : index
    %90 = vector.load %arg7[%c0_73, %c1_74, %c0_75, %c0_76] : memref<4x4x1x8xf32, #tpu.memory_space<vmem>>, vector<1x1x1x8xf32>
    %91 = vector.shape_cast %90 : vector<1x1x1x8xf32> to vector<1x8xf32>
    %92 = vector.broadcast %91 : vector<1x8xf32> to vector<16x8xf32>
    %93 = arith.addf %89, %92 : vector<16x8xf32>
    %cst_77 = arith.constant dense<0.000000e+00> : vector<16x16xf32>
    %94 = tpu.matmul %79, %86, %cst_77 {dimension_numbers = #tpu.dot_dimension_numbers<[1], [1], [0], [0], [0, 0, 1, 0], [], []>} : vector<16x8xf32>, vector<16x8xf32>, vector<16x16xf32> -> vector<16x16xf32>
    %cst_78 = arith.constant 0.353553385 : f32
    %95 = vector.broadcast %cst_78 : f32 to vector<16x16xf32>
    %96 = arith.mulf %94, %95 : vector<16x16xf32>
    %cst_79 = arith.constant -1.000000e+30 : f32
    %97 = vector.broadcast %cst_79 : f32 to vector<16x16xf32>
    %98 = arith.select %4, %96, %97 : vector<16x16xi1>, vector<16x16xf32>
    %cst_80 = arith.constant dense<0xFF800000> : vector<16xf32>
    %99 = vector.multi_reduction <maximumf>, %98, %cst_80 [1] : vector<16x16xf32> to vector<16xf32>
    %100 = vector.shape_cast %99 : vector<16xf32> to vector<16x1xf32>
    %101 = vector.broadcast %100 : vector<16x1xf32> to vector<16x16xf32>
    %102 = arith.subf %98, %101 : vector<16x16xf32>
    %103 = math.exp %102 : vector<16x16xf32>
    %cst_81 = arith.constant dense<0.000000e+00> : vector<16xf32>
    %104 = vector.multi_reduction <add>, %103, %cst_81 [1] : vector<16x16xf32> to vector<16xf32>
    %105 = vector.shape_cast %104 : vector<16xf32> to vector<16x1xf32>
    %106 = tpu.reciprocal %105 {approx = true} : vector<16x1xf32> -> vector<16x1xf32>
    %107 = vector.broadcast %106 : vector<16x1xf32> to vector<16x16xf32>
    %108 = arith.mulf %103, %107 : vector<16x16xf32>
    %cst_82 = arith.constant dense<0.000000e+00> : vector<16x8xf32>
    %109 = tpu.matmul %108, %93, %cst_82 {dimension_numbers = #tpu.dot_dimension_numbers<[1], [0], [0], [1], [0, 0, 1, 1], [], []>} : vector<16x16xf32>, vector<16x8xf32>, vector<16x8xf32> -> vector<16x8xf32>
    %c0_83 = arith.constant 0 : index
    %c1_84 = arith.constant 1 : index
    %c0_85 = arith.constant 0 : index
    %c0_86 = arith.constant 0 : index
    %110 = vector.load %arg8[%c0_83, %c1_84, %c0_85, %c0_86] : memref<4x4x8x32xf32, #tpu.memory_space<vmem>>, vector<1x1x8x32xf32>
    %111 = vector.shape_cast %110 : vector<1x1x8x32xf32> to vector<8x32xf32>
    %cst_87 = arith.constant dense<0.000000e+00> : vector<16x32xf32>
    %112 = tpu.matmul %109, %111, %cst_87 {dimension_numbers = #tpu.dot_dimension_numbers<[1], [0], [0], [1], [0, 0, 1, 1], [], []>} : vector<16x8xf32>, vector<8x32xf32>, vector<16x32xf32> -> vector<16x32xf32>
    %113 = arith.addf %72, %112 : vector<16x32xf32>
    %c0_88 = arith.constant 0 : index
    %c2 = arith.constant 2 : index
    %c0_89 = arith.constant 0 : index
    %c0_90 = arith.constant 0 : index
    %114 = vector.load %arg2[%c0_88, %c2, %c0_89, %c0_90] : memref<4x4x32x8xf32, #tpu.memory_space<vmem>>, vector<1x1x32x8xf32>
    %115 = vector.shape_cast %114 : vector<1x1x32x8xf32> to vector<32x8xf32>
    %cst_91 = arith.constant dense<0.000000e+00> : vector<16x8xf32>
    %116 = tpu.matmul %30, %115, %cst_91 {dimension_numbers = #tpu.dot_dimension_numbers<[1], [0], [0], [1], [0, 0, 1, 1], [], []>} : vector<16x32xf32>, vector<32x8xf32>, vector<16x8xf32> -> vector<16x8xf32>
    %c0_92 = arith.constant 0 : index
    %c2_93 = arith.constant 2 : index
    %c0_94 = arith.constant 0 : index
    %c0_95 = arith.constant 0 : index
    %117 = vector.load %arg3[%c0_92, %c2_93, %c0_94, %c0_95] : memref<4x4x1x8xf32, #tpu.memory_space<vmem>>, vector<1x1x1x8xf32>
    %118 = vector.shape_cast %117 : vector<1x1x1x8xf32> to vector<1x8xf32>
    %119 = vector.broadcast %118 : vector<1x8xf32> to vector<16x8xf32>
    %120 = arith.addf %116, %119 : vector<16x8xf32>
    %c0_96 = arith.constant 0 : index
    %c2_97 = arith.constant 2 : index
    %c0_98 = arith.constant 0 : index
    %c0_99 = arith.constant 0 : index
    %121 = vector.load %arg4[%c0_96, %c2_97, %c0_98, %c0_99] : memref<4x4x32x8xf32, #tpu.memory_space<vmem>>, vector<1x1x32x8xf32>
    %122 = vector.shape_cast %121 : vector<1x1x32x8xf32> to vector<32x8xf32>
    %cst_100 = arith.constant dense<0.000000e+00> : vector<16x8xf32>
    %123 = tpu.matmul %30, %122, %cst_100 {dimension_numbers = #tpu.dot_dimension_numbers<[1], [0], [0], [1], [0, 0, 1, 1], [], []>} : vector<16x32xf32>, vector<32x8xf32>, vector<16x8xf32> -> vector<16x8xf32>
    %c0_101 = arith.constant 0 : index
    %c2_102 = arith.constant 2 : index
    %c0_103 = arith.constant 0 : index
    %c0_104 = arith.constant 0 : index
    %124 = vector.load %arg5[%c0_101, %c2_102, %c0_103, %c0_104] : memref<4x4x1x8xf32, #tpu.memory_space<vmem>>, vector<1x1x1x8xf32>
    %125 = vector.shape_cast %124 : vector<1x1x1x8xf32> to vector<1x8xf32>
    %126 = vector.broadcast %125 : vector<1x8xf32> to vector<16x8xf32>
    %127 = arith.addf %123, %126 : vector<16x8xf32>
    %c0_105 = arith.constant 0 : index
    %c2_106 = arith.constant 2 : index
    %c0_107 = arith.constant 0 : index
    %c0_108 = arith.constant 0 : index
    %128 = vector.load %arg6[%c0_105, %c2_106, %c0_107, %c0_108] : memref<4x4x32x8xf32, #tpu.memory_space<vmem>>, vector<1x1x32x8xf32>
    %129 = vector.shape_cast %128 : vector<1x1x32x8xf32> to vector<32x8xf32>
    %cst_109 = arith.constant dense<0.000000e+00> : vector<16x8xf32>
    %130 = tpu.matmul %30, %129, %cst_109 {dimension_numbers = #tpu.dot_dimension_numbers<[1], [0], [0], [1], [0, 0, 1, 1], [], []>} : vector<16x32xf32>, vector<32x8xf32>, vector<16x8xf32> -> vector<16x8xf32>
    %c0_110 = arith.constant 0 : index
    %c2_111 = arith.constant 2 : index
    %c0_112 = arith.constant 0 : index
    %c0_113 = arith.constant 0 : index
    %131 = vector.load %arg7[%c0_110, %c2_111, %c0_112, %c0_113] : memref<4x4x1x8xf32, #tpu.memory_space<vmem>>, vector<1x1x1x8xf32>
    %132 = vector.shape_cast %131 : vector<1x1x1x8xf32> to vector<1x8xf32>
    %133 = vector.broadcast %132 : vector<1x8xf32> to vector<16x8xf32>
    %134 = arith.addf %130, %133 : vector<16x8xf32>
    %cst_114 = arith.constant dense<0.000000e+00> : vector<16x16xf32>
    %135 = tpu.matmul %120, %127, %cst_114 {dimension_numbers = #tpu.dot_dimension_numbers<[1], [1], [0], [0], [0, 0, 1, 0], [], []>} : vector<16x8xf32>, vector<16x8xf32>, vector<16x16xf32> -> vector<16x16xf32>
    %cst_115 = arith.constant 0.353553385 : f32
    %136 = vector.broadcast %cst_115 : f32 to vector<16x16xf32>
    %137 = arith.mulf %135, %136 : vector<16x16xf32>
    %cst_116 = arith.constant -1.000000e+30 : f32
    %138 = vector.broadcast %cst_116 : f32 to vector<16x16xf32>
    %139 = arith.select %4, %137, %138 : vector<16x16xi1>, vector<16x16xf32>
    %cst_117 = arith.constant dense<0xFF800000> : vector<16xf32>
    %140 = vector.multi_reduction <maximumf>, %139, %cst_117 [1] : vector<16x16xf32> to vector<16xf32>
    %141 = vector.shape_cast %140 : vector<16xf32> to vector<16x1xf32>
    %142 = vector.broadcast %141 : vector<16x1xf32> to vector<16x16xf32>
    %143 = arith.subf %139, %142 : vector<16x16xf32>
    %144 = math.exp %143 : vector<16x16xf32>
    %cst_118 = arith.constant dense<0.000000e+00> : vector<16xf32>
    %145 = vector.multi_reduction <add>, %144, %cst_118 [1] : vector<16x16xf32> to vector<16xf32>
    %146 = vector.shape_cast %145 : vector<16xf32> to vector<16x1xf32>
    %147 = tpu.reciprocal %146 {approx = true} : vector<16x1xf32> -> vector<16x1xf32>
    %148 = vector.broadcast %147 : vector<16x1xf32> to vector<16x16xf32>
    %149 = arith.mulf %144, %148 : vector<16x16xf32>
    %cst_119 = arith.constant dense<0.000000e+00> : vector<16x8xf32>
    %150 = tpu.matmul %149, %134, %cst_119 {dimension_numbers = #tpu.dot_dimension_numbers<[1], [0], [0], [1], [0, 0, 1, 1], [], []>} : vector<16x16xf32>, vector<16x8xf32>, vector<16x8xf32> -> vector<16x8xf32>
    %c0_120 = arith.constant 0 : index
    %c2_121 = arith.constant 2 : index
    %c0_122 = arith.constant 0 : index
    %c0_123 = arith.constant 0 : index
    %151 = vector.load %arg8[%c0_120, %c2_121, %c0_122, %c0_123] : memref<4x4x8x32xf32, #tpu.memory_space<vmem>>, vector<1x1x8x32xf32>
    %152 = vector.shape_cast %151 : vector<1x1x8x32xf32> to vector<8x32xf32>
    %cst_124 = arith.constant dense<0.000000e+00> : vector<16x32xf32>
    %153 = tpu.matmul %150, %152, %cst_124 {dimension_numbers = #tpu.dot_dimension_numbers<[1], [0], [0], [1], [0, 0, 1, 1], [], []>} : vector<16x8xf32>, vector<8x32xf32>, vector<16x32xf32> -> vector<16x32xf32>
    %154 = arith.addf %113, %153 : vector<16x32xf32>
    %c0_125 = arith.constant 0 : index
    %c3 = arith.constant 3 : index
    %c0_126 = arith.constant 0 : index
    %c0_127 = arith.constant 0 : index
    %155 = vector.load %arg2[%c0_125, %c3, %c0_126, %c0_127] : memref<4x4x32x8xf32, #tpu.memory_space<vmem>>, vector<1x1x32x8xf32>
    %156 = vector.shape_cast %155 : vector<1x1x32x8xf32> to vector<32x8xf32>
    %cst_128 = arith.constant dense<0.000000e+00> : vector<16x8xf32>
    %157 = tpu.matmul %30, %156, %cst_128 {dimension_numbers = #tpu.dot_dimension_numbers<[1], [0], [0], [1], [0, 0, 1, 1], [], []>} : vector<16x32xf32>, vector<32x8xf32>, vector<16x8xf32> -> vector<16x8xf32>
    %c0_129 = arith.constant 0 : index
    %c3_130 = arith.constant 3 : index
    %c0_131 = arith.constant 0 : index
    %c0_132 = arith.constant 0 : index
    %158 = vector.load %arg3[%c0_129, %c3_130, %c0_131, %c0_132] : memref<4x4x1x8xf32, #tpu.memory_space<vmem>>, vector<1x1x1x8xf32>
    %159 = vector.shape_cast %158 : vector<1x1x1x8xf32> to vector<1x8xf32>
    %160 = vector.broadcast %159 : vector<1x8xf32> to vector<16x8xf32>
    %161 = arith.addf %157, %160 : vector<16x8xf32>
    %c0_133 = arith.constant 0 : index
    %c3_134 = arith.constant 3 : index
    %c0_135 = arith.constant 0 : index
    %c0_136 = arith.constant 0 : index
    %162 = vector.load %arg4[%c0_133, %c3_134, %c0_135, %c0_136] : memref<4x4x32x8xf32, #tpu.memory_space<vmem>>, vector<1x1x32x8xf32>
    %163 = vector.shape_cast %162 : vector<1x1x32x8xf32> to vector<32x8xf32>
    %cst_137 = arith.constant dense<0.000000e+00> : vector<16x8xf32>
    %164 = tpu.matmul %30, %163, %cst_137 {dimension_numbers = #tpu.dot_dimension_numbers<[1], [0], [0], [1], [0, 0, 1, 1], [], []>} : vector<16x32xf32>, vector<32x8xf32>, vector<16x8xf32> -> vector<16x8xf32>
    %c0_138 = arith.constant 0 : index
    %c3_139 = arith.constant 3 : index
    %c0_140 = arith.constant 0 : index
    %c0_141 = arith.constant 0 : index
    %165 = vector.load %arg5[%c0_138, %c3_139, %c0_140, %c0_141] : memref<4x4x1x8xf32, #tpu.memory_space<vmem>>, vector<1x1x1x8xf32>
    %166 = vector.shape_cast %165 : vector<1x1x1x8xf32> to vector<1x8xf32>
    %167 = vector.broadcast %166 : vector<1x8xf32> to vector<16x8xf32>
    %168 = arith.addf %164, %167 : vector<16x8xf32>
    %c0_142 = arith.constant 0 : index
    %c3_143 = arith.constant 3 : index
    %c0_144 = arith.constant 0 : index
    %c0_145 = arith.constant 0 : index
    %169 = vector.load %arg6[%c0_142, %c3_143, %c0_144, %c0_145] : memref<4x4x32x8xf32, #tpu.memory_space<vmem>>, vector<1x1x32x8xf32>
    %170 = vector.shape_cast %169 : vector<1x1x32x8xf32> to vector<32x8xf32>
    %cst_146 = arith.constant dense<0.000000e+00> : vector<16x8xf32>
    %171 = tpu.matmul %30, %170, %cst_146 {dimension_numbers = #tpu.dot_dimension_numbers<[1], [0], [0], [1], [0, 0, 1, 1], [], []>} : vector<16x32xf32>, vector<32x8xf32>, vector<16x8xf32> -> vector<16x8xf32>
    %c0_147 = arith.constant 0 : index
    %c3_148 = arith.constant 3 : index
    %c0_149 = arith.constant 0 : index
    %c0_150 = arith.constant 0 : index
    %172 = vector.load %arg7[%c0_147, %c3_148, %c0_149, %c0_150] : memref<4x4x1x8xf32, #tpu.memory_space<vmem>>, vector<1x1x1x8xf32>
    %173 = vector.shape_cast %172 : vector<1x1x1x8xf32> to vector<1x8xf32>
    %174 = vector.broadcast %173 : vector<1x8xf32> to vector<16x8xf32>
    %175 = arith.addf %171, %174 : vector<16x8xf32>
    %cst_151 = arith.constant dense<0.000000e+00> : vector<16x16xf32>
    %176 = tpu.matmul %161, %168, %cst_151 {dimension_numbers = #tpu.dot_dimension_numbers<[1], [1], [0], [0], [0, 0, 1, 0], [], []>} : vector<16x8xf32>, vector<16x8xf32>, vector<16x16xf32> -> vector<16x16xf32>
    %cst_152 = arith.constant 0.353553385 : f32
    %177 = vector.broadcast %cst_152 : f32 to vector<16x16xf32>
    %178 = arith.mulf %176, %177 : vector<16x16xf32>
    %cst_153 = arith.constant -1.000000e+30 : f32
    %179 = vector.broadcast %cst_153 : f32 to vector<16x16xf32>
    %180 = arith.select %4, %178, %179 : vector<16x16xi1>, vector<16x16xf32>
    %cst_154 = arith.constant dense<0xFF800000> : vector<16xf32>
    %181 = vector.multi_reduction <maximumf>, %180, %cst_154 [1] : vector<16x16xf32> to vector<16xf32>
    %182 = vector.shape_cast %181 : vector<16xf32> to vector<16x1xf32>
    %183 = vector.broadcast %182 : vector<16x1xf32> to vector<16x16xf32>
    %184 = arith.subf %180, %183 : vector<16x16xf32>
    %185 = math.exp %184 : vector<16x16xf32>
    %cst_155 = arith.constant dense<0.000000e+00> : vector<16xf32>
    %186 = vector.multi_reduction <add>, %185, %cst_155 [1] : vector<16x16xf32> to vector<16xf32>
    %187 = vector.shape_cast %186 : vector<16xf32> to vector<16x1xf32>
    %188 = tpu.reciprocal %187 {approx = true} : vector<16x1xf32> -> vector<16x1xf32>
    %189 = vector.broadcast %188 : vector<16x1xf32> to vector<16x16xf32>
    %190 = arith.mulf %185, %189 : vector<16x16xf32>
    %cst_156 = arith.constant dense<0.000000e+00> : vector<16x8xf32>
    %191 = tpu.matmul %190, %175, %cst_156 {dimension_numbers = #tpu.dot_dimension_numbers<[1], [0], [0], [1], [0, 0, 1, 1], [], []>} : vector<16x16xf32>, vector<16x8xf32>, vector<16x8xf32> -> vector<16x8xf32>
    %c0_157 = arith.constant 0 : index
    %c3_158 = arith.constant 3 : index
    %c0_159 = arith.constant 0 : index
    %c0_160 = arith.constant 0 : index
    %192 = vector.load %arg8[%c0_157, %c3_158, %c0_159, %c0_160] : memref<4x4x8x32xf32, #tpu.memory_space<vmem>>, vector<1x1x8x32xf32>
    %193 = vector.shape_cast %192 : vector<1x1x8x32xf32> to vector<8x32xf32>
    %cst_161 = arith.constant dense<0.000000e+00> : vector<16x32xf32>
    %194 = tpu.matmul %191, %193, %cst_161 {dimension_numbers = #tpu.dot_dimension_numbers<[1], [0], [0], [1], [0, 0, 1, 1], [], []>} : vector<16x8xf32>, vector<8x32xf32>, vector<16x32xf32> -> vector<16x32xf32>
    %195 = arith.addf %154, %194 : vector<16x32xf32>
    %196 = arith.addf %1, %195 : vector<16x32xf32>
    %c0_162 = arith.constant 0 : index
    %c0_163 = arith.constant 0 : index
    %c0_164 = arith.constant 0 : index
    %197 = vector.load %arg9[%c0_162, %c0_163, %c0_164] : memref<4x1x32xf32, #tpu.memory_space<vmem>>, vector<1x1x32xf32>
    %198 = vector.shape_cast %197 : vector<1x1x32xf32> to vector<1x32xf32>
    %199 = vector.broadcast %198 : vector<1x32xf32> to vector<16x32xf32>
    %200 = arith.addf %196, %199 : vector<16x32xf32>
    %c0_165 = arith.constant 0 : index
    %c0_166 = arith.constant 0 : index
    %c0_167 = arith.constant 0 : index
    %201 = vector.load %arg12[%c0_165, %c0_166, %c0_167] : memref<4x1x32xf32, #tpu.memory_space<vmem>>, vector<1x1x32xf32>
    %202 = vector.shape_cast %201 : vector<1x1x32xf32> to vector<1x32xf32>
    %c0_168 = arith.constant 0 : index
    %c0_169 = arith.constant 0 : index
    %c0_170 = arith.constant 0 : index
    %203 = vector.load %arg13[%c0_168, %c0_169, %c0_170] : memref<4x1x32xf32, #tpu.memory_space<vmem>>, vector<1x1x32xf32>
    %204 = vector.shape_cast %203 : vector<1x1x32xf32> to vector<1x32xf32>
    %cst_171 = arith.constant dense<0.000000e+00> : vector<16xf32>
    %205 = vector.multi_reduction <add>, %200, %cst_171 [1] : vector<16x32xf32> to vector<16xf32>
    %206 = vector.shape_cast %205 : vector<16xf32> to vector<16x1xf32>
    %cst_172 = arith.constant 3.200000e+01 : f32
    %207 = vector.broadcast %cst_172 : f32 to vector<16x1xf32>
    %208 = arith.divf %206, %207 : vector<16x1xf32>
    %209 = vector.broadcast %208 : vector<16x1xf32> to vector<16x32xf32>
    %210 = arith.subf %200, %209 : vector<16x32xf32>
    %211 = arith.mulf %210, %210 : vector<16x32xf32>
    %cst_173 = arith.constant dense<0.000000e+00> : vector<16xf32>
    %212 = vector.multi_reduction <add>, %211, %cst_173 [1] : vector<16x32xf32> to vector<16xf32>
    %213 = vector.shape_cast %212 : vector<16xf32> to vector<16x1xf32>
    %cst_174 = arith.constant 3.200000e+01 : f32
    %214 = vector.broadcast %cst_174 : f32 to vector<16x1xf32>
    %215 = arith.divf %213, %214 : vector<16x1xf32>
    %216 = vector.broadcast %208 : vector<16x1xf32> to vector<16x32xf32>
    %217 = arith.subf %200, %216 : vector<16x32xf32>
    %cst_175 = arith.constant 9.99999974E-6 : f32
    %218 = vector.broadcast %cst_175 : f32 to vector<16x1xf32>
    %219 = arith.addf %215, %218 : vector<16x1xf32>
    %220 = math.rsqrt %219 : vector<16x1xf32>
    %221 = vector.broadcast %220 : vector<16x1xf32> to vector<16x32xf32>
    %222 = arith.mulf %217, %221 : vector<16x32xf32>
    %223 = vector.broadcast %202 : vector<1x32xf32> to vector<16x32xf32>
    %224 = arith.mulf %222, %223 : vector<16x32xf32>
    %225 = vector.broadcast %204 : vector<1x32xf32> to vector<16x32xf32>
    %226 = arith.addf %224, %225 : vector<16x32xf32>
    %c0_176 = arith.constant 0 : index
    %c0_177 = arith.constant 0 : index
    %c0_178 = arith.constant 0 : index
    %227 = vector.load %arg14[%c0_176, %c0_177, %c0_178] : memref<4x32x64xf32, #tpu.memory_space<vmem>>, vector<1x32x64xf32>
    %228 = vector.shape_cast %227 : vector<1x32x64xf32> to vector<32x64xf32>
    %cst_179 = arith.constant dense<0.000000e+00> : vector<16x64xf32>
    %229 = tpu.matmul %226, %228, %cst_179 {dimension_numbers = #tpu.dot_dimension_numbers<[1], [0], [0], [1], [0, 0, 1, 1], [], []>} : vector<16x32xf32>, vector<32x64xf32>, vector<16x64xf32> -> vector<16x64xf32>
    %c0_180 = arith.constant 0 : index
    %c0_181 = arith.constant 0 : index
    %c0_182 = arith.constant 0 : index
    %230 = vector.load %arg15[%c0_180, %c0_181, %c0_182] : memref<4x1x64xf32, #tpu.memory_space<vmem>>, vector<1x1x64xf32>
    %231 = vector.shape_cast %230 : vector<1x1x64xf32> to vector<1x64xf32>
    %232 = vector.broadcast %231 : vector<1x64xf32> to vector<16x64xf32>
    %233 = arith.addf %229, %232 : vector<16x64xf32>
    %cst_183 = arith.constant 5.000000e-01 : f32
    %234 = vector.broadcast %cst_183 : f32 to vector<16x64xf32>
    %235 = arith.mulf %234, %233 : vector<16x64xf32>
    %cst_184 = arith.constant 0.707106769 : f32
    %236 = vector.broadcast %cst_184 : f32 to vector<16x64xf32>
    %237 = arith.mulf %233, %236 : vector<16x64xf32>
    %cst_185 = arith.constant 0.000000e+00 : f32
    %238 = vector.broadcast %cst_185 : f32 to vector<16x64xf32>
    %239 = arith.cmpf oge, %237, %238 : vector<16x64xf32>
    %cst_186 = arith.constant 1.000000e+00 : f32
    %cst_187 = arith.constant -1.000000e+00 : f32
    %240 = vector.broadcast %cst_186 : f32 to vector<16x64xf32>
    %241 = vector.broadcast %cst_187 : f32 to vector<16x64xf32>
    %242 = arith.select %239, %240, %241 : vector<16x64xi1>, vector<16x64xf32>
    %243 = math.absf %237 : vector<16x64xf32>
    %cst_188 = arith.constant 0.327591091 : f32
    %244 = vector.broadcast %cst_188 : f32 to vector<16x64xf32>
    %245 = arith.mulf %244, %243 : vector<16x64xf32>
    %cst_189 = arith.constant 1.000000e+00 : f32
    %246 = vector.broadcast %cst_189 : f32 to vector<16x64xf32>
    %247 = arith.addf %246, %245 : vector<16x64xf32>
    %cst_190 = arith.constant 1.000000e+00 : f32
    %248 = vector.broadcast %cst_190 : f32 to vector<16x64xf32>
    %249 = arith.divf %248, %247 : vector<16x64xf32>
    %cst_191 = arith.constant 1.06140542 : f32
    %250 = vector.broadcast %cst_191 : f32 to vector<16x64xf32>
    %251 = arith.mulf %250, %249 : vector<16x64xf32>
    %cst_192 = arith.constant -1.45315206 : f32
    %252 = vector.broadcast %cst_192 : f32 to vector<16x64xf32>
    %253 = arith.addf %251, %252 : vector<16x64xf32>
    %254 = arith.mulf %253, %249 : vector<16x64xf32>
    %cst_193 = arith.constant 1.42141378 : f32
    %255 = vector.broadcast %cst_193 : f32 to vector<16x64xf32>
    %256 = arith.addf %254, %255 : vector<16x64xf32>
    %257 = arith.mulf %256, %249 : vector<16x64xf32>
    %cst_194 = arith.constant -0.284496725 : f32
    %258 = vector.broadcast %cst_194 : f32 to vector<16x64xf32>
    %259 = arith.addf %257, %258 : vector<16x64xf32>
    %260 = arith.mulf %259, %249 : vector<16x64xf32>
    %cst_195 = arith.constant 0.254829586 : f32
    %261 = vector.broadcast %cst_195 : f32 to vector<16x64xf32>
    %262 = arith.addf %260, %261 : vector<16x64xf32>
    %263 = arith.mulf %262, %249 : vector<16x64xf32>
    %cst_196 = arith.constant 0.000000e+00 : f32
    %264 = vector.broadcast %cst_196 : f32 to vector<16x64xf32>
    %265 = arith.subf %264, %243 : vector<16x64xf32>
    %266 = arith.mulf %265, %243 : vector<16x64xf32>
    %267 = math.exp %266 : vector<16x64xf32>
    %268 = arith.mulf %263, %267 : vector<16x64xf32>
    %cst_197 = arith.constant 1.000000e+00 : f32
    %269 = vector.broadcast %cst_197 : f32 to vector<16x64xf32>
    %270 = arith.subf %269, %268 : vector<16x64xf32>
    %271 = arith.mulf %242, %270 : vector<16x64xf32>
    %cst_198 = arith.constant 1.000000e+00 : f32
    %272 = vector.broadcast %cst_198 : f32 to vector<16x64xf32>
    %273 = arith.addf %272, %271 : vector<16x64xf32>
    %274 = arith.mulf %235, %273 : vector<16x64xf32>
    %c0_199 = arith.constant 0 : index
    %c0_200 = arith.constant 0 : index
    %c0_201 = arith.constant 0 : index
    %275 = vector.load %arg16[%c0_199, %c0_200, %c0_201] : memref<4x64x32xf32, #tpu.memory_space<vmem>>, vector<1x64x32xf32>
    %276 = vector.shape_cast %275 : vector<1x64x32xf32> to vector<64x32xf32>
    %cst_202 = arith.constant dense<0.000000e+00> : vector<16x32xf32>
    %277 = tpu.matmul %274, %276, %cst_202 {dimension_numbers = #tpu.dot_dimension_numbers<[1], [0], [0], [1], [0, 0, 1, 1], [], []>} : vector<16x64xf32>, vector<64x32xf32>, vector<16x32xf32> -> vector<16x32xf32>
    %278 = arith.addf %200, %277 : vector<16x32xf32>
    %c0_203 = arith.constant 0 : index
    %c0_204 = arith.constant 0 : index
    %c0_205 = arith.constant 0 : index
    %279 = vector.load %arg17[%c0_203, %c0_204, %c0_205] : memref<4x1x32xf32, #tpu.memory_space<vmem>>, vector<1x1x32xf32>
    %280 = vector.shape_cast %279 : vector<1x1x32xf32> to vector<1x32xf32>
    %281 = vector.broadcast %280 : vector<1x32xf32> to vector<16x32xf32>
    %282 = arith.addf %278, %281 : vector<16x32xf32>
    %c1_206 = arith.constant 1 : index
    %c0_207 = arith.constant 0 : index
    %c0_208 = arith.constant 0 : index
    %283 = vector.load %arg10[%c1_206, %c0_207, %c0_208] : memref<4x1x32xf32, #tpu.memory_space<vmem>>, vector<1x1x32xf32>
    %284 = vector.shape_cast %283 : vector<1x1x32xf32> to vector<1x32xf32>
    %c1_209 = arith.constant 1 : index
    %c0_210 = arith.constant 0 : index
    %c0_211 = arith.constant 0 : index
    %285 = vector.load %arg11[%c1_209, %c0_210, %c0_211] : memref<4x1x32xf32, #tpu.memory_space<vmem>>, vector<1x1x32xf32>
    %286 = vector.shape_cast %285 : vector<1x1x32xf32> to vector<1x32xf32>
    %cst_212 = arith.constant dense<0.000000e+00> : vector<16xf32>
    %287 = vector.multi_reduction <add>, %282, %cst_212 [1] : vector<16x32xf32> to vector<16xf32>
    %288 = vector.shape_cast %287 : vector<16xf32> to vector<16x1xf32>
    %cst_213 = arith.constant 3.200000e+01 : f32
    %289 = vector.broadcast %cst_213 : f32 to vector<16x1xf32>
    %290 = arith.divf %288, %289 : vector<16x1xf32>
    %291 = vector.broadcast %290 : vector<16x1xf32> to vector<16x32xf32>
    %292 = arith.subf %282, %291 : vector<16x32xf32>
    %293 = arith.mulf %292, %292 : vector<16x32xf32>
    %cst_214 = arith.constant dense<0.000000e+00> : vector<16xf32>
    %294 = vector.multi_reduction <add>, %293, %cst_214 [1] : vector<16x32xf32> to vector<16xf32>
    %295 = vector.shape_cast %294 : vector<16xf32> to vector<16x1xf32>
    %cst_215 = arith.constant 3.200000e+01 : f32
    %296 = vector.broadcast %cst_215 : f32 to vector<16x1xf32>
    %297 = arith.divf %295, %296 : vector<16x1xf32>
    %298 = vector.broadcast %290 : vector<16x1xf32> to vector<16x32xf32>
    %299 = arith.subf %282, %298 : vector<16x32xf32>
    %cst_216 = arith.constant 9.99999974E-6 : f32
    %300 = vector.broadcast %cst_216 : f32 to vector<16x1xf32>
    %301 = arith.addf %297, %300 : vector<16x1xf32>
    %302 = math.rsqrt %301 : vector<16x1xf32>
    %303 = vector.broadcast %302 : vector<16x1xf32> to vector<16x32xf32>
    %304 = arith.mulf %299, %303 : vector<16x32xf32>
    %305 = vector.broadcast %284 : vector<1x32xf32> to vector<16x32xf32>
    %306 = arith.mulf %304, %305 : vector<16x32xf32>
    %307 = vector.broadcast %286 : vector<1x32xf32> to vector<16x32xf32>
    %308 = arith.addf %306, %307 : vector<16x32xf32>
    %cst_217 = arith.constant 0.000000e+00 : f32
    %309 = vector.broadcast %cst_217 : f32 to vector<16x32xf32>
    %c1_218 = arith.constant 1 : index
    %c0_219 = arith.constant 0 : index
    %c0_220 = arith.constant 0 : index
    %c0_221 = arith.constant 0 : index
    %310 = vector.load %arg2[%c1_218, %c0_219, %c0_220, %c0_221] : memref<4x4x32x8xf32, #tpu.memory_space<vmem>>, vector<1x1x32x8xf32>
    %311 = vector.shape_cast %310 : vector<1x1x32x8xf32> to vector<32x8xf32>
    %cst_222 = arith.constant dense<0.000000e+00> : vector<16x8xf32>
    %312 = tpu.matmul %308, %311, %cst_222 {dimension_numbers = #tpu.dot_dimension_numbers<[1], [0], [0], [1], [0, 0, 1, 1], [], []>} : vector<16x32xf32>, vector<32x8xf32>, vector<16x8xf32> -> vector<16x8xf32>
    %c1_223 = arith.constant 1 : index
    %c0_224 = arith.constant 0 : index
    %c0_225 = arith.constant 0 : index
    %c0_226 = arith.constant 0 : index
    %313 = vector.load %arg3[%c1_223, %c0_224, %c0_225, %c0_226] : memref<4x4x1x8xf32, #tpu.memory_space<vmem>>, vector<1x1x1x8xf32>
    %314 = vector.shape_cast %313 : vector<1x1x1x8xf32> to vector<1x8xf32>
    %315 = vector.broadcast %314 : vector<1x8xf32> to vector<16x8xf32>
    %316 = arith.addf %312, %315 : vector<16x8xf32>
    %c1_227 = arith.constant 1 : index
    %c0_228 = arith.constant 0 : index
    %c0_229 = arith.constant 0 : index
    %c0_230 = arith.constant 0 : index
    %317 = vector.load %arg4[%c1_227, %c0_228, %c0_229, %c0_230] : memref<4x4x32x8xf32, #tpu.memory_space<vmem>>, vector<1x1x32x8xf32>
    %318 = vector.shape_cast %317 : vector<1x1x32x8xf32> to vector<32x8xf32>
    %cst_231 = arith.constant dense<0.000000e+00> : vector<16x8xf32>
    %319 = tpu.matmul %308, %318, %cst_231 {dimension_numbers = #tpu.dot_dimension_numbers<[1], [0], [0], [1], [0, 0, 1, 1], [], []>} : vector<16x32xf32>, vector<32x8xf32>, vector<16x8xf32> -> vector<16x8xf32>
    %c1_232 = arith.constant 1 : index
    %c0_233 = arith.constant 0 : index
    %c0_234 = arith.constant 0 : index
    %c0_235 = arith.constant 0 : index
    %320 = vector.load %arg5[%c1_232, %c0_233, %c0_234, %c0_235] : memref<4x4x1x8xf32, #tpu.memory_space<vmem>>, vector<1x1x1x8xf32>
    %321 = vector.shape_cast %320 : vector<1x1x1x8xf32> to vector<1x8xf32>
    %322 = vector.broadcast %321 : vector<1x8xf32> to vector<16x8xf32>
    %323 = arith.addf %319, %322 : vector<16x8xf32>
    %c1_236 = arith.constant 1 : index
    %c0_237 = arith.constant 0 : index
    %c0_238 = arith.constant 0 : index
    %c0_239 = arith.constant 0 : index
    %324 = vector.load %arg6[%c1_236, %c0_237, %c0_238, %c0_239] : memref<4x4x32x8xf32, #tpu.memory_space<vmem>>, vector<1x1x32x8xf32>
    %325 = vector.shape_cast %324 : vector<1x1x32x8xf32> to vector<32x8xf32>
    %cst_240 = arith.constant dense<0.000000e+00> : vector<16x8xf32>
    %326 = tpu.matmul %308, %325, %cst_240 {dimension_numbers = #tpu.dot_dimension_numbers<[1], [0], [0], [1], [0, 0, 1, 1], [], []>} : vector<16x32xf32>, vector<32x8xf32>, vector<16x8xf32> -> vector<16x8xf32>
    %c1_241 = arith.constant 1 : index
    %c0_242 = arith.constant 0 : index
    %c0_243 = arith.constant 0 : index
    %c0_244 = arith.constant 0 : index
    %327 = vector.load %arg7[%c1_241, %c0_242, %c0_243, %c0_244] : memref<4x4x1x8xf32, #tpu.memory_space<vmem>>, vector<1x1x1x8xf32>
    %328 = vector.shape_cast %327 : vector<1x1x1x8xf32> to vector<1x8xf32>
    %329 = vector.broadcast %328 : vector<1x8xf32> to vector<16x8xf32>
    %330 = arith.addf %326, %329 : vector<16x8xf32>
    %cst_245 = arith.constant dense<0.000000e+00> : vector<16x16xf32>
    %331 = tpu.matmul %316, %323, %cst_245 {dimension_numbers = #tpu.dot_dimension_numbers<[1], [1], [0], [0], [0, 0, 1, 0], [], []>} : vector<16x8xf32>, vector<16x8xf32>, vector<16x16xf32> -> vector<16x16xf32>
    %cst_246 = arith.constant 0.353553385 : f32
    %332 = vector.broadcast %cst_246 : f32 to vector<16x16xf32>
    %333 = arith.mulf %331, %332 : vector<16x16xf32>
    %cst_247 = arith.constant -1.000000e+30 : f32
    %334 = vector.broadcast %cst_247 : f32 to vector<16x16xf32>
    %335 = arith.select %4, %333, %334 : vector<16x16xi1>, vector<16x16xf32>
    %cst_248 = arith.constant dense<0xFF800000> : vector<16xf32>
    %336 = vector.multi_reduction <maximumf>, %335, %cst_248 [1] : vector<16x16xf32> to vector<16xf32>
    %337 = vector.shape_cast %336 : vector<16xf32> to vector<16x1xf32>
    %338 = vector.broadcast %337 : vector<16x1xf32> to vector<16x16xf32>
    %339 = arith.subf %335, %338 : vector<16x16xf32>
    %340 = math.exp %339 : vector<16x16xf32>
    %cst_249 = arith.constant dense<0.000000e+00> : vector<16xf32>
    %341 = vector.multi_reduction <add>, %340, %cst_249 [1] : vector<16x16xf32> to vector<16xf32>
    %342 = vector.shape_cast %341 : vector<16xf32> to vector<16x1xf32>
    %343 = tpu.reciprocal %342 {approx = true} : vector<16x1xf32> -> vector<16x1xf32>
    %344 = vector.broadcast %343 : vector<16x1xf32> to vector<16x16xf32>
    %345 = arith.mulf %340, %344 : vector<16x16xf32>
    %cst_250 = arith.constant dense<0.000000e+00> : vector<16x8xf32>
    %346 = tpu.matmul %345, %330, %cst_250 {dimension_numbers = #tpu.dot_dimension_numbers<[1], [0], [0], [1], [0, 0, 1, 1], [], []>} : vector<16x16xf32>, vector<16x8xf32>, vector<16x8xf32> -> vector<16x8xf32>
    %c1_251 = arith.constant 1 : index
    %c0_252 = arith.constant 0 : index
    %c0_253 = arith.constant 0 : index
    %c0_254 = arith.constant 0 : index
    %347 = vector.load %arg8[%c1_251, %c0_252, %c0_253, %c0_254] : memref<4x4x8x32xf32, #tpu.memory_space<vmem>>, vector<1x1x8x32xf32>
    %348 = vector.shape_cast %347 : vector<1x1x8x32xf32> to vector<8x32xf32>
    %cst_255 = arith.constant dense<0.000000e+00> : vector<16x32xf32>
    %349 = tpu.matmul %346, %348, %cst_255 {dimension_numbers = #tpu.dot_dimension_numbers<[1], [0], [0], [1], [0, 0, 1, 1], [], []>} : vector<16x8xf32>, vector<8x32xf32>, vector<16x32xf32> -> vector<16x32xf32>
    %350 = arith.addf %309, %349 : vector<16x32xf32>
    %c1_256 = arith.constant 1 : index
    %c1_257 = arith.constant 1 : index
    %c0_258 = arith.constant 0 : index
    %c0_259 = arith.constant 0 : index
    %351 = vector.load %arg2[%c1_256, %c1_257, %c0_258, %c0_259] : memref<4x4x32x8xf32, #tpu.memory_space<vmem>>, vector<1x1x32x8xf32>
    %352 = vector.shape_cast %351 : vector<1x1x32x8xf32> to vector<32x8xf32>
    %cst_260 = arith.constant dense<0.000000e+00> : vector<16x8xf32>
    %353 = tpu.matmul %308, %352, %cst_260 {dimension_numbers = #tpu.dot_dimension_numbers<[1], [0], [0], [1], [0, 0, 1, 1], [], []>} : vector<16x32xf32>, vector<32x8xf32>, vector<16x8xf32> -> vector<16x8xf32>
    %c1_261 = arith.constant 1 : index
    %c1_262 = arith.constant 1 : index
    %c0_263 = arith.constant 0 : index
    %c0_264 = arith.constant 0 : index
    %354 = vector.load %arg3[%c1_261, %c1_262, %c0_263, %c0_264] : memref<4x4x1x8xf32, #tpu.memory_space<vmem>>, vector<1x1x1x8xf32>
    %355 = vector.shape_cast %354 : vector<1x1x1x8xf32> to vector<1x8xf32>
    %356 = vector.broadcast %355 : vector<1x8xf32> to vector<16x8xf32>
    %357 = arith.addf %353, %356 : vector<16x8xf32>
    %c1_265 = arith.constant 1 : index
    %c1_266 = arith.constant 1 : index
    %c0_267 = arith.constant 0 : index
    %c0_268 = arith.constant 0 : index
    %358 = vector.load %arg4[%c1_265, %c1_266, %c0_267, %c0_268] : memref<4x4x32x8xf32, #tpu.memory_space<vmem>>, vector<1x1x32x8xf32>
    %359 = vector.shape_cast %358 : vector<1x1x32x8xf32> to vector<32x8xf32>
    %cst_269 = arith.constant dense<0.000000e+00> : vector<16x8xf32>
    %360 = tpu.matmul %308, %359, %cst_269 {dimension_numbers = #tpu.dot_dimension_numbers<[1], [0], [0], [1], [0, 0, 1, 1], [], []>} : vector<16x32xf32>, vector<32x8xf32>, vector<16x8xf32> -> vector<16x8xf32>
    %c1_270 = arith.constant 1 : index
    %c1_271 = arith.constant 1 : index
    %c0_272 = arith.constant 0 : index
    %c0_273 = arith.constant 0 : index
    %361 = vector.load %arg5[%c1_270, %c1_271, %c0_272, %c0_273] : memref<4x4x1x8xf32, #tpu.memory_space<vmem>>, vector<1x1x1x8xf32>
    %362 = vector.shape_cast %361 : vector<1x1x1x8xf32> to vector<1x8xf32>
    %363 = vector.broadcast %362 : vector<1x8xf32> to vector<16x8xf32>
    %364 = arith.addf %360, %363 : vector<16x8xf32>
    %c1_274 = arith.constant 1 : index
    %c1_275 = arith.constant 1 : index
    %c0_276 = arith.constant 0 : index
    %c0_277 = arith.constant 0 : index
    %365 = vector.load %arg6[%c1_274, %c1_275, %c0_276, %c0_277] : memref<4x4x32x8xf32, #tpu.memory_space<vmem>>, vector<1x1x32x8xf32>
    %366 = vector.shape_cast %365 : vector<1x1x32x8xf32> to vector<32x8xf32>
    %cst_278 = arith.constant dense<0.000000e+00> : vector<16x8xf32>
    %367 = tpu.matmul %308, %366, %cst_278 {dimension_numbers = #tpu.dot_dimension_numbers<[1], [0], [0], [1], [0, 0, 1, 1], [], []>} : vector<16x32xf32>, vector<32x8xf32>, vector<16x8xf32> -> vector<16x8xf32>
    %c1_279 = arith.constant 1 : index
    %c1_280 = arith.constant 1 : index
    %c0_281 = arith.constant 0 : index
    %c0_282 = arith.constant 0 : index
    %368 = vector.load %arg7[%c1_279, %c1_280, %c0_281, %c0_282] : memref<4x4x1x8xf32, #tpu.memory_space<vmem>>, vector<1x1x1x8xf32>
    %369 = vector.shape_cast %368 : vector<1x1x1x8xf32> to vector<1x8xf32>
    %370 = vector.broadcast %369 : vector<1x8xf32> to vector<16x8xf32>
    %371 = arith.addf %367, %370 : vector<16x8xf32>
    %cst_283 = arith.constant dense<0.000000e+00> : vector<16x16xf32>
    %372 = tpu.matmul %357, %364, %cst_283 {dimension_numbers = #tpu.dot_dimension_numbers<[1], [1], [0], [0], [0, 0, 1, 0], [], []>} : vector<16x8xf32>, vector<16x8xf32>, vector<16x16xf32> -> vector<16x16xf32>
    %cst_284 = arith.constant 0.353553385 : f32
    %373 = vector.broadcast %cst_284 : f32 to vector<16x16xf32>
    %374 = arith.mulf %372, %373 : vector<16x16xf32>
    %cst_285 = arith.constant -1.000000e+30 : f32
    %375 = vector.broadcast %cst_285 : f32 to vector<16x16xf32>
    %376 = arith.select %4, %374, %375 : vector<16x16xi1>, vector<16x16xf32>
    %cst_286 = arith.constant dense<0xFF800000> : vector<16xf32>
    %377 = vector.multi_reduction <maximumf>, %376, %cst_286 [1] : vector<16x16xf32> to vector<16xf32>
    %378 = vector.shape_cast %377 : vector<16xf32> to vector<16x1xf32>
    %379 = vector.broadcast %378 : vector<16x1xf32> to vector<16x16xf32>
    %380 = arith.subf %376, %379 : vector<16x16xf32>
    %381 = math.exp %380 : vector<16x16xf32>
    %cst_287 = arith.constant dense<0.000000e+00> : vector<16xf32>
    %382 = vector.multi_reduction <add>, %381, %cst_287 [1] : vector<16x16xf32> to vector<16xf32>
    %383 = vector.shape_cast %382 : vector<16xf32> to vector<16x1xf32>
    %384 = tpu.reciprocal %383 {approx = true} : vector<16x1xf32> -> vector<16x1xf32>
    %385 = vector.broadcast %384 : vector<16x1xf32> to vector<16x16xf32>
    %386 = arith.mulf %381, %385 : vector<16x16xf32>
    %cst_288 = arith.constant dense<0.000000e+00> : vector<16x8xf32>
    %387 = tpu.matmul %386, %371, %cst_288 {dimension_numbers = #tpu.dot_dimension_numbers<[1], [0], [0], [1], [0, 0, 1, 1], [], []>} : vector<16x16xf32>, vector<16x8xf32>, vector<16x8xf32> -> vector<16x8xf32>
    %c1_289 = arith.constant 1 : index
    %c1_290 = arith.constant 1 : index
    %c0_291 = arith.constant 0 : index
    %c0_292 = arith.constant 0 : index
    %388 = vector.load %arg8[%c1_289, %c1_290, %c0_291, %c0_292] : memref<4x4x8x32xf32, #tpu.memory_space<vmem>>, vector<1x1x8x32xf32>
    %389 = vector.shape_cast %388 : vector<1x1x8x32xf32> to vector<8x32xf32>
    %cst_293 = arith.constant dense<0.000000e+00> : vector<16x32xf32>
    %390 = tpu.matmul %387, %389, %cst_293 {dimension_numbers = #tpu.dot_dimension_numbers<[1], [0], [0], [1], [0, 0, 1, 1], [], []>} : vector<16x8xf32>, vector<8x32xf32>, vector<16x32xf32> -> vector<16x32xf32>
    %391 = arith.addf %350, %390 : vector<16x32xf32>
    %c1_294 = arith.constant 1 : index
    %c2_295 = arith.constant 2 : index
    %c0_296 = arith.constant 0 : index
    %c0_297 = arith.constant 0 : index
    %392 = vector.load %arg2[%c1_294, %c2_295, %c0_296, %c0_297] : memref<4x4x32x8xf32, #tpu.memory_space<vmem>>, vector<1x1x32x8xf32>
    %393 = vector.shape_cast %392 : vector<1x1x32x8xf32> to vector<32x8xf32>
    %cst_298 = arith.constant dense<0.000000e+00> : vector<16x8xf32>
    %394 = tpu.matmul %308, %393, %cst_298 {dimension_numbers = #tpu.dot_dimension_numbers<[1], [0], [0], [1], [0, 0, 1, 1], [], []>} : vector<16x32xf32>, vector<32x8xf32>, vector<16x8xf32> -> vector<16x8xf32>
    %c1_299 = arith.constant 1 : index
    %c2_300 = arith.constant 2 : index
    %c0_301 = arith.constant 0 : index
    %c0_302 = arith.constant 0 : index
    %395 = vector.load %arg3[%c1_299, %c2_300, %c0_301, %c0_302] : memref<4x4x1x8xf32, #tpu.memory_space<vmem>>, vector<1x1x1x8xf32>
    %396 = vector.shape_cast %395 : vector<1x1x1x8xf32> to vector<1x8xf32>
    %397 = vector.broadcast %396 : vector<1x8xf32> to vector<16x8xf32>
    %398 = arith.addf %394, %397 : vector<16x8xf32>
    %c1_303 = arith.constant 1 : index
    %c2_304 = arith.constant 2 : index
    %c0_305 = arith.constant 0 : index
    %c0_306 = arith.constant 0 : index
    %399 = vector.load %arg4[%c1_303, %c2_304, %c0_305, %c0_306] : memref<4x4x32x8xf32, #tpu.memory_space<vmem>>, vector<1x1x32x8xf32>
    %400 = vector.shape_cast %399 : vector<1x1x32x8xf32> to vector<32x8xf32>
    %cst_307 = arith.constant dense<0.000000e+00> : vector<16x8xf32>
    %401 = tpu.matmul %308, %400, %cst_307 {dimension_numbers = #tpu.dot_dimension_numbers<[1], [0], [0], [1], [0, 0, 1, 1], [], []>} : vector<16x32xf32>, vector<32x8xf32>, vector<16x8xf32> -> vector<16x8xf32>
    %c1_308 = arith.constant 1 : index
    %c2_309 = arith.constant 2 : index
    %c0_310 = arith.constant 0 : index
    %c0_311 = arith.constant 0 : index
    %402 = vector.load %arg5[%c1_308, %c2_309, %c0_310, %c0_311] : memref<4x4x1x8xf32, #tpu.memory_space<vmem>>, vector<1x1x1x8xf32>
    %403 = vector.shape_cast %402 : vector<1x1x1x8xf32> to vector<1x8xf32>
    %404 = vector.broadcast %403 : vector<1x8xf32> to vector<16x8xf32>
    %405 = arith.addf %401, %404 : vector<16x8xf32>
    %c1_312 = arith.constant 1 : index
    %c2_313 = arith.constant 2 : index
    %c0_314 = arith.constant 0 : index
    %c0_315 = arith.constant 0 : index
    %406 = vector.load %arg6[%c1_312, %c2_313, %c0_314, %c0_315] : memref<4x4x32x8xf32, #tpu.memory_space<vmem>>, vector<1x1x32x8xf32>
    %407 = vector.shape_cast %406 : vector<1x1x32x8xf32> to vector<32x8xf32>
    %cst_316 = arith.constant dense<0.000000e+00> : vector<16x8xf32>
    %408 = tpu.matmul %308, %407, %cst_316 {dimension_numbers = #tpu.dot_dimension_numbers<[1], [0], [0], [1], [0, 0, 1, 1], [], []>} : vector<16x32xf32>, vector<32x8xf32>, vector<16x8xf32> -> vector<16x8xf32>
    %c1_317 = arith.constant 1 : index
    %c2_318 = arith.constant 2 : index
    %c0_319 = arith.constant 0 : index
    %c0_320 = arith.constant 0 : index
    %409 = vector.load %arg7[%c1_317, %c2_318, %c0_319, %c0_320] : memref<4x4x1x8xf32, #tpu.memory_space<vmem>>, vector<1x1x1x8xf32>
    %410 = vector.shape_cast %409 : vector<1x1x1x8xf32> to vector<1x8xf32>
    %411 = vector.broadcast %410 : vector<1x8xf32> to vector<16x8xf32>
    %412 = arith.addf %408, %411 : vector<16x8xf32>
    %cst_321 = arith.constant dense<0.000000e+00> : vector<16x16xf32>
    %413 = tpu.matmul %398, %405, %cst_321 {dimension_numbers = #tpu.dot_dimension_numbers<[1], [1], [0], [0], [0, 0, 1, 0], [], []>} : vector<16x8xf32>, vector<16x8xf32>, vector<16x16xf32> -> vector<16x16xf32>
    %cst_322 = arith.constant 0.353553385 : f32
    %414 = vector.broadcast %cst_322 : f32 to vector<16x16xf32>
    %415 = arith.mulf %413, %414 : vector<16x16xf32>
    %cst_323 = arith.constant -1.000000e+30 : f32
    %416 = vector.broadcast %cst_323 : f32 to vector<16x16xf32>
    %417 = arith.select %4, %415, %416 : vector<16x16xi1>, vector<16x16xf32>
    %cst_324 = arith.constant dense<0xFF800000> : vector<16xf32>
    %418 = vector.multi_reduction <maximumf>, %417, %cst_324 [1] : vector<16x16xf32> to vector<16xf32>
    %419 = vector.shape_cast %418 : vector<16xf32> to vector<16x1xf32>
    %420 = vector.broadcast %419 : vector<16x1xf32> to vector<16x16xf32>
    %421 = arith.subf %417, %420 : vector<16x16xf32>
    %422 = math.exp %421 : vector<16x16xf32>
    %cst_325 = arith.constant dense<0.000000e+00> : vector<16xf32>
    %423 = vector.multi_reduction <add>, %422, %cst_325 [1] : vector<16x16xf32> to vector<16xf32>
    %424 = vector.shape_cast %423 : vector<16xf32> to vector<16x1xf32>
    %425 = tpu.reciprocal %424 {approx = true} : vector<16x1xf32> -> vector<16x1xf32>
    %426 = vector.broadcast %425 : vector<16x1xf32> to vector<16x16xf32>
    %427 = arith.mulf %422, %426 : vector<16x16xf32>
    %cst_326 = arith.constant dense<0.000000e+00> : vector<16x8xf32>
    %428 = tpu.matmul %427, %412, %cst_326 {dimension_numbers = #tpu.dot_dimension_numbers<[1], [0], [0], [1], [0, 0, 1, 1], [], []>} : vector<16x16xf32>, vector<16x8xf32>, vector<16x8xf32> -> vector<16x8xf32>
    %c1_327 = arith.constant 1 : index
    %c2_328 = arith.constant 2 : index
    %c0_329 = arith.constant 0 : index
    %c0_330 = arith.constant 0 : index
    %429 = vector.load %arg8[%c1_327, %c2_328, %c0_329, %c0_330] : memref<4x4x8x32xf32, #tpu.memory_space<vmem>>, vector<1x1x8x32xf32>
    %430 = vector.shape_cast %429 : vector<1x1x8x32xf32> to vector<8x32xf32>
    %cst_331 = arith.constant dense<0.000000e+00> : vector<16x32xf32>
    %431 = tpu.matmul %428, %430, %cst_331 {dimension_numbers = #tpu.dot_dimension_numbers<[1], [0], [0], [1], [0, 0, 1, 1], [], []>} : vector<16x8xf32>, vector<8x32xf32>, vector<16x32xf32> -> vector<16x32xf32>
    %432 = arith.addf %391, %431 : vector<16x32xf32>
    %c1_332 = arith.constant 1 : index
    %c3_333 = arith.constant 3 : index
    %c0_334 = arith.constant 0 : index
    %c0_335 = arith.constant 0 : index
    %433 = vector.load %arg2[%c1_332, %c3_333, %c0_334, %c0_335] : memref<4x4x32x8xf32, #tpu.memory_space<vmem>>, vector<1x1x32x8xf32>
    %434 = vector.shape_cast %433 : vector<1x1x32x8xf32> to vector<32x8xf32>
    %cst_336 = arith.constant dense<0.000000e+00> : vector<16x8xf32>
    %435 = tpu.matmul %308, %434, %cst_336 {dimension_numbers = #tpu.dot_dimension_numbers<[1], [0], [0], [1], [0, 0, 1, 1], [], []>} : vector<16x32xf32>, vector<32x8xf32>, vector<16x8xf32> -> vector<16x8xf32>
    %c1_337 = arith.constant 1 : index
    %c3_338 = arith.constant 3 : index
    %c0_339 = arith.constant 0 : index
    %c0_340 = arith.constant 0 : index
    %436 = vector.load %arg3[%c1_337, %c3_338, %c0_339, %c0_340] : memref<4x4x1x8xf32, #tpu.memory_space<vmem>>, vector<1x1x1x8xf32>
    %437 = vector.shape_cast %436 : vector<1x1x1x8xf32> to vector<1x8xf32>
    %438 = vector.broadcast %437 : vector<1x8xf32> to vector<16x8xf32>
    %439 = arith.addf %435, %438 : vector<16x8xf32>
    %c1_341 = arith.constant 1 : index
    %c3_342 = arith.constant 3 : index
    %c0_343 = arith.constant 0 : index
    %c0_344 = arith.constant 0 : index
    %440 = vector.load %arg4[%c1_341, %c3_342, %c0_343, %c0_344] : memref<4x4x32x8xf32, #tpu.memory_space<vmem>>, vector<1x1x32x8xf32>
    %441 = vector.shape_cast %440 : vector<1x1x32x8xf32> to vector<32x8xf32>
    %cst_345 = arith.constant dense<0.000000e+00> : vector<16x8xf32>
    %442 = tpu.matmul %308, %441, %cst_345 {dimension_numbers = #tpu.dot_dimension_numbers<[1], [0], [0], [1], [0, 0, 1, 1], [], []>} : vector<16x32xf32>, vector<32x8xf32>, vector<16x8xf32> -> vector<16x8xf32>
    %c1_346 = arith.constant 1 : index
    %c3_347 = arith.constant 3 : index
    %c0_348 = arith.constant 0 : index
    %c0_349 = arith.constant 0 : index
    %443 = vector.load %arg5[%c1_346, %c3_347, %c0_348, %c0_349] : memref<4x4x1x8xf32, #tpu.memory_space<vmem>>, vector<1x1x1x8xf32>
    %444 = vector.shape_cast %443 : vector<1x1x1x8xf32> to vector<1x8xf32>
    %445 = vector.broadcast %444 : vector<1x8xf32> to vector<16x8xf32>
    %446 = arith.addf %442, %445 : vector<16x8xf32>
    %c1_350 = arith.constant 1 : index
    %c3_351 = arith.constant 3 : index
    %c0_352 = arith.constant 0 : index
    %c0_353 = arith.constant 0 : index
    %447 = vector.load %arg6[%c1_350, %c3_351, %c0_352, %c0_353] : memref<4x4x32x8xf32, #tpu.memory_space<vmem>>, vector<1x1x32x8xf32>
    %448 = vector.shape_cast %447 : vector<1x1x32x8xf32> to vector<32x8xf32>
    %cst_354 = arith.constant dense<0.000000e+00> : vector<16x8xf32>
    %449 = tpu.matmul %308, %448, %cst_354 {dimension_numbers = #tpu.dot_dimension_numbers<[1], [0], [0], [1], [0, 0, 1, 1], [], []>} : vector<16x32xf32>, vector<32x8xf32>, vector<16x8xf32> -> vector<16x8xf32>
    %c1_355 = arith.constant 1 : index
    %c3_356 = arith.constant 3 : index
    %c0_357 = arith.constant 0 : index
    %c0_358 = arith.constant 0 : index
    %450 = vector.load %arg7[%c1_355, %c3_356, %c0_357, %c0_358] : memref<4x4x1x8xf32, #tpu.memory_space<vmem>>, vector<1x1x1x8xf32>
    %451 = vector.shape_cast %450 : vector<1x1x1x8xf32> to vector<1x8xf32>
    %452 = vector.broadcast %451 : vector<1x8xf32> to vector<16x8xf32>
    %453 = arith.addf %449, %452 : vector<16x8xf32>
    %cst_359 = arith.constant dense<0.000000e+00> : vector<16x16xf32>
    %454 = tpu.matmul %439, %446, %cst_359 {dimension_numbers = #tpu.dot_dimension_numbers<[1], [1], [0], [0], [0, 0, 1, 0], [], []>} : vector<16x8xf32>, vector<16x8xf32>, vector<16x16xf32> -> vector<16x16xf32>
    %cst_360 = arith.constant 0.353553385 : f32
    %455 = vector.broadcast %cst_360 : f32 to vector<16x16xf32>
    %456 = arith.mulf %454, %455 : vector<16x16xf32>
    %cst_361 = arith.constant -1.000000e+30 : f32
    %457 = vector.broadcast %cst_361 : f32 to vector<16x16xf32>
    %458 = arith.select %4, %456, %457 : vector<16x16xi1>, vector<16x16xf32>
    %cst_362 = arith.constant dense<0xFF800000> : vector<16xf32>
    %459 = vector.multi_reduction <maximumf>, %458, %cst_362 [1] : vector<16x16xf32> to vector<16xf32>
    %460 = vector.shape_cast %459 : vector<16xf32> to vector<16x1xf32>
    %461 = vector.broadcast %460 : vector<16x1xf32> to vector<16x16xf32>
    %462 = arith.subf %458, %461 : vector<16x16xf32>
    %463 = math.exp %462 : vector<16x16xf32>
    %cst_363 = arith.constant dense<0.000000e+00> : vector<16xf32>
    %464 = vector.multi_reduction <add>, %463, %cst_363 [1] : vector<16x16xf32> to vector<16xf32>
    %465 = vector.shape_cast %464 : vector<16xf32> to vector<16x1xf32>
    %466 = tpu.reciprocal %465 {approx = true} : vector<16x1xf32> -> vector<16x1xf32>
    %467 = vector.broadcast %466 : vector<16x1xf32> to vector<16x16xf32>
    %468 = arith.mulf %463, %467 : vector<16x16xf32>
    %cst_364 = arith.constant dense<0.000000e+00> : vector<16x8xf32>
    %469 = tpu.matmul %468, %453, %cst_364 {dimension_numbers = #tpu.dot_dimension_numbers<[1], [0], [0], [1], [0, 0, 1, 1], [], []>} : vector<16x16xf32>, vector<16x8xf32>, vector<16x8xf32> -> vector<16x8xf32>
    %c1_365 = arith.constant 1 : index
    %c3_366 = arith.constant 3 : index
    %c0_367 = arith.constant 0 : index
    %c0_368 = arith.constant 0 : index
    %470 = vector.load %arg8[%c1_365, %c3_366, %c0_367, %c0_368] : memref<4x4x8x32xf32, #tpu.memory_space<vmem>>, vector<1x1x8x32xf32>
    %471 = vector.shape_cast %470 : vector<1x1x8x32xf32> to vector<8x32xf32>
    %cst_369 = arith.constant dense<0.000000e+00> : vector<16x32xf32>
    %472 = tpu.matmul %469, %471, %cst_369 {dimension_numbers = #tpu.dot_dimension_numbers<[1], [0], [0], [1], [0, 0, 1, 1], [], []>} : vector<16x8xf32>, vector<8x32xf32>, vector<16x32xf32> -> vector<16x32xf32>
    %473 = arith.addf %432, %472 : vector<16x32xf32>
    %474 = arith.addf %282, %473 : vector<16x32xf32>
    %c1_370 = arith.constant 1 : index
    %c0_371 = arith.constant 0 : index
    %c0_372 = arith.constant 0 : index
    %475 = vector.load %arg9[%c1_370, %c0_371, %c0_372] : memref<4x1x32xf32, #tpu.memory_space<vmem>>, vector<1x1x32xf32>
    %476 = vector.shape_cast %475 : vector<1x1x32xf32> to vector<1x32xf32>
    %477 = vector.broadcast %476 : vector<1x32xf32> to vector<16x32xf32>
    %478 = arith.addf %474, %477 : vector<16x32xf32>
    %c1_373 = arith.constant 1 : index
    %c0_374 = arith.constant 0 : index
    %c0_375 = arith.constant 0 : index
    %479 = vector.load %arg12[%c1_373, %c0_374, %c0_375] : memref<4x1x32xf32, #tpu.memory_space<vmem>>, vector<1x1x32xf32>
    %480 = vector.shape_cast %479 : vector<1x1x32xf32> to vector<1x32xf32>
    %c1_376 = arith.constant 1 : index
    %c0_377 = arith.constant 0 : index
    %c0_378 = arith.constant 0 : index
    %481 = vector.load %arg13[%c1_376, %c0_377, %c0_378] : memref<4x1x32xf32, #tpu.memory_space<vmem>>, vector<1x1x32xf32>
    %482 = vector.shape_cast %481 : vector<1x1x32xf32> to vector<1x32xf32>
    %cst_379 = arith.constant dense<0.000000e+00> : vector<16xf32>
    %483 = vector.multi_reduction <add>, %478, %cst_379 [1] : vector<16x32xf32> to vector<16xf32>
    %484 = vector.shape_cast %483 : vector<16xf32> to vector<16x1xf32>
    %cst_380 = arith.constant 3.200000e+01 : f32
    %485 = vector.broadcast %cst_380 : f32 to vector<16x1xf32>
    %486 = arith.divf %484, %485 : vector<16x1xf32>
    %487 = vector.broadcast %486 : vector<16x1xf32> to vector<16x32xf32>
    %488 = arith.subf %478, %487 : vector<16x32xf32>
    %489 = arith.mulf %488, %488 : vector<16x32xf32>
    %cst_381 = arith.constant dense<0.000000e+00> : vector<16xf32>
    %490 = vector.multi_reduction <add>, %489, %cst_381 [1] : vector<16x32xf32> to vector<16xf32>
    %491 = vector.shape_cast %490 : vector<16xf32> to vector<16x1xf32>
    %cst_382 = arith.constant 3.200000e+01 : f32
    %492 = vector.broadcast %cst_382 : f32 to vector<16x1xf32>
    %493 = arith.divf %491, %492 : vector<16x1xf32>
    %494 = vector.broadcast %486 : vector<16x1xf32> to vector<16x32xf32>
    %495 = arith.subf %478, %494 : vector<16x32xf32>
    %cst_383 = arith.constant 9.99999974E-6 : f32
    %496 = vector.broadcast %cst_383 : f32 to vector<16x1xf32>
    %497 = arith.addf %493, %496 : vector<16x1xf32>
    %498 = math.rsqrt %497 : vector<16x1xf32>
    %499 = vector.broadcast %498 : vector<16x1xf32> to vector<16x32xf32>
    %500 = arith.mulf %495, %499 : vector<16x32xf32>
    %501 = vector.broadcast %480 : vector<1x32xf32> to vector<16x32xf32>
    %502 = arith.mulf %500, %501 : vector<16x32xf32>
    %503 = vector.broadcast %482 : vector<1x32xf32> to vector<16x32xf32>
    %504 = arith.addf %502, %503 : vector<16x32xf32>
    %c1_384 = arith.constant 1 : index
    %c0_385 = arith.constant 0 : index
    %c0_386 = arith.constant 0 : index
    %505 = vector.load %arg14[%c1_384, %c0_385, %c0_386] : memref<4x32x64xf32, #tpu.memory_space<vmem>>, vector<1x32x64xf32>
    %506 = vector.shape_cast %505 : vector<1x32x64xf32> to vector<32x64xf32>
    %cst_387 = arith.constant dense<0.000000e+00> : vector<16x64xf32>
    %507 = tpu.matmul %504, %506, %cst_387 {dimension_numbers = #tpu.dot_dimension_numbers<[1], [0], [0], [1], [0, 0, 1, 1], [], []>} : vector<16x32xf32>, vector<32x64xf32>, vector<16x64xf32> -> vector<16x64xf32>
    %c1_388 = arith.constant 1 : index
    %c0_389 = arith.constant 0 : index
    %c0_390 = arith.constant 0 : index
    %508 = vector.load %arg15[%c1_388, %c0_389, %c0_390] : memref<4x1x64xf32, #tpu.memory_space<vmem>>, vector<1x1x64xf32>
    %509 = vector.shape_cast %508 : vector<1x1x64xf32> to vector<1x64xf32>
    %510 = vector.broadcast %509 : vector<1x64xf32> to vector<16x64xf32>
    %511 = arith.addf %507, %510 : vector<16x64xf32>
    %cst_391 = arith.constant 5.000000e-01 : f32
    %512 = vector.broadcast %cst_391 : f32 to vector<16x64xf32>
    %513 = arith.mulf %512, %511 : vector<16x64xf32>
    %cst_392 = arith.constant 0.707106769 : f32
    %514 = vector.broadcast %cst_392 : f32 to vector<16x64xf32>
    %515 = arith.mulf %511, %514 : vector<16x64xf32>
    %cst_393 = arith.constant 0.000000e+00 : f32
    %516 = vector.broadcast %cst_393 : f32 to vector<16x64xf32>
    %517 = arith.cmpf oge, %515, %516 : vector<16x64xf32>
    %cst_394 = arith.constant 1.000000e+00 : f32
    %cst_395 = arith.constant -1.000000e+00 : f32
    %518 = vector.broadcast %cst_394 : f32 to vector<16x64xf32>
    %519 = vector.broadcast %cst_395 : f32 to vector<16x64xf32>
    %520 = arith.select %517, %518, %519 : vector<16x64xi1>, vector<16x64xf32>
    %521 = math.absf %515 : vector<16x64xf32>
    %cst_396 = arith.constant 0.327591091 : f32
    %522 = vector.broadcast %cst_396 : f32 to vector<16x64xf32>
    %523 = arith.mulf %522, %521 : vector<16x64xf32>
    %cst_397 = arith.constant 1.000000e+00 : f32
    %524 = vector.broadcast %cst_397 : f32 to vector<16x64xf32>
    %525 = arith.addf %524, %523 : vector<16x64xf32>
    %cst_398 = arith.constant 1.000000e+00 : f32
    %526 = vector.broadcast %cst_398 : f32 to vector<16x64xf32>
    %527 = arith.divf %526, %525 : vector<16x64xf32>
    %cst_399 = arith.constant 1.06140542 : f32
    %528 = vector.broadcast %cst_399 : f32 to vector<16x64xf32>
    %529 = arith.mulf %528, %527 : vector<16x64xf32>
    %cst_400 = arith.constant -1.45315206 : f32
    %530 = vector.broadcast %cst_400 : f32 to vector<16x64xf32>
    %531 = arith.addf %529, %530 : vector<16x64xf32>
    %532 = arith.mulf %531, %527 : vector<16x64xf32>
    %cst_401 = arith.constant 1.42141378 : f32
    %533 = vector.broadcast %cst_401 : f32 to vector<16x64xf32>
    %534 = arith.addf %532, %533 : vector<16x64xf32>
    %535 = arith.mulf %534, %527 : vector<16x64xf32>
    %cst_402 = arith.constant -0.284496725 : f32
    %536 = vector.broadcast %cst_402 : f32 to vector<16x64xf32>
    %537 = arith.addf %535, %536 : vector<16x64xf32>
    %538 = arith.mulf %537, %527 : vector<16x64xf32>
    %cst_403 = arith.constant 0.254829586 : f32
    %539 = vector.broadcast %cst_403 : f32 to vector<16x64xf32>
    %540 = arith.addf %538, %539 : vector<16x64xf32>
    %541 = arith.mulf %540, %527 : vector<16x64xf32>
    %cst_404 = arith.constant 0.000000e+00 : f32
    %542 = vector.broadcast %cst_404 : f32 to vector<16x64xf32>
    %543 = arith.subf %542, %521 : vector<16x64xf32>
    %544 = arith.mulf %543, %521 : vector<16x64xf32>
    %545 = math.exp %544 : vector<16x64xf32>
    %546 = arith.mulf %541, %545 : vector<16x64xf32>
    %cst_405 = arith.constant 1.000000e+00 : f32
    %547 = vector.broadcast %cst_405 : f32 to vector<16x64xf32>
    %548 = arith.subf %547, %546 : vector<16x64xf32>
    %549 = arith.mulf %520, %548 : vector<16x64xf32>
    %cst_406 = arith.constant 1.000000e+00 : f32
    %550 = vector.broadcast %cst_406 : f32 to vector<16x64xf32>
    %551 = arith.addf %550, %549 : vector<16x64xf32>
    %552 = arith.mulf %513, %551 : vector<16x64xf32>
    %c1_407 = arith.constant 1 : index
    %c0_408 = arith.constant 0 : index
    %c0_409 = arith.constant 0 : index
    %553 = vector.load %arg16[%c1_407, %c0_408, %c0_409] : memref<4x64x32xf32, #tpu.memory_space<vmem>>, vector<1x64x32xf32>
    %554 = vector.shape_cast %553 : vector<1x64x32xf32> to vector<64x32xf32>
    %cst_410 = arith.constant dense<0.000000e+00> : vector<16x32xf32>
    %555 = tpu.matmul %552, %554, %cst_410 {dimension_numbers = #tpu.dot_dimension_numbers<[1], [0], [0], [1], [0, 0, 1, 1], [], []>} : vector<16x64xf32>, vector<64x32xf32>, vector<16x32xf32> -> vector<16x32xf32>
    %556 = arith.addf %478, %555 : vector<16x32xf32>
    %c1_411 = arith.constant 1 : index
    %c0_412 = arith.constant 0 : index
    %c0_413 = arith.constant 0 : index
    %557 = vector.load %arg17[%c1_411, %c0_412, %c0_413] : memref<4x1x32xf32, #tpu.memory_space<vmem>>, vector<1x1x32xf32>
    %558 = vector.shape_cast %557 : vector<1x1x32xf32> to vector<1x32xf32>
    %559 = vector.broadcast %558 : vector<1x32xf32> to vector<16x32xf32>
    %560 = arith.addf %556, %559 : vector<16x32xf32>
    %c2_414 = arith.constant 2 : index
    %c0_415 = arith.constant 0 : index
    %c0_416 = arith.constant 0 : index
    %561 = vector.load %arg10[%c2_414, %c0_415, %c0_416] : memref<4x1x32xf32, #tpu.memory_space<vmem>>, vector<1x1x32xf32>
    %562 = vector.shape_cast %561 : vector<1x1x32xf32> to vector<1x32xf32>
    %c2_417 = arith.constant 2 : index
    %c0_418 = arith.constant 0 : index
    %c0_419 = arith.constant 0 : index
    %563 = vector.load %arg11[%c2_417, %c0_418, %c0_419] : memref<4x1x32xf32, #tpu.memory_space<vmem>>, vector<1x1x32xf32>
    %564 = vector.shape_cast %563 : vector<1x1x32xf32> to vector<1x32xf32>
    %cst_420 = arith.constant dense<0.000000e+00> : vector<16xf32>
    %565 = vector.multi_reduction <add>, %560, %cst_420 [1] : vector<16x32xf32> to vector<16xf32>
    %566 = vector.shape_cast %565 : vector<16xf32> to vector<16x1xf32>
    %cst_421 = arith.constant 3.200000e+01 : f32
    %567 = vector.broadcast %cst_421 : f32 to vector<16x1xf32>
    %568 = arith.divf %566, %567 : vector<16x1xf32>
    %569 = vector.broadcast %568 : vector<16x1xf32> to vector<16x32xf32>
    %570 = arith.subf %560, %569 : vector<16x32xf32>
    %571 = arith.mulf %570, %570 : vector<16x32xf32>
    %cst_422 = arith.constant dense<0.000000e+00> : vector<16xf32>
    %572 = vector.multi_reduction <add>, %571, %cst_422 [1] : vector<16x32xf32> to vector<16xf32>
    %573 = vector.shape_cast %572 : vector<16xf32> to vector<16x1xf32>
    %cst_423 = arith.constant 3.200000e+01 : f32
    %574 = vector.broadcast %cst_423 : f32 to vector<16x1xf32>
    %575 = arith.divf %573, %574 : vector<16x1xf32>
    %576 = vector.broadcast %568 : vector<16x1xf32> to vector<16x32xf32>
    %577 = arith.subf %560, %576 : vector<16x32xf32>
    %cst_424 = arith.constant 9.99999974E-6 : f32
    %578 = vector.broadcast %cst_424 : f32 to vector<16x1xf32>
    %579 = arith.addf %575, %578 : vector<16x1xf32>
    %580 = math.rsqrt %579 : vector<16x1xf32>
    %581 = vector.broadcast %580 : vector<16x1xf32> to vector<16x32xf32>
    %582 = arith.mulf %577, %581 : vector<16x32xf32>
    %583 = vector.broadcast %562 : vector<1x32xf32> to vector<16x32xf32>
    %584 = arith.mulf %582, %583 : vector<16x32xf32>
    %585 = vector.broadcast %564 : vector<1x32xf32> to vector<16x32xf32>
    %586 = arith.addf %584, %585 : vector<16x32xf32>
    %cst_425 = arith.constant 0.000000e+00 : f32
    %587 = vector.broadcast %cst_425 : f32 to vector<16x32xf32>
    %c2_426 = arith.constant 2 : index
    %c0_427 = arith.constant 0 : index
    %c0_428 = arith.constant 0 : index
    %c0_429 = arith.constant 0 : index
    %588 = vector.load %arg2[%c2_426, %c0_427, %c0_428, %c0_429] : memref<4x4x32x8xf32, #tpu.memory_space<vmem>>, vector<1x1x32x8xf32>
    %589 = vector.shape_cast %588 : vector<1x1x32x8xf32> to vector<32x8xf32>
    %cst_430 = arith.constant dense<0.000000e+00> : vector<16x8xf32>
    %590 = tpu.matmul %586, %589, %cst_430 {dimension_numbers = #tpu.dot_dimension_numbers<[1], [0], [0], [1], [0, 0, 1, 1], [], []>} : vector<16x32xf32>, vector<32x8xf32>, vector<16x8xf32> -> vector<16x8xf32>
    %c2_431 = arith.constant 2 : index
    %c0_432 = arith.constant 0 : index
    %c0_433 = arith.constant 0 : index
    %c0_434 = arith.constant 0 : index
    %591 = vector.load %arg3[%c2_431, %c0_432, %c0_433, %c0_434] : memref<4x4x1x8xf32, #tpu.memory_space<vmem>>, vector<1x1x1x8xf32>
    %592 = vector.shape_cast %591 : vector<1x1x1x8xf32> to vector<1x8xf32>
    %593 = vector.broadcast %592 : vector<1x8xf32> to vector<16x8xf32>
    %594 = arith.addf %590, %593 : vector<16x8xf32>
    %c2_435 = arith.constant 2 : index
    %c0_436 = arith.constant 0 : index
    %c0_437 = arith.constant 0 : index
    %c0_438 = arith.constant 0 : index
    %595 = vector.load %arg4[%c2_435, %c0_436, %c0_437, %c0_438] : memref<4x4x32x8xf32, #tpu.memory_space<vmem>>, vector<1x1x32x8xf32>
    %596 = vector.shape_cast %595 : vector<1x1x32x8xf32> to vector<32x8xf32>
    %cst_439 = arith.constant dense<0.000000e+00> : vector<16x8xf32>
    %597 = tpu.matmul %586, %596, %cst_439 {dimension_numbers = #tpu.dot_dimension_numbers<[1], [0], [0], [1], [0, 0, 1, 1], [], []>} : vector<16x32xf32>, vector<32x8xf32>, vector<16x8xf32> -> vector<16x8xf32>
    %c2_440 = arith.constant 2 : index
    %c0_441 = arith.constant 0 : index
    %c0_442 = arith.constant 0 : index
    %c0_443 = arith.constant 0 : index
    %598 = vector.load %arg5[%c2_440, %c0_441, %c0_442, %c0_443] : memref<4x4x1x8xf32, #tpu.memory_space<vmem>>, vector<1x1x1x8xf32>
    %599 = vector.shape_cast %598 : vector<1x1x1x8xf32> to vector<1x8xf32>
    %600 = vector.broadcast %599 : vector<1x8xf32> to vector<16x8xf32>
    %601 = arith.addf %597, %600 : vector<16x8xf32>
    %c2_444 = arith.constant 2 : index
    %c0_445 = arith.constant 0 : index
    %c0_446 = arith.constant 0 : index
    %c0_447 = arith.constant 0 : index
    %602 = vector.load %arg6[%c2_444, %c0_445, %c0_446, %c0_447] : memref<4x4x32x8xf32, #tpu.memory_space<vmem>>, vector<1x1x32x8xf32>
    %603 = vector.shape_cast %602 : vector<1x1x32x8xf32> to vector<32x8xf32>
    %cst_448 = arith.constant dense<0.000000e+00> : vector<16x8xf32>
    %604 = tpu.matmul %586, %603, %cst_448 {dimension_numbers = #tpu.dot_dimension_numbers<[1], [0], [0], [1], [0, 0, 1, 1], [], []>} : vector<16x32xf32>, vector<32x8xf32>, vector<16x8xf32> -> vector<16x8xf32>
    %c2_449 = arith.constant 2 : index
    %c0_450 = arith.constant 0 : index
    %c0_451 = arith.constant 0 : index
    %c0_452 = arith.constant 0 : index
    %605 = vector.load %arg7[%c2_449, %c0_450, %c0_451, %c0_452] : memref<4x4x1x8xf32, #tpu.memory_space<vmem>>, vector<1x1x1x8xf32>
    %606 = vector.shape_cast %605 : vector<1x1x1x8xf32> to vector<1x8xf32>
    %607 = vector.broadcast %606 : vector<1x8xf32> to vector<16x8xf32>
    %608 = arith.addf %604, %607 : vector<16x8xf32>
    %cst_453 = arith.constant dense<0.000000e+00> : vector<16x16xf32>
    %609 = tpu.matmul %594, %601, %cst_453 {dimension_numbers = #tpu.dot_dimension_numbers<[1], [1], [0], [0], [0, 0, 1, 0], [], []>} : vector<16x8xf32>, vector<16x8xf32>, vector<16x16xf32> -> vector<16x16xf32>
    %cst_454 = arith.constant 0.353553385 : f32
    %610 = vector.broadcast %cst_454 : f32 to vector<16x16xf32>
    %611 = arith.mulf %609, %610 : vector<16x16xf32>
    %cst_455 = arith.constant -1.000000e+30 : f32
    %612 = vector.broadcast %cst_455 : f32 to vector<16x16xf32>
    %613 = arith.select %4, %611, %612 : vector<16x16xi1>, vector<16x16xf32>
    %cst_456 = arith.constant dense<0xFF800000> : vector<16xf32>
    %614 = vector.multi_reduction <maximumf>, %613, %cst_456 [1] : vector<16x16xf32> to vector<16xf32>
    %615 = vector.shape_cast %614 : vector<16xf32> to vector<16x1xf32>
    %616 = vector.broadcast %615 : vector<16x1xf32> to vector<16x16xf32>
    %617 = arith.subf %613, %616 : vector<16x16xf32>
    %618 = math.exp %617 : vector<16x16xf32>
    %cst_457 = arith.constant dense<0.000000e+00> : vector<16xf32>
    %619 = vector.multi_reduction <add>, %618, %cst_457 [1] : vector<16x16xf32> to vector<16xf32>
    %620 = vector.shape_cast %619 : vector<16xf32> to vector<16x1xf32>
    %621 = tpu.reciprocal %620 {approx = true} : vector<16x1xf32> -> vector<16x1xf32>
    %622 = vector.broadcast %621 : vector<16x1xf32> to vector<16x16xf32>
    %623 = arith.mulf %618, %622 : vector<16x16xf32>
    %cst_458 = arith.constant dense<0.000000e+00> : vector<16x8xf32>
    %624 = tpu.matmul %623, %608, %cst_458 {dimension_numbers = #tpu.dot_dimension_numbers<[1], [0], [0], [1], [0, 0, 1, 1], [], []>} : vector<16x16xf32>, vector<16x8xf32>, vector<16x8xf32> -> vector<16x8xf32>
    %c2_459 = arith.constant 2 : index
    %c0_460 = arith.constant 0 : index
    %c0_461 = arith.constant 0 : index
    %c0_462 = arith.constant 0 : index
    %625 = vector.load %arg8[%c2_459, %c0_460, %c0_461, %c0_462] : memref<4x4x8x32xf32, #tpu.memory_space<vmem>>, vector<1x1x8x32xf32>
    %626 = vector.shape_cast %625 : vector<1x1x8x32xf32> to vector<8x32xf32>
    %cst_463 = arith.constant dense<0.000000e+00> : vector<16x32xf32>
    %627 = tpu.matmul %624, %626, %cst_463 {dimension_numbers = #tpu.dot_dimension_numbers<[1], [0], [0], [1], [0, 0, 1, 1], [], []>} : vector<16x8xf32>, vector<8x32xf32>, vector<16x32xf32> -> vector<16x32xf32>
    %628 = arith.addf %587, %627 : vector<16x32xf32>
    %c2_464 = arith.constant 2 : index
    %c1_465 = arith.constant 1 : index
    %c0_466 = arith.constant 0 : index
    %c0_467 = arith.constant 0 : index
    %629 = vector.load %arg2[%c2_464, %c1_465, %c0_466, %c0_467] : memref<4x4x32x8xf32, #tpu.memory_space<vmem>>, vector<1x1x32x8xf32>
    %630 = vector.shape_cast %629 : vector<1x1x32x8xf32> to vector<32x8xf32>
    %cst_468 = arith.constant dense<0.000000e+00> : vector<16x8xf32>
    %631 = tpu.matmul %586, %630, %cst_468 {dimension_numbers = #tpu.dot_dimension_numbers<[1], [0], [0], [1], [0, 0, 1, 1], [], []>} : vector<16x32xf32>, vector<32x8xf32>, vector<16x8xf32> -> vector<16x8xf32>
    %c2_469 = arith.constant 2 : index
    %c1_470 = arith.constant 1 : index
    %c0_471 = arith.constant 0 : index
    %c0_472 = arith.constant 0 : index
    %632 = vector.load %arg3[%c2_469, %c1_470, %c0_471, %c0_472] : memref<4x4x1x8xf32, #tpu.memory_space<vmem>>, vector<1x1x1x8xf32>
    %633 = vector.shape_cast %632 : vector<1x1x1x8xf32> to vector<1x8xf32>
    %634 = vector.broadcast %633 : vector<1x8xf32> to vector<16x8xf32>
    %635 = arith.addf %631, %634 : vector<16x8xf32>
    %c2_473 = arith.constant 2 : index
    %c1_474 = arith.constant 1 : index
    %c0_475 = arith.constant 0 : index
    %c0_476 = arith.constant 0 : index
    %636 = vector.load %arg4[%c2_473, %c1_474, %c0_475, %c0_476] : memref<4x4x32x8xf32, #tpu.memory_space<vmem>>, vector<1x1x32x8xf32>
    %637 = vector.shape_cast %636 : vector<1x1x32x8xf32> to vector<32x8xf32>
    %cst_477 = arith.constant dense<0.000000e+00> : vector<16x8xf32>
    %638 = tpu.matmul %586, %637, %cst_477 {dimension_numbers = #tpu.dot_dimension_numbers<[1], [0], [0], [1], [0, 0, 1, 1], [], []>} : vector<16x32xf32>, vector<32x8xf32>, vector<16x8xf32> -> vector<16x8xf32>
    %c2_478 = arith.constant 2 : index
    %c1_479 = arith.constant 1 : index
    %c0_480 = arith.constant 0 : index
    %c0_481 = arith.constant 0 : index
    %639 = vector.load %arg5[%c2_478, %c1_479, %c0_480, %c0_481] : memref<4x4x1x8xf32, #tpu.memory_space<vmem>>, vector<1x1x1x8xf32>
    %640 = vector.shape_cast %639 : vector<1x1x1x8xf32> to vector<1x8xf32>
    %641 = vector.broadcast %640 : vector<1x8xf32> to vector<16x8xf32>
    %642 = arith.addf %638, %641 : vector<16x8xf32>
    %c2_482 = arith.constant 2 : index
    %c1_483 = arith.constant 1 : index
    %c0_484 = arith.constant 0 : index
    %c0_485 = arith.constant 0 : index
    %643 = vector.load %arg6[%c2_482, %c1_483, %c0_484, %c0_485] : memref<4x4x32x8xf32, #tpu.memory_space<vmem>>, vector<1x1x32x8xf32>
    %644 = vector.shape_cast %643 : vector<1x1x32x8xf32> to vector<32x8xf32>
    %cst_486 = arith.constant dense<0.000000e+00> : vector<16x8xf32>
    %645 = tpu.matmul %586, %644, %cst_486 {dimension_numbers = #tpu.dot_dimension_numbers<[1], [0], [0], [1], [0, 0, 1, 1], [], []>} : vector<16x32xf32>, vector<32x8xf32>, vector<16x8xf32> -> vector<16x8xf32>
    %c2_487 = arith.constant 2 : index
    %c1_488 = arith.constant 1 : index
    %c0_489 = arith.constant 0 : index
    %c0_490 = arith.constant 0 : index
    %646 = vector.load %arg7[%c2_487, %c1_488, %c0_489, %c0_490] : memref<4x4x1x8xf32, #tpu.memory_space<vmem>>, vector<1x1x1x8xf32>
    %647 = vector.shape_cast %646 : vector<1x1x1x8xf32> to vector<1x8xf32>
    %648 = vector.broadcast %647 : vector<1x8xf32> to vector<16x8xf32>
    %649 = arith.addf %645, %648 : vector<16x8xf32>
    %cst_491 = arith.constant dense<0.000000e+00> : vector<16x16xf32>
    %650 = tpu.matmul %635, %642, %cst_491 {dimension_numbers = #tpu.dot_dimension_numbers<[1], [1], [0], [0], [0, 0, 1, 0], [], []>} : vector<16x8xf32>, vector<16x8xf32>, vector<16x16xf32> -> vector<16x16xf32>
    %cst_492 = arith.constant 0.353553385 : f32
    %651 = vector.broadcast %cst_492 : f32 to vector<16x16xf32>
    %652 = arith.mulf %650, %651 : vector<16x16xf32>
    %cst_493 = arith.constant -1.000000e+30 : f32
    %653 = vector.broadcast %cst_493 : f32 to vector<16x16xf32>
    %654 = arith.select %4, %652, %653 : vector<16x16xi1>, vector<16x16xf32>
    %cst_494 = arith.constant dense<0xFF800000> : vector<16xf32>
    %655 = vector.multi_reduction <maximumf>, %654, %cst_494 [1] : vector<16x16xf32> to vector<16xf32>
    %656 = vector.shape_cast %655 : vector<16xf32> to vector<16x1xf32>
    %657 = vector.broadcast %656 : vector<16x1xf32> to vector<16x16xf32>
    %658 = arith.subf %654, %657 : vector<16x16xf32>
    %659 = math.exp %658 : vector<16x16xf32>
    %cst_495 = arith.constant dense<0.000000e+00> : vector<16xf32>
    %660 = vector.multi_reduction <add>, %659, %cst_495 [1] : vector<16x16xf32> to vector<16xf32>
    %661 = vector.shape_cast %660 : vector<16xf32> to vector<16x1xf32>
    %662 = tpu.reciprocal %661 {approx = true} : vector<16x1xf32> -> vector<16x1xf32>
    %663 = vector.broadcast %662 : vector<16x1xf32> to vector<16x16xf32>
    %664 = arith.mulf %659, %663 : vector<16x16xf32>
    %cst_496 = arith.constant dense<0.000000e+00> : vector<16x8xf32>
    %665 = tpu.matmul %664, %649, %cst_496 {dimension_numbers = #tpu.dot_dimension_numbers<[1], [0], [0], [1], [0, 0, 1, 1], [], []>} : vector<16x16xf32>, vector<16x8xf32>, vector<16x8xf32> -> vector<16x8xf32>
    %c2_497 = arith.constant 2 : index
    %c1_498 = arith.constant 1 : index
    %c0_499 = arith.constant 0 : index
    %c0_500 = arith.constant 0 : index
    %666 = vector.load %arg8[%c2_497, %c1_498, %c0_499, %c0_500] : memref<4x4x8x32xf32, #tpu.memory_space<vmem>>, vector<1x1x8x32xf32>
    %667 = vector.shape_cast %666 : vector<1x1x8x32xf32> to vector<8x32xf32>
    %cst_501 = arith.constant dense<0.000000e+00> : vector<16x32xf32>
    %668 = tpu.matmul %665, %667, %cst_501 {dimension_numbers = #tpu.dot_dimension_numbers<[1], [0], [0], [1], [0, 0, 1, 1], [], []>} : vector<16x8xf32>, vector<8x32xf32>, vector<16x32xf32> -> vector<16x32xf32>
    %669 = arith.addf %628, %668 : vector<16x32xf32>
    %c2_502 = arith.constant 2 : index
    %c2_503 = arith.constant 2 : index
    %c0_504 = arith.constant 0 : index
    %c0_505 = arith.constant 0 : index
    %670 = vector.load %arg2[%c2_502, %c2_503, %c0_504, %c0_505] : memref<4x4x32x8xf32, #tpu.memory_space<vmem>>, vector<1x1x32x8xf32>
    %671 = vector.shape_cast %670 : vector<1x1x32x8xf32> to vector<32x8xf32>
    %cst_506 = arith.constant dense<0.000000e+00> : vector<16x8xf32>
    %672 = tpu.matmul %586, %671, %cst_506 {dimension_numbers = #tpu.dot_dimension_numbers<[1], [0], [0], [1], [0, 0, 1, 1], [], []>} : vector<16x32xf32>, vector<32x8xf32>, vector<16x8xf32> -> vector<16x8xf32>
    %c2_507 = arith.constant 2 : index
    %c2_508 = arith.constant 2 : index
    %c0_509 = arith.constant 0 : index
    %c0_510 = arith.constant 0 : index
    %673 = vector.load %arg3[%c2_507, %c2_508, %c0_509, %c0_510] : memref<4x4x1x8xf32, #tpu.memory_space<vmem>>, vector<1x1x1x8xf32>
    %674 = vector.shape_cast %673 : vector<1x1x1x8xf32> to vector<1x8xf32>
    %675 = vector.broadcast %674 : vector<1x8xf32> to vector<16x8xf32>
    %676 = arith.addf %672, %675 : vector<16x8xf32>
    %c2_511 = arith.constant 2 : index
    %c2_512 = arith.constant 2 : index
    %c0_513 = arith.constant 0 : index
    %c0_514 = arith.constant 0 : index
    %677 = vector.load %arg4[%c2_511, %c2_512, %c0_513, %c0_514] : memref<4x4x32x8xf32, #tpu.memory_space<vmem>>, vector<1x1x32x8xf32>
    %678 = vector.shape_cast %677 : vector<1x1x32x8xf32> to vector<32x8xf32>
    %cst_515 = arith.constant dense<0.000000e+00> : vector<16x8xf32>
    %679 = tpu.matmul %586, %678, %cst_515 {dimension_numbers = #tpu.dot_dimension_numbers<[1], [0], [0], [1], [0, 0, 1, 1], [], []>} : vector<16x32xf32>, vector<32x8xf32>, vector<16x8xf32> -> vector<16x8xf32>
    %c2_516 = arith.constant 2 : index
    %c2_517 = arith.constant 2 : index
    %c0_518 = arith.constant 0 : index
    %c0_519 = arith.constant 0 : index
    %680 = vector.load %arg5[%c2_516, %c2_517, %c0_518, %c0_519] : memref<4x4x1x8xf32, #tpu.memory_space<vmem>>, vector<1x1x1x8xf32>
    %681 = vector.shape_cast %680 : vector<1x1x1x8xf32> to vector<1x8xf32>
    %682 = vector.broadcast %681 : vector<1x8xf32> to vector<16x8xf32>
    %683 = arith.addf %679, %682 : vector<16x8xf32>
    %c2_520 = arith.constant 2 : index
    %c2_521 = arith.constant 2 : index
    %c0_522 = arith.constant 0 : index
    %c0_523 = arith.constant 0 : index
    %684 = vector.load %arg6[%c2_520, %c2_521, %c0_522, %c0_523] : memref<4x4x32x8xf32, #tpu.memory_space<vmem>>, vector<1x1x32x8xf32>
    %685 = vector.shape_cast %684 : vector<1x1x32x8xf32> to vector<32x8xf32>
    %cst_524 = arith.constant dense<0.000000e+00> : vector<16x8xf32>
    %686 = tpu.matmul %586, %685, %cst_524 {dimension_numbers = #tpu.dot_dimension_numbers<[1], [0], [0], [1], [0, 0, 1, 1], [], []>} : vector<16x32xf32>, vector<32x8xf32>, vector<16x8xf32> -> vector<16x8xf32>
    %c2_525 = arith.constant 2 : index
    %c2_526 = arith.constant 2 : index
    %c0_527 = arith.constant 0 : index
    %c0_528 = arith.constant 0 : index
    %687 = vector.load %arg7[%c2_525, %c2_526, %c0_527, %c0_528] : memref<4x4x1x8xf32, #tpu.memory_space<vmem>>, vector<1x1x1x8xf32>
    %688 = vector.shape_cast %687 : vector<1x1x1x8xf32> to vector<1x8xf32>
    %689 = vector.broadcast %688 : vector<1x8xf32> to vector<16x8xf32>
    %690 = arith.addf %686, %689 : vector<16x8xf32>
    %cst_529 = arith.constant dense<0.000000e+00> : vector<16x16xf32>
    %691 = tpu.matmul %676, %683, %cst_529 {dimension_numbers = #tpu.dot_dimension_numbers<[1], [1], [0], [0], [0, 0, 1, 0], [], []>} : vector<16x8xf32>, vector<16x8xf32>, vector<16x16xf32> -> vector<16x16xf32>
    %cst_530 = arith.constant 0.353553385 : f32
    %692 = vector.broadcast %cst_530 : f32 to vector<16x16xf32>
    %693 = arith.mulf %691, %692 : vector<16x16xf32>
    %cst_531 = arith.constant -1.000000e+30 : f32
    %694 = vector.broadcast %cst_531 : f32 to vector<16x16xf32>
    %695 = arith.select %4, %693, %694 : vector<16x16xi1>, vector<16x16xf32>
    %cst_532 = arith.constant dense<0xFF800000> : vector<16xf32>
    %696 = vector.multi_reduction <maximumf>, %695, %cst_532 [1] : vector<16x16xf32> to vector<16xf32>
    %697 = vector.shape_cast %696 : vector<16xf32> to vector<16x1xf32>
    %698 = vector.broadcast %697 : vector<16x1xf32> to vector<16x16xf32>
    %699 = arith.subf %695, %698 : vector<16x16xf32>
    %700 = math.exp %699 : vector<16x16xf32>
    %cst_533 = arith.constant dense<0.000000e+00> : vector<16xf32>
    %701 = vector.multi_reduction <add>, %700, %cst_533 [1] : vector<16x16xf32> to vector<16xf32>
    %702 = vector.shape_cast %701 : vector<16xf32> to vector<16x1xf32>
    %703 = tpu.reciprocal %702 {approx = true} : vector<16x1xf32> -> vector<16x1xf32>
    %704 = vector.broadcast %703 : vector<16x1xf32> to vector<16x16xf32>
    %705 = arith.mulf %700, %704 : vector<16x16xf32>
    %cst_534 = arith.constant dense<0.000000e+00> : vector<16x8xf32>
    %706 = tpu.matmul %705, %690, %cst_534 {dimension_numbers = #tpu.dot_dimension_numbers<[1], [0], [0], [1], [0, 0, 1, 1], [], []>} : vector<16x16xf32>, vector<16x8xf32>, vector<16x8xf32> -> vector<16x8xf32>
    %c2_535 = arith.constant 2 : index
    %c2_536 = arith.constant 2 : index
    %c0_537 = arith.constant 0 : index
    %c0_538 = arith.constant 0 : index
    %707 = vector.load %arg8[%c2_535, %c2_536, %c0_537, %c0_538] : memref<4x4x8x32xf32, #tpu.memory_space<vmem>>, vector<1x1x8x32xf32>
    %708 = vector.shape_cast %707 : vector<1x1x8x32xf32> to vector<8x32xf32>
    %cst_539 = arith.constant dense<0.000000e+00> : vector<16x32xf32>
    %709 = tpu.matmul %706, %708, %cst_539 {dimension_numbers = #tpu.dot_dimension_numbers<[1], [0], [0], [1], [0, 0, 1, 1], [], []>} : vector<16x8xf32>, vector<8x32xf32>, vector<16x32xf32> -> vector<16x32xf32>
    %710 = arith.addf %669, %709 : vector<16x32xf32>
    %c2_540 = arith.constant 2 : index
    %c3_541 = arith.constant 3 : index
    %c0_542 = arith.constant 0 : index
    %c0_543 = arith.constant 0 : index
    %711 = vector.load %arg2[%c2_540, %c3_541, %c0_542, %c0_543] : memref<4x4x32x8xf32, #tpu.memory_space<vmem>>, vector<1x1x32x8xf32>
    %712 = vector.shape_cast %711 : vector<1x1x32x8xf32> to vector<32x8xf32>
    %cst_544 = arith.constant dense<0.000000e+00> : vector<16x8xf32>
    %713 = tpu.matmul %586, %712, %cst_544 {dimension_numbers = #tpu.dot_dimension_numbers<[1], [0], [0], [1], [0, 0, 1, 1], [], []>} : vector<16x32xf32>, vector<32x8xf32>, vector<16x8xf32> -> vector<16x8xf32>
    %c2_545 = arith.constant 2 : index
    %c3_546 = arith.constant 3 : index
    %c0_547 = arith.constant 0 : index
    %c0_548 = arith.constant 0 : index
    %714 = vector.load %arg3[%c2_545, %c3_546, %c0_547, %c0_548] : memref<4x4x1x8xf32, #tpu.memory_space<vmem>>, vector<1x1x1x8xf32>
    %715 = vector.shape_cast %714 : vector<1x1x1x8xf32> to vector<1x8xf32>
    %716 = vector.broadcast %715 : vector<1x8xf32> to vector<16x8xf32>
    %717 = arith.addf %713, %716 : vector<16x8xf32>
    %c2_549 = arith.constant 2 : index
    %c3_550 = arith.constant 3 : index
    %c0_551 = arith.constant 0 : index
    %c0_552 = arith.constant 0 : index
    %718 = vector.load %arg4[%c2_549, %c3_550, %c0_551, %c0_552] : memref<4x4x32x8xf32, #tpu.memory_space<vmem>>, vector<1x1x32x8xf32>
    %719 = vector.shape_cast %718 : vector<1x1x32x8xf32> to vector<32x8xf32>
    %cst_553 = arith.constant dense<0.000000e+00> : vector<16x8xf32>
    %720 = tpu.matmul %586, %719, %cst_553 {dimension_numbers = #tpu.dot_dimension_numbers<[1], [0], [0], [1], [0, 0, 1, 1], [], []>} : vector<16x32xf32>, vector<32x8xf32>, vector<16x8xf32> -> vector<16x8xf32>
    %c2_554 = arith.constant 2 : index
    %c3_555 = arith.constant 3 : index
    %c0_556 = arith.constant 0 : index
    %c0_557 = arith.constant 0 : index
    %721 = vector.load %arg5[%c2_554, %c3_555, %c0_556, %c0_557] : memref<4x4x1x8xf32, #tpu.memory_space<vmem>>, vector<1x1x1x8xf32>
    %722 = vector.shape_cast %721 : vector<1x1x1x8xf32> to vector<1x8xf32>
    %723 = vector.broadcast %722 : vector<1x8xf32> to vector<16x8xf32>
    %724 = arith.addf %720, %723 : vector<16x8xf32>
    %c2_558 = arith.constant 2 : index
    %c3_559 = arith.constant 3 : index
    %c0_560 = arith.constant 0 : index
    %c0_561 = arith.constant 0 : index
    %725 = vector.load %arg6[%c2_558, %c3_559, %c0_560, %c0_561] : memref<4x4x32x8xf32, #tpu.memory_space<vmem>>, vector<1x1x32x8xf32>
    %726 = vector.shape_cast %725 : vector<1x1x32x8xf32> to vector<32x8xf32>
    %cst_562 = arith.constant dense<0.000000e+00> : vector<16x8xf32>
    %727 = tpu.matmul %586, %726, %cst_562 {dimension_numbers = #tpu.dot_dimension_numbers<[1], [0], [0], [1], [0, 0, 1, 1], [], []>} : vector<16x32xf32>, vector<32x8xf32>, vector<16x8xf32> -> vector<16x8xf32>
    %c2_563 = arith.constant 2 : index
    %c3_564 = arith.constant 3 : index
    %c0_565 = arith.constant 0 : index
    %c0_566 = arith.constant 0 : index
    %728 = vector.load %arg7[%c2_563, %c3_564, %c0_565, %c0_566] : memref<4x4x1x8xf32, #tpu.memory_space<vmem>>, vector<1x1x1x8xf32>
    %729 = vector.shape_cast %728 : vector<1x1x1x8xf32> to vector<1x8xf32>
    %730 = vector.broadcast %729 : vector<1x8xf32> to vector<16x8xf32>
    %731 = arith.addf %727, %730 : vector<16x8xf32>
    %cst_567 = arith.constant dense<0.000000e+00> : vector<16x16xf32>
    %732 = tpu.matmul %717, %724, %cst_567 {dimension_numbers = #tpu.dot_dimension_numbers<[1], [1], [0], [0], [0, 0, 1, 0], [], []>} : vector<16x8xf32>, vector<16x8xf32>, vector<16x16xf32> -> vector<16x16xf32>
    %cst_568 = arith.constant 0.353553385 : f32
    %733 = vector.broadcast %cst_568 : f32 to vector<16x16xf32>
    %734 = arith.mulf %732, %733 : vector<16x16xf32>
    %cst_569 = arith.constant -1.000000e+30 : f32
    %735 = vector.broadcast %cst_569 : f32 to vector<16x16xf32>
    %736 = arith.select %4, %734, %735 : vector<16x16xi1>, vector<16x16xf32>
    %cst_570 = arith.constant dense<0xFF800000> : vector<16xf32>
    %737 = vector.multi_reduction <maximumf>, %736, %cst_570 [1] : vector<16x16xf32> to vector<16xf32>
    %738 = vector.shape_cast %737 : vector<16xf32> to vector<16x1xf32>
    %739 = vector.broadcast %738 : vector<16x1xf32> to vector<16x16xf32>
    %740 = arith.subf %736, %739 : vector<16x16xf32>
    %741 = math.exp %740 : vector<16x16xf32>
    %cst_571 = arith.constant dense<0.000000e+00> : vector<16xf32>
    %742 = vector.multi_reduction <add>, %741, %cst_571 [1] : vector<16x16xf32> to vector<16xf32>
    %743 = vector.shape_cast %742 : vector<16xf32> to vector<16x1xf32>
    %744 = tpu.reciprocal %743 {approx = true} : vector<16x1xf32> -> vector<16x1xf32>
    %745 = vector.broadcast %744 : vector<16x1xf32> to vector<16x16xf32>
    %746 = arith.mulf %741, %745 : vector<16x16xf32>
    %cst_572 = arith.constant dense<0.000000e+00> : vector<16x8xf32>
    %747 = tpu.matmul %746, %731, %cst_572 {dimension_numbers = #tpu.dot_dimension_numbers<[1], [0], [0], [1], [0, 0, 1, 1], [], []>} : vector<16x16xf32>, vector<16x8xf32>, vector<16x8xf32> -> vector<16x8xf32>
    %c2_573 = arith.constant 2 : index
    %c3_574 = arith.constant 3 : index
    %c0_575 = arith.constant 0 : index
    %c0_576 = arith.constant 0 : index
    %748 = vector.load %arg8[%c2_573, %c3_574, %c0_575, %c0_576] : memref<4x4x8x32xf32, #tpu.memory_space<vmem>>, vector<1x1x8x32xf32>
    %749 = vector.shape_cast %748 : vector<1x1x8x32xf32> to vector<8x32xf32>
    %cst_577 = arith.constant dense<0.000000e+00> : vector<16x32xf32>
    %750 = tpu.matmul %747, %749, %cst_577 {dimension_numbers = #tpu.dot_dimension_numbers<[1], [0], [0], [1], [0, 0, 1, 1], [], []>} : vector<16x8xf32>, vector<8x32xf32>, vector<16x32xf32> -> vector<16x32xf32>
    %751 = arith.addf %710, %750 : vector<16x32xf32>
    %752 = arith.addf %560, %751 : vector<16x32xf32>
    %c2_578 = arith.constant 2 : index
    %c0_579 = arith.constant 0 : index
    %c0_580 = arith.constant 0 : index
    %753 = vector.load %arg9[%c2_578, %c0_579, %c0_580] : memref<4x1x32xf32, #tpu.memory_space<vmem>>, vector<1x1x32xf32>
    %754 = vector.shape_cast %753 : vector<1x1x32xf32> to vector<1x32xf32>
    %755 = vector.broadcast %754 : vector<1x32xf32> to vector<16x32xf32>
    %756 = arith.addf %752, %755 : vector<16x32xf32>
    %c2_581 = arith.constant 2 : index
    %c0_582 = arith.constant 0 : index
    %c0_583 = arith.constant 0 : index
    %757 = vector.load %arg12[%c2_581, %c0_582, %c0_583] : memref<4x1x32xf32, #tpu.memory_space<vmem>>, vector<1x1x32xf32>
    %758 = vector.shape_cast %757 : vector<1x1x32xf32> to vector<1x32xf32>
    %c2_584 = arith.constant 2 : index
    %c0_585 = arith.constant 0 : index
    %c0_586 = arith.constant 0 : index
    %759 = vector.load %arg13[%c2_584, %c0_585, %c0_586] : memref<4x1x32xf32, #tpu.memory_space<vmem>>, vector<1x1x32xf32>
    %760 = vector.shape_cast %759 : vector<1x1x32xf32> to vector<1x32xf32>
    %cst_587 = arith.constant dense<0.000000e+00> : vector<16xf32>
    %761 = vector.multi_reduction <add>, %756, %cst_587 [1] : vector<16x32xf32> to vector<16xf32>
    %762 = vector.shape_cast %761 : vector<16xf32> to vector<16x1xf32>
    %cst_588 = arith.constant 3.200000e+01 : f32
    %763 = vector.broadcast %cst_588 : f32 to vector<16x1xf32>
    %764 = arith.divf %762, %763 : vector<16x1xf32>
    %765 = vector.broadcast %764 : vector<16x1xf32> to vector<16x32xf32>
    %766 = arith.subf %756, %765 : vector<16x32xf32>
    %767 = arith.mulf %766, %766 : vector<16x32xf32>
    %cst_589 = arith.constant dense<0.000000e+00> : vector<16xf32>
    %768 = vector.multi_reduction <add>, %767, %cst_589 [1] : vector<16x32xf32> to vector<16xf32>
    %769 = vector.shape_cast %768 : vector<16xf32> to vector<16x1xf32>
    %cst_590 = arith.constant 3.200000e+01 : f32
    %770 = vector.broadcast %cst_590 : f32 to vector<16x1xf32>
    %771 = arith.divf %769, %770 : vector<16x1xf32>
    %772 = vector.broadcast %764 : vector<16x1xf32> to vector<16x32xf32>
    %773 = arith.subf %756, %772 : vector<16x32xf32>
    %cst_591 = arith.constant 9.99999974E-6 : f32
    %774 = vector.broadcast %cst_591 : f32 to vector<16x1xf32>
    %775 = arith.addf %771, %774 : vector<16x1xf32>
    %776 = math.rsqrt %775 : vector<16x1xf32>
    %777 = vector.broadcast %776 : vector<16x1xf32> to vector<16x32xf32>
    %778 = arith.mulf %773, %777 : vector<16x32xf32>
    %779 = vector.broadcast %758 : vector<1x32xf32> to vector<16x32xf32>
    %780 = arith.mulf %778, %779 : vector<16x32xf32>
    %781 = vector.broadcast %760 : vector<1x32xf32> to vector<16x32xf32>
    %782 = arith.addf %780, %781 : vector<16x32xf32>
    %c2_592 = arith.constant 2 : index
    %c0_593 = arith.constant 0 : index
    %c0_594 = arith.constant 0 : index
    %783 = vector.load %arg14[%c2_592, %c0_593, %c0_594] : memref<4x32x64xf32, #tpu.memory_space<vmem>>, vector<1x32x64xf32>
    %784 = vector.shape_cast %783 : vector<1x32x64xf32> to vector<32x64xf32>
    %cst_595 = arith.constant dense<0.000000e+00> : vector<16x64xf32>
    %785 = tpu.matmul %782, %784, %cst_595 {dimension_numbers = #tpu.dot_dimension_numbers<[1], [0], [0], [1], [0, 0, 1, 1], [], []>} : vector<16x32xf32>, vector<32x64xf32>, vector<16x64xf32> -> vector<16x64xf32>
    %c2_596 = arith.constant 2 : index
    %c0_597 = arith.constant 0 : index
    %c0_598 = arith.constant 0 : index
    %786 = vector.load %arg15[%c2_596, %c0_597, %c0_598] : memref<4x1x64xf32, #tpu.memory_space<vmem>>, vector<1x1x64xf32>
    %787 = vector.shape_cast %786 : vector<1x1x64xf32> to vector<1x64xf32>
    %788 = vector.broadcast %787 : vector<1x64xf32> to vector<16x64xf32>
    %789 = arith.addf %785, %788 : vector<16x64xf32>
    %cst_599 = arith.constant 5.000000e-01 : f32
    %790 = vector.broadcast %cst_599 : f32 to vector<16x64xf32>
    %791 = arith.mulf %790, %789 : vector<16x64xf32>
    %cst_600 = arith.constant 0.707106769 : f32
    %792 = vector.broadcast %cst_600 : f32 to vector<16x64xf32>
    %793 = arith.mulf %789, %792 : vector<16x64xf32>
    %cst_601 = arith.constant 0.000000e+00 : f32
    %794 = vector.broadcast %cst_601 : f32 to vector<16x64xf32>
    %795 = arith.cmpf oge, %793, %794 : vector<16x64xf32>
    %cst_602 = arith.constant 1.000000e+00 : f32
    %cst_603 = arith.constant -1.000000e+00 : f32
    %796 = vector.broadcast %cst_602 : f32 to vector<16x64xf32>
    %797 = vector.broadcast %cst_603 : f32 to vector<16x64xf32>
    %798 = arith.select %795, %796, %797 : vector<16x64xi1>, vector<16x64xf32>
    %799 = math.absf %793 : vector<16x64xf32>
    %cst_604 = arith.constant 0.327591091 : f32
    %800 = vector.broadcast %cst_604 : f32 to vector<16x64xf32>
    %801 = arith.mulf %800, %799 : vector<16x64xf32>
    %cst_605 = arith.constant 1.000000e+00 : f32
    %802 = vector.broadcast %cst_605 : f32 to vector<16x64xf32>
    %803 = arith.addf %802, %801 : vector<16x64xf32>
    %cst_606 = arith.constant 1.000000e+00 : f32
    %804 = vector.broadcast %cst_606 : f32 to vector<16x64xf32>
    %805 = arith.divf %804, %803 : vector<16x64xf32>
    %cst_607 = arith.constant 1.06140542 : f32
    %806 = vector.broadcast %cst_607 : f32 to vector<16x64xf32>
    %807 = arith.mulf %806, %805 : vector<16x64xf32>
    %cst_608 = arith.constant -1.45315206 : f32
    %808 = vector.broadcast %cst_608 : f32 to vector<16x64xf32>
    %809 = arith.addf %807, %808 : vector<16x64xf32>
    %810 = arith.mulf %809, %805 : vector<16x64xf32>
    %cst_609 = arith.constant 1.42141378 : f32
    %811 = vector.broadcast %cst_609 : f32 to vector<16x64xf32>
    %812 = arith.addf %810, %811 : vector<16x64xf32>
    %813 = arith.mulf %812, %805 : vector<16x64xf32>
    %cst_610 = arith.constant -0.284496725 : f32
    %814 = vector.broadcast %cst_610 : f32 to vector<16x64xf32>
    %815 = arith.addf %813, %814 : vector<16x64xf32>
    %816 = arith.mulf %815, %805 : vector<16x64xf32>
    %cst_611 = arith.constant 0.254829586 : f32
    %817 = vector.broadcast %cst_611 : f32 to vector<16x64xf32>
    %818 = arith.addf %816, %817 : vector<16x64xf32>
    %819 = arith.mulf %818, %805 : vector<16x64xf32>
    %cst_612 = arith.constant 0.000000e+00 : f32
    %820 = vector.broadcast %cst_612 : f32 to vector<16x64xf32>
    %821 = arith.subf %820, %799 : vector<16x64xf32>
    %822 = arith.mulf %821, %799 : vector<16x64xf32>
    %823 = math.exp %822 : vector<16x64xf32>
    %824 = arith.mulf %819, %823 : vector<16x64xf32>
    %cst_613 = arith.constant 1.000000e+00 : f32
    %825 = vector.broadcast %cst_613 : f32 to vector<16x64xf32>
    %826 = arith.subf %825, %824 : vector<16x64xf32>
    %827 = arith.mulf %798, %826 : vector<16x64xf32>
    %cst_614 = arith.constant 1.000000e+00 : f32
    %828 = vector.broadcast %cst_614 : f32 to vector<16x64xf32>
    %829 = arith.addf %828, %827 : vector<16x64xf32>
    %830 = arith.mulf %791, %829 : vector<16x64xf32>
    %c2_615 = arith.constant 2 : index
    %c0_616 = arith.constant 0 : index
    %c0_617 = arith.constant 0 : index
    %831 = vector.load %arg16[%c2_615, %c0_616, %c0_617] : memref<4x64x32xf32, #tpu.memory_space<vmem>>, vector<1x64x32xf32>
    %832 = vector.shape_cast %831 : vector<1x64x32xf32> to vector<64x32xf32>
    %cst_618 = arith.constant dense<0.000000e+00> : vector<16x32xf32>
    %833 = tpu.matmul %830, %832, %cst_618 {dimension_numbers = #tpu.dot_dimension_numbers<[1], [0], [0], [1], [0, 0, 1, 1], [], []>} : vector<16x64xf32>, vector<64x32xf32>, vector<16x32xf32> -> vector<16x32xf32>
    %834 = arith.addf %756, %833 : vector<16x32xf32>
    %c2_619 = arith.constant 2 : index
    %c0_620 = arith.constant 0 : index
    %c0_621 = arith.constant 0 : index
    %835 = vector.load %arg17[%c2_619, %c0_620, %c0_621] : memref<4x1x32xf32, #tpu.memory_space<vmem>>, vector<1x1x32xf32>
    %836 = vector.shape_cast %835 : vector<1x1x32xf32> to vector<1x32xf32>
    %837 = vector.broadcast %836 : vector<1x32xf32> to vector<16x32xf32>
    %838 = arith.addf %834, %837 : vector<16x32xf32>
    %c3_622 = arith.constant 3 : index
    %c0_623 = arith.constant 0 : index
    %c0_624 = arith.constant 0 : index
    %839 = vector.load %arg10[%c3_622, %c0_623, %c0_624] : memref<4x1x32xf32, #tpu.memory_space<vmem>>, vector<1x1x32xf32>
    %840 = vector.shape_cast %839 : vector<1x1x32xf32> to vector<1x32xf32>
    %c3_625 = arith.constant 3 : index
    %c0_626 = arith.constant 0 : index
    %c0_627 = arith.constant 0 : index
    %841 = vector.load %arg11[%c3_625, %c0_626, %c0_627] : memref<4x1x32xf32, #tpu.memory_space<vmem>>, vector<1x1x32xf32>
    %842 = vector.shape_cast %841 : vector<1x1x32xf32> to vector<1x32xf32>
    %cst_628 = arith.constant dense<0.000000e+00> : vector<16xf32>
    %843 = vector.multi_reduction <add>, %838, %cst_628 [1] : vector<16x32xf32> to vector<16xf32>
    %844 = vector.shape_cast %843 : vector<16xf32> to vector<16x1xf32>
    %cst_629 = arith.constant 3.200000e+01 : f32
    %845 = vector.broadcast %cst_629 : f32 to vector<16x1xf32>
    %846 = arith.divf %844, %845 : vector<16x1xf32>
    %847 = vector.broadcast %846 : vector<16x1xf32> to vector<16x32xf32>
    %848 = arith.subf %838, %847 : vector<16x32xf32>
    %849 = arith.mulf %848, %848 : vector<16x32xf32>
    %cst_630 = arith.constant dense<0.000000e+00> : vector<16xf32>
    %850 = vector.multi_reduction <add>, %849, %cst_630 [1] : vector<16x32xf32> to vector<16xf32>
    %851 = vector.shape_cast %850 : vector<16xf32> to vector<16x1xf32>
    %cst_631 = arith.constant 3.200000e+01 : f32
    %852 = vector.broadcast %cst_631 : f32 to vector<16x1xf32>
    %853 = arith.divf %851, %852 : vector<16x1xf32>
    %854 = vector.broadcast %846 : vector<16x1xf32> to vector<16x32xf32>
    %855 = arith.subf %838, %854 : vector<16x32xf32>
    %cst_632 = arith.constant 9.99999974E-6 : f32
    %856 = vector.broadcast %cst_632 : f32 to vector<16x1xf32>
    %857 = arith.addf %853, %856 : vector<16x1xf32>
    %858 = math.rsqrt %857 : vector<16x1xf32>
    %859 = vector.broadcast %858 : vector<16x1xf32> to vector<16x32xf32>
    %860 = arith.mulf %855, %859 : vector<16x32xf32>
    %861 = vector.broadcast %840 : vector<1x32xf32> to vector<16x32xf32>
    %862 = arith.mulf %860, %861 : vector<16x32xf32>
    %863 = vector.broadcast %842 : vector<1x32xf32> to vector<16x32xf32>
    %864 = arith.addf %862, %863 : vector<16x32xf32>
    %cst_633 = arith.constant 0.000000e+00 : f32
    %865 = vector.broadcast %cst_633 : f32 to vector<16x32xf32>
    %c3_634 = arith.constant 3 : index
    %c0_635 = arith.constant 0 : index
    %c0_636 = arith.constant 0 : index
    %c0_637 = arith.constant 0 : index
    %866 = vector.load %arg2[%c3_634, %c0_635, %c0_636, %c0_637] : memref<4x4x32x8xf32, #tpu.memory_space<vmem>>, vector<1x1x32x8xf32>
    %867 = vector.shape_cast %866 : vector<1x1x32x8xf32> to vector<32x8xf32>
    %cst_638 = arith.constant dense<0.000000e+00> : vector<16x8xf32>
    %868 = tpu.matmul %864, %867, %cst_638 {dimension_numbers = #tpu.dot_dimension_numbers<[1], [0], [0], [1], [0, 0, 1, 1], [], []>} : vector<16x32xf32>, vector<32x8xf32>, vector<16x8xf32> -> vector<16x8xf32>
    %c3_639 = arith.constant 3 : index
    %c0_640 = arith.constant 0 : index
    %c0_641 = arith.constant 0 : index
    %c0_642 = arith.constant 0 : index
    %869 = vector.load %arg3[%c3_639, %c0_640, %c0_641, %c0_642] : memref<4x4x1x8xf32, #tpu.memory_space<vmem>>, vector<1x1x1x8xf32>
    %870 = vector.shape_cast %869 : vector<1x1x1x8xf32> to vector<1x8xf32>
    %871 = vector.broadcast %870 : vector<1x8xf32> to vector<16x8xf32>
    %872 = arith.addf %868, %871 : vector<16x8xf32>
    %c3_643 = arith.constant 3 : index
    %c0_644 = arith.constant 0 : index
    %c0_645 = arith.constant 0 : index
    %c0_646 = arith.constant 0 : index
    %873 = vector.load %arg4[%c3_643, %c0_644, %c0_645, %c0_646] : memref<4x4x32x8xf32, #tpu.memory_space<vmem>>, vector<1x1x32x8xf32>
    %874 = vector.shape_cast %873 : vector<1x1x32x8xf32> to vector<32x8xf32>
    %cst_647 = arith.constant dense<0.000000e+00> : vector<16x8xf32>
    %875 = tpu.matmul %864, %874, %cst_647 {dimension_numbers = #tpu.dot_dimension_numbers<[1], [0], [0], [1], [0, 0, 1, 1], [], []>} : vector<16x32xf32>, vector<32x8xf32>, vector<16x8xf32> -> vector<16x8xf32>
    %c3_648 = arith.constant 3 : index
    %c0_649 = arith.constant 0 : index
    %c0_650 = arith.constant 0 : index
    %c0_651 = arith.constant 0 : index
    %876 = vector.load %arg5[%c3_648, %c0_649, %c0_650, %c0_651] : memref<4x4x1x8xf32, #tpu.memory_space<vmem>>, vector<1x1x1x8xf32>
    %877 = vector.shape_cast %876 : vector<1x1x1x8xf32> to vector<1x8xf32>
    %878 = vector.broadcast %877 : vector<1x8xf32> to vector<16x8xf32>
    %879 = arith.addf %875, %878 : vector<16x8xf32>
    %c3_652 = arith.constant 3 : index
    %c0_653 = arith.constant 0 : index
    %c0_654 = arith.constant 0 : index
    %c0_655 = arith.constant 0 : index
    %880 = vector.load %arg6[%c3_652, %c0_653, %c0_654, %c0_655] : memref<4x4x32x8xf32, #tpu.memory_space<vmem>>, vector<1x1x32x8xf32>
    %881 = vector.shape_cast %880 : vector<1x1x32x8xf32> to vector<32x8xf32>
    %cst_656 = arith.constant dense<0.000000e+00> : vector<16x8xf32>
    %882 = tpu.matmul %864, %881, %cst_656 {dimension_numbers = #tpu.dot_dimension_numbers<[1], [0], [0], [1], [0, 0, 1, 1], [], []>} : vector<16x32xf32>, vector<32x8xf32>, vector<16x8xf32> -> vector<16x8xf32>
    %c3_657 = arith.constant 3 : index
    %c0_658 = arith.constant 0 : index
    %c0_659 = arith.constant 0 : index
    %c0_660 = arith.constant 0 : index
    %883 = vector.load %arg7[%c3_657, %c0_658, %c0_659, %c0_660] : memref<4x4x1x8xf32, #tpu.memory_space<vmem>>, vector<1x1x1x8xf32>
    %884 = vector.shape_cast %883 : vector<1x1x1x8xf32> to vector<1x8xf32>
    %885 = vector.broadcast %884 : vector<1x8xf32> to vector<16x8xf32>
    %886 = arith.addf %882, %885 : vector<16x8xf32>
    %cst_661 = arith.constant dense<0.000000e+00> : vector<16x16xf32>
    %887 = tpu.matmul %872, %879, %cst_661 {dimension_numbers = #tpu.dot_dimension_numbers<[1], [1], [0], [0], [0, 0, 1, 0], [], []>} : vector<16x8xf32>, vector<16x8xf32>, vector<16x16xf32> -> vector<16x16xf32>
    %cst_662 = arith.constant 0.353553385 : f32
    %888 = vector.broadcast %cst_662 : f32 to vector<16x16xf32>
    %889 = arith.mulf %887, %888 : vector<16x16xf32>
    %cst_663 = arith.constant -1.000000e+30 : f32
    %890 = vector.broadcast %cst_663 : f32 to vector<16x16xf32>
    %891 = arith.select %4, %889, %890 : vector<16x16xi1>, vector<16x16xf32>
    %cst_664 = arith.constant dense<0xFF800000> : vector<16xf32>
    %892 = vector.multi_reduction <maximumf>, %891, %cst_664 [1] : vector<16x16xf32> to vector<16xf32>
    %893 = vector.shape_cast %892 : vector<16xf32> to vector<16x1xf32>
    %894 = vector.broadcast %893 : vector<16x1xf32> to vector<16x16xf32>
    %895 = arith.subf %891, %894 : vector<16x16xf32>
    %896 = math.exp %895 : vector<16x16xf32>
    %cst_665 = arith.constant dense<0.000000e+00> : vector<16xf32>
    %897 = vector.multi_reduction <add>, %896, %cst_665 [1] : vector<16x16xf32> to vector<16xf32>
    %898 = vector.shape_cast %897 : vector<16xf32> to vector<16x1xf32>
    %899 = tpu.reciprocal %898 {approx = true} : vector<16x1xf32> -> vector<16x1xf32>
    %900 = vector.broadcast %899 : vector<16x1xf32> to vector<16x16xf32>
    %901 = arith.mulf %896, %900 : vector<16x16xf32>
    %cst_666 = arith.constant dense<0.000000e+00> : vector<16x8xf32>
    %902 = tpu.matmul %901, %886, %cst_666 {dimension_numbers = #tpu.dot_dimension_numbers<[1], [0], [0], [1], [0, 0, 1, 1], [], []>} : vector<16x16xf32>, vector<16x8xf32>, vector<16x8xf32> -> vector<16x8xf32>
    %c3_667 = arith.constant 3 : index
    %c0_668 = arith.constant 0 : index
    %c0_669 = arith.constant 0 : index
    %c0_670 = arith.constant 0 : index
    %903 = vector.load %arg8[%c3_667, %c0_668, %c0_669, %c0_670] : memref<4x4x8x32xf32, #tpu.memory_space<vmem>>, vector<1x1x8x32xf32>
    %904 = vector.shape_cast %903 : vector<1x1x8x32xf32> to vector<8x32xf32>
    %cst_671 = arith.constant dense<0.000000e+00> : vector<16x32xf32>
    %905 = tpu.matmul %902, %904, %cst_671 {dimension_numbers = #tpu.dot_dimension_numbers<[1], [0], [0], [1], [0, 0, 1, 1], [], []>} : vector<16x8xf32>, vector<8x32xf32>, vector<16x32xf32> -> vector<16x32xf32>
    %906 = arith.addf %865, %905 : vector<16x32xf32>
    %c3_672 = arith.constant 3 : index
    %c1_673 = arith.constant 1 : index
    %c0_674 = arith.constant 0 : index
    %c0_675 = arith.constant 0 : index
    %907 = vector.load %arg2[%c3_672, %c1_673, %c0_674, %c0_675] : memref<4x4x32x8xf32, #tpu.memory_space<vmem>>, vector<1x1x32x8xf32>
    %908 = vector.shape_cast %907 : vector<1x1x32x8xf32> to vector<32x8xf32>
    %cst_676 = arith.constant dense<0.000000e+00> : vector<16x8xf32>
    %909 = tpu.matmul %864, %908, %cst_676 {dimension_numbers = #tpu.dot_dimension_numbers<[1], [0], [0], [1], [0, 0, 1, 1], [], []>} : vector<16x32xf32>, vector<32x8xf32>, vector<16x8xf32> -> vector<16x8xf32>
    %c3_677 = arith.constant 3 : index
    %c1_678 = arith.constant 1 : index
    %c0_679 = arith.constant 0 : index
    %c0_680 = arith.constant 0 : index
    %910 = vector.load %arg3[%c3_677, %c1_678, %c0_679, %c0_680] : memref<4x4x1x8xf32, #tpu.memory_space<vmem>>, vector<1x1x1x8xf32>
    %911 = vector.shape_cast %910 : vector<1x1x1x8xf32> to vector<1x8xf32>
    %912 = vector.broadcast %911 : vector<1x8xf32> to vector<16x8xf32>
    %913 = arith.addf %909, %912 : vector<16x8xf32>
    %c3_681 = arith.constant 3 : index
    %c1_682 = arith.constant 1 : index
    %c0_683 = arith.constant 0 : index
    %c0_684 = arith.constant 0 : index
    %914 = vector.load %arg4[%c3_681, %c1_682, %c0_683, %c0_684] : memref<4x4x32x8xf32, #tpu.memory_space<vmem>>, vector<1x1x32x8xf32>
    %915 = vector.shape_cast %914 : vector<1x1x32x8xf32> to vector<32x8xf32>
    %cst_685 = arith.constant dense<0.000000e+00> : vector<16x8xf32>
    %916 = tpu.matmul %864, %915, %cst_685 {dimension_numbers = #tpu.dot_dimension_numbers<[1], [0], [0], [1], [0, 0, 1, 1], [], []>} : vector<16x32xf32>, vector<32x8xf32>, vector<16x8xf32> -> vector<16x8xf32>
    %c3_686 = arith.constant 3 : index
    %c1_687 = arith.constant 1 : index
    %c0_688 = arith.constant 0 : index
    %c0_689 = arith.constant 0 : index
    %917 = vector.load %arg5[%c3_686, %c1_687, %c0_688, %c0_689] : memref<4x4x1x8xf32, #tpu.memory_space<vmem>>, vector<1x1x1x8xf32>
    %918 = vector.shape_cast %917 : vector<1x1x1x8xf32> to vector<1x8xf32>
    %919 = vector.broadcast %918 : vector<1x8xf32> to vector<16x8xf32>
    %920 = arith.addf %916, %919 : vector<16x8xf32>
    %c3_690 = arith.constant 3 : index
    %c1_691 = arith.constant 1 : index
    %c0_692 = arith.constant 0 : index
    %c0_693 = arith.constant 0 : index
    %921 = vector.load %arg6[%c3_690, %c1_691, %c0_692, %c0_693] : memref<4x4x32x8xf32, #tpu.memory_space<vmem>>, vector<1x1x32x8xf32>
    %922 = vector.shape_cast %921 : vector<1x1x32x8xf32> to vector<32x8xf32>
    %cst_694 = arith.constant dense<0.000000e+00> : vector<16x8xf32>
    %923 = tpu.matmul %864, %922, %cst_694 {dimension_numbers = #tpu.dot_dimension_numbers<[1], [0], [0], [1], [0, 0, 1, 1], [], []>} : vector<16x32xf32>, vector<32x8xf32>, vector<16x8xf32> -> vector<16x8xf32>
    %c3_695 = arith.constant 3 : index
    %c1_696 = arith.constant 1 : index
    %c0_697 = arith.constant 0 : index
    %c0_698 = arith.constant 0 : index
    %924 = vector.load %arg7[%c3_695, %c1_696, %c0_697, %c0_698] : memref<4x4x1x8xf32, #tpu.memory_space<vmem>>, vector<1x1x1x8xf32>
    %925 = vector.shape_cast %924 : vector<1x1x1x8xf32> to vector<1x8xf32>
    %926 = vector.broadcast %925 : vector<1x8xf32> to vector<16x8xf32>
    %927 = arith.addf %923, %926 : vector<16x8xf32>
    %cst_699 = arith.constant dense<0.000000e+00> : vector<16x16xf32>
    %928 = tpu.matmul %913, %920, %cst_699 {dimension_numbers = #tpu.dot_dimension_numbers<[1], [1], [0], [0], [0, 0, 1, 0], [], []>} : vector<16x8xf32>, vector<16x8xf32>, vector<16x16xf32> -> vector<16x16xf32>
    %cst_700 = arith.constant 0.353553385 : f32
    %929 = vector.broadcast %cst_700 : f32 to vector<16x16xf32>
    %930 = arith.mulf %928, %929 : vector<16x16xf32>
    %cst_701 = arith.constant -1.000000e+30 : f32
    %931 = vector.broadcast %cst_701 : f32 to vector<16x16xf32>
    %932 = arith.select %4, %930, %931 : vector<16x16xi1>, vector<16x16xf32>
    %cst_702 = arith.constant dense<0xFF800000> : vector<16xf32>
    %933 = vector.multi_reduction <maximumf>, %932, %cst_702 [1] : vector<16x16xf32> to vector<16xf32>
    %934 = vector.shape_cast %933 : vector<16xf32> to vector<16x1xf32>
    %935 = vector.broadcast %934 : vector<16x1xf32> to vector<16x16xf32>
    %936 = arith.subf %932, %935 : vector<16x16xf32>
    %937 = math.exp %936 : vector<16x16xf32>
    %cst_703 = arith.constant dense<0.000000e+00> : vector<16xf32>
    %938 = vector.multi_reduction <add>, %937, %cst_703 [1] : vector<16x16xf32> to vector<16xf32>
    %939 = vector.shape_cast %938 : vector<16xf32> to vector<16x1xf32>
    %940 = tpu.reciprocal %939 {approx = true} : vector<16x1xf32> -> vector<16x1xf32>
    %941 = vector.broadcast %940 : vector<16x1xf32> to vector<16x16xf32>
    %942 = arith.mulf %937, %941 : vector<16x16xf32>
    %cst_704 = arith.constant dense<0.000000e+00> : vector<16x8xf32>
    %943 = tpu.matmul %942, %927, %cst_704 {dimension_numbers = #tpu.dot_dimension_numbers<[1], [0], [0], [1], [0, 0, 1, 1], [], []>} : vector<16x16xf32>, vector<16x8xf32>, vector<16x8xf32> -> vector<16x8xf32>
    %c3_705 = arith.constant 3 : index
    %c1_706 = arith.constant 1 : index
    %c0_707 = arith.constant 0 : index
    %c0_708 = arith.constant 0 : index
    %944 = vector.load %arg8[%c3_705, %c1_706, %c0_707, %c0_708] : memref<4x4x8x32xf32, #tpu.memory_space<vmem>>, vector<1x1x8x32xf32>
    %945 = vector.shape_cast %944 : vector<1x1x8x32xf32> to vector<8x32xf32>
    %cst_709 = arith.constant dense<0.000000e+00> : vector<16x32xf32>
    %946 = tpu.matmul %943, %945, %cst_709 {dimension_numbers = #tpu.dot_dimension_numbers<[1], [0], [0], [1], [0, 0, 1, 1], [], []>} : vector<16x8xf32>, vector<8x32xf32>, vector<16x32xf32> -> vector<16x32xf32>
    %947 = arith.addf %906, %946 : vector<16x32xf32>
    %c3_710 = arith.constant 3 : index
    %c2_711 = arith.constant 2 : index
    %c0_712 = arith.constant 0 : index
    %c0_713 = arith.constant 0 : index
    %948 = vector.load %arg2[%c3_710, %c2_711, %c0_712, %c0_713] : memref<4x4x32x8xf32, #tpu.memory_space<vmem>>, vector<1x1x32x8xf32>
    %949 = vector.shape_cast %948 : vector<1x1x32x8xf32> to vector<32x8xf32>
    %cst_714 = arith.constant dense<0.000000e+00> : vector<16x8xf32>
    %950 = tpu.matmul %864, %949, %cst_714 {dimension_numbers = #tpu.dot_dimension_numbers<[1], [0], [0], [1], [0, 0, 1, 1], [], []>} : vector<16x32xf32>, vector<32x8xf32>, vector<16x8xf32> -> vector<16x8xf32>
    %c3_715 = arith.constant 3 : index
    %c2_716 = arith.constant 2 : index
    %c0_717 = arith.constant 0 : index
    %c0_718 = arith.constant 0 : index
    %951 = vector.load %arg3[%c3_715, %c2_716, %c0_717, %c0_718] : memref<4x4x1x8xf32, #tpu.memory_space<vmem>>, vector<1x1x1x8xf32>
    %952 = vector.shape_cast %951 : vector<1x1x1x8xf32> to vector<1x8xf32>
    %953 = vector.broadcast %952 : vector<1x8xf32> to vector<16x8xf32>
    %954 = arith.addf %950, %953 : vector<16x8xf32>
    %c3_719 = arith.constant 3 : index
    %c2_720 = arith.constant 2 : index
    %c0_721 = arith.constant 0 : index
    %c0_722 = arith.constant 0 : index
    %955 = vector.load %arg4[%c3_719, %c2_720, %c0_721, %c0_722] : memref<4x4x32x8xf32, #tpu.memory_space<vmem>>, vector<1x1x32x8xf32>
    %956 = vector.shape_cast %955 : vector<1x1x32x8xf32> to vector<32x8xf32>
    %cst_723 = arith.constant dense<0.000000e+00> : vector<16x8xf32>
    %957 = tpu.matmul %864, %956, %cst_723 {dimension_numbers = #tpu.dot_dimension_numbers<[1], [0], [0], [1], [0, 0, 1, 1], [], []>} : vector<16x32xf32>, vector<32x8xf32>, vector<16x8xf32> -> vector<16x8xf32>
    %c3_724 = arith.constant 3 : index
    %c2_725 = arith.constant 2 : index
    %c0_726 = arith.constant 0 : index
    %c0_727 = arith.constant 0 : index
    %958 = vector.load %arg5[%c3_724, %c2_725, %c0_726, %c0_727] : memref<4x4x1x8xf32, #tpu.memory_space<vmem>>, vector<1x1x1x8xf32>
    %959 = vector.shape_cast %958 : vector<1x1x1x8xf32> to vector<1x8xf32>
    %960 = vector.broadcast %959 : vector<1x8xf32> to vector<16x8xf32>
    %961 = arith.addf %957, %960 : vector<16x8xf32>
    %c3_728 = arith.constant 3 : index
    %c2_729 = arith.constant 2 : index
    %c0_730 = arith.constant 0 : index
    %c0_731 = arith.constant 0 : index
    %962 = vector.load %arg6[%c3_728, %c2_729, %c0_730, %c0_731] : memref<4x4x32x8xf32, #tpu.memory_space<vmem>>, vector<1x1x32x8xf32>
    %963 = vector.shape_cast %962 : vector<1x1x32x8xf32> to vector<32x8xf32>
    %cst_732 = arith.constant dense<0.000000e+00> : vector<16x8xf32>
    %964 = tpu.matmul %864, %963, %cst_732 {dimension_numbers = #tpu.dot_dimension_numbers<[1], [0], [0], [1], [0, 0, 1, 1], [], []>} : vector<16x32xf32>, vector<32x8xf32>, vector<16x8xf32> -> vector<16x8xf32>
    %c3_733 = arith.constant 3 : index
    %c2_734 = arith.constant 2 : index
    %c0_735 = arith.constant 0 : index
    %c0_736 = arith.constant 0 : index
    %965 = vector.load %arg7[%c3_733, %c2_734, %c0_735, %c0_736] : memref<4x4x1x8xf32, #tpu.memory_space<vmem>>, vector<1x1x1x8xf32>
    %966 = vector.shape_cast %965 : vector<1x1x1x8xf32> to vector<1x8xf32>
    %967 = vector.broadcast %966 : vector<1x8xf32> to vector<16x8xf32>
    %968 = arith.addf %964, %967 : vector<16x8xf32>
    %cst_737 = arith.constant dense<0.000000e+00> : vector<16x16xf32>
    %969 = tpu.matmul %954, %961, %cst_737 {dimension_numbers = #tpu.dot_dimension_numbers<[1], [1], [0], [0], [0, 0, 1, 0], [], []>} : vector<16x8xf32>, vector<16x8xf32>, vector<16x16xf32> -> vector<16x16xf32>
    %cst_738 = arith.constant 0.353553385 : f32
    %970 = vector.broadcast %cst_738 : f32 to vector<16x16xf32>
    %971 = arith.mulf %969, %970 : vector<16x16xf32>
    %cst_739 = arith.constant -1.000000e+30 : f32
    %972 = vector.broadcast %cst_739 : f32 to vector<16x16xf32>
    %973 = arith.select %4, %971, %972 : vector<16x16xi1>, vector<16x16xf32>
    %cst_740 = arith.constant dense<0xFF800000> : vector<16xf32>
    %974 = vector.multi_reduction <maximumf>, %973, %cst_740 [1] : vector<16x16xf32> to vector<16xf32>
    %975 = vector.shape_cast %974 : vector<16xf32> to vector<16x1xf32>
    %976 = vector.broadcast %975 : vector<16x1xf32> to vector<16x16xf32>
    %977 = arith.subf %973, %976 : vector<16x16xf32>
    %978 = math.exp %977 : vector<16x16xf32>
    %cst_741 = arith.constant dense<0.000000e+00> : vector<16xf32>
    %979 = vector.multi_reduction <add>, %978, %cst_741 [1] : vector<16x16xf32> to vector<16xf32>
    %980 = vector.shape_cast %979 : vector<16xf32> to vector<16x1xf32>
    %981 = tpu.reciprocal %980 {approx = true} : vector<16x1xf32> -> vector<16x1xf32>
    %982 = vector.broadcast %981 : vector<16x1xf32> to vector<16x16xf32>
    %983 = arith.mulf %978, %982 : vector<16x16xf32>
    %cst_742 = arith.constant dense<0.000000e+00> : vector<16x8xf32>
    %984 = tpu.matmul %983, %968, %cst_742 {dimension_numbers = #tpu.dot_dimension_numbers<[1], [0], [0], [1], [0, 0, 1, 1], [], []>} : vector<16x16xf32>, vector<16x8xf32>, vector<16x8xf32> -> vector<16x8xf32>
    %c3_743 = arith.constant 3 : index
    %c2_744 = arith.constant 2 : index
    %c0_745 = arith.constant 0 : index
    %c0_746 = arith.constant 0 : index
    %985 = vector.load %arg8[%c3_743, %c2_744, %c0_745, %c0_746] : memref<4x4x8x32xf32, #tpu.memory_space<vmem>>, vector<1x1x8x32xf32>
    %986 = vector.shape_cast %985 : vector<1x1x8x32xf32> to vector<8x32xf32>
    %cst_747 = arith.constant dense<0.000000e+00> : vector<16x32xf32>
    %987 = tpu.matmul %984, %986, %cst_747 {dimension_numbers = #tpu.dot_dimension_numbers<[1], [0], [0], [1], [0, 0, 1, 1], [], []>} : vector<16x8xf32>, vector<8x32xf32>, vector<16x32xf32> -> vector<16x32xf32>
    %988 = arith.addf %947, %987 : vector<16x32xf32>
    %c3_748 = arith.constant 3 : index
    %c3_749 = arith.constant 3 : index
    %c0_750 = arith.constant 0 : index
    %c0_751 = arith.constant 0 : index
    %989 = vector.load %arg2[%c3_748, %c3_749, %c0_750, %c0_751] : memref<4x4x32x8xf32, #tpu.memory_space<vmem>>, vector<1x1x32x8xf32>
    %990 = vector.shape_cast %989 : vector<1x1x32x8xf32> to vector<32x8xf32>
    %cst_752 = arith.constant dense<0.000000e+00> : vector<16x8xf32>
    %991 = tpu.matmul %864, %990, %cst_752 {dimension_numbers = #tpu.dot_dimension_numbers<[1], [0], [0], [1], [0, 0, 1, 1], [], []>} : vector<16x32xf32>, vector<32x8xf32>, vector<16x8xf32> -> vector<16x8xf32>
    %c3_753 = arith.constant 3 : index
    %c3_754 = arith.constant 3 : index
    %c0_755 = arith.constant 0 : index
    %c0_756 = arith.constant 0 : index
    %992 = vector.load %arg3[%c3_753, %c3_754, %c0_755, %c0_756] : memref<4x4x1x8xf32, #tpu.memory_space<vmem>>, vector<1x1x1x8xf32>
    %993 = vector.shape_cast %992 : vector<1x1x1x8xf32> to vector<1x8xf32>
    %994 = vector.broadcast %993 : vector<1x8xf32> to vector<16x8xf32>
    %995 = arith.addf %991, %994 : vector<16x8xf32>
    %c3_757 = arith.constant 3 : index
    %c3_758 = arith.constant 3 : index
    %c0_759 = arith.constant 0 : index
    %c0_760 = arith.constant 0 : index
    %996 = vector.load %arg4[%c3_757, %c3_758, %c0_759, %c0_760] : memref<4x4x32x8xf32, #tpu.memory_space<vmem>>, vector<1x1x32x8xf32>
    %997 = vector.shape_cast %996 : vector<1x1x32x8xf32> to vector<32x8xf32>
    %cst_761 = arith.constant dense<0.000000e+00> : vector<16x8xf32>
    %998 = tpu.matmul %864, %997, %cst_761 {dimension_numbers = #tpu.dot_dimension_numbers<[1], [0], [0], [1], [0, 0, 1, 1], [], []>} : vector<16x32xf32>, vector<32x8xf32>, vector<16x8xf32> -> vector<16x8xf32>
    %c3_762 = arith.constant 3 : index
    %c3_763 = arith.constant 3 : index
    %c0_764 = arith.constant 0 : index
    %c0_765 = arith.constant 0 : index
    %999 = vector.load %arg5[%c3_762, %c3_763, %c0_764, %c0_765] : memref<4x4x1x8xf32, #tpu.memory_space<vmem>>, vector<1x1x1x8xf32>
    %1000 = vector.shape_cast %999 : vector<1x1x1x8xf32> to vector<1x8xf32>
    %1001 = vector.broadcast %1000 : vector<1x8xf32> to vector<16x8xf32>
    %1002 = arith.addf %998, %1001 : vector<16x8xf32>
    %c3_766 = arith.constant 3 : index
    %c3_767 = arith.constant 3 : index
    %c0_768 = arith.constant 0 : index
    %c0_769 = arith.constant 0 : index
    %1003 = vector.load %arg6[%c3_766, %c3_767, %c0_768, %c0_769] : memref<4x4x32x8xf32, #tpu.memory_space<vmem>>, vector<1x1x32x8xf32>
    %1004 = vector.shape_cast %1003 : vector<1x1x32x8xf32> to vector<32x8xf32>
    %cst_770 = arith.constant dense<0.000000e+00> : vector<16x8xf32>
    %1005 = tpu.matmul %864, %1004, %cst_770 {dimension_numbers = #tpu.dot_dimension_numbers<[1], [0], [0], [1], [0, 0, 1, 1], [], []>} : vector<16x32xf32>, vector<32x8xf32>, vector<16x8xf32> -> vector<16x8xf32>
    %c3_771 = arith.constant 3 : index
    %c3_772 = arith.constant 3 : index
    %c0_773 = arith.constant 0 : index
    %c0_774 = arith.constant 0 : index
    %1006 = vector.load %arg7[%c3_771, %c3_772, %c0_773, %c0_774] : memref<4x4x1x8xf32, #tpu.memory_space<vmem>>, vector<1x1x1x8xf32>
    %1007 = vector.shape_cast %1006 : vector<1x1x1x8xf32> to vector<1x8xf32>
    %1008 = vector.broadcast %1007 : vector<1x8xf32> to vector<16x8xf32>
    %1009 = arith.addf %1005, %1008 : vector<16x8xf32>
    %cst_775 = arith.constant dense<0.000000e+00> : vector<16x16xf32>
    %1010 = tpu.matmul %995, %1002, %cst_775 {dimension_numbers = #tpu.dot_dimension_numbers<[1], [1], [0], [0], [0, 0, 1, 0], [], []>} : vector<16x8xf32>, vector<16x8xf32>, vector<16x16xf32> -> vector<16x16xf32>
    %cst_776 = arith.constant 0.353553385 : f32
    %1011 = vector.broadcast %cst_776 : f32 to vector<16x16xf32>
    %1012 = arith.mulf %1010, %1011 : vector<16x16xf32>
    %cst_777 = arith.constant -1.000000e+30 : f32
    %1013 = vector.broadcast %cst_777 : f32 to vector<16x16xf32>
    %1014 = arith.select %4, %1012, %1013 : vector<16x16xi1>, vector<16x16xf32>
    %cst_778 = arith.constant dense<0xFF800000> : vector<16xf32>
    %1015 = vector.multi_reduction <maximumf>, %1014, %cst_778 [1] : vector<16x16xf32> to vector<16xf32>
    %1016 = vector.shape_cast %1015 : vector<16xf32> to vector<16x1xf32>
    %1017 = vector.broadcast %1016 : vector<16x1xf32> to vector<16x16xf32>
    %1018 = arith.subf %1014, %1017 : vector<16x16xf32>
    %1019 = math.exp %1018 : vector<16x16xf32>
    %cst_779 = arith.constant dense<0.000000e+00> : vector<16xf32>
    %1020 = vector.multi_reduction <add>, %1019, %cst_779 [1] : vector<16x16xf32> to vector<16xf32>
    %1021 = vector.shape_cast %1020 : vector<16xf32> to vector<16x1xf32>
    %1022 = tpu.reciprocal %1021 {approx = true} : vector<16x1xf32> -> vector<16x1xf32>
    %1023 = vector.broadcast %1022 : vector<16x1xf32> to vector<16x16xf32>
    %1024 = arith.mulf %1019, %1023 : vector<16x16xf32>
    %cst_780 = arith.constant dense<0.000000e+00> : vector<16x8xf32>
    %1025 = tpu.matmul %1024, %1009, %cst_780 {dimension_numbers = #tpu.dot_dimension_numbers<[1], [0], [0], [1], [0, 0, 1, 1], [], []>} : vector<16x16xf32>, vector<16x8xf32>, vector<16x8xf32> -> vector<16x8xf32>
    %c3_781 = arith.constant 3 : index
    %c3_782 = arith.constant 3 : index
    %c0_783 = arith.constant 0 : index
    %c0_784 = arith.constant 0 : index
    %1026 = vector.load %arg8[%c3_781, %c3_782, %c0_783, %c0_784] : memref<4x4x8x32xf32, #tpu.memory_space<vmem>>, vector<1x1x8x32xf32>
    %1027 = vector.shape_cast %1026 : vector<1x1x8x32xf32> to vector<8x32xf32>
    %cst_785 = arith.constant dense<0.000000e+00> : vector<16x32xf32>
    %1028 = tpu.matmul %1025, %1027, %cst_785 {dimension_numbers = #tpu.dot_dimension_numbers<[1], [0], [0], [1], [0, 0, 1, 1], [], []>} : vector<16x8xf32>, vector<8x32xf32>, vector<16x32xf32> -> vector<16x32xf32>
    %1029 = arith.addf %988, %1028 : vector<16x32xf32>
    %1030 = arith.addf %838, %1029 : vector<16x32xf32>
    %c3_786 = arith.constant 3 : index
    %c0_787 = arith.constant 0 : index
    %c0_788 = arith.constant 0 : index
    %1031 = vector.load %arg9[%c3_786, %c0_787, %c0_788] : memref<4x1x32xf32, #tpu.memory_space<vmem>>, vector<1x1x32xf32>
    %1032 = vector.shape_cast %1031 : vector<1x1x32xf32> to vector<1x32xf32>
    %1033 = vector.broadcast %1032 : vector<1x32xf32> to vector<16x32xf32>
    %1034 = arith.addf %1030, %1033 : vector<16x32xf32>
    %c3_789 = arith.constant 3 : index
    %c0_790 = arith.constant 0 : index
    %c0_791 = arith.constant 0 : index
    %1035 = vector.load %arg12[%c3_789, %c0_790, %c0_791] : memref<4x1x32xf32, #tpu.memory_space<vmem>>, vector<1x1x32xf32>
    %1036 = vector.shape_cast %1035 : vector<1x1x32xf32> to vector<1x32xf32>
    %c3_792 = arith.constant 3 : index
    %c0_793 = arith.constant 0 : index
    %c0_794 = arith.constant 0 : index
    %1037 = vector.load %arg13[%c3_792, %c0_793, %c0_794] : memref<4x1x32xf32, #tpu.memory_space<vmem>>, vector<1x1x32xf32>
    %1038 = vector.shape_cast %1037 : vector<1x1x32xf32> to vector<1x32xf32>
    %cst_795 = arith.constant dense<0.000000e+00> : vector<16xf32>
    %1039 = vector.multi_reduction <add>, %1034, %cst_795 [1] : vector<16x32xf32> to vector<16xf32>
    %1040 = vector.shape_cast %1039 : vector<16xf32> to vector<16x1xf32>
    %cst_796 = arith.constant 3.200000e+01 : f32
    %1041 = vector.broadcast %cst_796 : f32 to vector<16x1xf32>
    %1042 = arith.divf %1040, %1041 : vector<16x1xf32>
    %1043 = vector.broadcast %1042 : vector<16x1xf32> to vector<16x32xf32>
    %1044 = arith.subf %1034, %1043 : vector<16x32xf32>
    %1045 = arith.mulf %1044, %1044 : vector<16x32xf32>
    %cst_797 = arith.constant dense<0.000000e+00> : vector<16xf32>
    %1046 = vector.multi_reduction <add>, %1045, %cst_797 [1] : vector<16x32xf32> to vector<16xf32>
    %1047 = vector.shape_cast %1046 : vector<16xf32> to vector<16x1xf32>
    %cst_798 = arith.constant 3.200000e+01 : f32
    %1048 = vector.broadcast %cst_798 : f32 to vector<16x1xf32>
    %1049 = arith.divf %1047, %1048 : vector<16x1xf32>
    %1050 = vector.broadcast %1042 : vector<16x1xf32> to vector<16x32xf32>
    %1051 = arith.subf %1034, %1050 : vector<16x32xf32>
    %cst_799 = arith.constant 9.99999974E-6 : f32
    %1052 = vector.broadcast %cst_799 : f32 to vector<16x1xf32>
    %1053 = arith.addf %1049, %1052 : vector<16x1xf32>
    %1054 = math.rsqrt %1053 : vector<16x1xf32>
    %1055 = vector.broadcast %1054 : vector<16x1xf32> to vector<16x32xf32>
    %1056 = arith.mulf %1051, %1055 : vector<16x32xf32>
    %1057 = vector.broadcast %1036 : vector<1x32xf32> to vector<16x32xf32>
    %1058 = arith.mulf %1056, %1057 : vector<16x32xf32>
    %1059 = vector.broadcast %1038 : vector<1x32xf32> to vector<16x32xf32>
    %1060 = arith.addf %1058, %1059 : vector<16x32xf32>
    %c3_800 = arith.constant 3 : index
    %c0_801 = arith.constant 0 : index
    %c0_802 = arith.constant 0 : index
    %1061 = vector.load %arg14[%c3_800, %c0_801, %c0_802] : memref<4x32x64xf32, #tpu.memory_space<vmem>>, vector<1x32x64xf32>
    %1062 = vector.shape_cast %1061 : vector<1x32x64xf32> to vector<32x64xf32>
    %cst_803 = arith.constant dense<0.000000e+00> : vector<16x64xf32>
    %1063 = tpu.matmul %1060, %1062, %cst_803 {dimension_numbers = #tpu.dot_dimension_numbers<[1], [0], [0], [1], [0, 0, 1, 1], [], []>} : vector<16x32xf32>, vector<32x64xf32>, vector<16x64xf32> -> vector<16x64xf32>
    %c3_804 = arith.constant 3 : index
    %c0_805 = arith.constant 0 : index
    %c0_806 = arith.constant 0 : index
    %1064 = vector.load %arg15[%c3_804, %c0_805, %c0_806] : memref<4x1x64xf32, #tpu.memory_space<vmem>>, vector<1x1x64xf32>
    %1065 = vector.shape_cast %1064 : vector<1x1x64xf32> to vector<1x64xf32>
    %1066 = vector.broadcast %1065 : vector<1x64xf32> to vector<16x64xf32>
    %1067 = arith.addf %1063, %1066 : vector<16x64xf32>
    %cst_807 = arith.constant 5.000000e-01 : f32
    %1068 = vector.broadcast %cst_807 : f32 to vector<16x64xf32>
    %1069 = arith.mulf %1068, %1067 : vector<16x64xf32>
    %cst_808 = arith.constant 0.707106769 : f32
    %1070 = vector.broadcast %cst_808 : f32 to vector<16x64xf32>
    %1071 = arith.mulf %1067, %1070 : vector<16x64xf32>
    %cst_809 = arith.constant 0.000000e+00 : f32
    %1072 = vector.broadcast %cst_809 : f32 to vector<16x64xf32>
    %1073 = arith.cmpf oge, %1071, %1072 : vector<16x64xf32>
    %cst_810 = arith.constant 1.000000e+00 : f32
    %cst_811 = arith.constant -1.000000e+00 : f32
    %1074 = vector.broadcast %cst_810 : f32 to vector<16x64xf32>
    %1075 = vector.broadcast %cst_811 : f32 to vector<16x64xf32>
    %1076 = arith.select %1073, %1074, %1075 : vector<16x64xi1>, vector<16x64xf32>
    %1077 = math.absf %1071 : vector<16x64xf32>
    %cst_812 = arith.constant 0.327591091 : f32
    %1078 = vector.broadcast %cst_812 : f32 to vector<16x64xf32>
    %1079 = arith.mulf %1078, %1077 : vector<16x64xf32>
    %cst_813 = arith.constant 1.000000e+00 : f32
    %1080 = vector.broadcast %cst_813 : f32 to vector<16x64xf32>
    %1081 = arith.addf %1080, %1079 : vector<16x64xf32>
    %cst_814 = arith.constant 1.000000e+00 : f32
    %1082 = vector.broadcast %cst_814 : f32 to vector<16x64xf32>
    %1083 = arith.divf %1082, %1081 : vector<16x64xf32>
    %cst_815 = arith.constant 1.06140542 : f32
    %1084 = vector.broadcast %cst_815 : f32 to vector<16x64xf32>
    %1085 = arith.mulf %1084, %1083 : vector<16x64xf32>
    %cst_816 = arith.constant -1.45315206 : f32
    %1086 = vector.broadcast %cst_816 : f32 to vector<16x64xf32>
    %1087 = arith.addf %1085, %1086 : vector<16x64xf32>
    %1088 = arith.mulf %1087, %1083 : vector<16x64xf32>
    %cst_817 = arith.constant 1.42141378 : f32
    %1089 = vector.broadcast %cst_817 : f32 to vector<16x64xf32>
    %1090 = arith.addf %1088, %1089 : vector<16x64xf32>
    %1091 = arith.mulf %1090, %1083 : vector<16x64xf32>
    %cst_818 = arith.constant -0.284496725 : f32
    %1092 = vector.broadcast %cst_818 : f32 to vector<16x64xf32>
    %1093 = arith.addf %1091, %1092 : vector<16x64xf32>
    %1094 = arith.mulf %1093, %1083 : vector<16x64xf32>
    %cst_819 = arith.constant 0.254829586 : f32
    %1095 = vector.broadcast %cst_819 : f32 to vector<16x64xf32>
    %1096 = arith.addf %1094, %1095 : vector<16x64xf32>
    %1097 = arith.mulf %1096, %1083 : vector<16x64xf32>
    %cst_820 = arith.constant 0.000000e+00 : f32
    %1098 = vector.broadcast %cst_820 : f32 to vector<16x64xf32>
    %1099 = arith.subf %1098, %1077 : vector<16x64xf32>
    %1100 = arith.mulf %1099, %1077 : vector<16x64xf32>
    %1101 = math.exp %1100 : vector<16x64xf32>
    %1102 = arith.mulf %1097, %1101 : vector<16x64xf32>
    %cst_821 = arith.constant 1.000000e+00 : f32
    %1103 = vector.broadcast %cst_821 : f32 to vector<16x64xf32>
    %1104 = arith.subf %1103, %1102 : vector<16x64xf32>
    %1105 = arith.mulf %1076, %1104 : vector<16x64xf32>
    %cst_822 = arith.constant 1.000000e+00 : f32
    %1106 = vector.broadcast %cst_822 : f32 to vector<16x64xf32>
    %1107 = arith.addf %1106, %1105 : vector<16x64xf32>
    %1108 = arith.mulf %1069, %1107 : vector<16x64xf32>
    %c3_823 = arith.constant 3 : index
    %c0_824 = arith.constant 0 : index
    %c0_825 = arith.constant 0 : index
    %1109 = vector.load %arg16[%c3_823, %c0_824, %c0_825] : memref<4x64x32xf32, #tpu.memory_space<vmem>>, vector<1x64x32xf32>
    %1110 = vector.shape_cast %1109 : vector<1x64x32xf32> to vector<64x32xf32>
    %cst_826 = arith.constant dense<0.000000e+00> : vector<16x32xf32>
    %1111 = tpu.matmul %1108, %1110, %cst_826 {dimension_numbers = #tpu.dot_dimension_numbers<[1], [0], [0], [1], [0, 0, 1, 1], [], []>} : vector<16x64xf32>, vector<64x32xf32>, vector<16x32xf32> -> vector<16x32xf32>
    %1112 = arith.addf %1034, %1111 : vector<16x32xf32>
    %c3_827 = arith.constant 3 : index
    %c0_828 = arith.constant 0 : index
    %c0_829 = arith.constant 0 : index
    %1113 = vector.load %arg17[%c3_827, %c0_828, %c0_829] : memref<4x1x32xf32, #tpu.memory_space<vmem>>, vector<1x1x32xf32>
    %1114 = vector.shape_cast %1113 : vector<1x1x32xf32> to vector<1x32xf32>
    %1115 = vector.broadcast %1114 : vector<1x32xf32> to vector<16x32xf32>
    %1116 = arith.addf %1112, %1115 : vector<16x32xf32>
    %1117 = vector.extract_strided_slice %1116 {offsets = [0, 0], sizes = [1, 32], strides = [1, 1]} : vector<16x32xf32> to vector<1x32xf32>
    %c0_830 = arith.constant 0 : index
    %c0_831 = arith.constant 0 : index
    %1118 = vector.load %arg18[%c0_830, %c0_831] : memref<32x10xf32, #tpu.memory_space<vmem>>, vector<32x10xf32>
    %cst_832 = arith.constant dense<0.000000e+00> : vector<1x10xf32>
    %1119 = tpu.matmul %1117, %1118, %cst_832 {dimension_numbers = #tpu.dot_dimension_numbers<[1], [0], [0], [1], [0, 0, 1, 1], [], []>} : vector<1x32xf32>, vector<32x10xf32>, vector<1x10xf32> -> vector<1x10xf32>
    %c0_833 = arith.constant 0 : index
    %c0_834 = arith.constant 0 : index
    %1120 = vector.load %arg19[%c0_833, %c0_834] : memref<1x10xf32, #tpu.memory_space<vmem>>, vector<1x10xf32>
    %1121 = arith.addf %1119, %1120 : vector<1x10xf32>
    %c0_835 = arith.constant 0 : index
    %c0_836 = arith.constant 0 : index
    %c0_837 = arith.constant 0 : index
    %1122 = vector.load %arg20[%c0_835, %c0_836, %c0_837] : memref<1x1x10xf32, #tpu.memory_space<vmem>>, vector<1x1x10xf32>
    %1123 = vector.shape_cast %1122 : vector<1x1x10xf32> to vector<1x10xf32>
    %1124 = vector.shape_cast %1121 : vector<1x10xf32> to vector<1x1x10xf32>
    tpu.vector_store %arg20[%c0_835, %c0_836, %c0_837], %1124 {strides = array<i32>} : memref<1x1x10xf32, #tpu.memory_space<vmem>>, vector<1x1x10xf32>,
    return
  }
  func.func @transform_0(%arg0: i32) -> (i32, i32, i32) {
    %c0_i32 = arith.constant 0 : i32
    %c0_i32_0 = arith.constant 0 : i32
    %c0_i32_1 = arith.constant 0 : i32
    return %arg0, %c0_i32, %c0_i32_0 : i32, i32, i32
  }
  func.func @transform_1(%arg0: i32) -> (i32, i32, i32, i32) {
    %c0_i32 = arith.constant 0 : i32
    %c0_i32_0 = arith.constant 0 : i32
    %c0_i32_1 = arith.constant 0 : i32
    %c0_i32_2 = arith.constant 0 : i32
    %c0_i32_3 = arith.constant 0 : i32
    return %c0_i32, %c0_i32_0, %c0_i32_1, %c0_i32_2 : i32, i32, i32, i32
  }
  func.func @transform_2(%arg0: i32) -> (i32, i32, i32, i32) {
    %c0_i32 = arith.constant 0 : i32
    %c0_i32_0 = arith.constant 0 : i32
    %c0_i32_1 = arith.constant 0 : i32
    %c0_i32_2 = arith.constant 0 : i32
    %c0_i32_3 = arith.constant 0 : i32
    return %c0_i32, %c0_i32_0, %c0_i32_1, %c0_i32_2 : i32, i32, i32, i32
  }
  func.func @transform_3(%arg0: i32) -> (i32, i32, i32, i32) {
    %c0_i32 = arith.constant 0 : i32
    %c0_i32_0 = arith.constant 0 : i32
    %c0_i32_1 = arith.constant 0 : i32
    %c0_i32_2 = arith.constant 0 : i32
    %c0_i32_3 = arith.constant 0 : i32
    return %c0_i32, %c0_i32_0, %c0_i32_1, %c0_i32_2 : i32, i32, i32, i32
  }
  func.func @transform_4(%arg0: i32) -> (i32, i32, i32, i32) {
    %c0_i32 = arith.constant 0 : i32
    %c0_i32_0 = arith.constant 0 : i32
    %c0_i32_1 = arith.constant 0 : i32
    %c0_i32_2 = arith.constant 0 : i32
    %c0_i32_3 = arith.constant 0 : i32
    return %c0_i32, %c0_i32_0, %c0_i32_1, %c0_i32_2 : i32, i32, i32, i32
  }
  func.func @transform_5(%arg0: i32) -> (i32, i32, i32, i32) {
    %c0_i32 = arith.constant 0 : i32
    %c0_i32_0 = arith.constant 0 : i32
    %c0_i32_1 = arith.constant 0 : i32
    %c0_i32_2 = arith.constant 0 : i32
    %c0_i32_3 = arith.constant 0 : i32
    return %c0_i32, %c0_i32_0, %c0_i32_1, %c0_i32_2 : i32, i32, i32, i32
  }
  func.func @transform_6(%arg0: i32) -> (i32, i32, i32, i32) {
    %c0_i32 = arith.constant 0 : i32
    %c0_i32_0 = arith.constant 0 : i32
    %c0_i32_1 = arith.constant 0 : i32
    %c0_i32_2 = arith.constant 0 : i32
    %c0_i32_3 = arith.constant 0 : i32
    return %c0_i32, %c0_i32_0, %c0_i32_1, %c0_i32_2 : i32, i32, i32, i32
  }
  func.func @transform_7(%arg0: i32) -> (i32, i32, i32, i32) {
    %c0_i32 = arith.constant 0 : i32
    %c0_i32_0 = arith.constant 0 : i32
    %c0_i32_1 = arith.constant 0 : i32
    %c0_i32_2 = arith.constant 0 : i32
    %c0_i32_3 = arith.constant 0 : i32
    return %c0_i32, %c0_i32_0, %c0_i32_1, %c0_i32_2 : i32, i32, i32, i32
  }
  func.func @transform_8(%arg0: i32) -> (i32, i32, i32) {
    %c0_i32 = arith.constant 0 : i32
    %c0_i32_0 = arith.constant 0 : i32
    %c0_i32_1 = arith.constant 0 : i32
    %c0_i32_2 = arith.constant 0 : i32
    return %c0_i32, %c0_i32_0, %c0_i32_1 : i32, i32, i32
  }
  func.func @transform_9(%arg0: i32) -> (i32, i32, i32) {
    %c0_i32 = arith.constant 0 : i32
    %c0_i32_0 = arith.constant 0 : i32
    %c0_i32_1 = arith.constant 0 : i32
    %c0_i32_2 = arith.constant 0 : i32
    return %c0_i32, %c0_i32_0, %c0_i32_1 : i32, i32, i32
  }
  func.func @transform_10(%arg0: i32) -> (i32, i32, i32) {
    %c0_i32 = arith.constant 0 : i32
    %c0_i32_0 = arith.constant 0 : i32
    %c0_i32_1 = arith.constant 0 : i32
    %c0_i32_2 = arith.constant 0 : i32
    return %c0_i32, %c0_i32_0, %c0_i32_1 : i32, i32, i32
  }
  func.func @transform_11(%arg0: i32) -> (i32, i32, i32) {
    %c0_i32 = arith.constant 0 : i32
    %c0_i32_0 = arith.constant 0 : i32
    %c0_i32_1 = arith.constant 0 : i32
    %c0_i32_2 = arith.constant 0 : i32
    return %c0_i32, %c0_i32_0, %c0_i32_1 : i32, i32, i32
  }
  func.func @transform_12(%arg0: i32) -> (i32, i32, i32) {
    %c0_i32 = arith.constant 0 : i32
    %c0_i32_0 = arith.constant 0 : i32
    %c0_i32_1 = arith.constant 0 : i32
    %c0_i32_2 = arith.constant 0 : i32
    return %c0_i32, %c0_i32_0, %c0_i32_1 : i32, i32, i32
  }
  func.func @transform_13(%arg0: i32) -> (i32, i32, i32) {
    %c0_i32 = arith.constant 0 : i32
    %c0_i32_0 = arith.constant 0 : i32
    %c0_i32_1 = arith.constant 0 : i32
    %c0_i32_2 = arith.constant 0 : i32
    return %c0_i32, %c0_i32_0, %c0_i32_1 : i32, i32, i32
  }
  func.func @transform_14(%arg0: i32) -> (i32, i32, i32) {
    %c0_i32 = arith.constant 0 : i32
    %c0_i32_0 = arith.constant 0 : i32
    %c0_i32_1 = arith.constant 0 : i32
    %c0_i32_2 = arith.constant 0 : i32
    return %c0_i32, %c0_i32_0, %c0_i32_1 : i32, i32, i32
  }
  func.func @transform_15(%arg0: i32) -> (i32, i32, i32) {
    %c0_i32 = arith.constant 0 : i32
    %c0_i32_0 = arith.constant 0 : i32
    %c0_i32_1 = arith.constant 0 : i32
    %c0_i32_2 = arith.constant 0 : i32
    return %c0_i32, %c0_i32_0, %c0_i32_1 : i32, i32, i32
  }
  func.func @transform_16(%arg0: i32) -> (i32, i32, i32) {
    %c0_i32 = arith.constant 0 : i32
    %c0_i32_0 = arith.constant 0 : i32
    %c0_i32_1 = arith.constant 0 : i32
    %c0_i32_2 = arith.constant 0 : i32
    return %c0_i32, %c0_i32_0, %c0_i32_1 : i32, i32, i32
  }
  func.func @transform_17(%arg0: i32) -> (i32, i32) {
    %c0_i32 = arith.constant 0 : i32
    %c0_i32_0 = arith.constant 0 : i32
    %c0_i32_1 = arith.constant 0 : i32
    return %c0_i32, %c0_i32_0 : i32, i32
  }
  func.func @transform_18(%arg0: i32) -> (i32, i32) {
    %c0_i32 = arith.constant 0 : i32
    %c0_i32_0 = arith.constant 0 : i32
    %c0_i32_1 = arith.constant 0 : i32
    return %c0_i32, %c0_i32_0 : i32, i32
  }
  func.func @transform_19(%arg0: i32) -> (i32, i32, i32) {
    %c0_i32 = arith.constant 0 : i32
    %c0_i32_0 = arith.constant 0 : i32
    %c0_i32_1 = arith.constant 0 : i32
    return %arg0, %c0_i32, %c0_i32_0 : i32, i32, i32
  }
}

</mosaic_0001>

<bundles_post_ra>
// kernel: encoder_transformer_forward.1
= control target key start
LH: loop header
LB: loop body
LE: loop exit
PB: predicated region body
PF: predicated region fallthrough
CT: control target
= control target key end

     0   :  { %s15817_s0 = inlined_call_operand.vmem [shape: f32[2,16,32], index: 0, kind: input, shape index: {}]   ;;  %s15818_s1 = inlined_call_operand.vmem [shape: f32[4,4,32,8], index: 1, kind: input, shape index: {}]   ;;  %s15819_s2 = inlined_call_operand.vmem [shape: f32[4,4,1,8], index: 2, kind: input, shape index: {}]   ;;  %s15820_s3 = inlined_call_operand.vmem [shape: f32[4,4,32,8], index: 3, kind: input, shape index: {}]   ;;  %s15821_s4 = inlined_call_operand.vmem [shape: f32[4,4,1,8], index: 4, kind: input, shape index: {}]   ;;  %s15822_s5 = inlined_call_operand.vmem [shape: f32[4,4,32,8], index: 5, kind: input, shape index: {}]   ;;  %s15823_s6 = inlined_call_operand.vmem [shape: f32[4,4,1,8], index: 6, kind: input, shape index: {}]   ;;  %s15824_s7 = inlined_call_operand.vmem [shape: f32[4,4,8,32], index: 7, kind: input, shape index: {}]   ;;  %s15825_s8 = inlined_call_operand.vmem [shape: f32[4,1,32], index: 8, kind: input, shape index: {}]   ;;  %s15826_s9 = inlined_call_operand.vmem [shape: f32[4,1,32], index: 9, kind: input, shape index: {}]   ;;  %s15827_s10 = inlined_call_operand.vmem [shape: f32[4,1,32], index: 10, kind: input, shape index: {}]   ;;  %s15828_s11 = inlined_call_operand.vmem [shape: f32[4,1,32], index: 11, kind: input, shape index: {}]   ;;  %s15829_s12 = inlined_call_operand.vmem [shape: f32[4,1,32], index: 12, kind: input, shape index: {}]   ;;  %s15830_s13 = inlined_call_operand.vmem [shape: f32[4,32,64], index: 13, kind: input, shape index: {}]   ;;  %s15831_s14 = inlined_call_operand.vmem [shape: f32[4,1,64], index: 14, kind: input, shape index: {}]   ;;  %s15832_s15 = inlined_call_operand.vmem [shape: f32[4,64,32], index: 15, kind: input, shape index: {}]   ;;  %s15833_s16 = inlined_call_operand.vmem [shape: f32[4,1,32], index: 16, kind: input, shape index: {}]   ;;  %s15834_s17 = inlined_call_operand.vmem [shape: f32[32,10], index: 17, kind: input, shape index: {}]   ;;  %s15835_s18 = inlined_call_operand.vmem [shape: f32[1,10], index: 18, kind: input, shape index: {}]   ;;  %s15836_s19 = inlined_call_operand.hbm [shape: f32[2,1,10], index: 19, kind: output, shape index: {}]  }
   0x1   :  { %15847 = sst [smem:[#allocation11_spill]] %s15817_s0 }
   0x2   :  { %15848 = sst [smem:[#allocation12_spill]] %s15818_s1 }
   0x3   :  { %15849 = sst [smem:[#allocation13_spill]] %s15819_s2 }
   0x4   :  { %15850 = sst [smem:[#allocation14_spill]] %s15820_s3 }
   0x5   :  { %15851 = sst [smem:[#allocation15_spill]] %s15821_s4 }
   0x6   :  { %24 = vsyncpa [#allocation3], 0 }
   0x7   :  { %26 = vsyncpa [#allocation3 + $0x1], 0  ;;  %s14045_s0 = smov 0   ;;  %s14047_s30 = smov 0  }
   0x8   :  { %s14049_s20 = smov 0   ;;  %s14051_s21 = smov 0  }
   0x9 LB: > { %15852 = sst [smem:[#allocation5_spill]] %s13926_s0  ;;  %s14066_s1 = sadd.s32 4294967295, %s13938_s21   ;;  %s13938_s21 = sphi %s14051_s21, %s15871_s21   ;;  %s13934_s20 = sphi %s14049_s20, %s15876_s20   ;;  %s13930_s30 = sphi %s14047_s30, %s15875_s30   ;;  %s13926_s0 = sphi %s14045_s0, %s15874_s0  }
   0xa   : > { %15853 = sst [smem:[#allocation6_spill]] %s13934_s20  ;;  %s10851_s22 = sadd.s32 4294967294, %s13938_s21  }
   0xb   : > { %15854 = sst [smem:[#allocation7_spill]] %s13938_s21  ;;  %s14070_s2 = sadd.s32 1, %s13938_s21  }
   0xc   : > { %15855 = sst [smem:[#allocation8_spill]] %s14070_s2  ;;  %s443_s23 = sadd.s32 1, %s13934_s20 }
   0xd   : > { %s440_s24 = ssub.s32 %s13938_s21, %s14070_s2  ;;  %p453_p0 = scmp.ne.s32.totalorder %s13934_s20, %s13930_s30 }
   0xe   : > { %p441_p1 = scmp.eq.s32.totalorder %s440_s24, 0  ;;  %p454_p2 = scmp.eq.s32.totalorder %s14066_s1, 1 }
   0xf   : > { %p459_p3 = scmp.ne.s32.totalorder %s13930_s30, %s13926_s0  ;;  %p460_p4 = scmp.eq.s32.totalorder %s10851_s22, 1 }
  0x10   : > { %s14081_s25 = scalar_select %p441_p1, %s13934_s20, %s443_s23  }
  0x11   : > { %p14083_p5 = por %p454_p2, %p453_p0  ;;  %p14087_p6 = por %p460_p4, %p459_p3 }
  0x12   : > { %15856 = sst [smem:[#allocation9_spill]] %s14081_s25  ;;  %p10854_p7 = scmp.ge.s32.totalorder %s13938_s21, 1 }
  0x13   : > { %s15858_s26 = scalar_select %p14087_p6, 1, 0 }
  0x14   : > { %p540_p8 = scmp.lt.s32.totalorder %s13938_s21, 3 }
  0x15   : > { %15859 = sst [smem:[#allocation10_spill]] %s15858_s26 }
  0x16   : > { %p541_p9 = pnand %p10854_p7, %p540_p8 }
  0x17   : > { %p595_p10 = scmp.lt.s32.totalorder (!%p541_p9), %s14066_s1, 1  ;;  %vm607_vm0 = vcmask (!%p541_p9), 261120   ;;  %s15860_s23 = sld [smem:[#allocation11_spill]] (!%p541_p9)  ;;  %v829_v26 = vld [vmem:[%s15822_s5] sm:$0xff] (!%p541_p9)  ;;  %v830_v27 = vld [vmem:[%s15822_s5 + $0x8] sm:$0xff] (!%p541_p9)  ;;  %v831_v43 = vld [vmem:[%s15822_s5 + $0x10] sm:$0xff] (!%p541_p9) }
  0x18   : > { %544 = sbr.rel (%p541_p9) target bundleno = 20374 (0x4f96), region = 96  ;;  %s15861_s29 = sld [smem:[#allocation12_spill]] (!%p541_p9)  ;;  %v12987_v28 = vpack.c.bf16 (!%p541_p9), %v830_v27, %v829_v26  ;;  %v10857_v36 = vld [vmem:[%s15826_s9] ss:$0 sm:$0xff] (!%p541_p9)  ;;  %v832_v44 = vld [vmem:[%s15822_s5 + $0x18] sm:$0xff] (!%p541_p9)  ;;  %vm915_vm1 = vcmask (!%p541_p9), 64512  }
  0x19   : > { %s15862_s20 = sld [smem:[#allocation14_spill]] (!%p541_p9)  ;;  %v10858_v38 = vld [vmem:[%s15827_s10] ss:$0 sm:$0xff] (!%p541_p9)  ;;  %v12991_v47 = vpack.c.bf16 (!%p541_p9), %v832_v44, %v831_v43  ;;  %s15864_s4 = sld [smem:[#allocation15_spill]] (!%p541_p9)  ;;  %vm14192_vm2 = vmpackc.low (!%p541_p9), %vm915_vm1, %vm915_vm1  ;;  %vm1007_vm4 = vcmask (!%p541_p9), 130048   ;;  %vm3029_vm7 = vcmask (!%p541_p9), 523264  }
  0x1a   : > { %vm13942_vm14 = vmmov (!%p541_p9), 0   ;;  %s11471_s21 = sshll.u32 (!%p541_p9), %s14066_s1, 4  ;;  %vm10781_vm15 = vcmask (!%p541_p9), 73728  }
  0x1b   : > { %s15775_s25 = scalar_lea.hbm (!%p541_p9), %s15836_s19, %s11471_s21 }
  0x1e   : > { %v651_v14 = vld [vmem:[%s15861_s29] sm:$0xff] (!%p541_p9)  ;;  %v652_v15 = vld [vmem:[%s15861_s29 + $0x8] sm:$0xff] (!%p541_p9)  ;;  %v653_v20 = vld [vmem:[%s15861_s29 + $0x10] sm:$0xff] (!%p541_p9) }
  0x1f   : > { %s596_s27 = scalar_select %p595_p10, %s14066_s1, 1  ;;  %v12971_v16 = vpack.c.bf16 %v652_v15, %v651_v14  ;;  %v743_v17 = vld [vmem:[%s15862_s20] sm:$0xff]  ;;  %v654_v21 = vld [vmem:[%s15861_s29 + $0x18] sm:$0xff]  ;;  %v10876_v43 = vld [vmem:[%s15861_s29 + $0x30] sm:$0xff] }
  0x20   : > { %s15863_s2 = smov %s15862_s20  ;;  %v12975_v22 = vpack.c.bf16 %v654_v21, %v653_v20  ;;  %v10862_v54 = vld [vmem:[%s15864_s4] ss:$0 sm:$0xff]  ;;  %v10877_v44 = vld [vmem:[%s15861_s29 + $0x38] sm:$0xff]  ;;  %s593_s20 = sand.u32 1, %s13930_s30  }
  0x21   : > { %s11474_s28 = sshll.u32 %s596_s27, 4  ;;  %v744_v18 = vld [vmem:[%s15863_s2 + $0x8] sm:$0xff]  ;;  %12972 = vmatprep.subr.bf16.mxu0 %v12971_v16  ;;  %v745_v23 = vld [vmem:[%s15863_s2 + $0x10] sm:$0xff]  ;;  %v746_v24 = vld [vmem:[%s15863_s2 + $0x18] sm:$0xff]  ;;  %s10784_s0 = scalar_lea.sflag [#allocation3], %s593_s20 }
  0x22   : > { %s599_s24 = scalar_lea.vmem %s15860_s23, %s11474_s28  ;;  %v12979_v19 = vpack.c.bf16 %v744_v18, %v743_v17  ;;  %12974 = vmatpush3.bf16.msra.mxu0 %v12971_v16  ;;  %v12983_v25 = vpack.c.bf16 %v746_v24, %v745_v23  ;;  %v10882_v48 = vld [vmem:[%s15863_s2 + $0x20] sm:$0xff]  ;;  %v10883_v49 = vld [vmem:[%s15863_s2 + $0x28] sm:$0xff]  ;;  %v10884_v51 = vld [vmem:[%s15863_s2 + $0x30] sm:$0xff]  ;;  %s15865_s28 = sld [smem:[#allocation13_spill]]  ;;  %v602_v16 = vlaneseq }
  0x23   : > { %v14098_v0 = vld [vmem:[%s599_s24] sm:$0xff]  ;;  %v14100_v1 = vld [vmem:[%s599_s24 + $0x8] sm:$0xff]  ;;  %12976 = vmatprep.subr.bf16.mxu0 %v12975_v22  ;;  %v13013_v50 = vpack.c.bf16 %v10883_v49, %v10882_v48  ;;  %v10885_v52 = vld [vmem:[%s15863_s2 + $0x38] sm:$0xff]  ;;  %v13009_v49 = vpack.c.bf16 %v10877_v44, %v10876_v43  ;;  %s594_s23 = scalar_lea.vmem [#allocation2], %s593_s20  ;;  %s13944_s1 = smov [#allocation2]  }
  0x24   : > { %v608_v2 = vsel %vm607_vm0, %v14098_v0, 0.0  ;;  %v611_v3 = vsel %vm607_vm0, %v14100_v1, 0.0  ;;  %12980 = vmatprep.subr.bf16.mxu1 %v12979_v19  ;;  %v13017_v53 = vpack.c.bf16 %v10885_v52, %v10884_v51  ;;  %v14212_v17 = vand.u32 127, %v602_v16  ;;  %v10891_v51 = vld [vmem:[%s15822_s5 + $0x28] sm:$0xff]  ;;  %v10927_v44 = vld [vmem:[%s15822_s5 + $0x50] sm:$0xff]  ;;  %s10796_s24 = sshll.u32 %s594_s23, 4  ;;  %s15777_s24 = int_to_ptr.vmem [resolvable:$true] %s10796_s24 }
  0x25   : > { %609 = vadd.xlane.f32.xlu0 %v608_v2  ;;  %12982 = vmatpush3.bf16.msra.mxu1 %v12979_v19  ;;  %s13876_s26 = scalar_lea.vmem %s15777_s24, 16 }
  0x26   : > { %12978 = vmatpush3.bf16.msra.mxu0 %v12975_v22  ;;  %12984 = vmatprep.subr.bf16.mxu1 %v12983_v25  ;;  %vm604_vm3 = vcmp.lt.s32.totalorder %v14212_v17, 9  ;;  %p13877_p11 = scmp.ne.s32.totalorder %s15777_s24, %s13876_s26 }
  0x27   : > { %12988 = vmatprep.subr.bf16.mxu0 %v12987_v28 }
  0x28   : > { %v10859_v55 = vld [vmem:[%s15865_s28] ss:$0 sm:$0xff]  ;;  %p13878_p12 = pnand %p13877_p11, %p14083_p5 }
  0x29   : > { %612 = vadd.xlane.f32.xlu0 %v611_v3  ;;  %12986 = vmatpush3.bf16.msra.mxu1 %v12983_v25  ;;  %v10865_v3 = vld [vmem:[%s15823_s6] ss:$0 sm:$0xff] }
  0x2a   : > { %p13879_p13 = pneg %p13878_p12 }
  0xb2   : > { %v610_v4 = vpop.xlane.xlu0 %609 }
  0xb3   : > { %v615_v5 = vmul.f32 0.03125, %v610_v4 }
  0xb5   : > { %v617_v6 = vsub.f32 %v14098_v0, %v615_v5 }
  0xb6   : > { %v613_v7 = vpop.xlane.xlu0 %612 }
  0xb7   : > { %v616_v8 = vmul.f32 0.03125, %v613_v7  ;;  %v619_v9 = vmul.f32 %v617_v6, %v617_v6 }
  0xb9   : > { %v618_v10 = vsub.f32 %v14100_v1, %v616_v8  ;;  %v621_v11 = vsel %vm607_vm0, %v619_v9, 0.0 }
  0xba   : > { %622 = vadd.xlane.f32.xlu1 %v621_v11 }
  0xbb   : > { %v620_v12 = vmul.f32 %v618_v10, %v618_v10 }
  0xbd   : > { %v624_v13 = vsel %vm607_vm0, %v620_v12, 0.0 }
  0xbe   : > { %625 = vadd.xlane.f32.xlu1 %v624_v13 }
 0x147   : > { %v623_v29 = vpop.xlane.xlu1 %622 }
 0x148   : > { %v627_v30 = vmul.f32 0.03125, %v623_v29 }
 0x14a   : > { %v629_v31 = vadd.f32 1e-05, %v627_v30 }
 0x14b   : > { %v626_v32 = vpop.xlane.xlu1 %625 }
 0x14c   : > { %13684 = vrsqrt.f32 %v629_v31  ;;  %v628_v33 = vmul.f32 0.03125, %v626_v32 }
 0x14e   : > { %v630_v34 = vadd.f32 1e-05, %v628_v33 }
 0x150   : > { %13686 = vrsqrt.f32 %v630_v34 }
 0x156   : > { %v13685_v35 = vpop.eup %13684 }
 0x157   : > { %v633_v37 = vmul.f32 %v13685_v35, %v617_v6 }
 0x159   : > { %v641_v39 = vmul.f32 %v10857_v36, %v633_v37  ;;  %v10875_v37 = vld [vmem:[%s15861_s29 + $0x28] sm:$0xff] }
 0x15a   : > { %v13687_v40 = vpop.eup %13686 }
 0x15b   : > { %v14146_v41 = vadd.f32 %v10858_v38, %v641_v39  ;;  %v634_v42 = vmul.f32 %v13687_v40, %v618_v10  ;;  %v10887_v10 = vld [vmem:[%s15864_s4 + $0x1] ss:$0 sm:$0xff] }
 0x15d   : > { %v642_v45 = vmul.f32 %v10857_v36, %v634_v42  ;;  %12016 = vmatprep.mubr.msk.f32.mxu0 %vm607_vm0, %v14146_v41  ;;  %12027 = vmatprep.mubr.msk.f32.mxu1 %vm607_vm0, %v14146_v41  ;;  %v10874_v36 = vld [vmem:[%s15861_s29 + $0x20] sm:$0xff] }
 0x15f   : > { %v14158_v46 = vadd.f32 %v10858_v38, %v642_v45  ;;  %v13005_v38 = vpack.c.bf16 %v10875_v37, %v10874_v36 }
 0x161   : > { %12017 = vmatmul.mubr.msk.f32.vlgmr.msra.gmra.mrb[0].mxu0 %vm607_vm0, %v14158_v46  ;;  %12028 = vmatmul.mubr.msk.f32.vlgmr.msra.gmra.mrb[0].mxu1 %vm607_vm0, %v14158_v46 }
 0x162   : > { %12990 = vmatpush3.bf16.msra.mxu0 %v12987_v28  ;;  %12038 = vmatprep.mubr.msk.f32.mxu0 %vm607_vm0, %v14146_v41 }
 0x163   : > { %12992 = vmatprep.subr.bf16.mxu0 %v12991_v47 }
 0x166   : > { %12994 = vmatpush3.bf16.msra.mxu0 %v12991_v47 }
 0x167   : > { %13014 = vmatprep.subr.bf16.mxu0 %v13013_v50 }
 0x169   : > { %12039 = vmatmul.mubr.msk.f32.vlgmr.msra.gmra.mrb[2].mxu0 %vm607_vm0, %v14158_v46 }
 0x16a   : > { %13016 = vmatpush3.bf16.msra.mxu0 %v13013_v50  ;;  %12074 = vmatprep.mubr.msk.f32.mxu0 %vm607_vm0, %v14146_v41  ;;  %v10890_v50 = vld [vmem:[%s15822_s5 + $0x20] sm:$0xff] }
 0x16b   : > { %13018 = vmatprep.subr.bf16.mxu0 %v13017_v53  ;;  %v13021_v52 = vpack.c.bf16 %v10891_v51, %v10890_v50  ;;  %v10918_v50 = vld [vmem:[%s15863_s2 + $0x48] sm:$0xff] }
 0x16e   : > { %13020 = vmatpush3.bf16.msra.mxu0 %v13017_v53  ;;  %v10892_v53 = vld [vmem:[%s15822_s5 + $0x30] sm:$0xff] }
 0x171   : > { %12075 = vmatmul.mubr.msk.f32.vlgmr.msra.gmra.mrb[4].mxu0 %vm607_vm0, %v14158_v46 }
 0x234   : > { %v12018_v56 = vpop.f32.mrb[0].mxu0  ;;  %v12029_v57 = vpop.f32.mrb[0].mxu1 }
 0x235   : > { %v826_v58 = vadd.f32 %v12029_v57, %v10862_v54  ;;  %v734_v59 = vpop.f32.mrb[1].mxu0  ;;  %v820_v60 = vpop.f32.mrb[1].mxu1  ;;  %v740_v8 = vadd.f32 %v12018_v56, %v10859_v55 }
 0x236   : > { %v735_v61 = vadd.f32 %v10859_v55, %v734_v59  ;;  %v821_v62 = vadd.f32 %v10862_v54, %v820_v60  ;;  %v10893_v54 = vld [vmem:[%s15822_s5 + $0x38] sm:$0xff] }
 0x237   : > { %v13025_v55 = vpack.c.bf16 %v10893_v54, %v10892_v53  ;;  %v10914_v54 = vld [vmem:[%s15865_s28 + $0x2] ss:$0 sm:$0xff] }
 0x238   : > { %v12995_v2 = vpack.c.bf16 %v826_v58, %v821_v62  ;;  %12045 = vmatprep.mubr.msk.f32.mxu1 %vm915_vm1, %v735_v61  ;;  %v10879_v58 = vld [vmem:[%s15865_s28 + $0x1] ss:$0 sm:$0xff] }
 0x23a   : > { %12997 = vmatprep.subr.msk.bf16.mxu1 %vm14192_vm2, %v12995_v2 }
 0x23b   : > { %13000 = vmatpush3.bf16.xpose.msk.msra.mxu1 %vm14192_vm2, %v12995_v2  ;;  %v10895_v2 = vld [vmem:[%s15823_s6 + $0x1] ss:$0 sm:$0xff] }
 0x23c   : > { %v12040_v4 = vpop.f32.mrb[2].mxu0 }
 0x23d   : > { %v912_v5 = vadd.f32 %v12040_v4, %v10865_v3  ;;  %v906_v6 = vpop.f32.mrb[3].mxu0 }
 0x23e   : > { %v907_v7 = vadd.f32 %v10865_v3, %v906_v6 }
 0x240   : > { %v13001_v9 = vpack.c.bf16 %v912_v5, %v907_v7 }
 0x242   : > { %13002 = vmatprep.subr.bf16.mxu1 %v13001_v9  ;;  %12046 = vmatmul.mubr.msk.f32.vlgmr.msra.gmra.mrb[2].mxu1 %vm915_vm1, %v740_v8 }
 0x243   : > { %13004 = vmatpush3.bf16.msra.mxu1 %v13001_v9 }
 0x244   : > { %v12076_v11 = vpop.f32.mrb[4].mxu0  ;;  %13006 = vmatprep.subr.bf16.mxu1 %v13005_v38 }
 0x245   : > { %v1285_v12 = vadd.f32 %v12076_v11, %v10887_v10  ;;  %v1279_v13 = vpop.f32.mrb[5].mxu0 }
 0x246   : > { %v1280_v14 = vadd.f32 %v10887_v10, %v1279_v13 }
 0x248   : > { %v13029_v15 = vpack.c.bf16 %v1285_v12, %v1280_v14 }
 0x24a   : > { %13031 = vmatprep.subr.msk.bf16.mxu0 %vm14192_vm2, %v13029_v15 }
 0x24b   : > { %13034 = vmatpush3.bf16.xpose.msk.msra.mxu0 %vm14192_vm2, %v13029_v15 }
 0x315   : > { %v12047_v18 = vpop.f32.mrb[2].mxu1 }
 0x316   : > { %v1004_v19 = vmul.f32 0.35355338, %v12047_v18  ;;  %v994_v20 = vpop.f32.mrb[3].mxu1 }
 0x317   : > { %v1003_v21 = vmul.f32 0.35355338, %v994_v20 }
 0x318   : > { %v1006_v22 = vsel %vm604_vm3, %v1004_v19, -1e+30 }
 0x319   : > { %v1011_v23 = vsel %vm1007_vm4, %v1006_v22, -inf  ;;  %v1005_v24 = vsel %vm604_vm3, %v1003_v21, -1e+30 }
 0x31a   : > { %1012 = vmax.xlane.f32.xlu1 %v1011_v23  ;;  %v1008_v25 = vsel %vm1007_vm4, %v1005_v24, -inf }
 0x31b   : > { %1009 = vmax.xlane.f32.xlu0 %v1008_v25 }
 0x3a7   : > { %v1013_v26 = vpop.xlane.xlu1 %1012 }
 0x3a8   : > { %v1015_v27 = vsub.f32 %v1006_v22, %v1013_v26  ;;  %v1010_v28 = vpop.xlane.xlu0 %1009 }
 0x3a9   : > { %v1014_v29 = vsub.f32 %v1005_v24, %v1010_v28  ;;  %v10910_v28 = vld [vmem:[%s15861_s29 + $0x48] sm:$0xff] }
 0x3aa   : > { %v1018_v30 = vmul.f32 1.442695, %v1015_v27  ;;  %v10909_v27 = vld [vmem:[%s15861_s29 + $0x40] sm:$0xff] }
 0x3ab   : > { %v1016_v31 = vmul.f32 1.442695, %v1014_v29  ;;  %v13039_v29 = vpack.c.bf16 %v10910_v28, %v10909_v27 }
 0x3ac   : > { %13688 = vpow2.f32 %v1018_v30  ;;  %v10904_v30 = vld [vmem:[%s15824_s7 + $0x8] sm:$0xff] }
 0x3ad   : > { %13690 = vpow2.f32 %v1016_v31  ;;  %12102 = vmatprep.subr.mxu0 %v10904_v30 }
 0x3b6   : > { %v13689_v32 = vpop.eup %13688 }
 0x3b7   : > { %v13691_v33 = vpop.eup %13690  ;;  %v1023_v34 = vsel %vm1007_vm4, %v13689_v32, 0.0 }
 0x3b8   : > { %1024 = vadd.xlane.f32.xlu1 %v1023_v34  ;;  %v1020_v35 = vsel %vm1007_vm4, %v13691_v33, 0.0  ;;  %v10911_v34 = vld [vmem:[%s15861_s29 + $0x50] sm:$0xff] }
 0x3b9   : > { %1021 = vadd.xlane.f32.xlu0 %v1020_v35  ;;  %v10912_v35 = vld [vmem:[%s15861_s29 + $0x58] sm:$0xff] }
 0x445   : > { %v1025_v39 = vpop.xlane.xlu1 %1024 }
 0x446   : > { %13692 = vrcp.f32 %v1025_v39  ;;  %v1022_v40 = vpop.xlane.xlu0 %1021  ;;  %v13043_v39 = vpack.c.bf16 %v10912_v35, %v10911_v34  ;;  %v10939_v35 = vld [vmem:[%s15824_s7 + $0x10] sm:$0xff] }
 0x447   : > { %13694 = vrcp.f32 %v1022_v40  ;;  %v10925_v40 = vld [vmem:[%s15822_s5 + $0x40] sm:$0xff] }
 0x450   : > { %v13693_v42 = vpop.eup %13692 }
 0x451   : > { %v13695_v45 = vpop.eup %13694  ;;  %v1029_v48 = vmul.f32 %v13693_v42, %v13689_v32  ;;  %v10926_v42 = vld [vmem:[%s15822_s5 + $0x48] sm:$0xff] }
 0x452   : > { %v1028_v47 = vmul.f32 %v13695_v45, %v13691_v33  ;;  %v13055_v43 = vpack.c.bf16 %v10926_v42, %v10925_v40  ;;  %v10928_v45 = vld [vmem:[%s15822_s5 + $0x58] sm:$0xff] }
 0x453   : > { %v10945_v40 = vld [vmem:[%s15861_s29 + $0x78] sm:$0xff] }
 0x454   : > { %12052 = vmatprep.mubr.msk.f32.mxu1 %vm1007_vm4, %v1028_v47  ;;  %v13059_v47 = vpack.c.bf16 %v10928_v45, %v10927_v44 }
 0x455   : > { %12053 = vmatmul.mubr.msk.f32.vlgmr.msra.gmra.mrb[4].mxu1 %vm1007_vm4, %v1029_v48  ;;  %v1111_v48 = vld [vmem:[%s15824_s7] sm:$0xff] }
 0x456   : > { %13008 = vmatpush3.bf16.msra.mxu1 %v13005_v38  ;;  %12063 = vmatprep.mubr.msk.f32.mxu1 %vm607_vm0, %v14146_v41 }
 0x457   : > { %13010 = vmatprep.subr.bf16.mxu1 %v13009_v49 }
 0x45a   : > { %13012 = vmatpush3.bf16.msra.mxu1 %v13009_v49  ;;  %v10917_v49 = vld [vmem:[%s15863_s2 + $0x40] sm:$0xff] }
 0x45b   : > { %13022 = vmatprep.subr.bf16.mxu1 %v13021_v52  ;;  %v13047_v53 = vpack.c.bf16 %v10918_v50, %v10917_v49  ;;  %v10960_v50 = vld [vmem:[%s15822_s5 + $0x70] sm:$0xff] }
 0x45d   : > { %12064 = vmatmul.mubr.msk.f32.vlgmr.msra.gmra.mrb[6].mxu1 %vm607_vm0, %v14158_v46 }
 0x45e   : > { %13024 = vmatpush3.bf16.msra.mxu1 %v13021_v52  ;;  %12085 = vmatprep.mubr.msk.f32.mxu1 %vm607_vm0, %v14146_v41 }
 0x45f   : > { %13026 = vmatprep.subr.bf16.mxu1 %v13025_v55 }
 0x462   : > { %13028 = vmatpush3.bf16.msra.mxu1 %v13025_v55  ;;  %v10919_v55 = vld [vmem:[%s15863_s2 + $0x50] sm:$0xff] }
 0x465   : > { %12086 = vmatmul.mubr.msk.f32.vlgmr.msra.gmra.mrb[8].mxu1 %vm607_vm0, %v14158_v46 }
 0x528   : > { %v14257_v56 = vpop.f32.mrb[4].mxu1 }
 0x529   : > { %v14259_v57 = vpop.f32.mrb[5].mxu1 }
 0x530   : > { %v12065_v59 = vpop.f32.mrb[6].mxu1 }
 0x531   : > { %v1191_v60 = vpop.f32.mrb[7].mxu1  ;;  %v1197_v62 = vadd.f32 %v12065_v59, %v10879_v58 }
 0x532   : > { %v1192_v61 = vadd.f32 %v10879_v58, %v1191_v60  ;;  %v10920_v58 = vld [vmem:[%s15863_s2 + $0x58] sm:$0xff] }
 0x534   : > { %12092 = vmatprep.mubr.msk.f32.mxu0 %vm915_vm1, %v1192_v61 }
 0x535   : > { %12093 = vmatmul.mubr.msk.f32.vlgmr.msra.gmra.mrb[6].mxu0 %vm915_vm1, %v1197_v62  ;;  %v13051_v62 = vpack.c.bf16 %v10920_v58, %v10919_v55  ;;  %v10952_v58 = vld [vmem:[%s15863_s2 + $0x70] sm:$0xff] }
 0x536   : > { %12103 = vmatpush3.msra.mxu0 %v10904_v30 }
 0x537   : > { %12107 = vmatprep.subr.mxu0 %v1111_v48 }
 0x538   : > { %v12087_v3 = vpop.f32.mrb[8].mxu1 }
 0x539   : > { %v1373_v4 = vadd.f32 %v12087_v3, %v10895_v2  ;;  %v1367_v5 = vpop.f32.mrb[9].mxu1 }
 0x53a   : > { %v1368_v6 = vadd.f32 %v10895_v2, %v1367_v5 }
 0x53c   : > { %v13035_v7 = vpack.c.bf16 %v1373_v4, %v1368_v6 }
 0x53e   : > { %13036 = vmatprep.subr.bf16.mxu1 %v13035_v7 }
 0x53f   : > { %13038 = vmatpush3.bf16.msra.mxu1 %v13035_v7 }
 0x540   : > { %13040 = vmatprep.subr.bf16.mxu1 %v13039_v29 }
 0x608   : > { %v12094_v8 = vpop.f32.mrb[6].mxu0 }
 0x609   : > { %v1464_v9 = vmul.f32 0.35355338, %v12094_v8  ;;  %v1454_v10 = vpop.f32.mrb[7].mxu0 }
 0x60a   : > { %v1463_v11 = vmul.f32 0.35355338, %v1454_v10 }
 0x60b   : > { %v1466_v12 = vsel %vm604_vm3, %v1464_v9, -1e+30 }
 0x60c   : > { %v1470_v13 = vsel %vm1007_vm4, %v1466_v12, -inf  ;;  %v1465_v14 = vsel %vm604_vm3, %v1463_v11, -1e+30 }
 0x60d   : > { %1471 = vmax.xlane.f32.xlu1 %v1470_v13  ;;  %v1467_v15 = vsel %vm1007_vm4, %v1465_v14, -inf }
 0x60e   : > { %1468 = vmax.xlane.f32.xlu0 %v1467_v15 }
 0x69a   : > { %v1472_v16 = vpop.xlane.xlu1 %1471 }
 0x69b   : > { %v1474_v18 = vsub.f32 %v1466_v12, %v1472_v16  ;;  %v1469_v19 = vpop.xlane.xlu0 %1468 }
 0x69c   : > { %v1473_v20 = vsub.f32 %v1465_v14, %v1469_v19 }
 0x69d   : > { %v1477_v21 = vmul.f32 1.442695, %v1474_v18 }
 0x69e   : > { %v1475_v22 = vmul.f32 1.442695, %v1473_v20 }
 0x69f   : > { %13696 = vpow2.f32 %v1477_v21 }
 0x6a0   : > { %13698 = vpow2.f32 %v1475_v22 }
 0x6a9   : > { %v13697_v23 = vpop.eup %13696 }
 0x6aa   : > { %v13699_v24 = vpop.eup %13698  ;;  %v1482_v25 = vsel %vm1007_vm4, %v13697_v23, 0.0 }
 0x6ab   : > { %1483 = vadd.xlane.f32.xlu1 %v1482_v25  ;;  %v1479_v26 = vsel %vm1007_vm4, %v13699_v24, 0.0 }
 0x6ac   : > { %1480 = vadd.xlane.f32.xlu0 %v1479_v26 }
 0x738   : > { %v1484_v31 = vpop.xlane.xlu1 %1483 }
 0x739   : > { %13700 = vrcp.f32 %v1484_v31  ;;  %v1481_v32 = vpop.xlane.xlu0 %1480 }
 0x73a   : > { %13702 = vrcp.f32 %v1481_v32  ;;  %v10942_v32 = vld [vmem:[%s15861_s29 + $0x60] sm:$0xff] }
 0x743   : > { %v13701_v33 = vpop.eup %13700 }
 0x744   : > { %v13703_v36 = vpop.eup %13702  ;;  %v1488_v38 = vmul.f32 %v13701_v33, %v13697_v23  ;;  %v10943_v33 = vld [vmem:[%s15861_s29 + $0x68] sm:$0xff] }
 0x745   : > { %v1487_v37 = vmul.f32 %v13703_v36, %v13699_v24  ;;  %v13073_v34 = vpack.c.bf16 %v10943_v33, %v10942_v32 }
 0x747   : > { %12099 = vmatprep.mubr.msk.f32.mxu1 %vm1007_vm4, %v1487_v37 }
 0x748   : > { %12100 = vmatmul.mubr.msk.f32.vlgmr.msra.gmra.mrb[10].mxu1 %vm1007_vm4, %v1488_v38 }
 0x749   : > { %13042 = vmatpush3.bf16.msra.mxu1 %v13039_v29  ;;  %12120 = vmatprep.mubr.msk.f32.mxu1 %vm607_vm0, %v14146_v41 }
 0x74a   : > { %13044 = vmatprep.subr.bf16.mxu1 %v13043_v39 }
 0x74d   : > { %13046 = vmatpush3.bf16.msra.mxu1 %v13043_v39  ;;  %v10944_v39 = vld [vmem:[%s15861_s29 + $0x70] sm:$0xff] }
 0x74e   : > { %13056 = vmatprep.subr.bf16.mxu1 %v13055_v43  ;;  %v13077_v45 = vpack.c.bf16 %v10945_v40, %v10944_v39 }
 0x750   : > { %12121 = vmatmul.mubr.msk.f32.vlgmr.msra.gmra.mrb[12].mxu1 %vm607_vm0, %v14158_v46 }
 0x751   : > { %13058 = vmatpush3.bf16.msra.mxu1 %v13055_v43  ;;  %12142 = vmatprep.mubr.msk.f32.mxu1 %vm607_vm0, %v14146_v41 }
 0x752   : > { %13060 = vmatprep.subr.bf16.mxu1 %v13059_v47 }
 0x755   : > { %13062 = vmatpush3.bf16.msra.mxu1 %v13059_v47  ;;  %v10958_v47 = vld [vmem:[%s15822_s5 + $0x60] sm:$0xff] }
 0x758   : > { %12143 = vmatmul.mubr.msk.f32.vlgmr.msra.gmra.mrb[14].mxu1 %vm607_vm0, %v14158_v46 }
 0x81b   : > { %v12101_v51 = vpop.f32.mrb[10].mxu1 }
 0x81c   : > { %v1561_v52 = vpop.f32.mrb[11].mxu1 }
 0x81d   : > { %12104 = vmatprep.mubr.msk.f32.mxu0 %vm915_vm1, %v1561_v52 }
 0x81e   : > { %12105 = vmatmul.mubr.msk.f32.vlgmr.msra.gmra.mrb[8].mxu0 %vm915_vm1, %v12101_v51  ;;  %v10961_v51 = vld [vmem:[%s15822_s5 + $0x78] sm:$0xff] }
 0x81f   : > { %12108 = vmatpush3.msra.mxu0 %v1111_v48  ;;  %12109 = vmatprep.mubr.msk.f32.mxu0 %vm915_vm1, %v14259_v57  ;;  %v10930_v57 = vld [vmem:[%s15823_s6 + $0x2] ss:$0 sm:$0xff]  ;;  %v10959_v48 = vld [vmem:[%s15822_s5 + $0x68] sm:$0xff]  ;;  %v13093_v52 = vpack.c.bf16 %v10961_v51, %v10960_v50 }
 0x820   : > { %13048 = vmatprep.subr.bf16.mxu0 %v13047_v53  ;;  %v13089_v49 = vpack.c.bf16 %v10959_v48, %v10958_v47 }
 0x823   : > { %v12122_v59 = vpop.f32.mrb[12].mxu1 }
 0x824   : > { %v1819_v60 = vadd.f32 %v12122_v59, %v10914_v54  ;;  %v1813_v61 = vpop.f32.mrb[13].mxu1  ;;  %v10953_v59 = vld [vmem:[%s15863_s2 + $0x78] sm:$0xff] }
 0x825   : > { %v1814_v5 = vadd.f32 %v10914_v54, %v1813_v61  ;;  %v10951_v54 = vld [vmem:[%s15863_s2 + $0x68] sm:$0xff] }
 0x826   : > { %12110 = vmatmul.mubr.msk.f32.vlgmr.msra.gmra.mrb[8].mxu0 %vm915_vm1, %v14257_v56  ;;  %v10922_v56 = vld [vmem:[%s15864_s4 + $0x2] ss:$0 sm:$0xff] }
 0x827   : > { %13050 = vmatpush3.bf16.msra.mxu0 %v13047_v53  ;;  %12131 = vmatprep.mubr.msk.f32.mxu0 %vm607_vm0, %v14146_v41  ;;  %v10950_v53 = vld [vmem:[%s15863_s2 + $0x60] sm:$0xff] }
 0x828   : > { %13052 = vmatprep.subr.bf16.mxu0 %v13051_v62  ;;  %v13081_v55 = vpack.c.bf16 %v10951_v54, %v10950_v53 }
 0x82b   : > { %13054 = vmatpush3.bf16.msra.mxu0 %v13051_v62  ;;  %v12144_v2 = vpop.f32.mrb[14].mxu1  ;;  %v13085_v62 = vpack.c.bf16 %v10953_v59, %v10952_v58 }
 0x82c   : > { %v1995_v3 = vadd.f32 %v12144_v2, %v10930_v57  ;;  %v1989_v4 = vpop.f32.mrb[15].mxu1 }
 0x82d   : > { %v1990_v6 = vadd.f32 %v10930_v57, %v1989_v4  ;;  %v10947_v57 = vld [vmem:[%s15865_s28 + $0x3] ss:$0 sm:$0xff] }
 0x82e   : > { %12132 = vmatmul.mubr.msk.f32.vlgmr.msra.gmra.mrb[10].mxu0 %vm607_vm0, %v14158_v46 }
 0x82f   : > { %v13069_v7 = vpack.c.bf16 %v1995_v3, %v1990_v6  ;;  %12149 = vmatprep.mubr.msk.f32.mxu0 %vm915_vm1, %v1814_v5  ;;  %v10963_v6 = vld [vmem:[%s15823_s6 + $0x3] ss:$0 sm:$0xff] }
 0x831   : > { %13070 = vmatprep.subr.bf16.mxu1 %v13069_v7 }
 0x832   : > { %13072 = vmatpush3.bf16.msra.mxu1 %v13069_v7 }
 0x833   : > { %13074 = vmatprep.subr.bf16.mxu1 %v13073_v34 }
 0x901   : > { %v12133_v8 = vpop.f32.mrb[10].mxu0 }
 0x902   : > { %v1907_v9 = vadd.f32 %v12133_v8, %v10922_v56  ;;  %v1901_v10 = vpop.f32.mrb[11].mxu0 }
 0x903   : > { %v1902_v11 = vadd.f32 %v10922_v56, %v1901_v10  ;;  %v10955_v10 = vld [vmem:[%s15864_s4 + $0x3] ss:$0 sm:$0xff] }
 0x905   : > { %v13063_v12 = vpack.c.bf16 %v1907_v9, %v1902_v11 }
 0x907   : > { %13065 = vmatprep.subr.msk.bf16.mxu0 %vm14192_vm2, %v13063_v12 }
 0x908   : > { %13068 = vmatpush3.bf16.xpose.msk.msra.mxu0 %vm14192_vm2, %v13063_v12 }
 0x909   : > { %12159 = vmatprep.subr.mxu0 %v10939_v35 }
 0x90f   : > { %12150 = vmatmul.mubr.msk.f32.vlgmr.msra.gmra.mrb[12].mxu0 %vm915_vm1, %v1819_v60 }
 0x910   : > { %12160 = vmatpush3.msra.mxu0 %v10939_v35 }
 0x911   : > { %13082 = vmatprep.subr.bf16.mxu0 %v13081_v55 }
 0x9e2   : > { %v12151_v13 = vpop.f32.mrb[12].mxu0 }
 0x9e3   : > { %v2086_v14 = vmul.f32 0.35355338, %v12151_v13  ;;  %v2076_v15 = vpop.f32.mrb[13].mxu0 }
 0x9e4   : > { %v2085_v16 = vmul.f32 0.35355338, %v2076_v15 }
 0x9e5   : > { %v2088_v18 = vsel %vm604_vm3, %v2086_v14, -1e+30 }
 0x9e6   : > { %v2092_v19 = vsel %vm1007_vm4, %v2088_v18, -inf  ;;  %v2087_v20 = vsel %vm604_vm3, %v2085_v16, -1e+30 }
 0x9e7   : > { %2093 = vmax.xlane.f32.xlu1 %v2092_v19  ;;  %v2089_v21 = vsel %vm1007_vm4, %v2087_v20, -inf }
 0x9e8   : > { %2090 = vmax.xlane.f32.xlu0 %v2089_v21 }
 0xa74   : > { %v2094_v22 = vpop.xlane.xlu1 %2093 }
 0xa75   : > { %v2096_v23 = vsub.f32 %v2088_v18, %v2094_v22  ;;  %v2091_v24 = vpop.xlane.xlu0 %2090 }
 0xa76   : > { %v2095_v25 = vsub.f32 %v2087_v20, %v2091_v24 }
 0xa77   : > { %v2099_v26 = vmul.f32 1.442695, %v2096_v23 }
 0xa78   : > { %v2097_v27 = vmul.f32 1.442695, %v2095_v25 }
 0xa79   : > { %13704 = vpow2.f32 %v2099_v26 }
 0xa7a   : > { %13706 = vpow2.f32 %v2097_v27 }
 0xa83   : > { %v13705_v28 = vpop.eup %13704 }
 0xa84   : > { %v13707_v29 = vpop.eup %13706  ;;  %v2104_v30 = vsel %vm1007_vm4, %v13705_v28, 0.0 }
 0xa85   : > { %2105 = vadd.xlane.f32.xlu1 %v2104_v30  ;;  %v2101_v31 = vsel %vm1007_vm4, %v13707_v29, 0.0 }
 0xa86   : > { %2102 = vadd.xlane.f32.xlu0 %v2101_v31 }
 0xb12   : > { %v2106_v36 = vpop.xlane.xlu1 %2105 }
 0xb13   : > { %13708 = vrcp.f32 %v2106_v36  ;;  %v2103_v37 = vpop.xlane.xlu0 %2102 }
 0xb14   : > { %13710 = vrcp.f32 %v2103_v37 }
 0xb1d   : > { %v13709_v38 = vpop.eup %13708 }
 0xb1e   : > { %v13711_v42 = vpop.eup %13710  ;;  %v2110_v44 = vmul.f32 %v13709_v38, %v13705_v28 }
 0xb1f   : > { %v2109_v43 = vmul.f32 %v13711_v42, %v13707_v29 }
 0xb21   : > { %12156 = vmatprep.mubr.msk.f32.mxu1 %vm1007_vm4, %v2109_v43 }
 0xb22   : > { %12157 = vmatmul.mubr.msk.f32.vlgmr.msra.gmra.mrb[16].mxu1 %vm1007_vm4, %v2110_v44 }
 0xb23   : > { %13076 = vmatpush3.bf16.msra.mxu1 %v13073_v34  ;;  %12172 = vmatprep.mubr.msk.f32.mxu1 %vm607_vm0, %v14146_v41  ;;  %v10972_v34 = vld [vmem:[%s15824_s7 + $0x18] sm:$0xff] }
 0xb24   : > { %13078 = vmatprep.subr.bf16.mxu1 %v13077_v45 }
 0xb27   : > { %13080 = vmatpush3.bf16.msra.mxu1 %v13077_v45  ;;  %v10975_v45 = vld [vmem:[%s15825_s8] ss:$0 sm:$0xff] }
 0xb28   : > { %13090 = vmatprep.subr.bf16.mxu1 %v13089_v49 }
 0xb2a   : > { %12173 = vmatmul.mubr.msk.f32.vlgmr.msra.gmra.mrb[18].mxu1 %vm607_vm0, %v14158_v46 }
 0xb2b   : > { %13092 = vmatpush3.bf16.msra.mxu1 %v13089_v49  ;;  %12194 = vmatprep.mubr.msk.f32.mxu1 %vm607_vm0, %v14146_v41 }
 0xb2c   : > { %13094 = vmatprep.subr.bf16.mxu1 %v13093_v52 }
 0xb2f   : > { %13096 = vmatpush3.bf16.msra.mxu1 %v13093_v52 }
 0xb32   : > { %12195 = vmatmul.mubr.msk.f32.vlgmr.msra.gmra.mrb[20].mxu1 %vm607_vm0, %v14158_v46 }
 0xbf5   : > { %v12158_v60 = vpop.f32.mrb[16].mxu1 }
 0xbf6   : > { %v2183_v61 = vpop.f32.mrb[17].mxu1 }
 0xbf7   : > { %12161 = vmatprep.mubr.msk.f32.mxu0 %vm915_vm1, %v2183_v61 }
 0xbf8   : > { %12162 = vmatmul.mubr.msk.f32.vlgmr.msra.gmra.mrb[8].mxu0 %vm915_vm1, %v12158_v60 }
 0xbf9   : > { %13084 = vmatpush3.bf16.msra.mxu0 %v13081_v55  ;;  %12183 = vmatprep.mubr.msk.f32.mxu0 %vm607_vm0, %v14146_v41 }
 0xbfa   : > { %13086 = vmatprep.subr.bf16.mxu0 %v13085_v62 }
 0xbfd   : > { %v12174_v2 = vpop.f32.mrb[18].mxu1  ;;  %13088 = vmatpush3.bf16.msra.mxu0 %v13085_v62 }
 0xbfe   : > { %v2362_v3 = vadd.f32 %v12174_v2, %v10947_v57  ;;  %v2356_v4 = vpop.f32.mrb[19].mxu1  ;;  %v2875_v2 = vld [vmem:[%s15830_s13] sm:$0xff] }
 0xbff   : > { %v2357_v5 = vadd.f32 %v10947_v57, %v2356_v4 }
 0xc00   : > { %12184 = vmatmul.mubr.msk.f32.vlgmr.msra.gmra.mrb[14].mxu0 %vm607_vm0, %v14158_v46 }
 0xc01   : > { %12201 = vmatprep.mubr.msk.f32.mxu0 %vm915_vm1, %v2357_v5  ;;  %v2877_v5 = vld [vmem:[%s15830_s13 + $0x10] sm:$0xff] }
 0xc05   : > { %v12196_v41 = vpop.f32.mrb[20].mxu1 }
 0xc06   : > { %v2538_v7 = vadd.f32 %v12196_v41, %v10963_v6  ;;  %v2532_v56 = vpop.f32.mrb[21].mxu1 }
 0xc07   : > { %v2533_v8 = vadd.f32 %v10963_v6, %v2532_v56  ;;  %v2878_v6 = vld [vmem:[%s15830_s13 + $0x18] sm:$0xff] }
 0xc08   : > { %v13111_v41 = vpack.c.bf16 %v2878_v6, %v2877_v5 }
 0xc09   : > { %v13103_v9 = vpack.c.bf16 %v2538_v7, %v2533_v8 }
 0xc0b   : > { %13104 = vmatprep.subr.bf16.mxu1 %v13103_v9 }
 0xc0c   : > { %13106 = vmatpush3.bf16.msra.mxu1 %v13103_v9 }
 0xcd3   : > { %v12185_v11 = vpop.f32.mrb[14].mxu0 }
 0xcd4   : > { %v2450_v12 = vadd.f32 %v12185_v11, %v10955_v10  ;;  %v2444_v46 = vpop.f32.mrb[15].mxu0 }
 0xcd5   : > { %v2445_v13 = vadd.f32 %v10955_v10, %v2444_v46  ;;  %v10976_v46 = vld [vmem:[%s15828_s11] ss:$0 sm:$0xff] }
 0xcd7   : > { %v13097_v14 = vpack.c.bf16 %v2450_v12, %v2445_v13 }
 0xcd9   : > { %13099 = vmatprep.subr.msk.bf16.mxu0 %vm14192_vm2, %v13097_v14 }
 0xcda   : > { %13102 = vmatpush3.bf16.xpose.msk.msra.mxu0 %vm14192_vm2, %v13097_v14 }
 0xcdb   : > { %12211 = vmatprep.subr.mxu0 %v10972_v34 }
 0xce1   : > { %12202 = vmatmul.mubr.msk.f32.vlgmr.msra.gmra.mrb[16].mxu0 %vm915_vm1, %v2362_v3  ;;  %v2876_v3 = vld [vmem:[%s15830_s13 + $0x8] sm:$0xff] }
 0xce2   : > { %12212 = vmatpush3.msra.mxu0 %v10972_v34  ;;  %v13107_v4 = vpack.c.bf16 %v2876_v3, %v2875_v2  ;;  %v10978_v34 = vld [vmem:[%s15831_s14] ss:$0 sm:$0xff] }
 0xce4   : > { %13108 = vmatprep.subr.bf16.mxu1 %v13107_v4 }
 0xdb4   : > { %v12203_v15 = vpop.f32.mrb[16].mxu0 }
 0xdb5   : > { %v2629_v16 = vmul.f32 0.35355338, %v12203_v15  ;;  %v2619_v18 = vpop.f32.mrb[17].mxu0 }
 0xdb6   : > { %v2628_v19 = vmul.f32 0.35355338, %v2619_v18 }
 0xdb7   : > { %v2631_v20 = vsel %vm604_vm3, %v2629_v16, -1e+30  ;;  %v10977_v16 = vld [vmem:[%s15829_s12] ss:$0 sm:$0xff] }
 0xdb8   : > { %v2635_v21 = vsel %vm1007_vm4, %v2631_v20, -inf  ;;  %v2630_v22 = vsel %vm604_vm3, %v2628_v19, -1e+30 }
 0xdb9   : > { %2636 = vmax.xlane.f32.xlu1 %v2635_v21  ;;  %v2632_v23 = vsel %vm1007_vm4, %v2630_v22, -inf }
 0xdba   : > { %2633 = vmax.xlane.f32.xlu0 %v2632_v23  ;;  %v3022_v23 = vld [vmem:[%s15832_s15 + $0x8] sm:$0xff] }
 0xe46   : > { %v2637_v24 = vpop.xlane.xlu1 %2636 }
 0xe47   : > { %v2639_v25 = vsub.f32 %v2631_v20, %v2637_v24  ;;  %v2634_v26 = vpop.xlane.xlu0 %2633 }
 0xe48   : > { %v2638_v27 = vsub.f32 %v2630_v22, %v2634_v26  ;;  %v3021_v22 = vld [vmem:[%s15832_s15] sm:$0xff]  ;;  %v3024_v26 = vld [vmem:[%s15832_s15 + $0x18] sm:$0xff] }
 0xe49   : > { %v2642_v28 = vmul.f32 1.442695, %v2639_v25  ;;  %v13115_v24 = vpack.c.bf16 %v3022_v23, %v3021_v22  ;;  %v3023_v25 = vld [vmem:[%s15832_s15 + $0x10] sm:$0xff] }
 0xe4a   : > { %v2640_v29 = vmul.f32 1.442695, %v2638_v27  ;;  %v13119_v27 = vpack.c.bf16 %v3024_v26, %v3023_v25 }
 0xe4b   : > { %13712 = vpow2.f32 %v2642_v28  ;;  %13116 = vmatprep.subr.bf16.mxu0 %v13115_v24  ;;  %v3025_v28 = vld [vmem:[%s15832_s15 + $0x20] sm:$0xff] }
 0xe4c   : > { %13714 = vpow2.f32 %v2640_v29  ;;  %v3026_v29 = vld [vmem:[%s15832_s15 + $0x28] sm:$0xff] }
 0xe55   : > { %v13713_v30 = vpop.eup %13712 }
 0xe56   : > { %v13715_v31 = vpop.eup %13714  ;;  %v2647_v32 = vsel %vm1007_vm4, %v13713_v30, 0.0 }
 0xe57   : > { %2648 = vadd.xlane.f32.xlu1 %v2647_v32  ;;  %v2644_v33 = vsel %vm1007_vm4, %v13715_v31, 0.0  ;;  %v3028_v32 = vld [vmem:[%s15832_s15 + $0x38] sm:$0xff] }
 0xe58   : > { %2645 = vadd.xlane.f32.xlu0 %v2644_v33 }
 0xee4   : > { %v2649_v35 = vpop.xlane.xlu1 %2648 }
 0xee5   : > { %13716 = vrcp.f32 %v2649_v35  ;;  %v2646_v36 = vpop.xlane.xlu0 %2645 }
 0xee6   : > { %13718 = vrcp.f32 %v2646_v36 }
 0xeef   : > { %v13717_v37 = vpop.eup %13716 }
 0xef0   : > { %v13719_v38 = vpop.eup %13718  ;;  %v2653_v40 = vmul.f32 %v13717_v37, %v13713_v30  ;;  %v13123_v30 = vpack.c.bf16 %v3026_v29, %v3025_v28 }
 0xef1   : > { %v2652_v39 = vmul.f32 %v13719_v38, %v13715_v31  ;;  %v3027_v31 = vld [vmem:[%s15832_s15 + $0x30] sm:$0xff] }
 0xef2   : > { %v13127_v33 = vpack.c.bf16 %v3028_v32, %v3027_v31  ;;  %v10983_v31 = vld [vmem:[%s15833_s16] ss:$0 sm:$0xff] }
 0xef3   : > { %12208 = vmatprep.mubr.msk.f32.mxu1 %vm1007_vm4, %v2652_v39 }
 0xef4   : > { %12209 = vmatmul.mubr.msk.f32.vlgmr.msra.gmra.mrb[22].mxu1 %vm1007_vm4, %v2653_v40 }
 0xef5   : > { %13110 = vmatpush3.bf16.msra.mxu1 %v13107_v4 }
 0xef6   : > { %13112 = vmatprep.subr.bf16.mxu1 %v13111_v41 }
 0xef9   : > { %13114 = vmatpush3.bf16.msra.mxu1 %v13111_v41 }
 0xfc7   : > { %v12210_v42 = vpop.f32.mrb[22].mxu1 }
 0xfc8   : > { %v2726_v43 = vpop.f32.mrb[23].mxu1 }
 0xfc9   : > { %12213 = vmatprep.mubr.msk.f32.mxu0 %vm915_vm1, %v2726_v43 }
 0xfca   : > { %12214 = vmatmul.mubr.msk.f32.vlgmr.msra.gmra.mrb[8].mxu0 %vm915_vm1, %v12210_v42 }
 0xfcb   : > { %13118 = vmatpush3.bf16.msra.mxu0 %v13115_v24 }
 0xfcc   : > { %13120 = vmatprep.subr.bf16.mxu0 %v13119_v27 }
 0xfcf   : > { %13122 = vmatpush3.bf16.msra.mxu0 %v13119_v27 }
 0xfd0   : > { %13124 = vmatprep.subr.bf16.mxu0 %v13123_v30 }
 0xfd3   : > { %13126 = vmatpush3.bf16.msra.mxu0 %v13123_v30 }
 0xfd4   : > { %13128 = vmatprep.subr.bf16.mxu0 %v13127_v33 }
 0xfd7   : > { %13130 = vmatpush3.bf16.msra.mxu0 %v13127_v33 }
0x109d   : > { %v12215_v44 = vpop.f32.mrb[8].mxu0 }
0x109e   : > { %v2821_v47 = vadd.f32 %v12215_v44, %v14100_v1  ;;  %v2809_v48 = vpop.f32.mrb[9].mxu0 }
0x109f   : > { %v2820_v49 = vadd.f32 %v2809_v48, %v14098_v0 }
0x10a0   : > { %v14452_v50 = vadd.f32 %v10975_v45, %v2821_v47 }
0x10a1   : > { %v14454_v51 = vadd.f32 %v10975_v45, %v2820_v49 }
0x10a2   : > { %v2836_v52 = vsel %vm607_vm0, %v14452_v50, 0.0 }
0x10a3   : > { %2837 = vadd.xlane.f32.xlu1 %v2836_v52  ;;  %v2833_v53 = vsel %vm607_vm0, %v14454_v51, 0.0 }
0x10a4   : > { %2834 = vadd.xlane.f32.xlu0 %v2833_v53 }
0x1130   : > { %v2838_v54 = vpop.xlane.xlu1 %2837 }
0x1131   : > { %v2840_v55 = vmul.f32 0.03125, %v2838_v54  ;;  %v2835_v58 = vpop.xlane.xlu0 %2834 }
0x1132   : > { %v2839_v59 = vmul.f32 0.03125, %v2835_v58 }
0x1133   : > { %v2842_v1 = vsub.f32 %v14452_v50, %v2840_v55 }
0x1134   : > { %v2841_v0 = vsub.f32 %v14454_v51, %v2839_v59 }
0x1135   : > { %v2844_v60 = vmul.f32 %v2842_v1, %v2842_v1 }
0x1136   : > { %v2843_v61 = vmul.f32 %v2841_v0, %v2841_v0 }
0x1137   : > { %v2848_v62 = vsel %vm607_vm0, %v2844_v60, 0.0 }
0x1138   : > { %2849 = vadd.xlane.f32.xlu1 %v2848_v62  ;;  %v2845_v57 = vsel %vm607_vm0, %v2843_v61, 0.0 }
0x1139   : > { %2846 = vadd.xlane.f32.xlu0 %v2845_v57 }
0x11c5   : > { %v2850_v7 = vpop.xlane.xlu1 %2849 }
0x11c6   : > { %v2852_v56 = vmul.f32 0.03125, %v2850_v7  ;;  %v2847_v8 = vpop.xlane.xlu0 %2846 }
0x11c7   : > { %v2851_v9 = vmul.f32 0.03125, %v2847_v8 }
0x11c8   : > { %v2854_v10 = vadd.f32 1e-05, %v2852_v56 }
0x11c9   : > { %v2853_v11 = vadd.f32 1e-05, %v2851_v9 }
0x11ca   : > { %13720 = vrsqrt.f32 %v2854_v10 }
0x11cb   : > { %13722 = vrsqrt.f32 %v2853_v11 }
0x11d4   : > { %v13721_v12 = vpop.eup %13720 }
0x11d5   : > { %v13723_v13 = vpop.eup %13722  ;;  %v2858_v14 = vmul.f32 %v13721_v12, %v2842_v1 }
0x11d6   : > { %v2857_v15 = vmul.f32 %v13723_v13, %v2841_v0 }
0x11d7   : > { %v2866_v18 = vmul.f32 %v10976_v46, %v2858_v14 }
0x11d8   : > { %v2865_v19 = vmul.f32 %v10976_v46, %v2857_v15 }
0x11d9   : > { %v2874_v21 = vadd.f32 %v10977_v16, %v2866_v18  ;;  %v13940_v18 = vmov -1.0  }
0x11da   : > { %v2873_v20 = vadd.f32 %v10977_v16, %v2865_v19 }
0x11dc   : > { %12224 = vmatprep.mubr.msk.f32.mxu1 %vm607_vm0, %v2873_v20 }
0x11dd   : > { %12225 = vmatmul.mubr.msk.f32.vlgmr.msra.gmra.mrb[24].mxu1 %vm607_vm0, %v2874_v21 }
0x12b0   : > { %v12226_v35 = vpop.f32.mrb[24].mxu1 }
0x12b1   : > { %v2964_v36 = vadd.f32 %v12226_v35, %v10978_v34  ;;  %v2958_v37 = vpop.f32.mrb[25].mxu1 }
0x12b2   : > { %v2959_v38 = vadd.f32 %v10978_v34, %v2958_v37 }
0x12b3   : > { %v2970_v39 = vmul.f32 0.70710677, %v2964_v36  ;;  %v2968_v27 = vmul.f32 0.5, %v2964_v36 }
0x12b4   : > { %v2969_v40 = vmul.f32 0.70710677, %v2959_v38  ;;  %v2967_v25 = vmul.f32 0.5, %v2959_v38 }
0x12b5   : > { %v2976_v42 = vand.u32 2147483647, %v2970_v39  ;;  %vm2972_vm5 = vcmp.ge.f32.partialorder %v2970_v39, 0.0 }
0x12b6   : > { %v2975_v43 = vand.u32 2147483647, %v2969_v40  ;;  %vm2971_vm6 = vcmp.ge.f32.partialorder %v2969_v40, 0.0  ;;  %v2974_v19 = vsel %vm2972_vm5, 1.0, %v13940_v18 }
0x12b7   : > { %v2978_v44 = vmul.f32 0.3275911, %v2976_v42  ;;  %v3004_v49 = vsub.f32 0.0, %v2976_v42  ;;  %v2973_v22 = vsel %vm2971_vm6, 1.0, %v13940_v18 }
0x12b8   : > { %v2977_v45 = vmul.f32 0.3275911, %v2975_v43  ;;  %v3003_v52 = vsub.f32 0.0, %v2975_v43 }
0x12b9   : > { %v2980_v47 = vadd.f32 1.0, %v2978_v44  ;;  %v3006_v54 = vmul.f32 %v3004_v49, %v2976_v42  ;;  %v10988_v49 = vld [vmem:[%s15861_s29 + $0x80] sm:$0xff] }
0x12ba   : > { %v2979_v48 = vadd.f32 1.0, %v2977_v45  ;;  %v3005_v59 = vmul.f32 %v3003_v52, %v2975_v43  ;;  %v10989_v52 = vld [vmem:[%s15861_s29 + $0x88] sm:$0xff] }
0x12bb   : > { %13724 = vrcp.f32 %v2980_v47  ;;  %v3009_v60 = vmul.f32 1.442695, %v3006_v54  ;;  %v11004_v54 = vld [vmem:[%s15822_s5 + $0x80] sm:$0xff] }
0x12bc   : > { %13726 = vrcp.f32 %v2979_v48  ;;  %v3007_v57 = vmul.f32 1.442695, %v3005_v59  ;;  %v10990_v59 = vld [vmem:[%s15861_s29 + $0x90] sm:$0xff] }
0x12bd   : > { %13728 = vpow2.f32 %v3009_v60  ;;  %v11006_v60 = vld [vmem:[%s15822_s5 + $0x90] sm:$0xff] }
0x12be   : > { %13730 = vpow2.f32 %v3007_v57  ;;  %v10996_v57 = vld [vmem:[%s15863_s2 + $0x80] sm:$0xff] }
0x12c5   : > { %v13725_v53 = vpop.eup %13724 }
0x12c6   : > { %v13727_v55 = vpop.eup %13726  ;;  %v2986_v58 = vmul.f32 1.0614054, %v13725_v53 }
0x12c7   : > { %v2985_v1 = vmul.f32 1.0614054, %v13727_v55  ;;  %v13729_v12 = vpop.eup %13728 }
0x12c8   : > { %v2988_v0 = vadd.f32 -1.4531521, %v2986_v58  ;;  %v13731_v13 = vpop.eup %13730 }
0x12c9   : > { %v2987_v61 = vadd.f32 -1.4531521, %v2985_v1  ;;  %v10991_v1 = vld [vmem:[%s15861_s29 + $0x98] sm:$0xff] }
0x12ca   : > { %v2990_v62 = vmul.f32 %v13725_v53, %v2988_v0  ;;  %v13135_v0 = vpack.c.bf16 %v10991_v1, %v10990_v59 }
0x12cb   : > { %v2989_v2 = vmul.f32 %v13727_v55, %v2987_v61  ;;  %v11007_v61 = vld [vmem:[%s15822_s5 + $0x98] sm:$0xff] }
0x12cc   : > { %v2992_v3 = vadd.f32 1.4214138, %v2990_v62  ;;  %v13151_v62 = vpack.c.bf16 %v11007_v61, %v11006_v60 }
0x12cd   : > { %v2991_v4 = vadd.f32 1.4214138, %v2989_v2  ;;  %v10997_v2 = vld [vmem:[%s15863_s2 + $0x88] sm:$0xff] }
0x12ce   : > { %v2994_v5 = vmul.f32 %v13725_v53, %v2992_v3  ;;  %v13139_v3 = vpack.c.bf16 %v10997_v2, %v10996_v57  ;;  %v11024_v57 = vld [vmem:[%s15865_s28 + $0x5] ss:$0 sm:$0xff] }
0x12cf   : > { %v2993_v6 = vmul.f32 %v13727_v55, %v2991_v4 }
0x12d0   : > { %v2996_v41 = vadd.f32 -0.28449672, %v2994_v5 }
0x12d1   : > { %v2995_v7 = vadd.f32 -0.28449672, %v2993_v6 }
0x12d2   : > { %v2998_v56 = vmul.f32 %v13725_v53, %v2996_v41 }
0x12d3   : > { %v2997_v8 = vmul.f32 %v13727_v55, %v2995_v7 }
0x12d4   : > { %v3000_v9 = vadd.f32 0.2548296, %v2998_v56 }
0x12d5   : > { %v2999_v10 = vadd.f32 0.2548296, %v2997_v8 }
0x12d6   : > { %v3002_v11 = vmul.f32 %v13725_v53, %v3000_v9  ;;  %v13131_v53 = vpack.c.bf16 %v10989_v52, %v10988_v49  ;;  %v10986_v9 = vld [vmem:[%s15826_s9 + $0x1] ss:$0 sm:$0xff]  ;;  %v11037_v52 = vld [vmem:[%s15822_s5 + $0xb0] sm:$0xff] }
0x12d7   : > { %v3001_v46 = vmul.f32 %v13727_v55, %v2999_v10  ;;  %v11005_v55 = vld [vmem:[%s15822_s5 + $0x88] sm:$0xff] }
0x12d8   : > { %v3012_v14 = vmul.f32 %v13729_v12, %v3002_v11  ;;  %v13147_v58 = vpack.c.bf16 %v11005_v55, %v11004_v54  ;;  %13132 = vmatprep.subr.bf16.mxu1 %v13131_v53 }
0x12d9   : > { %v3011_v15 = vmul.f32 %v13731_v13, %v3001_v46  ;;  %13134 = vmatpush3.bf16.msra.mxu1 %v13131_v53  ;;  %v10987_v46 = vld [vmem:[%s15827_s10 + $0x1] ss:$0 sm:$0xff]  ;;  %v11038_v53 = vld [vmem:[%s15822_s5 + $0xb8] sm:$0xff] }
0x12da   : > { %v3014_v16 = vsub.f32 1.0, %v3012_v14  ;;  %13148 = vmatprep.subr.bf16.mxu0 %v13147_v58  ;;  %13136 = vmatprep.subr.bf16.mxu1 %v13135_v0  ;;  %v13185_v54 = vpack.c.bf16 %v11038_v53, %v11037_v52 }
0x12db   : > { %v3013_v20 = vsub.f32 1.0, %v3011_v15  ;;  %v10998_v15 = vld [vmem:[%s15863_s2 + $0x90] sm:$0xff] }
0x12dc   : > { %v3016_v21 = vmul.f32 %v3014_v16, %v2974_v19  ;;  %v10999_v16 = vld [vmem:[%s15863_s2 + $0x98] sm:$0xff] }
0x12dd   : > { %v3015_v23 = vmul.f32 %v3013_v20, %v2973_v22  ;;  %13138 = vmatpush3.bf16.msra.mxu1 %v13135_v0  ;;  %v11009_v22 = vld [vmem:[%s15823_s6 + $0x4] ss:$0 sm:$0xff] }
0x12de   : > { %v3018_v24 = vadd.f32 1.0, %v3016_v21  ;;  %13140 = vmatprep.subr.bf16.mxu1 %v13139_v3  ;;  %v13143_v21 = vpack.c.bf16 %v10999_v16, %v10998_v15 }
0x12df   : > { %v3017_v26 = vadd.f32 1.0, %v3015_v23  ;;  %v10993_v23 = vld [vmem:[%s15865_s28 + $0x4] ss:$0 sm:$0xff] }
0x12e0   : > { %v3020_v29 = vmul.f32 %v3018_v24, %v2968_v27 }
0x12e1   : > { %v3019_v28 = vmul.f32 %v3017_v26, %v2967_v25 }
0x12e3   : > { %12243 = vmatprep.mubr.msk.f32.mxu0 %vm3029_vm7, %v3019_v28 }
0x12e4   : > { %12244 = vmatmul.mubr.msk.f32.vlgmr.msra.gmra.mrb[18].mxu0 %vm3029_vm7, %v3020_v29 }
0x12e5   : > { %13150 = vmatpush3.bf16.msra.mxu0 %v13147_v58 }
0x12e6   : > { %13152 = vmatprep.subr.bf16.mxu0 %v13151_v62 }
0x12e9   : > { %13154 = vmatpush3.bf16.msra.mxu0 %v13151_v62 }
0x13b7   : > { %v12245_v30 = vpop.f32.mrb[18].mxu0 }
0x13b8   : > { %v3112_v32 = vadd.f32 %v12245_v30, %v14452_v50  ;;  %v3102_v33 = vpop.f32.mrb[19].mxu0 }
0x13b9   : > { %v3111_v34 = vadd.f32 %v3102_v33, %v14454_v51 }
0x13ba   : > { %v14520_v35 = vadd.f32 %v10983_v31, %v3112_v32  ;;  %v11001_v32 = vld [vmem:[%s15864_s4 + $0x4] ss:$0 sm:$0xff] }
0x13bb   : > { %v14522_v36 = vadd.f32 %v10983_v31, %v3111_v34 }
0x13bc   : > { %v3129_v37 = vsel %vm607_vm0, %v14520_v35, 0.0 }
0x13bd   : > { %3130 = vadd.xlane.f32.xlu1 %v3129_v37  ;;  %v3126_v38 = vsel %vm607_vm0, %v14522_v36, 0.0 }
0x13be   : > { %3127 = vadd.xlane.f32.xlu0 %v3126_v38  ;;  %v11019_v38 = vld [vmem:[%s15861_s29 + $0xa0] sm:$0xff] }
0x144a   : > { %v3131_v39 = vpop.xlane.xlu1 %3130 }
0x144b   : > { %v3133_v40 = vmul.f32 0.03125, %v3131_v39  ;;  %v3128_v42 = vpop.xlane.xlu0 %3127  ;;  %v11020_v39 = vld [vmem:[%s15861_s29 + $0xa8] sm:$0xff] }
0x144c   : > { %v3132_v43 = vmul.f32 0.03125, %v3128_v42 }
0x144d   : > { %v3135_v50 = vsub.f32 %v14520_v35, %v3133_v40 }
0x144e   : > { %v3134_v51 = vsub.f32 %v14522_v36, %v3132_v43  ;;  %v13165_v43 = vpack.c.bf16 %v11020_v39, %v11019_v38  ;;  %v11032_v39 = vld [vmem:[%s15864_s4 + $0x5] ss:$0 sm:$0xff] }
0x144f   : > { %v3137_v44 = vmul.f32 %v3135_v50, %v3135_v50 }
0x1450   : > { %v3136_v45 = vmul.f32 %v3134_v51, %v3134_v51 }
0x1451   : > { %v3141_v47 = vsel %vm607_vm0, %v3137_v44, 0.0 }
0x1452   : > { %3142 = vadd.xlane.f32.xlu1 %v3141_v47  ;;  %v3138_v48 = vsel %vm607_vm0, %v3136_v45, 0.0  ;;  %v11035_v47 = vld [vmem:[%s15822_s5 + $0xa0] sm:$0xff] }
0x1453   : > { %3139 = vadd.xlane.f32.xlu0 %v3138_v48  ;;  %v11036_v48 = vld [vmem:[%s15822_s5 + $0xa8] sm:$0xff] }
0x1454   : > { %v13181_v49 = vpack.c.bf16 %v11036_v48, %v11035_v47 }
0x14df   : > { %v3143_v4 = vpop.xlane.xlu1 %3142 }
0x14e0   : > { %v3145_v5 = vmul.f32 0.03125, %v3143_v4  ;;  %v3140_v6 = vpop.xlane.xlu0 %3139 }
0x14e1   : > { %v3144_v41 = vmul.f32 0.03125, %v3140_v6 }
0x14e2   : > { %v3147_v7 = vadd.f32 1e-05, %v3145_v5  ;;  %v11040_v5 = vld [vmem:[%s15823_s6 + $0x5] ss:$0 sm:$0xff] }
0x14e3   : > { %v3146_v56 = vadd.f32 1e-05, %v3144_v41 }
0x14e4   : > { %13732 = vrsqrt.f32 %v3147_v7 }
0x14e5   : > { %13734 = vrsqrt.f32 %v3146_v56 }
0x14ee   : > { %v13733_v8 = vpop.eup %13732 }
0x14ef   : > { %v13735_v10 = vpop.eup %13734  ;;  %v3151_v11 = vmul.f32 %v13733_v8, %v3135_v50  ;;  %v11021_v50 = vld [vmem:[%s15861_s29 + $0xb0] sm:$0xff] }
0x14f0   : > { %v3150_v12 = vmul.f32 %v13735_v10, %v3134_v51  ;;  %v11022_v51 = vld [vmem:[%s15861_s29 + $0xb8] sm:$0xff] }
0x14f1   : > { %v3159_v13 = vmul.f32 %v10986_v9, %v3151_v11  ;;  %v13169_v45 = vpack.c.bf16 %v11022_v51, %v11021_v50 }
0x14f2   : > { %v3158_v14 = vmul.f32 %v10986_v9, %v3150_v12 }
0x14f3   : > { %v14576_v20 = vadd.f32 %v10987_v46, %v3159_v13 }
0x14f4   : > { %v14574_v19 = vadd.f32 %v10987_v46, %v3158_v14 }
0x14f6   : > { %12254 = vmatprep.mubr.msk.f32.mxu1 %vm607_vm0, %v14574_v19  ;;  %12276 = vmatprep.mubr.msk.f32.mxu0 %vm607_vm0, %v14574_v19 }
0x14f7   : > { %12255 = vmatmul.mubr.msk.f32.vlgmr.msra.gmra.mrb[26].mxu1 %vm607_vm0, %v14576_v20  ;;  %12277 = vmatmul.mubr.msk.f32.vlgmr.msra.gmra.mrb[20].mxu0 %vm607_vm0, %v14576_v20 }
0x14f8   : > { %13142 = vmatpush3.bf16.msra.mxu1 %v13139_v3  ;;  %12265 = vmatprep.mubr.msk.f32.mxu1 %vm607_vm0, %v14574_v19 }
0x14f9   : > { %13144 = vmatprep.subr.bf16.mxu1 %v13143_v21 }
0x14fc   : > { %13146 = vmatpush3.bf16.msra.mxu1 %v13143_v21 }
0x14ff   : > { %12266 = vmatmul.mubr.msk.f32.vlgmr.msra.gmra.mrb[28].mxu1 %vm607_vm0, %v14576_v20 }
0x15ca   : > { %v12256_v24 = vpop.f32.mrb[26].mxu1  ;;  %v12278_v25 = vpop.f32.mrb[20].mxu0 }
0x15cb   : > { %v3435_v26 = vadd.f32 %v12278_v25, %v11009_v22  ;;  %v3253_v27 = vpop.f32.mrb[27].mxu1  ;;  %v3429_v28 = vpop.f32.mrb[21].mxu0  ;;  %v3259_v44 = vadd.f32 %v12256_v24, %v10993_v23 }
0x15cc   : > { %v3254_v29 = vadd.f32 %v10993_v23, %v3253_v27  ;;  %v3430_v30 = vadd.f32 %v11009_v22, %v3429_v28  ;;  %v11027_v22 = vld [vmem:[%s15863_s2 + $0xa0] sm:$0xff]  ;;  %v11028_v23 = vld [vmem:[%s15863_s2 + $0xa8] sm:$0xff]  ;;  %v11029_v28 = vld [vmem:[%s15863_s2 + $0xb0] sm:$0xff] }
0x15cd   : > { %v13173_v24 = vpack.c.bf16 %v11028_v23, %v11027_v22  ;;  %v11018_v23 = vld [vmem:[%s15824_s7 + $0x20] sm:$0xff] }
0x15ce   : > { %v13161_v31 = vpack.c.bf16 %v3435_v26, %v3430_v30  ;;  %12283 = vmatprep.mubr.msk.f32.mxu1 %vm915_vm1, %v3254_v29  ;;  %v11030_v29 = vld [vmem:[%s15863_s2 + $0xb8] sm:$0xff] }
0x15d0   : > { %13162 = vmatprep.subr.bf16.mxu0 %v13161_v31 }
0x15d1   : > { %13164 = vmatpush3.bf16.msra.mxu0 %v13161_v31 }
0x15d2   : > { %v12267_v33 = vpop.f32.mrb[28].mxu1  ;;  %13174 = vmatprep.subr.bf16.mxu0 %v13173_v24 }
0x15d3   : > { %v3347_v34 = vadd.f32 %v12267_v33, %v11001_v32  ;;  %v3341_v37 = vpop.f32.mrb[29].mxu1  ;;  %v13177_v33 = vpack.c.bf16 %v11030_v29, %v11029_v28  ;;  %v11059_v29 = vld [vmem:[%s15865_s28 + $0x6] ss:$0 sm:$0xff] }
0x15d4   : > { %v3342_v40 = vadd.f32 %v11001_v32, %v3341_v37 }
0x15d6   : > { %v13155_v42 = vpack.c.bf16 %v3347_v34, %v3342_v40 }
0x15d8   : > { %13157 = vmatprep.subr.msk.bf16.mxu1 %vm14192_vm2, %v13155_v42 }
0x15d9   : > { %13160 = vmatpush3.bf16.xpose.msk.msra.mxu1 %vm14192_vm2, %v13155_v42 }
0x15da   : > { %13166 = vmatprep.subr.bf16.mxu1 %v13165_v43 }
0x15e0   : > { %12284 = vmatmul.mubr.msk.f32.vlgmr.msra.gmra.mrb[30].mxu1 %vm915_vm1, %v3259_v44 }
0x15e1   : > { %13168 = vmatpush3.bf16.msra.mxu1 %v13165_v43  ;;  %12301 = vmatprep.mubr.msk.f32.mxu1 %vm607_vm0, %v14574_v19 }
0x15e2   : > { %13170 = vmatprep.subr.bf16.mxu1 %v13169_v45 }
0x15e5   : > { %13172 = vmatpush3.bf16.msra.mxu1 %v13169_v45 }
0x15e6   : > { %13182 = vmatprep.subr.bf16.mxu1 %v13181_v49 }
0x15e8   : > { %12302 = vmatmul.mubr.msk.f32.vlgmr.msra.gmra.mrb[32].mxu1 %vm607_vm0, %v14576_v20 }
0x15e9   : > { %13184 = vmatpush3.bf16.msra.mxu1 %v13181_v49  ;;  %12323 = vmatprep.mubr.msk.f32.mxu1 %vm607_vm0, %v14574_v19 }
0x15ea   : > { %13186 = vmatprep.subr.bf16.mxu1 %v13185_v54 }
0x15ed   : > { %13188 = vmatpush3.bf16.msra.mxu1 %v13185_v54 }
0x15f0   : > { %12324 = vmatmul.mubr.msk.f32.vlgmr.msra.gmra.mrb[34].mxu1 %vm607_vm0, %v14576_v20 }
0x16b3   : > { %v12285_v55 = vpop.f32.mrb[30].mxu1 }
0x16b4   : > { %v3526_v58 = vmul.f32 0.35355338, %v12285_v55  ;;  %v3516_v59 = vpop.f32.mrb[31].mxu1 }
0x16b5   : > { %v3525_v1 = vmul.f32 0.35355338, %v3516_v59 }
0x16b6   : > { %v3528_v0 = vsel %vm604_vm3, %v3526_v58, -1e+30 }
0x16b7   : > { %v3532_v60 = vsel %vm1007_vm4, %v3528_v0, -inf  ;;  %v3527_v61 = vsel %vm604_vm3, %v3525_v1, -1e+30 }
0x16b8   : > { %3533 = vmax.xlane.f32.xlu1 %v3532_v60  ;;  %v3529_v62 = vsel %vm1007_vm4, %v3527_v61, -inf }
0x16b9   : > { %3530 = vmax.xlane.f32.xlu0 %v3529_v62 }
0x16bb   : > { %v12303_v2 = vpop.f32.mrb[32].mxu1 }
0x16bc   : > { %v3719_v3 = vadd.f32 %v12303_v2, %v11024_v57  ;;  %v3713_v4 = vpop.f32.mrb[33].mxu1 }
0x16bd   : > { %v3714_v34 = vadd.f32 %v11024_v57, %v3713_v4  ;;  %v11055_v4 = vld [vmem:[%s15861_s29 + $0xc8] sm:$0xff] }
0x16c3   : > { %v12325_v6 = vpop.f32.mrb[34].mxu1 }
0x16c4   : > { %v3895_v41 = vadd.f32 %v12325_v6, %v11040_v5  ;;  %v3889_v7 = vpop.f32.mrb[35].mxu1  ;;  %v11049_v6 = vld [vmem:[%s15824_s7 + $0x28] sm:$0xff] }
0x16c5   : > { %v3890_v56 = vadd.f32 %v11040_v5, %v3889_v7 }
0x16c7   : > { %v13195_v8 = vpack.c.bf16 %v3895_v41, %v3890_v56 }
0x16c9   : > { %13196 = vmatprep.subr.bf16.mxu1 %v13195_v8 }
0x16ca   : > { %13198 = vmatpush3.bf16.msra.mxu1 %v13195_v8  ;;  %v11056_v8 = vld [vmem:[%s15861_s29 + $0xd0] sm:$0xff] }
0x1745   : > { %v3534_v9 = vpop.xlane.xlu1 %3533 }
0x1746   : > { %v3536_v10 = vsub.f32 %v3528_v0, %v3534_v9  ;;  %v3531_v11 = vpop.xlane.xlu0 %3530  ;;  %v11057_v9 = vld [vmem:[%s15861_s29 + $0xd8] sm:$0xff] }
0x1747   : > { %v3535_v12 = vsub.f32 %v3527_v61, %v3531_v11 }
0x1748   : > { %v3539_v46 = vmul.f32 1.442695, %v3536_v10 }
0x1749   : > { %v3537_v13 = vmul.f32 1.442695, %v3535_v12 }
0x174a   : > { %13736 = vpow2.f32 %v3539_v46  ;;  %v13203_v46 = vpack.c.bf16 %v11057_v9, %v11056_v8  ;;  %v11088_v8 = vld [vmem:[%s15861_s29 + $0xe8] sm:$0xff] }
0x174b   : > { %13738 = vpow2.f32 %v3537_v13  ;;  %v11070_v13 = vld [vmem:[%s15822_s5 + $0xc0] sm:$0xff] }
0x1754   : > { %v13737_v14 = vpop.eup %13736 }
0x1755   : > { %v13739_v15 = vpop.eup %13738  ;;  %v3544_v16 = vsel %vm1007_vm4, %v13737_v14, 0.0 }
0x1756   : > { %3545 = vadd.xlane.f32.xlu1 %v3544_v16  ;;  %v3541_v21 = vsel %vm1007_vm4, %v13739_v15, 0.0  ;;  %v11072_v16 = vld [vmem:[%s15822_s5 + $0xd0] sm:$0xff] }
0x1757   : > { %3542 = vadd.xlane.f32.xlu0 %v3541_v21  ;;  %v11073_v21 = vld [vmem:[%s15822_s5 + $0xd8] sm:$0xff] }
0x1758   : > { %v13219_v22 = vpack.c.bf16 %v11073_v21, %v11072_v16 }
0x17e3   : > { %v3546_v25 = vpop.xlane.xlu1 %3545 }
0x17e4   : > { %13740 = vrcp.f32 %v3546_v25  ;;  %v3543_v26 = vpop.xlane.xlu0 %3542  ;;  %v11063_v25 = vld [vmem:[%s15863_s2 + $0xc8] sm:$0xff] }
0x17e5   : > { %13742 = vrcp.f32 %v3543_v26 }
0x17ee   : > { %v13741_v27 = vpop.eup %13740 }
0x17ef   : > { %v13743_v30 = vpop.eup %13742  ;;  %v3550_v32 = vmul.f32 %v13741_v27, %v13737_v14  ;;  %v11071_v14 = vld [vmem:[%s15822_s5 + $0xc8] sm:$0xff] }
0x17f0   : > { %v3549_v31 = vmul.f32 %v13743_v30, %v13739_v15  ;;  %v13215_v15 = vpack.c.bf16 %v11071_v14, %v11070_v13  ;;  %v11064_v30 = vld [vmem:[%s15863_s2 + $0xd0] sm:$0xff]  ;;  %v11090_v14 = vld [vmem:[%s15861_s29 + $0xf8] sm:$0xff] }
0x17f1   : > { %v11089_v13 = vld [vmem:[%s15861_s29 + $0xf0] sm:$0xff] }
0x17f2   : > { %12290 = vmatprep.mubr.msk.f32.mxu0 %vm1007_vm4, %v3549_v31  ;;  %v11065_v31 = vld [vmem:[%s15863_s2 + $0xd8] sm:$0xff] }
0x17f3   : > { %12291 = vmatmul.mubr.msk.f32.vlgmr.msra.gmra.mrb[22].mxu0 %vm1007_vm4, %v3550_v32 }
0x17f4   : > { %13176 = vmatpush3.bf16.msra.mxu0 %v13173_v24  ;;  %12312 = vmatprep.mubr.msk.f32.mxu0 %vm607_vm0, %v14574_v19  ;;  %v11062_v24 = vld [vmem:[%s15863_s2 + $0xc0] sm:$0xff] }
0x17f5   : > { %13178 = vmatprep.subr.bf16.mxu0 %v13177_v33  ;;  %v13207_v28 = vpack.c.bf16 %v11063_v25, %v11062_v24  ;;  %v11104_v24 = vld [vmem:[%s15822_s5 + $0xe8] sm:$0xff] }
0x17f8   : > { %13180 = vmatpush3.bf16.msra.mxu0 %v13177_v33 }
0x17fb   : > { %12313 = vmatmul.mubr.msk.f32.vlgmr.msra.gmra.mrb[24].mxu0 %vm607_vm0, %v14576_v20 }
0x17fc   : > { %12330 = vmatprep.mubr.msk.f32.mxu0 %vm915_vm1, %v3714_v34 }
0x18c6   : > { %v14670_v37 = vpop.f32.mrb[22].mxu0 }
0x18c7   : > { %v14672_v38 = vpop.f32.mrb[23].mxu0 }
0x18ce   : > { %v12314_v40 = vpop.f32.mrb[24].mxu0 }
0x18cf   : > { %v3807_v42 = vadd.f32 %v12314_v40, %v11032_v39  ;;  %v3801_v43 = vpop.f32.mrb[25].mxu0 }
0x18d0   : > { %v3802_v50 = vadd.f32 %v11032_v39, %v3801_v43  ;;  %v13211_v39 = vpack.c.bf16 %v11065_v31, %v11064_v30  ;;  %v11096_v30 = vld [vmem:[%s15863_s2 + $0xe8] sm:$0xff] }
0x18d2   : > { %v13189_v51 = vpack.c.bf16 %v3807_v42, %v3802_v50 }
0x18d4   : > { %13191 = vmatprep.subr.msk.bf16.mxu0 %vm14192_vm2, %v13189_v51 }
0x18d5   : > { %13194 = vmatpush3.bf16.xpose.msk.msra.mxu0 %vm14192_vm2, %v13189_v51 }
0x18d6   : > { %12340 = vmatprep.subr.mxu0 %v11049_v6 }
0x18dc   : > { %12331 = vmatmul.mubr.msk.f32.vlgmr.msra.gmra.mrb[26].mxu0 %vm915_vm1, %v3719_v3  ;;  %v11054_v3 = vld [vmem:[%s15861_s29 + $0xc0] sm:$0xff] }
0x18dd   : > { %v13199_v5 = vpack.c.bf16 %v11055_v4, %v11054_v3  ;;  %12341 = vmatpush3.msra.mxu0 %v11049_v6 }
0x18de   : > { %12345 = vmatprep.subr.mxu0 %v11018_v23 }
0x18df   : > { %13200 = vmatprep.subr.bf16.mxu1 %v13199_v5 }
0x19af   : > { %v12332_v44 = vpop.f32.mrb[26].mxu0 }
0x19b0   : > { %v3986_v45 = vmul.f32 0.35355338, %v12332_v44  ;;  %v3976_v47 = vpop.f32.mrb[27].mxu0 }
0x19b1   : > { %v3985_v48 = vmul.f32 0.35355338, %v3976_v47 }
0x19b2   : > { %v3988_v49 = vsel %vm604_vm3, %v3986_v45, -1e+30 }
0x19b3   : > { %v3992_v52 = vsel %vm1007_vm4, %v3988_v49, -inf  ;;  %v3987_v53 = vsel %vm604_vm3, %v3985_v48, -1e+30 }
0x19b4   : > { %3993 = vmax.xlane.f32.xlu1 %v3992_v52  ;;  %v3989_v54 = vsel %vm1007_vm4, %v3987_v53, -inf }
0x19b5   : > { %3990 = vmax.xlane.f32.xlu0 %v3989_v54 }
0x1a41   : > { %v3994_v55 = vpop.xlane.xlu1 %3993 }
0x1a42   : > { %v3996_v58 = vsub.f32 %v3988_v49, %v3994_v55  ;;  %v3991_v59 = vpop.xlane.xlu0 %3990 }
0x1a43   : > { %v3995_v1 = vsub.f32 %v3987_v53, %v3991_v59 }
0x1a44   : > { %v3999_v0 = vmul.f32 1.442695, %v3996_v58 }
0x1a45   : > { %v3997_v60 = vmul.f32 1.442695, %v3995_v1 }
0x1a46   : > { %13744 = vpow2.f32 %v3999_v0 }
0x1a47   : > { %13746 = vpow2.f32 %v3997_v60 }
0x1a50   : > { %v13745_v61 = vpop.eup %13744 }
0x1a51   : > { %v13747_v62 = vpop.eup %13746  ;;  %v4004_v57 = vsel %vm1007_vm4, %v13745_v61, 0.0 }
0x1a52   : > { %4005 = vadd.xlane.f32.xlu1 %v4004_v57  ;;  %v4001_v2 = vsel %vm1007_vm4, %v13747_v62, 0.0 }
0x1a53   : > { %4002 = vadd.xlane.f32.xlu0 %v4001_v2 }
0x1adf   : > { %v4006_v41 = vpop.xlane.xlu1 %4005 }
0x1ae0   : > { %13748 = vrcp.f32 %v4006_v41  ;;  %v4003_v7 = vpop.xlane.xlu0 %4002 }
0x1ae1   : > { %13750 = vrcp.f32 %v4003_v7 }
0x1aea   : > { %v13749_v56 = vpop.eup %13748 }
0x1aeb   : > { %v13751_v10 = vpop.eup %13750  ;;  %v4010_v12 = vmul.f32 %v13749_v56, %v13745_v61  ;;  %v11087_v56 = vld [vmem:[%s15861_s29 + $0xe0] sm:$0xff] }
0x1aec   : > { %v4009_v11 = vmul.f32 %v13751_v10, %v13747_v62  ;;  %v13233_v9 = vpack.c.bf16 %v11088_v8, %v11087_v56  ;;  %v11084_v10 = vld [vmem:[%s15824_s7 + $0x30] sm:$0xff] }
0x1aee   : > { %12337 = vmatprep.mubr.msk.f32.mxu1 %vm1007_vm4, %v4009_v11 }
0x1aef   : > { %12338 = vmatmul.mubr.msk.f32.vlgmr.msra.gmra.mrb[36].mxu1 %vm1007_vm4, %v4010_v12 }
0x1af0   : > { %13202 = vmatpush3.bf16.msra.mxu1 %v13199_v5  ;;  %12358 = vmatprep.mubr.msk.f32.mxu1 %vm607_vm0, %v14574_v19 }
0x1af1   : > { %13204 = vmatprep.subr.bf16.mxu1 %v13203_v46 }
0x1af4   : > { %13206 = vmatpush3.bf16.msra.mxu1 %v13203_v46 }
0x1af5   : > { %13216 = vmatprep.subr.bf16.mxu1 %v13215_v15 }
0x1af7   : > { %12359 = vmatmul.mubr.msk.f32.vlgmr.msra.gmra.mrb[38].mxu1 %vm607_vm0, %v14576_v20 }
0x1af8   : > { %13218 = vmatpush3.bf16.msra.mxu1 %v13215_v15  ;;  %12380 = vmatprep.mubr.msk.f32.mxu1 %vm607_vm0, %v14574_v19 }
0x1af9   : > { %13220 = vmatprep.subr.bf16.mxu1 %v13219_v22 }
0x1afc   : > { %13222 = vmatpush3.bf16.msra.mxu1 %v13219_v22  ;;  %v13237_v22 = vpack.c.bf16 %v11090_v14, %v11089_v13 }
0x1aff   : > { %12381 = vmatmul.mubr.msk.f32.vlgmr.msra.gmra.mrb[40].mxu1 %vm607_vm0, %v14576_v20 }
0x1bc2   : > { %v12339_v26 = vpop.f32.mrb[36].mxu1 }
0x1bc3   : > { %v4083_v27 = vpop.f32.mrb[37].mxu1 }
0x1bc4   : > { %12342 = vmatprep.mubr.msk.f32.mxu0 %vm915_vm1, %v4083_v27  ;;  %v11106_v27 = vld [vmem:[%s15822_s5 + $0xf8] sm:$0xff] }
0x1bc5   : > { %12343 = vmatmul.mubr.msk.f32.vlgmr.msra.gmra.mrb[28].mxu0 %vm915_vm1, %v12339_v26  ;;  %v11105_v26 = vld [vmem:[%s15822_s5 + $0xf0] sm:$0xff] }
0x1bc6   : > { %12346 = vmatpush3.msra.mxu0 %v11018_v23  ;;  %12347 = vmatprep.mubr.msk.f32.mxu0 %vm915_vm1, %v14672_v38  ;;  %v11075_v38 = vld [vmem:[%s15823_s6 + $0x6] ss:$0 sm:$0xff] }
0x1bc7   : > { %13208 = vmatprep.subr.bf16.mxu0 %v13207_v28  ;;  %v11103_v23 = vld [vmem:[%s15822_s5 + $0xe0] sm:$0xff] }
0x1bc8   : > { %v13249_v25 = vpack.c.bf16 %v11104_v24, %v11103_v23  ;;  %v11121_v23 = vld [vmem:[%s15825_s8 + $0x1] ss:$0 sm:$0xff] }
0x1bca   : > { %v12360_v32 = vpop.f32.mrb[38].mxu1 }
0x1bcb   : > { %v4341_v33 = vadd.f32 %v12360_v32, %v11059_v29  ;;  %v4335_v34 = vpop.f32.mrb[39].mxu1  ;;  %v11097_v32 = vld [vmem:[%s15863_s2 + $0xf0] sm:$0xff] }
0x1bcc   : > { %v4336_v50 = vadd.f32 %v11059_v29, %v4335_v34  ;;  %v11095_v29 = vld [vmem:[%s15863_s2 + $0xe0] sm:$0xff] }
0x1bcd   : > { %12348 = vmatmul.mubr.msk.f32.vlgmr.msra.gmra.mrb[28].mxu0 %vm915_vm1, %v14670_v37  ;;  %v11067_v37 = vld [vmem:[%s15864_s4 + $0x6] ss:$0 sm:$0xff]  ;;  %v13241_v31 = vpack.c.bf16 %v11096_v30, %v11095_v29 }
0x1bce   : > { %13210 = vmatpush3.bf16.msra.mxu0 %v13207_v28  ;;  %12369 = vmatprep.mubr.msk.f32.mxu0 %vm607_vm0, %v14574_v19  ;;  %v13253_v28 = vpack.c.bf16 %v11106_v27, %v11105_v26 }
0x1bcf   : > { %13212 = vmatprep.subr.bf16.mxu0 %v13211_v39 }
0x1bd2   : > { %13214 = vmatpush3.bf16.msra.mxu0 %v13211_v39  ;;  %v12382_v40 = vpop.f32.mrb[40].mxu1 }
0x1bd3   : > { %v4517_v42 = vadd.f32 %v12382_v40, %v11075_v38  ;;  %v4511_v43 = vpop.f32.mrb[41].mxu1  ;;  %v11092_v40 = vld [vmem:[%s15865_s28 + $0x7] ss:$0 sm:$0xff] }
0x1bd4   : > { %v4512_v51 = vadd.f32 %v11075_v38, %v4511_v43 }
0x1bd5   : > { %12370 = vmatmul.mubr.msk.f32.vlgmr.msra.gmra.mrb[30].mxu0 %vm607_vm0, %v14576_v20 }
0x1bd6   : > { %v13229_v44 = vpack.c.bf16 %v4517_v42, %v4512_v51  ;;  %12387 = vmatprep.mubr.msk.f32.mxu0 %vm915_vm1, %v4336_v50 }
0x1bd8   : > { %13230 = vmatprep.subr.bf16.mxu1 %v13229_v44 }
0x1bd9   : > { %13232 = vmatpush3.bf16.msra.mxu1 %v13229_v44  ;;  %v11108_v44 = vld [vmem:[%s15823_s6 + $0x7] ss:$0 sm:$0xff] }
0x1bda   : > { %13234 = vmatprep.subr.bf16.mxu1 %v13233_v9 }
0x1ca8   : > { %v12371_v45 = vpop.f32.mrb[30].mxu0 }
0x1ca9   : > { %v4429_v47 = vadd.f32 %v12371_v45, %v11067_v37  ;;  %v4423_v48 = vpop.f32.mrb[31].mxu0 }
0x1caa   : > { %v4424_v49 = vadd.f32 %v11067_v37, %v4423_v48 }
0x1cac   : > { %v13223_v52 = vpack.c.bf16 %v4429_v47, %v4424_v49  ;;  %v11100_v49 = vld [vmem:[%s15864_s4 + $0x7] ss:$0 sm:$0xff] }
0x1cae   : > { %13225 = vmatprep.subr.msk.bf16.mxu0 %vm14192_vm2, %v13223_v52 }
0x1caf   : > { %13228 = vmatpush3.bf16.xpose.msk.msra.mxu0 %vm14192_vm2, %v13223_v52 }
0x1cb0   : > { %12397 = vmatprep.subr.mxu0 %v11084_v10 }
0x1cb6   : > { %12388 = vmatmul.mubr.msk.f32.vlgmr.msra.gmra.mrb[32].mxu0 %vm915_vm1, %v4341_v33  ;;  %v11098_v33 = vld [vmem:[%s15863_s2 + $0xf8] sm:$0xff] }
0x1cb7   : > { %12398 = vmatpush3.msra.mxu0 %v11084_v10  ;;  %v13245_v38 = vpack.c.bf16 %v11098_v33, %v11097_v32  ;;  %v11117_v10 = vld [vmem:[%s15824_s7 + $0x38] sm:$0xff] }
0x1cb8   : > { %13242 = vmatprep.subr.bf16.mxu0 %v13241_v31 }
0x1d89   : > { %v12389_v53 = vpop.f32.mrb[32].mxu0 }
0x1d8a   : > { %v4608_v54 = vmul.f32 0.35355338, %v12389_v53  ;;  %v4598_v55 = vpop.f32.mrb[33].mxu0 }
0x1d8b   : > { %v4607_v58 = vmul.f32 0.35355338, %v4598_v55 }
0x1d8c   : > { %v4610_v59 = vsel %vm604_vm3, %v4608_v54, -1e+30 }
0x1d8d   : > { %v4614_v1 = vsel %vm1007_vm4, %v4610_v59, -inf  ;;  %v4609_v0 = vsel %vm604_vm3, %v4607_v58, -1e+30 }
0x1d8e   : > { %4615 = vmax.xlane.f32.xlu1 %v4614_v1  ;;  %v4611_v60 = vsel %vm1007_vm4, %v4609_v0, -inf }
0x1d8f   : > { %4612 = vmax.xlane.f32.xlu0 %v4611_v60 }
0x1e1b   : > { %v4616_v61 = vpop.xlane.xlu1 %4615 }
0x1e1c   : > { %v4618_v62 = vsub.f32 %v4610_v59, %v4616_v61  ;;  %v4613_v57 = vpop.xlane.xlu0 %4612 }
0x1e1d   : > { %v4617_v2 = vsub.f32 %v4609_v0, %v4613_v57 }
0x1e1e   : > { %v4621_v3 = vmul.f32 1.442695, %v4618_v62 }
0x1e1f   : > { %v4619_v4 = vmul.f32 1.442695, %v4617_v2 }
0x1e20   : > { %13752 = vpow2.f32 %v4621_v3 }
0x1e21   : > { %13754 = vpow2.f32 %v4619_v4 }
0x1e2a   : > { %v13753_v5 = vpop.eup %13752 }
0x1e2b   : > { %v13755_v6 = vpop.eup %13754  ;;  %v4626_v41 = vsel %vm1007_vm4, %v13753_v5, 0.0 }
0x1e2c   : > { %4627 = vadd.xlane.f32.xlu1 %v4626_v41  ;;  %v4623_v7 = vsel %vm1007_vm4, %v13755_v6, 0.0 }
0x1e2d   : > { %4624 = vadd.xlane.f32.xlu0 %v4623_v7 }
0x1eb9   : > { %v4628_v11 = vpop.xlane.xlu1 %4627 }
0x1eba   : > { %13756 = vrcp.f32 %v4628_v11  ;;  %v4625_v12 = vpop.xlane.xlu0 %4624 }
0x1ebb   : > { %13758 = vrcp.f32 %v4625_v12 }
0x1ec4   : > { %v13757_v46 = vpop.eup %13756 }
0x1ec5   : > { %v13759_v15 = vpop.eup %13758  ;;  %v4632_v21 = vmul.f32 %v13757_v46, %v13753_v5 }
0x1ec6   : > { %v4631_v16 = vmul.f32 %v13759_v15, %v13755_v6 }
0x1ec8   : > { %12394 = vmatprep.mubr.msk.f32.mxu1 %vm1007_vm4, %v4631_v16 }
0x1ec9   : > { %12395 = vmatmul.mubr.msk.f32.vlgmr.msra.gmra.mrb[42].mxu1 %vm1007_vm4, %v4632_v21 }
0x1eca   : > { %13236 = vmatpush3.bf16.msra.mxu1 %v13233_v9  ;;  %12410 = vmatprep.mubr.msk.f32.mxu1 %vm607_vm0, %v14574_v19 }
0x1ecb   : > { %13238 = vmatprep.subr.bf16.mxu1 %v13237_v22 }
0x1ece   : > { %13240 = vmatpush3.bf16.msra.mxu1 %v13237_v22 }
0x1ecf   : > { %13250 = vmatprep.subr.bf16.mxu1 %v13249_v25 }
0x1ed1   : > { %12411 = vmatmul.mubr.msk.f32.vlgmr.msra.gmra.mrb[44].mxu1 %vm607_vm0, %v14576_v20 }
0x1ed2   : > { %13252 = vmatpush3.bf16.msra.mxu1 %v13249_v25  ;;  %12432 = vmatprep.mubr.msk.f32.mxu1 %vm607_vm0, %v14574_v19 }
0x1ed3   : > { %13254 = vmatprep.subr.bf16.mxu1 %v13253_v28 }
0x1ed6   : > { %13256 = vmatpush3.bf16.msra.mxu1 %v13253_v28 }
0x1ed9   : > { %12433 = vmatmul.mubr.msk.f32.vlgmr.msra.gmra.mrb[46].mxu1 %vm607_vm0, %v14576_v20 }
0x1f9c   : > { %v12396_v34 = vpop.f32.mrb[42].mxu1 }
0x1f9d   : > { %v4705_v39 = vpop.f32.mrb[43].mxu1 }
0x1f9e   : > { %12399 = vmatprep.mubr.msk.f32.mxu0 %vm915_vm1, %v4705_v39 }
0x1f9f   : > { %12400 = vmatmul.mubr.msk.f32.vlgmr.msra.gmra.mrb[28].mxu0 %vm915_vm1, %v12396_v34 }
0x1fa0   : > { %13244 = vmatpush3.bf16.msra.mxu0 %v13241_v31  ;;  %12421 = vmatprep.mubr.msk.f32.mxu0 %vm607_vm0, %v14574_v19 }
0x1fa1   : > { %13246 = vmatprep.subr.bf16.mxu0 %v13245_v38 }
0x1fa4   : > { %v12412_v42 = vpop.f32.mrb[44].mxu1  ;;  %13248 = vmatpush3.bf16.msra.mxu0 %v13245_v38 }
0x1fa5   : > { %v4884_v43 = vadd.f32 %v12412_v42, %v11092_v40  ;;  %v4878_v50 = vpop.f32.mrb[45].mxu1 }
0x1fa6   : > { %v4879_v51 = vadd.f32 %v11092_v40, %v4878_v50  ;;  %v11127_v50 = vld [vmem:[%s15830_s13 + $0x28] sm:$0xff] }
0x1fa7   : > { %12422 = vmatmul.mubr.msk.f32.vlgmr.msra.gmra.mrb[34].mxu0 %vm607_vm0, %v14576_v20 }
0x1fa8   : > { %12439 = vmatprep.mubr.msk.f32.mxu0 %vm915_vm1, %v4879_v51 }
0x1fac   : > { %v12434_v19 = vpop.f32.mrb[46].mxu1 }
0x1fad   : > { %v5060_v37 = vadd.f32 %v12434_v19, %v11108_v44  ;;  %v5054_v45 = vpop.f32.mrb[47].mxu1  ;;  %v11129_v19 = vld [vmem:[%s15830_s13 + $0x38] sm:$0xff] }
0x1fae   : > { %v5055_v47 = vadd.f32 %v11108_v44, %v5054_v45  ;;  %v11128_v44 = vld [vmem:[%s15830_s13 + $0x30] sm:$0xff] }
0x1fb0   : > { %v13263_v48 = vpack.c.bf16 %v5060_v37, %v5055_v47  ;;  %v13271_v37 = vpack.c.bf16 %v11129_v19, %v11128_v44 }
0x1fb2   : > { %13264 = vmatprep.subr.bf16.mxu1 %v13263_v48 }
0x1fb3   : > { %13266 = vmatpush3.bf16.msra.mxu1 %v13263_v48 }
0x207a   : > { %v12423_v52 = vpop.f32.mrb[34].mxu0 }
0x207b   : > { %v4972_v53 = vadd.f32 %v12423_v52, %v11100_v49  ;;  %v4966_v20 = vpop.f32.mrb[35].mxu0 }
0x207c   : > { %v4967_v54 = vadd.f32 %v11100_v49, %v4966_v20 }
0x207e   : > { %v13257_v55 = vpack.c.bf16 %v4972_v53, %v4967_v54  ;;  %v11124_v54 = vld [vmem:[%s15828_s11 + $0x1] ss:$0 sm:$0xff] }
0x2080   : > { %13259 = vmatprep.subr.msk.bf16.mxu0 %vm14192_vm2, %v13257_v55 }
0x2081   : > { %13262 = vmatpush3.bf16.xpose.msk.msra.mxu0 %vm14192_vm2, %v13257_v55 }
0x2082   : > { %12449 = vmatprep.subr.mxu0 %v11117_v10 }
0x2088   : > { %12440 = vmatmul.mubr.msk.f32.vlgmr.msra.gmra.mrb[36].mxu0 %vm915_vm1, %v4884_v43  ;;  %v11126_v43 = vld [vmem:[%s15830_s13 + $0x20] sm:$0xff] }
0x2089   : > { %12450 = vmatpush3.msra.mxu0 %v11117_v10  ;;  %v13267_v51 = vpack.c.bf16 %v11127_v50, %v11126_v43 }
0x208b   : > { %13268 = vmatprep.subr.bf16.mxu1 %v13267_v51 }
0x215b   : > { %v12441_v58 = vpop.f32.mrb[36].mxu0 }
0x215c   : > { %v5151_v59 = vmul.f32 0.35355338, %v12441_v58  ;;  %v5141_v1 = vpop.f32.mrb[37].mxu0 }
0x215d   : > { %v5150_v0 = vmul.f32 0.35355338, %v5141_v1  ;;  %v11125_v1 = vld [vmem:[%s15829_s12 + $0x1] ss:$0 sm:$0xff] }
0x215e   : > { %v5153_v60 = vsel %vm604_vm3, %v5151_v59, -1e+30 }
0x215f   : > { %v5157_v61 = vsel %vm1007_vm4, %v5153_v60, -inf  ;;  %v5152_v62 = vsel %vm604_vm3, %v5150_v0, -1e+30 }
0x2160   : > { %5158 = vmax.xlane.f32.xlu1 %v5157_v61  ;;  %v5154_v57 = vsel %vm1007_vm4, %v5152_v62, -inf }
0x2161   : > { %5155 = vmax.xlane.f32.xlu0 %v5154_v57  ;;  %v11134_v57 = vld [vmem:[%s15832_s15 + $0x40] sm:$0xff] }
0x21ed   : > { %v5159_v2 = vpop.xlane.xlu1 %5158 }
0x21ee   : > { %v5161_v3 = vsub.f32 %v5153_v60, %v5159_v2  ;;  %v5156_v4 = vpop.xlane.xlu0 %5155  ;;  %v11135_v2 = vld [vmem:[%s15832_s15 + $0x48] sm:$0xff] }
0x21ef   : > { %v5160_v5 = vsub.f32 %v5152_v62, %v5156_v4  ;;  %v11136_v4 = vld [vmem:[%s15832_s15 + $0x50] sm:$0xff] }
0x21f0   : > { %v5164_v6 = vmul.f32 1.442695, %v5161_v3  ;;  %v13275_v3 = vpack.c.bf16 %v11135_v2, %v11134_v57 }
0x21f1   : > { %v5162_v41 = vmul.f32 1.442695, %v5160_v5  ;;  %v11137_v5 = vld [vmem:[%s15832_s15 + $0x58] sm:$0xff] }
0x21f2   : > { %13760 = vpow2.f32 %v5164_v6  ;;  %13276 = vmatprep.subr.bf16.mxu0 %v13275_v3  ;;  %v13279_v6 = vpack.c.bf16 %v11137_v5, %v11136_v4 }
0x21f3   : > { %13762 = vpow2.f32 %v5162_v41  ;;  %v11138_v41 = vld [vmem:[%s15832_s15 + $0x60] sm:$0xff] }
0x21fc   : > { %v13761_v7 = vpop.eup %13760 }
0x21fd   : > { %v13763_v56 = vpop.eup %13762  ;;  %v5169_v8 = vsel %vm1007_vm4, %v13761_v7, 0.0 }
0x21fe   : > { %5170 = vadd.xlane.f32.xlu1 %v5169_v8  ;;  %v5166_v9 = vsel %vm1007_vm4, %v13763_v56, 0.0  ;;  %v11140_v8 = vld [vmem:[%s15832_s15 + $0x70] sm:$0xff] }
0x21ff   : > { %5167 = vadd.xlane.f32.xlu0 %v5166_v9  ;;  %v11141_v9 = vld [vmem:[%s15832_s15 + $0x78] sm:$0xff] }
0x2200   : > { %v13287_v10 = vpack.c.bf16 %v11141_v9, %v11140_v8  ;;  %v11145_v8 = vld [vmem:[%s15833_s16 + $0x1] ss:$0 sm:$0xff] }
0x228b   : > { %v5171_v11 = vpop.xlane.xlu1 %5170 }
0x228c   : > { %13764 = vrcp.f32 %v5171_v11  ;;  %v5168_v12 = vpop.xlane.xlu0 %5167  ;;  %v11131_v11 = vld [vmem:[%s15831_s14 + $0x1] ss:$0 sm:$0xff] }
0x228d   : > { %13766 = vrcp.f32 %v5168_v12 }
0x2296   : > { %v13765_v46 = vpop.eup %13764 }
0x2297   : > { %v13767_v13 = vpop.eup %13766  ;;  %v5175_v15 = vmul.f32 %v13765_v46, %v13761_v7  ;;  %v11139_v7 = vld [vmem:[%s15832_s15 + $0x68] sm:$0xff] }
0x2298   : > { %v5174_v14 = vmul.f32 %v13767_v13, %v13763_v56  ;;  %v13283_v56 = vpack.c.bf16 %v11139_v7, %v11138_v41 }
0x229a   : > { %12446 = vmatprep.mubr.msk.f32.mxu1 %vm1007_vm4, %v5174_v14 }
0x229b   : > { %12447 = vmatmul.mubr.msk.f32.vlgmr.msra.gmra.mrb[48].mxu1 %vm1007_vm4, %v5175_v15 }
0x229c   : > { %13270 = vmatpush3.bf16.msra.mxu1 %v13267_v51 }
0x229d   : > { %13272 = vmatprep.subr.bf16.mxu1 %v13271_v37 }
0x22a0   : > { %13274 = vmatpush3.bf16.msra.mxu1 %v13271_v37 }
0x236e   : > { %v12448_v16 = vpop.f32.mrb[48].mxu1 }
0x236f   : > { %v5248_v21 = vpop.f32.mrb[49].mxu1 }
0x2370   : > { %12451 = vmatprep.mubr.msk.f32.mxu0 %vm915_vm1, %v5248_v21 }
0x2371   : > { %12452 = vmatmul.mubr.msk.f32.vlgmr.msra.gmra.mrb[28].mxu0 %vm915_vm1, %v12448_v16 }
0x2372   : > { %13278 = vmatpush3.bf16.msra.mxu0 %v13275_v3 }
0x2373   : > { %13280 = vmatprep.subr.bf16.mxu0 %v13279_v6 }
0x2376   : > { %13282 = vmatpush3.bf16.msra.mxu0 %v13279_v6 }
0x2377   : > { %13284 = vmatprep.subr.bf16.mxu0 %v13283_v56 }
0x237a   : > { %13286 = vmatpush3.bf16.msra.mxu0 %v13283_v56 }
0x237b   : > { %13288 = vmatprep.subr.bf16.mxu0 %v13287_v10 }
0x237e   : > { %13290 = vmatpush3.bf16.msra.mxu0 %v13287_v10 }
0x2444   : > { %v12453_v22 = vpop.f32.mrb[28].mxu0 }
0x2445   : > { %v5343_v24 = vadd.f32 %v12453_v22, %v14520_v35  ;;  %v5331_v25 = vpop.f32.mrb[29].mxu0 }
0x2446   : > { %v5342_v26 = vadd.f32 %v5331_v25, %v14522_v36 }
0x2447   : > { %v14865_v27 = vadd.f32 %v11121_v23, %v5343_v24 }
0x2448   : > { %v14867_v28 = vadd.f32 %v11121_v23, %v5342_v26 }
0x2449   : > { %v5361_v29 = vsel %vm607_vm0, %v14865_v27, 0.0 }
0x244a   : > { %5362 = vadd.xlane.f32.xlu1 %v5361_v29  ;;  %v5358_v30 = vsel %vm607_vm0, %v14867_v28, 0.0 }
0x244b   : > { %5359 = vadd.xlane.f32.xlu0 %v5358_v30 }
0x24d7   : > { %v5363_v31 = vpop.xlane.xlu1 %5362 }
0x24d8   : > { %v5365_v32 = vmul.f32 0.03125, %v5363_v31  ;;  %v5360_v33 = vpop.xlane.xlu0 %5359 }
0x24d9   : > { %v5364_v34 = vmul.f32 0.03125, %v5360_v33 }
0x24da   : > { %v5367_v35 = vsub.f32 %v14865_v27, %v5365_v32 }
0x24db   : > { %v5366_v36 = vsub.f32 %v14867_v28, %v5364_v34 }
0x24dc   : > { %v5369_v39 = vmul.f32 %v5367_v35, %v5367_v35 }
0x24dd   : > { %v5368_v38 = vmul.f32 %v5366_v36, %v5366_v36 }
0x24de   : > { %v5373_v40 = vsel %vm607_vm0, %v5369_v39, 0.0 }
0x24df   : > { %5374 = vadd.xlane.f32.xlu1 %v5373_v40  ;;  %v5370_v42 = vsel %vm607_vm0, %v5368_v38, 0.0 }
0x24e0   : > { %5371 = vadd.xlane.f32.xlu0 %v5370_v42 }
0x256c   : > { %v5375_v45 = vpop.xlane.xlu1 %5374 }
0x256d   : > { %v5377_v47 = vmul.f32 0.03125, %v5375_v45  ;;  %v5372_v48 = vpop.xlane.xlu0 %5371 }
0x256e   : > { %v5376_v49 = vmul.f32 0.03125, %v5372_v48 }
0x256f   : > { %v5379_v52 = vadd.f32 1e-05, %v5377_v47 }
0x2570   : > { %v5378_v53 = vadd.f32 1e-05, %v5376_v49 }
0x2571   : > { %13768 = vrsqrt.f32 %v5379_v52 }
0x2572   : > { %13770 = vrsqrt.f32 %v5378_v53 }
0x257b   : > { %v13769_v20 = vpop.eup %13768 }
0x257c   : > { %v13771_v55 = vpop.eup %13770  ;;  %v5383_v58 = vmul.f32 %v13769_v20, %v5367_v35 }
0x257d   : > { %v5382_v59 = vmul.f32 %v13771_v55, %v5366_v36 }
0x257e   : > { %v5391_v0 = vmul.f32 %v11124_v54, %v5383_v58 }
0x257f   : > { %v5390_v60 = vmul.f32 %v11124_v54, %v5382_v59 }
0x2580   : > { %v5399_v62 = vadd.f32 %v11125_v1, %v5391_v0 }
0x2581   : > { %v5398_v61 = vadd.f32 %v11125_v1, %v5390_v60 }
0x2583   : > { %12462 = vmatprep.mubr.msk.f32.mxu1 %vm607_vm0, %v5398_v61 }
0x2584   : > { %12463 = vmatmul.mubr.msk.f32.vlgmr.msra.gmra.mrb[50].mxu1 %vm607_vm0, %v5399_v62 }
0x2657   : > { %v12464_v12 = vpop.f32.mrb[50].mxu1 }
0x2658   : > { %v5491_v46 = vadd.f32 %v12464_v12, %v11131_v11  ;;  %v5485_v13 = vpop.f32.mrb[51].mxu1 }
0x2659   : > { %v5486_v14 = vadd.f32 %v11131_v11, %v5485_v13 }
0x265a   : > { %v5497_v15 = vmul.f32 0.70710677, %v5491_v46  ;;  %v5495_v6 = vmul.f32 0.5, %v5491_v46 }
0x265b   : > { %v5496_v16 = vmul.f32 0.70710677, %v5486_v14  ;;  %v5494_v4 = vmul.f32 0.5, %v5486_v14 }
0x265c   : > { %v5503_v21 = vand.u32 2147483647, %v5497_v15  ;;  %vm5499_vm8 = vcmp.ge.f32.partialorder %v5497_v15, 0.0 }
0x265d   : > { %v5502_v22 = vand.u32 2147483647, %v5496_v16  ;;  %vm5498_vm9 = vcmp.ge.f32.partialorder %v5496_v16, 0.0  ;;  %v5501_v60 = vsel %vm5499_vm8, 1.0, %v13940_v18 }
0x265e   : > { %v5505_v23 = vmul.f32 0.3275911, %v5503_v21  ;;  %v5531_v29 = vsub.f32 0.0, %v5503_v21  ;;  %v5500_v57 = vsel %vm5498_vm9, 1.0, %v13940_v18 }
0x265f   : > { %v5504_v24 = vmul.f32 0.3275911, %v5502_v22  ;;  %v5530_v30 = vsub.f32 0.0, %v5502_v22 }
0x2660   : > { %v5507_v25 = vadd.f32 1.0, %v5505_v23  ;;  %v5533_v32 = vmul.f32 %v5531_v29, %v5503_v21  ;;  %v11150_v29 = vld [vmem:[%s15861_s29 + $0x100] sm:$0xff] }
0x2661   : > { %v5506_v26 = vadd.f32 1.0, %v5504_v24  ;;  %v5532_v35 = vmul.f32 %v5530_v30, %v5502_v22  ;;  %v11151_v30 = vld [vmem:[%s15861_s29 + $0x108] sm:$0xff] }
0x2662   : > { %13772 = vrcp.f32 %v5507_v25  ;;  %v5536_v38 = vmul.f32 1.442695, %v5533_v32  ;;  %v11166_v32 = vld [vmem:[%s15822_s5 + $0x100] sm:$0xff] }
0x2663   : > { %13774 = vrcp.f32 %v5506_v26  ;;  %v5534_v43 = vmul.f32 1.442695, %v5532_v35  ;;  %v11152_v35 = vld [vmem:[%s15861_s29 + $0x110] sm:$0xff] }
0x2664   : > { %13776 = vpow2.f32 %v5536_v38  ;;  %v11168_v38 = vld [vmem:[%s15822_s5 + $0x110] sm:$0xff] }
0x2665   : > { %13778 = vpow2.f32 %v5534_v43  ;;  %v11158_v43 = vld [vmem:[%s15863_s2 + $0x100] sm:$0xff] }
0x266c   : > { %v13773_v31 = vpop.eup %13772 }
0x266d   : > { %v13775_v33 = vpop.eup %13774  ;;  %v5513_v34 = vmul.f32 1.0614054, %v13773_v31 }
0x266e   : > { %v5512_v36 = vmul.f32 1.0614054, %v13775_v33  ;;  %v13777_v54 = vpop.eup %13776 }
0x266f   : > { %v5515_v39 = vadd.f32 -1.4531521, %v5513_v34  ;;  %v13779_v58 = vpop.eup %13778 }
0x2670   : > { %v5514_v40 = vadd.f32 -1.4531521, %v5512_v36  ;;  %v11153_v36 = vld [vmem:[%s15861_s29 + $0x118] sm:$0xff] }
0x2671   : > { %v5517_v42 = vmul.f32 %v13773_v31, %v5515_v39  ;;  %v13295_v39 = vpack.c.bf16 %v11153_v36, %v11152_v35 }
0x2672   : > { %v5516_v50 = vmul.f32 %v13775_v33, %v5514_v40  ;;  %v11169_v40 = vld [vmem:[%s15822_s5 + $0x118] sm:$0xff] }
0x2673   : > { %v5519_v51 = vadd.f32 1.4214138, %v5517_v42  ;;  %v13311_v42 = vpack.c.bf16 %v11169_v40, %v11168_v38 }
0x2674   : > { %v5518_v44 = vadd.f32 1.4214138, %v5516_v50  ;;  %v11159_v50 = vld [vmem:[%s15863_s2 + $0x108] sm:$0xff] }
0x2675   : > { %v5521_v19 = vmul.f32 %v13773_v31, %v5519_v51  ;;  %v13299_v51 = vpack.c.bf16 %v11159_v50, %v11158_v43  ;;  %v11186_v43 = vld [vmem:[%s15865_s28 + $0x9] ss:$0 sm:$0xff] }
0x2676   : > { %v5520_v37 = vmul.f32 %v13775_v33, %v5518_v44 }
0x2677   : > { %v5523_v45 = vadd.f32 -0.28449672, %v5521_v19 }
0x2678   : > { %v5522_v47 = vadd.f32 -0.28449672, %v5520_v37 }
0x2679   : > { %v5525_v48 = vmul.f32 %v13773_v31, %v5523_v45 }
0x267a   : > { %v5524_v49 = vmul.f32 %v13775_v33, %v5522_v47 }
0x267b   : > { %v5527_v52 = vadd.f32 0.2548296, %v5525_v48 }
0x267c   : > { %v5526_v53 = vadd.f32 0.2548296, %v5524_v49 }
0x267d   : > { %v5529_v20 = vmul.f32 %v13773_v31, %v5527_v52  ;;  %v13291_v31 = vpack.c.bf16 %v11151_v30, %v11150_v29  ;;  %v11148_v52 = vld [vmem:[%s15826_s9 + $0x2] ss:$0 sm:$0xff]  ;;  %v11199_v30 = vld [vmem:[%s15822_s5 + $0x130] sm:$0xff] }
0x267e   : > { %v5528_v55 = vmul.f32 %v13775_v33, %v5526_v53  ;;  %v11167_v33 = vld [vmem:[%s15822_s5 + $0x108] sm:$0xff] }
0x267f   : > { %v5539_v59 = vmul.f32 %v13777_v54, %v5529_v20  ;;  %v13307_v34 = vpack.c.bf16 %v11167_v33, %v11166_v32  ;;  %13292 = vmatprep.subr.bf16.mxu1 %v13291_v31 }
0x2680   : > { %v5538_v1 = vmul.f32 %v13779_v58, %v5528_v55  ;;  %13294 = vmatpush3.bf16.msra.mxu1 %v13291_v31  ;;  %v11149_v55 = vld [vmem:[%s15827_s10 + $0x2] ss:$0 sm:$0xff]  ;;  %v11200_v31 = vld [vmem:[%s15822_s5 + $0x138] sm:$0xff] }
0x2681   : > { %v5541_v0 = vsub.f32 1.0, %v5539_v59  ;;  %13308 = vmatprep.subr.bf16.mxu0 %v13307_v34  ;;  %13296 = vmatprep.subr.bf16.mxu1 %v13295_v39  ;;  %v13345_v32 = vpack.c.bf16 %v11200_v31, %v11199_v30 }
0x2682   : > { %v5540_v61 = vsub.f32 1.0, %v5538_v1  ;;  %v11160_v1 = vld [vmem:[%s15863_s2 + $0x110] sm:$0xff] }
0x2683   : > { %v5543_v62 = vmul.f32 %v5541_v0, %v5501_v60  ;;  %v11161_v0 = vld [vmem:[%s15863_s2 + $0x118] sm:$0xff] }
0x2684   : > { %v5542_v2 = vmul.f32 %v5540_v61, %v5500_v57  ;;  %13298 = vmatpush3.bf16.msra.mxu1 %v13295_v39  ;;  %v11171_v57 = vld [vmem:[%s15823_s6 + $0x8] ss:$0 sm:$0xff] }
0x2685   : > { %v5545_v3 = vadd.f32 1.0, %v5543_v62  ;;  %13300 = vmatprep.subr.bf16.mxu1 %v13299_v51  ;;  %v13303_v62 = vpack.c.bf16 %v11161_v0, %v11160_v1 }
0x2686   : > { %v5544_v5 = vadd.f32 1.0, %v5542_v2  ;;  %v11155_v2 = vld [vmem:[%s15865_s28 + $0x8] ss:$0 sm:$0xff] }
0x2687   : > { %v5547_v7 = vmul.f32 %v5545_v3, %v5495_v6 }
0x2688   : > { %v5546_v41 = vmul.f32 %v5544_v5, %v5494_v4 }
0x268a   : > { %12481 = vmatprep.mubr.msk.f32.mxu0 %vm3029_vm7, %v5546_v41 }
0x268b   : > { %12482 = vmatmul.mubr.msk.f32.vlgmr.msra.gmra.mrb[38].mxu0 %vm3029_vm7, %v5547_v7 }
0x268c   : > { %13310 = vmatpush3.bf16.msra.mxu0 %v13307_v34 }
0x268d   : > { %13312 = vmatprep.subr.bf16.mxu0 %v13311_v42 }
0x2690   : > { %13314 = vmatpush3.bf16.msra.mxu0 %v13311_v42 }
0x275e   : > { %v12483_v56 = vpop.f32.mrb[38].mxu0 }
0x275f   : > { %v5639_v9 = vadd.f32 %v12483_v56, %v14865_v27  ;;  %v5629_v10 = vpop.f32.mrb[39].mxu0 }
0x2760   : > { %v5638_v11 = vadd.f32 %v5629_v10, %v14867_v28 }
0x2761   : > { %v14933_v12 = vadd.f32 %v11145_v8, %v5639_v9  ;;  %v11163_v9 = vld [vmem:[%s15864_s4 + $0x8] ss:$0 sm:$0xff] }
0x2762   : > { %v14935_v13 = vadd.f32 %v11145_v8, %v5638_v11 }
0x2763   : > { %v5657_v46 = vsel %vm607_vm0, %v14933_v12, 0.0 }
0x2764   : > { %5658 = vadd.xlane.f32.xlu1 %v5657_v46  ;;  %v5654_v14 = vsel %vm607_vm0, %v14935_v13, 0.0 }
0x2765   : > { %5655 = vadd.xlane.f32.xlu0 %v5654_v14  ;;  %v11181_v14 = vld [vmem:[%s15861_s29 + $0x120] sm:$0xff] }
0x27f1   : > { %v5659_v15 = vpop.xlane.xlu1 %5658 }
0x27f2   : > { %v5661_v16 = vmul.f32 0.03125, %v5659_v15  ;;  %v5656_v21 = vpop.xlane.xlu0 %5655  ;;  %v11182_v15 = vld [vmem:[%s15861_s29 + $0x128] sm:$0xff] }
0x27f3   : > { %v5660_v22 = vmul.f32 0.03125, %v5656_v21 }
0x27f4   : > { %v5663_v27 = vsub.f32 %v14933_v12, %v5661_v16 }
0x27f5   : > { %v5662_v28 = vsub.f32 %v14935_v13, %v5660_v22  ;;  %v13325_v22 = vpack.c.bf16 %v11182_v15, %v11181_v14  ;;  %v11194_v15 = vld [vmem:[%s15864_s4 + $0x9] ss:$0 sm:$0xff] }
0x27f6   : > { %v5665_v23 = vmul.f32 %v5663_v27, %v5663_v27 }
0x27f7   : > { %v5664_v24 = vmul.f32 %v5662_v28, %v5662_v28 }
0x27f8   : > { %v5669_v25 = vsel %vm607_vm0, %v5665_v23, 0.0 }
0x27f9   : > { %5670 = vadd.xlane.f32.xlu1 %v5669_v25  ;;  %v5666_v26 = vsel %vm607_vm0, %v5664_v24, 0.0  ;;  %v11197_v25 = vld [vmem:[%s15822_s5 + $0x120] sm:$0xff] }
0x27fa   : > { %5667 = vadd.xlane.f32.xlu0 %v5666_v26  ;;  %v11198_v26 = vld [vmem:[%s15822_s5 + $0x128] sm:$0xff] }
0x27fb   : > { %v13341_v29 = vpack.c.bf16 %v11198_v26, %v11197_v25 }
0x2886   : > { %v5671_v44 = vpop.xlane.xlu1 %5670 }
0x2887   : > { %v5673_v19 = vmul.f32 0.03125, %v5671_v44  ;;  %v5668_v37 = vpop.xlane.xlu0 %5667 }
0x2888   : > { %v5672_v45 = vmul.f32 0.03125, %v5668_v37 }
0x2889   : > { %v5675_v47 = vadd.f32 1e-05, %v5673_v19  ;;  %v11202_v19 = vld [vmem:[%s15823_s6 + $0x9] ss:$0 sm:$0xff] }
0x288a   : > { %v5674_v48 = vadd.f32 1e-05, %v5672_v45 }
0x288b   : > { %13780 = vrsqrt.f32 %v5675_v47 }
0x288c   : > { %13782 = vrsqrt.f32 %v5674_v48 }
0x2895   : > { %v13781_v49 = vpop.eup %13780 }
0x2896   : > { %v13783_v53 = vpop.eup %13782  ;;  %v5679_v20 = vmul.f32 %v13781_v49, %v5663_v27  ;;  %v11183_v27 = vld [vmem:[%s15861_s29 + $0x130] sm:$0xff] }
0x2897   : > { %v5678_v54 = vmul.f32 %v13783_v53, %v5662_v28  ;;  %v11184_v28 = vld [vmem:[%s15861_s29 + $0x138] sm:$0xff] }
0x2898   : > { %v5687_v58 = vmul.f32 %v11148_v52, %v5679_v20  ;;  %v13329_v24 = vpack.c.bf16 %v11184_v28, %v11183_v27 }
0x2899   : > { %v5686_v59 = vmul.f32 %v11148_v52, %v5678_v54 }
0x289a   : > { %v14989_v61 = vadd.f32 %v11149_v55, %v5687_v58 }
0x289b   : > { %v14987_v60 = vadd.f32 %v11149_v55, %v5686_v59 }
0x289d   : > { %12492 = vmatprep.mubr.msk.f32.mxu1 %vm607_vm0, %v14987_v60  ;;  %12514 = vmatprep.mubr.msk.f32.mxu0 %vm607_vm0, %v14987_v60 }
0x289e   : > { %12493 = vmatmul.mubr.msk.f32.vlgmr.msra.gmra.mrb[52].mxu1 %vm607_vm0, %v14989_v61  ;;  %12515 = vmatmul.mubr.msk.f32.vlgmr.msra.gmra.mrb[40].mxu0 %vm607_vm0, %v14989_v61 }
0x289f   : > { %13302 = vmatpush3.bf16.msra.mxu1 %v13299_v51  ;;  %12503 = vmatprep.mubr.msk.f32.mxu1 %vm607_vm0, %v14987_v60 }
0x28a0   : > { %13304 = vmatprep.subr.bf16.mxu1 %v13303_v62 }
0x28a3   : > { %13306 = vmatpush3.bf16.msra.mxu1 %v13303_v62 }
0x28a6   : > { %12504 = vmatmul.mubr.msk.f32.vlgmr.msra.gmra.mrb[54].mxu1 %vm607_vm0, %v14989_v61 }
0x2971   : > { %v12494_v3 = vpop.f32.mrb[52].mxu1  ;;  %v12516_v4 = vpop.f32.mrb[40].mxu0 }
0x2972   : > { %v5963_v5 = vadd.f32 %v12516_v4, %v11171_v57  ;;  %v5781_v6 = vpop.f32.mrb[53].mxu1  ;;  %v5957_v41 = vpop.f32.mrb[41].mxu0  ;;  %v5787_v23 = vadd.f32 %v12494_v3, %v11155_v2 }
0x2973   : > { %v5782_v7 = vadd.f32 %v11155_v2, %v5781_v6  ;;  %v5958_v56 = vadd.f32 %v11171_v57, %v5957_v41  ;;  %v11189_v57 = vld [vmem:[%s15863_s2 + $0x120] sm:$0xff]  ;;  %v11190_v2 = vld [vmem:[%s15863_s2 + $0x128] sm:$0xff]  ;;  %v11191_v41 = vld [vmem:[%s15863_s2 + $0x130] sm:$0xff] }
0x2974   : > { %v13333_v3 = vpack.c.bf16 %v11190_v2, %v11189_v57  ;;  %v11180_v2 = vld [vmem:[%s15824_s7 + $0x40] sm:$0xff] }
0x2975   : > { %v13321_v8 = vpack.c.bf16 %v5963_v5, %v5958_v56  ;;  %12521 = vmatprep.mubr.msk.f32.mxu1 %vm915_vm1, %v5782_v7  ;;  %v11192_v7 = vld [vmem:[%s15863_s2 + $0x138] sm:$0xff] }
0x2977   : > { %13322 = vmatprep.subr.bf16.mxu0 %v13321_v8 }
0x2978   : > { %13324 = vmatpush3.bf16.msra.mxu0 %v13321_v8 }
0x2979   : > { %v12505_v10 = vpop.f32.mrb[54].mxu1  ;;  %13334 = vmatprep.subr.bf16.mxu0 %v13333_v3 }
0x297a   : > { %v5875_v11 = vadd.f32 %v12505_v10, %v11163_v9  ;;  %v5869_v46 = vpop.f32.mrb[55].mxu1  ;;  %v13337_v10 = vpack.c.bf16 %v11192_v7, %v11191_v41  ;;  %v11221_v7 = vld [vmem:[%s15865_s28 + $0xa] ss:$0 sm:$0xff] }
0x297b   : > { %v5870_v16 = vadd.f32 %v11163_v9, %v5869_v46 }
0x297d   : > { %v13315_v21 = vpack.c.bf16 %v5875_v11, %v5870_v16 }
0x297f   : > { %13317 = vmatprep.subr.msk.bf16.mxu1 %vm14192_vm2, %v13315_v21 }
0x2980   : > { %13320 = vmatpush3.bf16.xpose.msk.msra.mxu1 %vm14192_vm2, %v13315_v21 }
0x2981   : > { %13326 = vmatprep.subr.bf16.mxu1 %v13325_v22 }
0x2987   : > { %12522 = vmatmul.mubr.msk.f32.vlgmr.msra.gmra.mrb[56].mxu1 %vm915_vm1, %v5787_v23 }
0x2988   : > { %13328 = vmatpush3.bf16.msra.mxu1 %v13325_v22  ;;  %12539 = vmatprep.mubr.msk.f32.mxu1 %vm607_vm0, %v14987_v60 }
0x2989   : > { %13330 = vmatprep.subr.bf16.mxu1 %v13329_v24 }
0x298c   : > { %13332 = vmatpush3.bf16.msra.mxu1 %v13329_v24 }
0x298d   : > { %13342 = vmatprep.subr.bf16.mxu1 %v13341_v29 }
0x298f   : > { %12540 = vmatmul.mubr.msk.f32.vlgmr.msra.gmra.mrb[58].mxu1 %vm607_vm0, %v14989_v61 }
0x2990   : > { %13344 = vmatpush3.bf16.msra.mxu1 %v13341_v29  ;;  %12561 = vmatprep.mubr.msk.f32.mxu1 %vm607_vm0, %v14987_v60 }
0x2991   : > { %13346 = vmatprep.subr.bf16.mxu1 %v13345_v32 }
0x2994   : > { %13348 = vmatpush3.bf16.msra.mxu1 %v13345_v32 }
0x2997   : > { %12562 = vmatmul.mubr.msk.f32.vlgmr.msra.gmra.mrb[60].mxu1 %vm607_vm0, %v14989_v61 }
0x2a5a   : > { %v12523_v33 = vpop.f32.mrb[56].mxu1 }
0x2a5b   : > { %v6054_v34 = vmul.f32 0.35355338, %v12523_v33  ;;  %v6044_v35 = vpop.f32.mrb[57].mxu1 }
0x2a5c   : > { %v6053_v36 = vmul.f32 0.35355338, %v6044_v35 }
0x2a5d   : > { %v6056_v39 = vsel %vm604_vm3, %v6054_v34, -1e+30 }
0x2a5e   : > { %v6060_v38 = vsel %vm1007_vm4, %v6056_v39, -inf  ;;  %v6055_v40 = vsel %vm604_vm3, %v6053_v36, -1e+30 }
0x2a5f   : > { %6061 = vmax.xlane.f32.xlu1 %v6060_v38  ;;  %v6057_v42 = vsel %vm1007_vm4, %v6055_v40, -inf }
0x2a60   : > { %6058 = vmax.xlane.f32.xlu0 %v6057_v42 }
0x2a62   : > { %v12541_v50 = vpop.f32.mrb[58].mxu1 }
0x2a63   : > { %v6247_v51 = vadd.f32 %v12541_v50, %v11186_v43  ;;  %v6241_v44 = vpop.f32.mrb[59].mxu1 }
0x2a64   : > { %v6242_v11 = vadd.f32 %v11186_v43, %v6241_v44  ;;  %v11217_v44 = vld [vmem:[%s15861_s29 + $0x148] sm:$0xff] }
0x2a6a   : > { %v12563_v37 = vpop.f32.mrb[60].mxu1 }
0x2a6b   : > { %v6423_v45 = vadd.f32 %v12563_v37, %v11202_v19  ;;  %v6417_v47 = vpop.f32.mrb[61].mxu1  ;;  %v11211_v37 = vld [vmem:[%s15824_s7 + $0x48] sm:$0xff] }
0x2a6c   : > { %v6418_v48 = vadd.f32 %v11202_v19, %v6417_v47 }
0x2a6e   : > { %v13355_v49 = vpack.c.bf16 %v6423_v45, %v6418_v48 }
0x2a70   : > { %13356 = vmatprep.subr.bf16.mxu1 %v13355_v49 }
0x2a71   : > { %13358 = vmatpush3.bf16.msra.mxu1 %v13355_v49  ;;  %v11218_v49 = vld [vmem:[%s15861_s29 + $0x150] sm:$0xff] }
0x2aec   : > { %v6062_v52 = vpop.xlane.xlu1 %6061 }
0x2aed   : > { %v6064_v53 = vsub.f32 %v6056_v39, %v6062_v52  ;;  %v6059_v20 = vpop.xlane.xlu0 %6058  ;;  %v11219_v52 = vld [vmem:[%s15861_s29 + $0x158] sm:$0xff] }
0x2aee   : > { %v6063_v54 = vsub.f32 %v6055_v40, %v6059_v20 }
0x2aef   : > { %v6067_v55 = vmul.f32 1.442695, %v6064_v53 }
0x2af0   : > { %v6065_v58 = vmul.f32 1.442695, %v6063_v54 }
0x2af1   : > { %13784 = vpow2.f32 %v6067_v55  ;;  %v13363_v55 = vpack.c.bf16 %v11219_v52, %v11218_v49  ;;  %v11250_v49 = vld [vmem:[%s15861_s29 + $0x168] sm:$0xff] }
0x2af2   : > { %13786 = vpow2.f32 %v6065_v58  ;;  %v11232_v58 = vld [vmem:[%s15822_s5 + $0x140] sm:$0xff] }
0x2afb   : > { %v13785_v59 = vpop.eup %13784 }
0x2afc   : > { %v13787_v1 = vpop.eup %13786  ;;  %v6072_v0 = vsel %vm1007_vm4, %v13785_v59, 0.0 }
0x2afd   : > { %6073 = vadd.xlane.f32.xlu1 %v6072_v0  ;;  %v6069_v62 = vsel %vm1007_vm4, %v13787_v1, 0.0  ;;  %v11234_v0 = vld [vmem:[%s15822_s5 + $0x150] sm:$0xff] }
0x2afe   : > { %6070 = vadd.xlane.f32.xlu0 %v6069_v62  ;;  %v11235_v62 = vld [vmem:[%s15822_s5 + $0x158] sm:$0xff] }
0x2aff   : > { %v13379_v57 = vpack.c.bf16 %v11235_v62, %v11234_v0 }
0x2b8a   : > { %v6074_v4 = vpop.xlane.xlu1 %6073 }
0x2b8b   : > { %13788 = vrcp.f32 %v6074_v4  ;;  %v6071_v5 = vpop.xlane.xlu0 %6070  ;;  %v11225_v4 = vld [vmem:[%s15863_s2 + $0x148] sm:$0xff] }
0x2b8c   : > { %13790 = vrcp.f32 %v6071_v5 }
0x2b95   : > { %v13789_v6 = vpop.eup %13788 }
0x2b96   : > { %v13791_v56 = vpop.eup %13790  ;;  %v6078_v9 = vmul.f32 %v13789_v6, %v13785_v59  ;;  %v11233_v59 = vld [vmem:[%s15822_s5 + $0x148] sm:$0xff] }
0x2b97   : > { %v6077_v8 = vmul.f32 %v13791_v56, %v13787_v1  ;;  %v13375_v1 = vpack.c.bf16 %v11233_v59, %v11232_v58  ;;  %v11226_v56 = vld [vmem:[%s15863_s2 + $0x150] sm:$0xff]  ;;  %v11252_v59 = vld [vmem:[%s15861_s29 + $0x178] sm:$0xff] }
0x2b98   : > { %v11251_v58 = vld [vmem:[%s15861_s29 + $0x170] sm:$0xff] }
0x2b99   : > { %12528 = vmatprep.mubr.msk.f32.mxu0 %vm1007_vm4, %v6077_v8  ;;  %v11227_v8 = vld [vmem:[%s15863_s2 + $0x158] sm:$0xff] }
0x2b9a   : > { %12529 = vmatmul.mubr.msk.f32.vlgmr.msra.gmra.mrb[42].mxu0 %vm1007_vm4, %v6078_v9 }
0x2b9b   : > { %13336 = vmatpush3.bf16.msra.mxu0 %v13333_v3  ;;  %12550 = vmatprep.mubr.msk.f32.mxu0 %vm607_vm0, %v14987_v60  ;;  %v11224_v3 = vld [vmem:[%s15863_s2 + $0x140] sm:$0xff] }
0x2b9c   : > { %13338 = vmatprep.subr.bf16.mxu0 %v13337_v10  ;;  %v13367_v41 = vpack.c.bf16 %v11225_v4, %v11224_v3  ;;  %v11266_v3 = vld [vmem:[%s15822_s5 + $0x168] sm:$0xff] }
0x2b9f   : > { %13340 = vmatpush3.bf16.msra.mxu0 %v13337_v10 }
0x2ba2   : > { %12551 = vmatmul.mubr.msk.f32.vlgmr.msra.gmra.mrb[44].mxu0 %vm607_vm0, %v14989_v61 }
0x2ba3   : > { %12568 = vmatprep.mubr.msk.f32.mxu0 %vm915_vm1, %v6242_v11 }
0x2c6d   : > { %v15083_v46 = vpop.f32.mrb[42].mxu0 }
0x2c6e   : > { %v15085_v14 = vpop.f32.mrb[43].mxu0 }
0x2c75   : > { %v12552_v16 = vpop.f32.mrb[44].mxu0 }
0x2c76   : > { %v6335_v21 = vadd.f32 %v12552_v16, %v11194_v15  ;;  %v6329_v22 = vpop.f32.mrb[45].mxu0 }
0x2c77   : > { %v6330_v27 = vadd.f32 %v11194_v15, %v6329_v22  ;;  %v13371_v15 = vpack.c.bf16 %v11227_v8, %v11226_v56  ;;  %v11258_v56 = vld [vmem:[%s15863_s2 + $0x168] sm:$0xff] }
0x2c79   : > { %v13349_v28 = vpack.c.bf16 %v6335_v21, %v6330_v27 }
0x2c7b   : > { %13351 = vmatprep.subr.msk.bf16.mxu0 %vm14192_vm2, %v13349_v28 }
0x2c7c   : > { %13354 = vmatpush3.bf16.xpose.msk.msra.mxu0 %vm14192_vm2, %v13349_v28 }
0x2c7d   : > { %12578 = vmatprep.subr.mxu0 %v11211_v37 }
0x2c83   : > { %12569 = vmatmul.mubr.msk.f32.vlgmr.msra.gmra.mrb[46].mxu0 %vm915_vm1, %v6247_v51  ;;  %v11216_v51 = vld [vmem:[%s15861_s29 + $0x140] sm:$0xff] }
0x2c84   : > { %v13359_v19 = vpack.c.bf16 %v11217_v44, %v11216_v51  ;;  %12579 = vmatpush3.msra.mxu0 %v11211_v37 }
0x2c85   : > { %12583 = vmatprep.subr.mxu0 %v11180_v2 }
0x2c86   : > { %13360 = vmatprep.subr.bf16.mxu1 %v13359_v19 }
0x2d56   : > { %v12570_v23 = vpop.f32.mrb[46].mxu0 }
0x2d57   : > { %v6514_v24 = vmul.f32 0.35355338, %v12570_v23  ;;  %v6504_v25 = vpop.f32.mrb[47].mxu0 }
0x2d58   : > { %v6513_v26 = vmul.f32 0.35355338, %v6504_v25 }
0x2d59   : > { %v6516_v29 = vsel %vm604_vm3, %v6514_v24, -1e+30 }
0x2d5a   : > { %v6520_v30 = vsel %vm1007_vm4, %v6516_v29, -inf  ;;  %v6515_v31 = vsel %vm604_vm3, %v6513_v26, -1e+30 }
0x2d5b   : > { %6521 = vmax.xlane.f32.xlu1 %v6520_v30  ;;  %v6517_v32 = vsel %vm1007_vm4, %v6515_v31, -inf }
0x2d5c   : > { %6518 = vmax.xlane.f32.xlu0 %v6517_v32 }
0x2de8   : > { %v6522_v33 = vpop.xlane.xlu1 %6521 }
0x2de9   : > { %v6524_v34 = vsub.f32 %v6516_v29, %v6522_v33  ;;  %v6519_v35 = vpop.xlane.xlu0 %6518 }
0x2dea   : > { %v6523_v36 = vsub.f32 %v6515_v31, %v6519_v35 }
0x2deb   : > { %v6527_v39 = vmul.f32 1.442695, %v6524_v34 }
0x2dec   : > { %v6525_v38 = vmul.f32 1.442695, %v6523_v36 }
0x2ded   : > { %13792 = vpow2.f32 %v6527_v39 }
0x2dee   : > { %13794 = vpow2.f32 %v6525_v38 }
0x2df7   : > { %v13793_v40 = vpop.eup %13792 }
0x2df8   : > { %v13795_v42 = vpop.eup %13794  ;;  %v6532_v43 = vsel %vm1007_vm4, %v13793_v40, 0.0 }
0x2df9   : > { %6533 = vadd.xlane.f32.xlu1 %v6532_v43  ;;  %v6529_v50 = vsel %vm1007_vm4, %v13795_v42, 0.0 }
0x2dfa   : > { %6530 = vadd.xlane.f32.xlu0 %v6529_v50 }
0x2e86   : > { %v6534_v45 = vpop.xlane.xlu1 %6533 }
0x2e87   : > { %13796 = vrcp.f32 %v6534_v45  ;;  %v6531_v47 = vpop.xlane.xlu0 %6530 }
0x2e88   : > { %13798 = vrcp.f32 %v6531_v47 }
0x2e91   : > { %v13797_v48 = vpop.eup %13796 }
0x2e92   : > { %v13799_v53 = vpop.eup %13798  ;;  %v6538_v54 = vmul.f32 %v13797_v48, %v13793_v40  ;;  %v11249_v48 = vld [vmem:[%s15861_s29 + $0x160] sm:$0xff] }
0x2e93   : > { %v6537_v20 = vmul.f32 %v13799_v53, %v13795_v42  ;;  %v13393_v52 = vpack.c.bf16 %v11250_v49, %v11249_v48  ;;  %v11246_v53 = vld [vmem:[%s15824_s7 + $0x50] sm:$0xff] }
0x2e95   : > { %12575 = vmatprep.mubr.msk.f32.mxu1 %vm1007_vm4, %v6537_v20 }
0x2e96   : > { %12576 = vmatmul.mubr.msk.f32.vlgmr.msra.gmra.mrb[62].mxu1 %vm1007_vm4, %v6538_v54 }
0x2e97   : > { %13362 = vmatpush3.bf16.msra.mxu1 %v13359_v19  ;;  %12596 = vmatprep.mubr.msk.f32.mxu1 %vm607_vm0, %v14987_v60 }
0x2e98   : > { %13364 = vmatprep.subr.bf16.mxu1 %v13363_v55 }
0x2e9b   : > { %13366 = vmatpush3.bf16.msra.mxu1 %v13363_v55 }
0x2e9c   : > { %13376 = vmatprep.subr.bf16.mxu1 %v13375_v1 }
0x2e9e   : > { %12597 = vmatmul.mubr.msk.f32.vlgmr.msra.gmra.mrb[64].mxu1 %vm607_vm0, %v14989_v61 }
0x2e9f   : > { %13378 = vmatpush3.bf16.msra.mxu1 %v13375_v1  ;;  %12618 = vmatprep.mubr.msk.f32.mxu1 %vm607_vm0, %v14987_v60 }
0x2ea0   : > { %13380 = vmatprep.subr.bf16.mxu1 %v13379_v57 }
0x2ea3   : > { %13382 = vmatpush3.bf16.msra.mxu1 %v13379_v57  ;;  %v13397_v57 = vpack.c.bf16 %v11252_v59, %v11251_v58 }
0x2ea6   : > { %12619 = vmatmul.mubr.msk.f32.vlgmr.msra.gmra.mrb[66].mxu1 %vm607_vm0, %v14989_v61 }
0x2f69   : > { %v12577_v5 = vpop.f32.mrb[62].mxu1 }
0x2f6a   : > { %v6611_v6 = vpop.f32.mrb[63].mxu1 }
0x2f6b   : > { %12580 = vmatprep.mubr.msk.f32.mxu0 %vm915_vm1, %v6611_v6  ;;  %v11268_v6 = vld [vmem:[%s15822_s5 + $0x178] sm:$0xff] }
0x2f6c   : > { %12581 = vmatmul.mubr.msk.f32.vlgmr.msra.gmra.mrb[48].mxu0 %vm915_vm1, %v12577_v5  ;;  %v11267_v5 = vld [vmem:[%s15822_s5 + $0x170] sm:$0xff] }
0x2f6d   : > { %12584 = vmatpush3.msra.mxu0 %v11180_v2  ;;  %12585 = vmatprep.mubr.msk.f32.mxu0 %vm915_vm1, %v15085_v14  ;;  %v11237_v14 = vld [vmem:[%s15823_s6 + $0xa] ss:$0 sm:$0xff]  ;;  %v11265_v2 = vld [vmem:[%s15822_s5 + $0x160] sm:$0xff] }
0x2f6e   : > { %13368 = vmatprep.subr.bf16.mxu0 %v13367_v41  ;;  %v13409_v4 = vpack.c.bf16 %v11266_v3, %v11265_v2  ;;  %v11283_v2 = vld [vmem:[%s15825_s8 + $0x2] ss:$0 sm:$0xff] }
0x2f71   : > { %v12598_v9 = vpop.f32.mrb[64].mxu1 }
0x2f72   : > { %v6869_v10 = vadd.f32 %v12598_v9, %v11221_v7  ;;  %v6863_v11 = vpop.f32.mrb[65].mxu1  ;;  %v11259_v9 = vld [vmem:[%s15863_s2 + $0x170] sm:$0xff] }
0x2f73   : > { %v6864_v27 = vadd.f32 %v11221_v7, %v6863_v11  ;;  %v11257_v7 = vld [vmem:[%s15863_s2 + $0x160] sm:$0xff] }
0x2f74   : > { %12586 = vmatmul.mubr.msk.f32.vlgmr.msra.gmra.mrb[48].mxu0 %vm915_vm1, %v15083_v46  ;;  %v11229_v46 = vld [vmem:[%s15864_s4 + $0xa] ss:$0 sm:$0xff]  ;;  %v13401_v8 = vpack.c.bf16 %v11258_v56, %v11257_v7 }
0x2f75   : > { %13370 = vmatpush3.bf16.msra.mxu0 %v13367_v41  ;;  %12607 = vmatprep.mubr.msk.f32.mxu0 %vm607_vm0, %v14987_v60  ;;  %v13413_v41 = vpack.c.bf16 %v11268_v6, %v11267_v5 }
0x2f76   : > { %13372 = vmatprep.subr.bf16.mxu0 %v13371_v15 }
0x2f79   : > { %13374 = vmatpush3.bf16.msra.mxu0 %v13371_v15  ;;  %v12620_v16 = vpop.f32.mrb[66].mxu1 }
0x2f7a   : > { %v7045_v21 = vadd.f32 %v12620_v16, %v11237_v14  ;;  %v7039_v22 = vpop.f32.mrb[67].mxu1  ;;  %v11254_v16 = vld [vmem:[%s15865_s28 + $0xb] ss:$0 sm:$0xff] }
0x2f7b   : > { %v7040_v28 = vadd.f32 %v11237_v14, %v7039_v22 }
0x2f7c   : > { %12608 = vmatmul.mubr.msk.f32.vlgmr.msra.gmra.mrb[50].mxu0 %vm607_vm0, %v14989_v61 }
0x2f7d   : > { %v13389_v23 = vpack.c.bf16 %v7045_v21, %v7040_v28  ;;  %12625 = vmatprep.mubr.msk.f32.mxu0 %vm915_vm1, %v6864_v27 }
0x2f7f   : > { %13390 = vmatprep.subr.bf16.mxu1 %v13389_v23 }
0x2f80   : > { %13392 = vmatpush3.bf16.msra.mxu1 %v13389_v23  ;;  %v11270_v23 = vld [vmem:[%s15823_s6 + $0xb] ss:$0 sm:$0xff] }
0x2f81   : > { %13394 = vmatprep.subr.bf16.mxu1 %v13393_v52 }
0x304f   : > { %v12609_v24 = vpop.f32.mrb[50].mxu0 }
0x3050   : > { %v6957_v25 = vadd.f32 %v12609_v24, %v11229_v46  ;;  %v6951_v26 = vpop.f32.mrb[51].mxu0 }
0x3051   : > { %v6952_v29 = vadd.f32 %v11229_v46, %v6951_v26 }
0x3053   : > { %v13383_v30 = vpack.c.bf16 %v6957_v25, %v6952_v29  ;;  %v11262_v29 = vld [vmem:[%s15864_s4 + $0xb] ss:$0 sm:$0xff] }
0x3055   : > { %13385 = vmatprep.subr.msk.bf16.mxu0 %vm14192_vm2, %v13383_v30 }
0x3056   : > { %13388 = vmatpush3.bf16.xpose.msk.msra.mxu0 %vm14192_vm2, %v13383_v30 }
0x3057   : > { %12635 = vmatprep.subr.mxu0 %v11246_v53 }
0x305d   : > { %12626 = vmatmul.mubr.msk.f32.vlgmr.msra.gmra.mrb[52].mxu0 %vm915_vm1, %v6869_v10  ;;  %v11260_v10 = vld [vmem:[%s15863_s2 + $0x178] sm:$0xff] }
0x305e   : > { %12636 = vmatpush3.msra.mxu0 %v11246_v53  ;;  %v13405_v14 = vpack.c.bf16 %v11260_v10, %v11259_v9  ;;  %v11279_v53 = vld [vmem:[%s15824_s7 + $0x58] sm:$0xff] }
0x305f   : > { %13402 = vmatprep.subr.bf16.mxu0 %v13401_v8 }
0x3130   : > { %v12627_v31 = vpop.f32.mrb[52].mxu0 }
0x3131   : > { %v7136_v32 = vmul.f32 0.35355338, %v12627_v31  ;;  %v7126_v33 = vpop.f32.mrb[53].mxu0 }
0x3132   : > { %v7135_v34 = vmul.f32 0.35355338, %v7126_v33 }
0x3133   : > { %v7138_v35 = vsel %vm604_vm3, %v7136_v32, -1e+30 }
0x3134   : > { %v7142_v36 = vsel %vm1007_vm4, %v7138_v35, -inf  ;;  %v7137_v39 = vsel %vm604_vm3, %v7135_v34, -1e+30 }
0x3135   : > { %7143 = vmax.xlane.f32.xlu1 %v7142_v36  ;;  %v7139_v38 = vsel %vm1007_vm4, %v7137_v39, -inf }
0x3136   : > { %7140 = vmax.xlane.f32.xlu0 %v7139_v38 }
0x31c2   : > { %v7144_v40 = vpop.xlane.xlu1 %7143 }
0x31c3   : > { %v7146_v42 = vsub.f32 %v7138_v35, %v7144_v40  ;;  %v7141_v43 = vpop.xlane.xlu0 %7140 }
0x31c4   : > { %v7145_v50 = vsub.f32 %v7137_v39, %v7141_v43 }
0x31c5   : > { %v7149_v51 = vmul.f32 1.442695, %v7146_v42 }
0x31c6   : > { %v7147_v44 = vmul.f32 1.442695, %v7145_v50 }
0x31c7   : > { %13800 = vpow2.f32 %v7149_v51 }
0x31c8   : > { %13802 = vpow2.f32 %v7147_v44 }
0x31d1   : > { %v13801_v19 = vpop.eup %13800 }
0x31d2   : > { %v13803_v37 = vpop.eup %13802  ;;  %v7154_v45 = vsel %vm1007_vm4, %v13801_v19, 0.0 }
0x31d3   : > { %7155 = vadd.xlane.f32.xlu1 %v7154_v45  ;;  %v7151_v47 = vsel %vm1007_vm4, %v13803_v37, 0.0 }
0x31d4   : > { %7152 = vadd.xlane.f32.xlu0 %v7151_v47 }
0x3260   : > { %v7156_v20 = vpop.xlane.xlu1 %7155 }
0x3261   : > { %13804 = vrcp.f32 %v7156_v20  ;;  %v7153_v54 = vpop.xlane.xlu0 %7152 }
0x3262   : > { %13806 = vrcp.f32 %v7153_v54 }
0x326b   : > { %v13805_v55 = vpop.eup %13804 }
0x326c   : > { %v13807_v1 = vpop.eup %13806  ;;  %v7160_v62 = vmul.f32 %v13805_v55, %v13801_v19 }
0x326d   : > { %v7159_v0 = vmul.f32 %v13807_v1, %v13803_v37 }
0x326f   : > { %12632 = vmatprep.mubr.msk.f32.mxu1 %vm1007_vm4, %v7159_v0 }
0x3270   : > { %12633 = vmatmul.mubr.msk.f32.vlgmr.msra.gmra.mrb[68].mxu1 %vm1007_vm4, %v7160_v62 }
0x3271   : > { %13396 = vmatpush3.bf16.msra.mxu1 %v13393_v52  ;;  %12648 = vmatprep.mubr.msk.f32.mxu1 %vm607_vm0, %v14987_v60 }
0x3272   : > { %13398 = vmatprep.subr.bf16.mxu1 %v13397_v57 }
0x3275   : > { %13400 = vmatpush3.bf16.msra.mxu1 %v13397_v57 }
0x3276   : > { %13410 = vmatprep.subr.bf16.mxu1 %v13409_v4 }
0x3278   : > { %12649 = vmatmul.mubr.msk.f32.vlgmr.msra.gmra.mrb[70].mxu1 %vm607_vm0, %v14989_v61 }
0x3279   : > { %13412 = vmatpush3.bf16.msra.mxu1 %v13409_v4  ;;  %12670 = vmatprep.mubr.msk.f32.mxu1 %vm607_vm0, %v14987_v60 }
0x327a   : > { %13414 = vmatprep.subr.bf16.mxu1 %v13413_v41 }
0x327d   : > { %13416 = vmatpush3.bf16.msra.mxu1 %v13413_v41 }
0x3280   : > { %12671 = vmatmul.mubr.msk.f32.vlgmr.msra.gmra.mrb[72].mxu1 %vm607_vm0, %v14989_v61 }
0x3343   : > { %v12634_v11 = vpop.f32.mrb[68].mxu1 }
0x3344   : > { %v7233_v15 = vpop.f32.mrb[69].mxu1 }
0x3345   : > { %12637 = vmatprep.mubr.msk.f32.mxu0 %vm915_vm1, %v7233_v15 }
0x3346   : > { %12638 = vmatmul.mubr.msk.f32.vlgmr.msra.gmra.mrb[48].mxu0 %vm915_vm1, %v12634_v11 }
0x3347   : > { %13404 = vmatpush3.bf16.msra.mxu0 %v13401_v8  ;;  %12659 = vmatprep.mubr.msk.f32.mxu0 %vm607_vm0, %v14987_v60 }
0x3348   : > { %13406 = vmatprep.subr.bf16.mxu0 %v13405_v14 }
0x334b   : > { %v12650_v21 = vpop.f32.mrb[70].mxu1  ;;  %13408 = vmatpush3.bf16.msra.mxu0 %v13405_v14 }
0x334c   : > { %v7412_v22 = vadd.f32 %v12650_v21, %v11254_v16  ;;  %v7406_v27 = vpop.f32.mrb[71].mxu1 }
0x334d   : > { %v7407_v28 = vadd.f32 %v11254_v16, %v7406_v27  ;;  %v11289_v27 = vld [vmem:[%s15830_s13 + $0x48] sm:$0xff] }
0x334e   : > { %12660 = vmatmul.mubr.msk.f32.vlgmr.msra.gmra.mrb[54].mxu0 %vm607_vm0, %v14989_v61 }
0x334f   : > { %12677 = vmatprep.mubr.msk.f32.mxu0 %vm915_vm1, %v7407_v28 }
0x3353   : > { %v12672_v60 = vpop.f32.mrb[72].mxu1 }
0x3354   : > { %v7588_v46 = vadd.f32 %v12672_v60, %v11270_v23  ;;  %v7582_v24 = vpop.f32.mrb[73].mxu1  ;;  %v11291_v60 = vld [vmem:[%s15830_s13 + $0x58] sm:$0xff] }
0x3355   : > { %v7583_v25 = vadd.f32 %v11270_v23, %v7582_v24  ;;  %v11290_v23 = vld [vmem:[%s15830_s13 + $0x50] sm:$0xff] }
0x3357   : > { %v13423_v26 = vpack.c.bf16 %v7588_v46, %v7583_v25  ;;  %v13431_v46 = vpack.c.bf16 %v11291_v60, %v11290_v23 }
0x3359   : > { %13424 = vmatprep.subr.bf16.mxu1 %v13423_v26 }
0x335a   : > { %13426 = vmatpush3.bf16.msra.mxu1 %v13423_v26 }
0x3421   : > { %v12661_v30 = vpop.f32.mrb[54].mxu0 }
0x3422   : > { %v7500_v31 = vadd.f32 %v12661_v30, %v11262_v29  ;;  %v7494_v61 = vpop.f32.mrb[55].mxu0 }
0x3423   : > { %v7495_v32 = vadd.f32 %v11262_v29, %v7494_v61 }
0x3425   : > { %v13417_v33 = vpack.c.bf16 %v7500_v31, %v7495_v32  ;;  %v11286_v32 = vld [vmem:[%s15828_s11 + $0x2] ss:$0 sm:$0xff] }
0x3427   : > { %13419 = vmatprep.subr.msk.bf16.mxu0 %vm14192_vm2, %v13417_v33 }
0x3428   : > { %13422 = vmatpush3.bf16.xpose.msk.msra.mxu0 %vm14192_vm2, %v13417_v33 }
0x3429   : > { %12687 = vmatprep.subr.mxu0 %v11279_v53 }
0x342f   : > { %12678 = vmatmul.mubr.msk.f32.vlgmr.msra.gmra.mrb[56].mxu0 %vm915_vm1, %v7412_v22  ;;  %v11288_v22 = vld [vmem:[%s15830_s13 + $0x40] sm:$0xff] }
0x3430   : > { %12688 = vmatpush3.msra.mxu0 %v11279_v53  ;;  %v13427_v28 = vpack.c.bf16 %v11289_v27, %v11288_v22 }
0x3432   : > { %13428 = vmatprep.subr.bf16.mxu1 %v13427_v28 }
0x3502   : > { %v12679_v34 = vpop.f32.mrb[56].mxu0 }
0x3503   : > { %v7679_v35 = vmul.f32 0.35355338, %v12679_v34  ;;  %v7669_v36 = vpop.f32.mrb[57].mxu0 }
0x3504   : > { %v7678_v39 = vmul.f32 0.35355338, %v7669_v36  ;;  %v11287_v36 = vld [vmem:[%s15829_s12 + $0x2] ss:$0 sm:$0xff] }
0x3505   : > { %v7681_v38 = vsel %vm604_vm3, %v7679_v35, -1e+30 }
0x3506   : > { %v7685_v40 = vsel %vm1007_vm4, %v7681_v38, -inf  ;;  %v7680_v42 = vsel %vm604_vm3, %v7678_v39, -1e+30 }
0x3507   : > { %7686 = vmax.xlane.f32.xlu1 %v7685_v40  ;;  %v7682_v43 = vsel %vm1007_vm4, %v7680_v42, -inf }
0x3508   : > { %7683 = vmax.xlane.f32.xlu0 %v7682_v43  ;;  %v11296_v43 = vld [vmem:[%s15832_s15 + $0x80] sm:$0xff] }
0x3594   : > { %v7687_v50 = vpop.xlane.xlu1 %7686 }
0x3595   : > { %v7689_v51 = vsub.f32 %v7681_v38, %v7687_v50  ;;  %v7684_v44 = vpop.xlane.xlu0 %7683  ;;  %v11297_v50 = vld [vmem:[%s15832_s15 + $0x88] sm:$0xff] }
0x3596   : > { %v7688_v19 = vsub.f32 %v7680_v42, %v7684_v44  ;;  %v11298_v44 = vld [vmem:[%s15832_s15 + $0x90] sm:$0xff] }
0x3597   : > { %v7692_v37 = vmul.f32 1.442695, %v7689_v51  ;;  %v13435_v51 = vpack.c.bf16 %v11297_v50, %v11296_v43 }
0x3598   : > { %v7690_v45 = vmul.f32 1.442695, %v7688_v19  ;;  %v11299_v19 = vld [vmem:[%s15832_s15 + $0x98] sm:$0xff] }
0x3599   : > { %13808 = vpow2.f32 %v7692_v37  ;;  %13436 = vmatprep.subr.bf16.mxu0 %v13435_v51  ;;  %v13439_v37 = vpack.c.bf16 %v11299_v19, %v11298_v44 }
0x359a   : > { %13810 = vpow2.f32 %v7690_v45  ;;  %v11300_v45 = vld [vmem:[%s15832_s15 + $0xa0] sm:$0xff] }
0x35a3   : > { %v13809_v47 = vpop.eup %13808 }
0x35a4   : > { %v13811_v48 = vpop.eup %13810  ;;  %v7697_v49 = vsel %vm1007_vm4, %v13809_v47, 0.0 }
0x35a5   : > { %7698 = vadd.xlane.f32.xlu1 %v7697_v49  ;;  %v7694_v52 = vsel %vm1007_vm4, %v13811_v48, 0.0  ;;  %v11302_v49 = vld [vmem:[%s15832_s15 + $0xb0] sm:$0xff] }
0x35a6   : > { %7695 = vadd.xlane.f32.xlu0 %v7694_v52  ;;  %v11303_v52 = vld [vmem:[%s15832_s15 + $0xb8] sm:$0xff] }
0x35a7   : > { %v13447_v53 = vpack.c.bf16 %v11303_v52, %v11302_v49  ;;  %v11307_v49 = vld [vmem:[%s15833_s16 + $0x2] ss:$0 sm:$0xff] }
0x3632   : > { %v7699_v20 = vpop.xlane.xlu1 %7698 }
0x3633   : > { %13812 = vrcp.f32 %v7699_v20  ;;  %v7696_v54 = vpop.xlane.xlu0 %7695  ;;  %v11293_v20 = vld [vmem:[%s15831_s14 + $0x2] ss:$0 sm:$0xff] }
0x3634   : > { %13814 = vrcp.f32 %v7696_v54 }
0x363d   : > { %v13813_v55 = vpop.eup %13812 }
0x363e   : > { %v13815_v58 = vpop.eup %13814  ;;  %v7703_v1 = vmul.f32 %v13813_v55, %v13809_v47  ;;  %v11301_v47 = vld [vmem:[%s15832_s15 + $0xa8] sm:$0xff] }
0x363f   : > { %v7702_v59 = vmul.f32 %v13815_v58, %v13811_v48  ;;  %v13443_v48 = vpack.c.bf16 %v11301_v47, %v11300_v45 }
0x3641   : > { %12684 = vmatprep.mubr.msk.f32.mxu1 %vm1007_vm4, %v7702_v59 }
0x3642   : > { %12685 = vmatmul.mubr.msk.f32.vlgmr.msra.gmra.mrb[74].mxu1 %vm1007_vm4, %v7703_v1 }
0x3643   : > { %13430 = vmatpush3.bf16.msra.mxu1 %v13427_v28 }
0x3644   : > { %13432 = vmatprep.subr.bf16.mxu1 %v13431_v46 }
0x3647   : > { %13434 = vmatpush3.bf16.msra.mxu1 %v13431_v46 }
0x3715   : > { %v12686_v0 = vpop.f32.mrb[74].mxu1 }
0x3716   : > { %v7776_v62 = vpop.f32.mrb[75].mxu1 }
0x3717   : > { %12689 = vmatprep.mubr.msk.f32.mxu0 %vm915_vm1, %v7776_v62 }
0x3718   : > { %12690 = vmatmul.mubr.msk.f32.vlgmr.msra.gmra.mrb[48].mxu0 %vm915_vm1, %v12686_v0 }
0x3719   : > { %13438 = vmatpush3.bf16.msra.mxu0 %v13435_v51 }
0x371a   : > { %13440 = vmatprep.subr.bf16.mxu0 %v13439_v37 }
0x371d   : > { %13442 = vmatpush3.bf16.msra.mxu0 %v13439_v37 }
0x371e   : > { %13444 = vmatprep.subr.bf16.mxu0 %v13443_v48 }
0x3721   : > { %13446 = vmatpush3.bf16.msra.mxu0 %v13443_v48 }
0x3722   : > { %13448 = vmatprep.subr.bf16.mxu0 %v13447_v53 }
0x3725   : > { %13450 = vmatpush3.bf16.msra.mxu0 %v13447_v53 }
0x37eb   : > { %v12691_v57 = vpop.f32.mrb[48].mxu0 }
0x37ec   : > { %v7871_v3 = vadd.f32 %v12691_v57, %v14933_v12  ;;  %v7859_v4 = vpop.f32.mrb[49].mxu0 }
0x37ed   : > { %v7870_v5 = vadd.f32 %v7859_v4, %v14935_v13 }
0x37ee   : > { %v15278_v6 = vadd.f32 %v11283_v2, %v7871_v3 }
0x37ef   : > { %v15280_v41 = vadd.f32 %v11283_v2, %v7870_v5 }
0x37f0   : > { %v7889_v7 = vsel %vm607_vm0, %v15278_v6, 0.0 }
0x37f1   : > { %7890 = vadd.xlane.f32.xlu1 %v7889_v7  ;;  %v7886_v56 = vsel %vm607_vm0, %v15280_v41, 0.0 }
0x37f2   : > { %7887 = vadd.xlane.f32.xlu0 %v7886_v56 }
0x387e   : > { %v7891_v8 = vpop.xlane.xlu1 %7890 }
0x387f   : > { %v7893_v9 = vmul.f32 0.03125, %v7891_v8  ;;  %v7888_v10 = vpop.xlane.xlu0 %7887 }
0x3880   : > { %v7892_v11 = vmul.f32 0.03125, %v7888_v10 }
0x3881   : > { %v7895_v12 = vsub.f32 %v15278_v6, %v7893_v9 }
0x3882   : > { %v7894_v13 = vsub.f32 %v15280_v41, %v7892_v11 }
0x3883   : > { %v7897_v15 = vmul.f32 %v7895_v12, %v7895_v12 }
0x3884   : > { %v7896_v14 = vmul.f32 %v7894_v13, %v7894_v13 }
0x3885   : > { %v7901_v16 = vsel %vm607_vm0, %v7897_v15, 0.0 }
0x3886   : > { %7902 = vadd.xlane.f32.xlu1 %v7901_v16  ;;  %v7898_v21 = vsel %vm607_vm0, %v7896_v14, 0.0 }
0x3887   : > { %7899 = vadd.xlane.f32.xlu0 %v7898_v21 }
0x3913   : > { %v7903_v24 = vpop.xlane.xlu1 %7902 }
0x3914   : > { %v7905_v25 = vmul.f32 0.03125, %v7903_v24  ;;  %v7900_v26 = vpop.xlane.xlu0 %7899 }
0x3915   : > { %v7904_v29 = vmul.f32 0.03125, %v7900_v26 }
0x3916   : > { %v7907_v30 = vadd.f32 1e-05, %v7905_v25 }
0x3917   : > { %v7906_v31 = vadd.f32 1e-05, %v7904_v29 }
0x3918   : > { %13816 = vrsqrt.f32 %v7907_v30 }
0x3919   : > { %13818 = vrsqrt.f32 %v7906_v31 }
0x3922   : > { %v13817_v61 = vpop.eup %13816 }
0x3923   : > { %v13819_v33 = vpop.eup %13818  ;;  %v7911_v34 = vmul.f32 %v13817_v61, %v7895_v12 }
0x3924   : > { %v7910_v35 = vmul.f32 %v13819_v33, %v7894_v13 }
0x3925   : > { %v7919_v39 = vmul.f32 %v11286_v32, %v7911_v34 }
0x3926   : > { %v7918_v38 = vmul.f32 %v11286_v32, %v7910_v35 }
0x3927   : > { %v7927_v42 = vadd.f32 %v11287_v36, %v7919_v39 }
0x3928   : > { %v7926_v40 = vadd.f32 %v11287_v36, %v7918_v38 }
0x392a   : > { %12700 = vmatprep.mubr.msk.f32.mxu1 %vm607_vm0, %v7926_v40 }
0x392b   : > { %12701 = vmatmul.mubr.msk.f32.vlgmr.msra.gmra.mrb[76].mxu1 %vm607_vm0, %v7927_v42 }
0x39fe   : > { %v12702_v54 = vpop.f32.mrb[76].mxu1 }
0x39ff   : > { %v8019_v55 = vadd.f32 %v12702_v54, %v11293_v20  ;;  %v8013_v58 = vpop.f32.mrb[77].mxu1 }
0x3a00   : > { %v8014_v59 = vadd.f32 %v11293_v20, %v8013_v58 }
0x3a01   : > { %v8025_v1 = vmul.f32 0.70710677, %v8019_v55  ;;  %v8023_v37 = vmul.f32 0.5, %v8019_v55 }
0x3a02   : > { %v8024_v0 = vmul.f32 0.70710677, %v8014_v59  ;;  %v8022_v44 = vmul.f32 0.5, %v8014_v59 }
0x3a03   : > { %v8031_v62 = vand.u32 2147483647, %v8025_v1  ;;  %vm8027_vm10 = vcmp.ge.f32.partialorder %v8025_v1, 0.0 }
0x3a04   : > { %v8030_v57 = vand.u32 2147483647, %v8024_v0  ;;  %vm8026_vm11 = vcmp.ge.f32.partialorder %v8024_v0, 0.0  ;;  %v8029_v38 = vsel %vm8027_vm10, 1.0, %v13940_v18 }
0x3a05   : > { %v8033_v2 = vmul.f32 0.3275911, %v8031_v62  ;;  %v8059_v7 = vsub.f32 0.0, %v8031_v62  ;;  %v8028_v43 = vsel %vm8026_vm11, 1.0, %v13940_v18 }
0x3a06   : > { %v8032_v3 = vmul.f32 0.3275911, %v8030_v57  ;;  %v8058_v56 = vsub.f32 0.0, %v8030_v57 }
0x3a07   : > { %v8035_v4 = vadd.f32 1.0, %v8033_v2  ;;  %v8061_v9 = vmul.f32 %v8059_v7, %v8031_v62  ;;  %v11312_v7 = vld [vmem:[%s15861_s29 + $0x180] sm:$0xff] }
0x3a08   : > { %v8034_v5 = vadd.f32 1.0, %v8032_v3  ;;  %v8060_v12 = vmul.f32 %v8058_v56, %v8030_v57  ;;  %v11313_v56 = vld [vmem:[%s15861_s29 + $0x188] sm:$0xff] }
0x3a09   : > { %13820 = vrcp.f32 %v8035_v4  ;;  %v8064_v14 = vmul.f32 1.442695, %v8061_v9  ;;  %v11328_v9 = vld [vmem:[%s15822_s5 + $0x180] sm:$0xff] }
0x3a0a   : > { %13822 = vrcp.f32 %v8034_v5  ;;  %v8062_v22 = vmul.f32 1.442695, %v8060_v12  ;;  %v11314_v12 = vld [vmem:[%s15861_s29 + $0x190] sm:$0xff] }
0x3a0b   : > { %13824 = vpow2.f32 %v8064_v14  ;;  %v11330_v14 = vld [vmem:[%s15822_s5 + $0x190] sm:$0xff] }
0x3a0c   : > { %13826 = vpow2.f32 %v8062_v22  ;;  %v11320_v22 = vld [vmem:[%s15863_s2 + $0x180] sm:$0xff] }
0x3a13   : > { %v13821_v8 = vpop.eup %13820 }
0x3a14   : > { %v13823_v10 = vpop.eup %13822  ;;  %v8041_v11 = vmul.f32 1.0614054, %v13821_v8 }
0x3a15   : > { %v8040_v13 = vmul.f32 1.0614054, %v13823_v10  ;;  %v13825_v32 = vpop.eup %13824 }
0x3a16   : > { %v8043_v15 = vadd.f32 -1.4531521, %v8041_v11  ;;  %v13827_v34 = vpop.eup %13826 }
0x3a17   : > { %v8042_v16 = vadd.f32 -1.4531521, %v8040_v13  ;;  %v11315_v13 = vld [vmem:[%s15861_s29 + $0x198] sm:$0xff] }
0x3a18   : > { %v8045_v21 = vmul.f32 %v13821_v8, %v8043_v15  ;;  %v13455_v15 = vpack.c.bf16 %v11315_v13, %v11314_v12 }
0x3a19   : > { %v8044_v27 = vmul.f32 %v13823_v10, %v8042_v16  ;;  %v11331_v16 = vld [vmem:[%s15822_s5 + $0x198] sm:$0xff] }
0x3a1a   : > { %v8047_v28 = vadd.f32 1.4214138, %v8045_v21  ;;  %v13471_v21 = vpack.c.bf16 %v11331_v16, %v11330_v14 }
0x3a1b   : > { %v8046_v23 = vadd.f32 1.4214138, %v8044_v27  ;;  %v11321_v27 = vld [vmem:[%s15863_s2 + $0x188] sm:$0xff] }
0x3a1c   : > { %v8049_v60 = vmul.f32 %v13821_v8, %v8047_v28  ;;  %v13459_v28 = vpack.c.bf16 %v11321_v27, %v11320_v22  ;;  %v11348_v22 = vld [vmem:[%s15865_s28 + $0xd] ss:$0 sm:$0xff] }
0x3a1d   : > { %v8048_v46 = vmul.f32 %v13823_v10, %v8046_v23 }
0x3a1e   : > { %v8051_v24 = vadd.f32 -0.28449672, %v8049_v60 }
0x3a1f   : > { %v8050_v25 = vadd.f32 -0.28449672, %v8048_v46 }
0x3a20   : > { %v8053_v26 = vmul.f32 %v13821_v8, %v8051_v24 }
0x3a21   : > { %v8052_v29 = vmul.f32 %v13823_v10, %v8050_v25 }
0x3a22   : > { %v8055_v30 = vadd.f32 0.2548296, %v8053_v26 }
0x3a23   : > { %v8054_v31 = vadd.f32 0.2548296, %v8052_v29 }
0x3a24   : > { %v8057_v61 = vmul.f32 %v13821_v8, %v8055_v30  ;;  %v13451_v8 = vpack.c.bf16 %v11313_v56, %v11312_v7  ;;  %v11310_v30 = vld [vmem:[%s15826_s9 + $0x3] ss:$0 sm:$0xff]  ;;  %v11361_v56 = vld [vmem:[%s15822_s5 + $0x1b0] sm:$0xff] }
0x3a25   : > { %v8056_v33 = vmul.f32 %v13823_v10, %v8054_v31  ;;  %v11329_v10 = vld [vmem:[%s15822_s5 + $0x188] sm:$0xff] }
0x3a26   : > { %v8067_v35 = vmul.f32 %v13825_v32, %v8057_v61  ;;  %v13467_v11 = vpack.c.bf16 %v11329_v10, %v11328_v9  ;;  %13452 = vmatprep.subr.bf16.mxu1 %v13451_v8 }
0x3a27   : > { %v8066_v36 = vmul.f32 %v13827_v34, %v8056_v33  ;;  %13454 = vmatpush3.bf16.msra.mxu1 %v13451_v8  ;;  %v11311_v33 = vld [vmem:[%s15827_s10 + $0x3] ss:$0 sm:$0xff]  ;;  %v11362_v8 = vld [vmem:[%s15822_s5 + $0x1b8] sm:$0xff] }
0x3a28   : > { %v8069_v39 = vsub.f32 1.0, %v8067_v35  ;;  %13468 = vmatprep.subr.bf16.mxu0 %v13467_v11  ;;  %13456 = vmatprep.subr.bf16.mxu1 %v13455_v15  ;;  %v13505_v9 = vpack.c.bf16 %v11362_v8, %v11361_v56 }
0x3a29   : > { %v8068_v40 = vsub.f32 1.0, %v8066_v36  ;;  %v11322_v36 = vld [vmem:[%s15863_s2 + $0x190] sm:$0xff] }
0x3a2a   : > { %v8071_v42 = vmul.f32 %v8069_v39, %v8029_v38  ;;  %v11323_v39 = vld [vmem:[%s15863_s2 + $0x198] sm:$0xff] }
0x3a2b   : > { %v8070_v50 = vmul.f32 %v8068_v40, %v8028_v43  ;;  %13458 = vmatpush3.bf16.msra.mxu1 %v13455_v15  ;;  %v11333_v43 = vld [vmem:[%s15823_s6 + $0xc] ss:$0 sm:$0xff] }
0x3a2c   : > { %v8073_v51 = vadd.f32 1.0, %v8071_v42  ;;  %13460 = vmatprep.subr.bf16.mxu1 %v13459_v28  ;;  %v13463_v42 = vpack.c.bf16 %v11323_v39, %v11322_v36 }
0x3a2d   : > { %v8072_v19 = vadd.f32 1.0, %v8070_v50  ;;  %v11317_v50 = vld [vmem:[%s15865_s28 + $0xc] ss:$0 sm:$0xff] }
0x3a2e   : > { %v8075_v47 = vmul.f32 %v8073_v51, %v8023_v37 }
0x3a2f   : > { %v8074_v45 = vmul.f32 %v8072_v19, %v8022_v44 }
0x3a31   : > { %12719 = vmatprep.mubr.msk.f32.mxu0 %vm3029_vm7, %v8074_v45 }
0x3a32   : > { %12720 = vmatmul.mubr.msk.f32.vlgmr.msra.gmra.mrb[58].mxu0 %vm3029_vm7, %v8075_v47 }
0x3a33   : > { %13470 = vmatpush3.bf16.msra.mxu0 %v13467_v11 }
0x3a34   : > { %13472 = vmatprep.subr.bf16.mxu0 %v13471_v21 }
0x3a37   : > { %13474 = vmatpush3.bf16.msra.mxu0 %v13471_v21 }
0x3b05   : > { %v12721_v48 = vpop.f32.mrb[58].mxu0 }
0x3b06   : > { %v8167_v52 = vadd.f32 %v12721_v48, %v15278_v6  ;;  %v8157_v53 = vpop.f32.mrb[59].mxu0 }
0x3b07   : > { %v8166_v20 = vadd.f32 %v8157_v53, %v15280_v41 }
0x3b08   : > { %v15346_v54 = vadd.f32 %v11307_v49, %v8167_v52  ;;  %v11325_v52 = vld [vmem:[%s15864_s4 + $0xc] ss:$0 sm:$0xff] }
0x3b09   : > { %v15348_v58 = vadd.f32 %v11307_v49, %v8166_v20 }
0x3b0a   : > { %v8185_v55 = vsel %vm607_vm0, %v15346_v54, 0.0 }
0x3b0b   : > { %8186 = vadd.xlane.f32.xlu1 %v8185_v55  ;;  %v8182_v59 = vsel %vm607_vm0, %v15348_v58, 0.0 }
0x3b0c   : > { %8183 = vadd.xlane.f32.xlu0 %v8182_v59  ;;  %v11343_v59 = vld [vmem:[%s15861_s29 + $0x1a0] sm:$0xff] }
0x3b98   : > { %v8187_v1 = vpop.xlane.xlu1 %8186 }
0x3b99   : > { %v8189_v0 = vmul.f32 0.03125, %v8187_v1  ;;  %v8184_v62 = vpop.xlane.xlu0 %8183  ;;  %v11344_v1 = vld [vmem:[%s15861_s29 + $0x1a8] sm:$0xff] }
0x3b9a   : > { %v8188_v57 = vmul.f32 0.03125, %v8184_v62 }
0x3b9b   : > { %v8191_v6 = vsub.f32 %v15346_v54, %v8189_v0 }
0x3b9c   : > { %v8190_v41 = vsub.f32 %v15348_v58, %v8188_v57  ;;  %v13485_v57 = vpack.c.bf16 %v11344_v1, %v11343_v59  ;;  %v11356_v1 = vld [vmem:[%s15864_s4 + $0xd] ss:$0 sm:$0xff] }
0x3b9d   : > { %v8193_v2 = vmul.f32 %v8191_v6, %v8191_v6 }
0x3b9e   : > { %v8192_v3 = vmul.f32 %v8190_v41, %v8190_v41 }
0x3b9f   : > { %v8197_v4 = vsel %vm607_vm0, %v8193_v2, 0.0 }
0x3ba0   : > { %8198 = vadd.xlane.f32.xlu1 %v8197_v4  ;;  %v8194_v5 = vsel %vm607_vm0, %v8192_v3, 0.0  ;;  %v11359_v4 = vld [vmem:[%s15822_s5 + $0x1a0] sm:$0xff] }
0x3ba1   : > { %8195 = vadd.xlane.f32.xlu0 %v8194_v5  ;;  %v11360_v5 = vld [vmem:[%s15822_s5 + $0x1a8] sm:$0xff] }
0x3ba2   : > { %v13501_v7 = vpack.c.bf16 %v11360_v5, %v11359_v4 }
0x3c2d   : > { %v8199_v23 = vpop.xlane.xlu1 %8198 }
0x3c2e   : > { %v8201_v60 = vmul.f32 0.03125, %v8199_v23  ;;  %v8196_v46 = vpop.xlane.xlu0 %8195 }
0x3c2f   : > { %v8200_v24 = vmul.f32 0.03125, %v8196_v46 }
0x3c30   : > { %v8203_v25 = vadd.f32 1e-05, %v8201_v60  ;;  %v11364_v60 = vld [vmem:[%s15823_s6 + $0xd] ss:$0 sm:$0xff] }
0x3c31   : > { %v8202_v26 = vadd.f32 1e-05, %v8200_v24 }
0x3c32   : > { %13828 = vrsqrt.f32 %v8203_v25 }
0x3c33   : > { %13830 = vrsqrt.f32 %v8202_v26 }
0x3c3c   : > { %v13829_v29 = vpop.eup %13828 }
0x3c3d   : > { %v13831_v31 = vpop.eup %13830  ;;  %v8207_v61 = vmul.f32 %v13829_v29, %v8191_v6  ;;  %v11345_v6 = vld [vmem:[%s15861_s29 + $0x1b0] sm:$0xff] }
0x3c3e   : > { %v8206_v32 = vmul.f32 %v13831_v31, %v8190_v41  ;;  %v11346_v41 = vld [vmem:[%s15861_s29 + $0x1b8] sm:$0xff] }
0x3c3f   : > { %v8215_v34 = vmul.f32 %v11310_v30, %v8207_v61  ;;  %v13489_v3 = vpack.c.bf16 %v11346_v41, %v11345_v6 }
0x3c40   : > { %v8214_v35 = vmul.f32 %v11310_v30, %v8206_v32 }
0x3c41   : > { %v15402_v40 = vadd.f32 %v11311_v33, %v8215_v34 }
0x3c42   : > { %v15400_v38 = vadd.f32 %v11311_v33, %v8214_v35 }
0x3c44   : > { %12730 = vmatprep.mubr.msk.f32.mxu1 %vm607_vm0, %v15400_v38  ;;  %12752 = vmatprep.mubr.msk.f32.mxu0 %vm607_vm0, %v15400_v38 }
0x3c45   : > { %12731 = vmatmul.mubr.msk.f32.vlgmr.msra.gmra.mrb[78].mxu1 %vm607_vm0, %v15402_v40  ;;  %12753 = vmatmul.mubr.msk.f32.vlgmr.msra.gmra.mrb[60].mxu0 %vm607_vm0, %v15402_v40 }
0x3c46   : > { %13462 = vmatpush3.bf16.msra.mxu1 %v13459_v28  ;;  %12741 = vmatprep.mubr.msk.f32.mxu1 %vm607_vm0, %v15400_v38 }
0x3c47   : > { %13464 = vmatprep.subr.bf16.mxu1 %v13463_v42 }
0x3c4a   : > { %13466 = vmatpush3.bf16.msra.mxu1 %v13463_v42 }
0x3c4d   : > { %12742 = vmatmul.mubr.msk.f32.vlgmr.msra.gmra.mrb[80].mxu1 %vm607_vm0, %v15402_v40 }
0x3d18   : > { %v12732_v51 = vpop.f32.mrb[78].mxu1  ;;  %v12754_v44 = vpop.f32.mrb[60].mxu0 }
0x3d19   : > { %v8491_v19 = vadd.f32 %v12754_v44, %v11333_v43  ;;  %v8309_v37 = vpop.f32.mrb[79].mxu1  ;;  %v8485_v45 = vpop.f32.mrb[61].mxu0  ;;  %v8315_v2 = vadd.f32 %v12732_v51, %v11317_v50 }
0x3d1a   : > { %v8310_v47 = vadd.f32 %v11317_v50, %v8309_v37  ;;  %v8486_v48 = vadd.f32 %v11333_v43, %v8485_v45  ;;  %v11351_v43 = vld [vmem:[%s15863_s2 + $0x1a0] sm:$0xff]  ;;  %v11352_v50 = vld [vmem:[%s15863_s2 + $0x1a8] sm:$0xff]  ;;  %v11353_v45 = vld [vmem:[%s15863_s2 + $0x1b0] sm:$0xff] }
0x3d1b   : > { %v13493_v51 = vpack.c.bf16 %v11352_v50, %v11351_v43  ;;  %v11342_v50 = vld [vmem:[%s15824_s7 + $0x60] sm:$0xff] }
0x3d1c   : > { %v13481_v49 = vpack.c.bf16 %v8491_v19, %v8486_v48  ;;  %12759 = vmatprep.mubr.msk.f32.mxu1 %vm915_vm1, %v8310_v47  ;;  %v11354_v47 = vld [vmem:[%s15863_s2 + $0x1b8] sm:$0xff] }
0x3d1e   : > { %13482 = vmatprep.subr.bf16.mxu0 %v13481_v49 }
0x3d1f   : > { %13484 = vmatpush3.bf16.msra.mxu0 %v13481_v49 }
0x3d20   : > { %v12743_v53 = vpop.f32.mrb[80].mxu1  ;;  %13494 = vmatprep.subr.bf16.mxu0 %v13493_v51 }
0x3d21   : > { %v8403_v20 = vadd.f32 %v12743_v53, %v11325_v52  ;;  %v8397_v55 = vpop.f32.mrb[81].mxu1  ;;  %v13497_v53 = vpack.c.bf16 %v11354_v47, %v11353_v45  ;;  %v11383_v47 = vld [vmem:[%s15865_s28 + $0xe] ss:$0 sm:$0xff] }
0x3d22   : > { %v8398_v0 = vadd.f32 %v11325_v52, %v8397_v55 }
0x3d24   : > { %v13475_v62 = vpack.c.bf16 %v8403_v20, %v8398_v0 }
0x3d26   : > { %13477 = vmatprep.subr.msk.bf16.mxu1 %vm14192_vm2, %v13475_v62 }
0x3d27   : > { %13480 = vmatpush3.bf16.xpose.msk.msra.mxu1 %vm14192_vm2, %v13475_v62 }
0x3d28   : > { %13486 = vmatprep.subr.bf16.mxu1 %v13485_v57 }
0x3d2e   : > { %12760 = vmatmul.mubr.msk.f32.vlgmr.msra.gmra.mrb[82].mxu1 %vm915_vm1, %v8315_v2 }
0x3d2f   : > { %13488 = vmatpush3.bf16.msra.mxu1 %v13485_v57  ;;  %12777 = vmatprep.mubr.msk.f32.mxu1 %vm607_vm0, %v15400_v38 }
0x3d30   : > { %13490 = vmatprep.subr.bf16.mxu1 %v13489_v3 }
0x3d33   : > { %13492 = vmatpush3.bf16.msra.mxu1 %v13489_v3 }
0x3d34   : > { %13502 = vmatprep.subr.bf16.mxu1 %v13501_v7 }
0x3d36   : > { %12778 = vmatmul.mubr.msk.f32.vlgmr.msra.gmra.mrb[84].mxu1 %vm607_vm0, %v15402_v40 }
0x3d37   : > { %13504 = vmatpush3.bf16.msra.mxu1 %v13501_v7  ;;  %12799 = vmatprep.mubr.msk.f32.mxu1 %vm607_vm0, %v15400_v38 }
0x3d38   : > { %13506 = vmatprep.subr.bf16.mxu1 %v13505_v9 }
0x3d3b   : > { %13508 = vmatpush3.bf16.msra.mxu1 %v13505_v9 }
0x3d3e   : > { %12800 = vmatmul.mubr.msk.f32.vlgmr.msra.gmra.mrb[86].mxu1 %vm607_vm0, %v15402_v40 }
0x3e01   : > { %v12761_v10 = vpop.f32.mrb[82].mxu1 }
0x3e02   : > { %v8582_v11 = vmul.f32 0.35355338, %v12761_v10  ;;  %v8572_v12 = vpop.f32.mrb[83].mxu1 }
0x3e03   : > { %v8581_v13 = vmul.f32 0.35355338, %v8572_v12 }
0x3e04   : > { %v8584_v15 = vsel %vm604_vm3, %v8582_v11, -1e+30 }
0x3e05   : > { %v8588_v14 = vsel %vm1007_vm4, %v8584_v15, -inf  ;;  %v8583_v16 = vsel %vm604_vm3, %v8581_v13, -1e+30 }
0x3e06   : > { %8589 = vmax.xlane.f32.xlu1 %v8588_v14  ;;  %v8585_v21 = vsel %vm1007_vm4, %v8583_v16, -inf }
0x3e07   : > { %8586 = vmax.xlane.f32.xlu0 %v8585_v21 }
0x3e09   : > { %v12779_v27 = vpop.f32.mrb[84].mxu1 }
0x3e0a   : > { %v8775_v28 = vadd.f32 %v12779_v27, %v11348_v22  ;;  %v8769_v23 = vpop.f32.mrb[85].mxu1 }
0x3e0b   : > { %v8770_v20 = vadd.f32 %v11348_v22, %v8769_v23  ;;  %v11379_v23 = vld [vmem:[%s15861_s29 + $0x1c8] sm:$0xff] }
0x3e11   : > { %v12801_v46 = vpop.f32.mrb[86].mxu1 }
0x3e12   : > { %v8951_v24 = vadd.f32 %v12801_v46, %v11364_v60  ;;  %v8945_v25 = vpop.f32.mrb[87].mxu1  ;;  %v11373_v46 = vld [vmem:[%s15824_s7 + $0x68] sm:$0xff] }
0x3e13   : > { %v8946_v26 = vadd.f32 %v11364_v60, %v8945_v25 }
0x3e15   : > { %v13515_v29 = vpack.c.bf16 %v8951_v24, %v8946_v26 }
0x3e17   : > { %13516 = vmatprep.subr.bf16.mxu1 %v13515_v29 }
0x3e18   : > { %13518 = vmatpush3.bf16.msra.mxu1 %v13515_v29  ;;  %v11380_v29 = vld [vmem:[%s15861_s29 + $0x1d0] sm:$0xff] }
0x3e93   : > { %v8590_v30 = vpop.xlane.xlu1 %8589 }
0x3e94   : > { %v8592_v31 = vsub.f32 %v8584_v15, %v8590_v30  ;;  %v8587_v61 = vpop.xlane.xlu0 %8586  ;;  %v11381_v30 = vld [vmem:[%s15861_s29 + $0x1d8] sm:$0xff] }
0x3e95   : > { %v8591_v32 = vsub.f32 %v8583_v16, %v8587_v61 }
0x3e96   : > { %v8595_v33 = vmul.f32 1.442695, %v8592_v31 }
0x3e97   : > { %v8593_v34 = vmul.f32 1.442695, %v8591_v32 }
0x3e98   : > { %13832 = vpow2.f32 %v8595_v33  ;;  %v13523_v33 = vpack.c.bf16 %v11381_v30, %v11380_v29  ;;  %v11412_v29 = vld [vmem:[%s15861_s29 + $0x1e8] sm:$0xff] }
0x3e99   : > { %13834 = vpow2.f32 %v8593_v34  ;;  %v11394_v34 = vld [vmem:[%s15822_s5 + $0x1c0] sm:$0xff] }
0x3ea2   : > { %v13833_v35 = vpop.eup %13832 }
0x3ea3   : > { %v13835_v36 = vpop.eup %13834  ;;  %v8600_v39 = vsel %vm1007_vm4, %v13833_v35, 0.0 }
0x3ea4   : > { %8601 = vadd.xlane.f32.xlu1 %v8600_v39  ;;  %v8597_v42 = vsel %vm1007_vm4, %v13835_v36, 0.0  ;;  %v11396_v39 = vld [vmem:[%s15822_s5 + $0x1d0] sm:$0xff] }
0x3ea5   : > { %8598 = vadd.xlane.f32.xlu0 %v8597_v42  ;;  %v11397_v42 = vld [vmem:[%s15822_s5 + $0x1d8] sm:$0xff] }
0x3ea6   : > { %v13539_v43 = vpack.c.bf16 %v11397_v42, %v11396_v39 }
0x3f31   : > { %v8602_v44 = vpop.xlane.xlu1 %8601 }
0x3f32   : > { %13836 = vrcp.f32 %v8602_v44  ;;  %v8599_v19 = vpop.xlane.xlu0 %8598  ;;  %v11387_v44 = vld [vmem:[%s15863_s2 + $0x1c8] sm:$0xff] }
0x3f33   : > { %13838 = vrcp.f32 %v8599_v19 }
0x3f3c   : > { %v13837_v37 = vpop.eup %13836 }
0x3f3d   : > { %v13839_v48 = vpop.eup %13838  ;;  %v8606_v52 = vmul.f32 %v13837_v37, %v13833_v35  ;;  %v11395_v35 = vld [vmem:[%s15822_s5 + $0x1c8] sm:$0xff] }
0x3f3e   : > { %v8605_v49 = vmul.f32 %v13839_v48, %v13835_v36  ;;  %v13535_v36 = vpack.c.bf16 %v11395_v35, %v11394_v34  ;;  %v11388_v48 = vld [vmem:[%s15863_s2 + $0x1d0] sm:$0xff]  ;;  %v11414_v35 = vld [vmem:[%s15861_s29 + $0x1f8] sm:$0xff] }
0x3f3f   : > { %v11413_v34 = vld [vmem:[%s15861_s29 + $0x1f0] sm:$0xff] }
0x3f40   : > { %12766 = vmatprep.mubr.msk.f32.mxu0 %vm1007_vm4, %v8605_v49  ;;  %v11389_v49 = vld [vmem:[%s15863_s2 + $0x1d8] sm:$0xff] }
0x3f41   : > { %12767 = vmatmul.mubr.msk.f32.vlgmr.msra.gmra.mrb[62].mxu0 %vm1007_vm4, %v8606_v52 }
0x3f42   : > { %13496 = vmatpush3.bf16.msra.mxu0 %v13493_v51  ;;  %12788 = vmatprep.mubr.msk.f32.mxu0 %vm607_vm0, %v15400_v38  ;;  %v11386_v51 = vld [vmem:[%s15863_s2 + $0x1c0] sm:$0xff] }
0x3f43   : > { %13498 = vmatprep.subr.bf16.mxu0 %v13497_v53  ;;  %v13527_v45 = vpack.c.bf16 %v11387_v44, %v11386_v51  ;;  %v11428_v51 = vld [vmem:[%s15822_s5 + $0x1e8] sm:$0xff] }
0x3f46   : > { %13500 = vmatpush3.bf16.msra.mxu0 %v13497_v53 }
0x3f49   : > { %12789 = vmatmul.mubr.msk.f32.vlgmr.msra.gmra.mrb[64].mxu0 %vm607_vm0, %v15402_v40 }
0x3f4a   : > { %12806 = vmatprep.mubr.msk.f32.mxu0 %vm915_vm1, %v8770_v20 }
0x4014   : > { %v15496_v55 = vpop.f32.mrb[62].mxu0 }
0x4015   : > { %v15498_v59 = vpop.f32.mrb[63].mxu0 }
0x401c   : > { %v12790_v0 = vpop.f32.mrb[64].mxu0 }
0x401d   : > { %v8863_v62 = vadd.f32 %v12790_v0, %v11356_v1  ;;  %v8857_v57 = vpop.f32.mrb[65].mxu0 }
0x401e   : > { %v8858_v6 = vadd.f32 %v11356_v1, %v8857_v57  ;;  %v13531_v1 = vpack.c.bf16 %v11389_v49, %v11388_v48  ;;  %v11420_v48 = vld [vmem:[%s15863_s2 + $0x1e8] sm:$0xff] }
0x4020   : > { %v13509_v41 = vpack.c.bf16 %v8863_v62, %v8858_v6 }
0x4022   : > { %13511 = vmatprep.subr.msk.bf16.mxu0 %vm14192_vm2, %v13509_v41 }
0x4023   : > { %13514 = vmatpush3.bf16.xpose.msk.msra.mxu0 %vm14192_vm2, %v13509_v41 }
0x4024   : > { %12816 = vmatprep.subr.mxu0 %v11373_v46 }
0x402a   : > { %12807 = vmatmul.mubr.msk.f32.vlgmr.msra.gmra.mrb[66].mxu0 %vm915_vm1, %v8775_v28  ;;  %v11378_v28 = vld [vmem:[%s15861_s29 + $0x1c0] sm:$0xff] }
0x402b   : > { %v13519_v60 = vpack.c.bf16 %v11379_v23, %v11378_v28  ;;  %12817 = vmatpush3.msra.mxu0 %v11373_v46 }
0x402c   : > { %12821 = vmatprep.subr.mxu0 %v11342_v50 }
0x402d   : > { %13520 = vmatprep.subr.bf16.mxu1 %v13519_v60 }
0x40fd   : > { %v12808_v2 = vpop.f32.mrb[66].mxu0 }
0x40fe   : > { %v9042_v3 = vmul.f32 0.35355338, %v12808_v2  ;;  %v9032_v4 = vpop.f32.mrb[67].mxu0 }
0x40ff   : > { %v9041_v5 = vmul.f32 0.35355338, %v9032_v4 }
0x4100   : > { %v9044_v7 = vsel %vm604_vm3, %v9042_v3, -1e+30 }
0x4101   : > { %v9048_v56 = vsel %vm1007_vm4, %v9044_v7, -inf  ;;  %v9043_v8 = vsel %vm604_vm3, %v9041_v5, -1e+30 }
0x4102   : > { %9049 = vmax.xlane.f32.xlu1 %v9048_v56  ;;  %v9045_v9 = vsel %vm1007_vm4, %v9043_v8, -inf }
0x4103   : > { %9046 = vmax.xlane.f32.xlu0 %v9045_v9 }
0x418f   : > { %v9050_v10 = vpop.xlane.xlu1 %9049 }
0x4190   : > { %v9052_v11 = vsub.f32 %v9044_v7, %v9050_v10  ;;  %v9047_v12 = vpop.xlane.xlu0 %9046 }
0x4191   : > { %v9051_v13 = vsub.f32 %v9043_v8, %v9047_v12 }
0x4192   : > { %v9055_v15 = vmul.f32 1.442695, %v9052_v11 }
0x4193   : > { %v9053_v14 = vmul.f32 1.442695, %v9051_v13 }
0x4194   : > { %13840 = vpow2.f32 %v9055_v15 }
0x4195   : > { %13842 = vpow2.f32 %v9053_v14 }
0x419e   : > { %v13841_v16 = vpop.eup %13840 }
0x419f   : > { %v13843_v21 = vpop.eup %13842  ;;  %v9060_v22 = vsel %vm1007_vm4, %v13841_v16, 0.0 }
0x41a0   : > { %9061 = vadd.xlane.f32.xlu1 %v9060_v22  ;;  %v9057_v27 = vsel %vm1007_vm4, %v13843_v21, 0.0 }
0x41a1   : > { %9058 = vadd.xlane.f32.xlu0 %v9057_v27 }
0x422d   : > { %v9062_v24 = vpop.xlane.xlu1 %9061 }
0x422e   : > { %13844 = vrcp.f32 %v9062_v24  ;;  %v9059_v25 = vpop.xlane.xlu0 %9058 }
0x422f   : > { %13846 = vrcp.f32 %v9059_v25 }
0x4238   : > { %v13845_v26 = vpop.eup %13844 }
0x4239   : > { %v13847_v31 = vpop.eup %13846  ;;  %v9066_v32 = vmul.f32 %v13845_v26, %v13841_v16  ;;  %v11411_v26 = vld [vmem:[%s15861_s29 + $0x1e0] sm:$0xff] }
0x423a   : > { %v9065_v61 = vmul.f32 %v13847_v31, %v13843_v21  ;;  %v13553_v30 = vpack.c.bf16 %v11412_v29, %v11411_v26  ;;  %v11408_v31 = vld [vmem:[%s15824_s7 + $0x70] sm:$0xff]  ;;  %v11441_v29 = vld [vmem:[%s15824_s7 + $0x78] sm:$0xff] }
0x423c   : > { %12813 = vmatprep.mubr.msk.f32.mxu1 %vm1007_vm4, %v9065_v61 }
0x423d   : > { %12814 = vmatmul.mubr.msk.f32.vlgmr.msra.gmra.mrb[88].mxu1 %vm1007_vm4, %v9066_v32 }
0x423e   : > { %13522 = vmatpush3.bf16.msra.mxu1 %v13519_v60  ;;  %12834 = vmatprep.mubr.msk.f32.mxu1 %vm607_vm0, %v15400_v38 }
0x423f   : > { %13524 = vmatprep.subr.bf16.mxu1 %v13523_v33 }
0x4242   : > { %13526 = vmatpush3.bf16.msra.mxu1 %v13523_v33 }
0x4243   : > { %13536 = vmatprep.subr.bf16.mxu1 %v13535_v36 }
0x4245   : > { %12835 = vmatmul.mubr.msk.f32.vlgmr.msra.gmra.mrb[90].mxu1 %vm607_vm0, %v15402_v40 }
0x4246   : > { %13538 = vmatpush3.bf16.msra.mxu1 %v13535_v36  ;;  %12856 = vmatprep.mubr.msk.f32.mxu1 %vm607_vm0, %v15400_v38 }
0x4247   : > { %13540 = vmatprep.subr.bf16.mxu1 %v13539_v43 }
0x424a   : > { %13542 = vmatpush3.bf16.msra.mxu1 %v13539_v43  ;;  %v13557_v43 = vpack.c.bf16 %v11414_v35, %v11413_v34 }
0x424d   : > { %12857 = vmatmul.mubr.msk.f32.vlgmr.msra.gmra.mrb[92].mxu1 %vm607_vm0, %v15402_v40 }
0x4310   : > { %v12815_v19 = vpop.f32.mrb[88].mxu1 }
0x4311   : > { %v9139_v37 = vpop.f32.mrb[89].mxu1 }
0x4312   : > { %12818 = vmatprep.mubr.msk.f32.mxu0 %vm915_vm1, %v9139_v37  ;;  %v11430_v37 = vld [vmem:[%s15822_s5 + $0x1f8] sm:$0xff] }
0x4313   : > { %12819 = vmatmul.mubr.msk.f32.vlgmr.msra.gmra.mrb[68].mxu0 %vm915_vm1, %v12815_v19  ;;  %v11429_v19 = vld [vmem:[%s15822_s5 + $0x1f0] sm:$0xff] }
0x4314   : > { %12822 = vmatpush3.msra.mxu0 %v11342_v50  ;;  %12823 = vmatprep.mubr.msk.f32.mxu0 %vm915_vm1, %v15498_v59  ;;  %v11399_v59 = vld [vmem:[%s15823_s6 + $0xe] ss:$0 sm:$0xff]  ;;  %v11427_v50 = vld [vmem:[%s15822_s5 + $0x1e0] sm:$0xff] }
0x4315   : > { %13528 = vmatprep.subr.bf16.mxu0 %v13527_v45  ;;  %v13569_v44 = vpack.c.bf16 %v11428_v51, %v11427_v50 }
0x4318   : > { %v12836_v52 = vpop.f32.mrb[90].mxu1 }
0x4319   : > { %v9397_v53 = vadd.f32 %v12836_v52, %v11383_v47  ;;  %v9391_v20 = vpop.f32.mrb[91].mxu1  ;;  %v11421_v52 = vld [vmem:[%s15863_s2 + $0x1f0] sm:$0xff] }
0x431a   : > { %v9392_v6 = vadd.f32 %v11383_v47, %v9391_v20  ;;  %v11419_v47 = vld [vmem:[%s15863_s2 + $0x1e0] sm:$0xff] }
0x431b   : > { %12824 = vmatmul.mubr.msk.f32.vlgmr.msra.gmra.mrb[68].mxu0 %vm915_vm1, %v15496_v55  ;;  %v11391_v55 = vld [vmem:[%s15864_s4 + $0xe] ss:$0 sm:$0xff]  ;;  %v13561_v49 = vpack.c.bf16 %v11420_v48, %v11419_v47 }
0x431c   : > { %13530 = vmatpush3.bf16.msra.mxu0 %v13527_v45  ;;  %12845 = vmatprep.mubr.msk.f32.mxu0 %vm607_vm0, %v15400_v38  ;;  %v13573_v45 = vpack.c.bf16 %v11430_v37, %v11429_v19 }
0x431d   : > { %13532 = vmatprep.subr.bf16.mxu0 %v13531_v1 }
0x4320   : > { %13534 = vmatpush3.bf16.msra.mxu0 %v13531_v1  ;;  %v12858_v0 = vpop.f32.mrb[92].mxu1 }
0x4321   : > { %v9573_v62 = vadd.f32 %v12858_v0, %v11399_v59  ;;  %v9567_v57 = vpop.f32.mrb[93].mxu1  ;;  %v11416_v0 = vld [vmem:[%s15865_s28 + $0xf] ss:$0 sm:$0xff] }
0x4322   : > { %v9568_v41 = vadd.f32 %v11399_v59, %v9567_v57 }
0x4323   : > { %12846 = vmatmul.mubr.msk.f32.vlgmr.msra.gmra.mrb[70].mxu0 %vm607_vm0, %v15402_v40 }
0x4324   : > { %v13549_v2 = vpack.c.bf16 %v9573_v62, %v9568_v41  ;;  %12863 = vmatprep.mubr.msk.f32.mxu0 %vm915_vm1, %v9392_v6 }
0x4326   : > { %13550 = vmatprep.subr.bf16.mxu1 %v13549_v2 }
0x4327   : > { %13552 = vmatpush3.bf16.msra.mxu1 %v13549_v2  ;;  %v11432_v2 = vld [vmem:[%s15823_s6 + $0xf] ss:$0 sm:$0xff] }
0x4328   : > { %13554 = vmatprep.subr.bf16.mxu1 %v13553_v30 }
0x43f6   : > { %v12847_v3 = vpop.f32.mrb[70].mxu0 }
0x43f7   : > { %v9485_v4 = vadd.f32 %v12847_v3, %v11391_v55  ;;  %v9479_v5 = vpop.f32.mrb[71].mxu0 }
0x43f8   : > { %v9480_v7 = vadd.f32 %v11391_v55, %v9479_v5 }
0x43fa   : > { %v13543_v56 = vpack.c.bf16 %v9485_v4, %v9480_v7  ;;  %v11424_v7 = vld [vmem:[%s15864_s4 + $0xf] ss:$0 sm:$0xff] }
0x43fc   : > { %13545 = vmatprep.subr.msk.bf16.mxu0 %vm14192_vm2, %v13543_v56 }
0x43fd   : > { %13548 = vmatpush3.bf16.xpose.msk.msra.mxu0 %vm14192_vm2, %v13543_v56 }
0x43fe   : > { %12873 = vmatprep.subr.mxu0 %v11408_v31 }
0x4404   : > { %12864 = vmatmul.mubr.msk.f32.vlgmr.msra.gmra.mrb[72].mxu0 %vm915_vm1, %v9397_v53  ;;  %v11422_v53 = vld [vmem:[%s15863_s2 + $0x1f8] sm:$0xff]  ;;  %s13880_s2 = sshll.u32 %s13944_s1, 4  ;;  %s13881_s2 = int_to_ptr.vmem [resolvable:$false] %s13880_s2 }
0x4405   : > { %12874 = vmatpush3.msra.mxu0 %v11408_v31  ;;  %v13565_v59 = vpack.c.bf16 %v11422_v53, %v11421_v52  ;;  %s13882_s4 = scalar_lea.vmem %s13881_s2, 32  ;;  %p13883_p0 = scmp.lt.s32.totalorder %s15777_s24, %s13881_s2 }
0x4406   : > { %13562 = vmatprep.subr.bf16.mxu0 %v13561_v49  ;;  %p13884_p1 = scmp.lt.s32.totalorder %s13882_s4, %s13876_s26 }
0x4408   : > { %p13885_p2 = por %p13884_p1, %p13883_p0 }
0x440a   : > { %p13886_p3 = pnand %p13885_p2, %p13879_p13 }
0x44d7   : > { %v12865_v8 = vpop.f32.mrb[72].mxu0 }
0x44d8   : > { %v9664_v9 = vmul.f32 0.35355338, %v12865_v8  ;;  %v9654_v10 = vpop.f32.mrb[73].mxu0 }
0x44d9   : > { %v9663_v11 = vmul.f32 0.35355338, %v9654_v10 }
0x44da   : > { %v9666_v12 = vsel %vm604_vm3, %v9664_v9, -1e+30 }
0x44db   : > { %v9670_v13 = vsel %vm1007_vm4, %v9666_v12, -inf  ;;  %v9665_v15 = vsel %vm604_vm3, %v9663_v11, -1e+30 }
0x44dc   : > { %9671 = vmax.xlane.f32.xlu1 %v9670_v13  ;;  %v9667_v14 = vsel %vm1007_vm4, %v9665_v15, -inf }
0x44dd   : > { %9668 = vmax.xlane.f32.xlu0 %v9667_v14 }
0x4569   : > { %v9672_v16 = vpop.xlane.xlu1 %9671 }
0x456a   : > { %v9674_v21 = vsub.f32 %v9666_v12, %v9672_v16  ;;  %v9669_v22 = vpop.xlane.xlu0 %9668 }
0x456b   : > { %v9673_v27 = vsub.f32 %v9665_v15, %v9669_v22 }
0x456c   : > { %v9677_v28 = vmul.f32 1.442695, %v9674_v21 }
0x456d   : > { %v9675_v23 = vmul.f32 1.442695, %v9673_v27 }
0x456e   : > { %13848 = vpow2.f32 %v9677_v28 }
0x456f   : > { %13850 = vpow2.f32 %v9675_v23 }
0x4578   : > { %v13849_v60 = vpop.eup %13848 }
0x4579   : > { %v13851_v46 = vpop.eup %13850  ;;  %v9682_v24 = vsel %vm1007_vm4, %v13849_v60, 0.0 }
0x457a   : > { %9683 = vadd.xlane.f32.xlu1 %v9682_v24  ;;  %v9679_v25 = vsel %vm1007_vm4, %v13851_v46, 0.0 }
0x457b   : > { %9680 = vadd.xlane.f32.xlu0 %v9679_v25 }
0x4607   : > { %v9684_v61 = vpop.xlane.xlu1 %9683 }
0x4608   : > { %13852 = vrcp.f32 %v9684_v61  ;;  %v9681_v32 = vpop.xlane.xlu0 %9680 }
0x4609   : > { %13854 = vrcp.f32 %v9681_v32 }
0x4612   : > { %v13853_v33 = vpop.eup %13852 }
0x4613   : > { %v13855_v36 = vpop.eup %13854  ;;  %v9688_v42 = vmul.f32 %v13853_v33, %v13849_v60 }
0x4614   : > { %v9687_v39 = vmul.f32 %v13855_v36, %v13851_v46 }
0x4616   : > { %12870 = vmatprep.mubr.msk.f32.mxu1 %vm1007_vm4, %v9687_v39 }
0x4617   : > { %12871 = vmatmul.mubr.msk.f32.vlgmr.msra.gmra.mrb[94].mxu1 %vm1007_vm4, %v9688_v42  ;;  %v11445_v42 = vld [vmem:[%s15825_s8 + $0x3] ss:$0 sm:$0xff] }
0x4618   : > { %13556 = vmatpush3.bf16.msra.mxu1 %v13553_v30  ;;  %12886 = vmatprep.mubr.msk.f32.mxu1 %vm607_vm0, %v15400_v38 }
0x4619   : > { %13558 = vmatprep.subr.bf16.mxu1 %v13557_v43 }
0x461c   : > { %13560 = vmatpush3.bf16.msra.mxu1 %v13557_v43 }
0x461d   : > { %13570 = vmatprep.subr.bf16.mxu1 %v13569_v44 }
0x461f   : > { %12887 = vmatmul.mubr.msk.f32.vlgmr.msra.gmra.mrb[96].mxu1 %vm607_vm0, %v15402_v40 }
0x4620   : > { %13572 = vmatpush3.bf16.msra.mxu1 %v13569_v44  ;;  %12908 = vmatprep.mubr.msk.f32.mxu1 %vm607_vm0, %v15400_v38 }
0x4621   : > { %13574 = vmatprep.subr.bf16.mxu1 %v13573_v45 }
0x4624   : > { %13576 = vmatpush3.bf16.msra.mxu1 %v13573_v45 }
0x4627   : > { %12909 = vmatmul.mubr.msk.f32.vlgmr.msra.gmra.mrb[98].mxu1 %vm607_vm0, %v15402_v40 }
0x46ea   : > { %v12872_v20 = vpop.f32.mrb[94].mxu1 }
0x46eb   : > { %v9761_v1 = vpop.f32.mrb[95].mxu1 }
0x46ec   : > { %12875 = vmatprep.mubr.msk.f32.mxu0 %vm915_vm1, %v9761_v1 }
0x46ed   : > { %12876 = vmatmul.mubr.msk.f32.vlgmr.msra.gmra.mrb[68].mxu0 %vm915_vm1, %v12872_v20 }
0x46ee   : > { %13564 = vmatpush3.bf16.msra.mxu0 %v13561_v49  ;;  %12897 = vmatprep.mubr.msk.f32.mxu0 %vm607_vm0, %v15400_v38 }
0x46ef   : > { %13566 = vmatprep.subr.bf16.mxu0 %v13565_v59 }
0x46f2   : > { %v12888_v62 = vpop.f32.mrb[96].mxu1  ;;  %13568 = vmatpush3.bf16.msra.mxu0 %v13565_v59 }
0x46f3   : > { %v9940_v57 = vadd.f32 %v12888_v62, %v11416_v0  ;;  %v9934_v6 = vpop.f32.mrb[97].mxu1  ;;  %v11451_v62 = vld [vmem:[%s15830_s13 + $0x68] sm:$0xff] }
0x46f4   : > { %v9935_v41 = vadd.f32 %v11416_v0, %v9934_v6  ;;  %v11450_v0 = vld [vmem:[%s15830_s13 + $0x60] sm:$0xff]  ;;  %v11452_v6 = vld [vmem:[%s15830_s13 + $0x70] sm:$0xff] }
0x46f5   : > { %12898 = vmatmul.mubr.msk.f32.vlgmr.msra.gmra.mrb[74].mxu0 %vm607_vm0, %v15402_v40 }
0x46f6   : > { %12915 = vmatprep.mubr.msk.f32.mxu0 %vm915_vm1, %v9935_v41  ;;  %v11453_v41 = vld [vmem:[%s15830_s13 + $0x78] sm:$0xff] }
0x46fa   : > { %v12910_v38 = vpop.f32.mrb[98].mxu1 }
0x46fb   : > { %v10116_v55 = vadd.f32 %v12910_v38, %v11432_v2  ;;  %v10110_v3 = vpop.f32.mrb[99].mxu1 }
0x46fc   : > { %v10111_v4 = vadd.f32 %v11432_v2, %v10110_v3  ;;  %v13591_v2 = vpack.c.bf16 %v11453_v41, %v11452_v6 }
0x46fe   : > { %v13583_v5 = vpack.c.bf16 %v10116_v55, %v10111_v4 }
0x4700   : > { %13584 = vmatprep.subr.bf16.mxu1 %v13583_v5 }
0x4701   : > { %13586 = vmatpush3.bf16.msra.mxu1 %v13583_v5 }
0x47c8   : > { %v12899_v56 = vpop.f32.mrb[74].mxu0 }
0x47c9   : > { %v10028_v8 = vadd.f32 %v12899_v56, %v11424_v7  ;;  %v10022_v40 = vpop.f32.mrb[75].mxu0 }
0x47ca   : > { %v10023_v9 = vadd.f32 %v11424_v7, %v10022_v40 }
0x47cc   : > { %v13577_v10 = vpack.c.bf16 %v10028_v8, %v10023_v9  ;;  %v11448_v8 = vld [vmem:[%s15828_s11 + $0x3] ss:$0 sm:$0xff] }
0x47ce   : > { %13579 = vmatprep.subr.msk.bf16.mxu0 %vm14192_vm2, %v13577_v10 }
0x47cf   : > { %13582 = vmatpush3.bf16.xpose.msk.msra.mxu0 %vm14192_vm2, %v13577_v10 }
0x47d0   : > { %12925 = vmatprep.subr.mxu0 %v11441_v29 }
0x47d6   : > { %12916 = vmatmul.mubr.msk.f32.vlgmr.msra.gmra.mrb[76].mxu0 %vm915_vm1, %v9940_v57  ;;  %v13587_v57 = vpack.c.bf16 %v11451_v62, %v11450_v0 }
0x47d7   : > { %12926 = vmatpush3.msra.mxu0 %v11441_v29  ;;  %v10704_v29 = vld [vmem:[%s15834_s17 + $0x8] sm:$0xff] }
0x47d8   : > { %13588 = vmatprep.subr.bf16.mxu1 %v13587_v57 }
0x48a9   : > { %v12917_v11 = vpop.f32.mrb[76].mxu0 }
0x48aa   : > { %v10207_v12 = vmul.f32 0.35355338, %v12917_v11  ;;  %v10197_v13 = vpop.f32.mrb[77].mxu0  ;;  %v11449_v11 = vld [vmem:[%s15829_s12 + $0x3] ss:$0 sm:$0xff] }
0x48ab   : > { %v10206_v15 = vmul.f32 0.35355338, %v10197_v13 }
0x48ac   : > { %v10209_v14 = vsel %vm604_vm3, %v10207_v12, -1e+30 }
0x48ad   : > { %v10213_v16 = vsel %vm1007_vm4, %v10209_v14, -inf  ;;  %v10208_v21 = vsel %vm604_vm3, %v10206_v15, -1e+30 }
0x48ae   : > { %10214 = vmax.xlane.f32.xlu1 %v10213_v16  ;;  %v10210_v22 = vsel %vm1007_vm4, %v10208_v21, -inf  ;;  %v11458_v16 = vld [vmem:[%s15832_s15 + $0xc0] sm:$0xff] }
0x48af   : > { %10211 = vmax.xlane.f32.xlu0 %v10210_v22 }
0x493b   : > { %v10215_v63 = vpop.xlane.xlu1 %10214 }
0x493c   : > { %v10217_v27 = vsub.f32 %v10209_v14, %v10215_v63  ;;  %v10212_v28 = vpop.xlane.xlu0 %10211  ;;  %v11460_v63 = vld [vmem:[%s15832_s15 + $0xd0] sm:$0xff] }
0x493d   : > { %v10216_v23 = vsub.f32 %v10208_v21, %v10212_v28  ;;  %v11459_v21 = vld [vmem:[%s15832_s15 + $0xc8] sm:$0xff] }
0x493e   : > { %v10220_v60 = vmul.f32 1.442695, %v10217_v27  ;;  %v13595_v22 = vpack.c.bf16 %v11459_v21, %v11458_v16  ;;  %v11461_v27 = vld [vmem:[%s15832_s15 + $0xd8] sm:$0xff] }
0x493f   : > { %v10218_v46 = vmul.f32 1.442695, %v10216_v23  ;;  %v13599_v28 = vpack.c.bf16 %v11461_v27, %v11460_v63  ;;  %v11462_v23 = vld [vmem:[%s15832_s15 + $0xe0] sm:$0xff] }
0x4940   : > { %13856 = vpow2.f32 %v10220_v60  ;;  %13596 = vmatprep.subr.bf16.mxu0 %v13595_v22  ;;  %v11463_v60 = vld [vmem:[%s15832_s15 + $0xe8] sm:$0xff] }
0x4941   : > { %13858 = vpow2.f32 %v10218_v46  ;;  %v13603_v46 = vpack.c.bf16 %v11463_v60, %v11462_v23 }
0x494a   : > { %v13857_v24 = vpop.eup %13856 }
0x494b   : > { %v13859_v25 = vpop.eup %13858  ;;  %v10225_v26 = vsel %vm1007_vm4, %v13857_v24, 0.0 }
0x494c   : > { %10226 = vadd.xlane.f32.xlu1 %v10225_v26  ;;  %v10222_v17 = vsel %vm1007_vm4, %v13859_v25, 0.0 }
0x494d   : > { %10223 = vadd.xlane.f32.xlu0 %v10222_v17  ;;  %v10703_v17 = vld [vmem:[%s15834_s17] sm:$0xff] }
0x49d9   : > { %v10227_v30 = vpop.xlane.xlu1 %10226 }
0x49da   : > { %13860 = vrcp.f32 %v10227_v30  ;;  %v10224_v31 = vpop.xlane.xlu0 %10223  ;;  %v13941_v30 = vmov 0.0|0.0  }
0x49db   : > { %13862 = vrcp.f32 %v10224_v31  ;;  %v13612_v31 = vpack.c.bf16 %v10704_v29, %v10703_v17 }
0x49e4   : > { %v13861_v61 = vpop.eup %13860 }
0x49e5   : > { %v13863_v32 = vpop.eup %13862  ;;  %v10231_v34 = vmul.f32 %v13861_v61, %v13857_v24  ;;  %v11464_v24 = vld [vmem:[%s15832_s15 + $0xf0] sm:$0xff]  ;;  %v11455_v61 = vld [vmem:[%s15831_s14 + $0x3] ss:$0 sm:$0xff] }
0x49e6   : > { %v10230_v33 = vmul.f32 %v13863_v32, %v13859_v25  ;;  %v11465_v25 = vld [vmem:[%s15832_s15 + $0xf8] sm:$0xff] }
0x49e7   : > { %v13607_v26 = vpack.c.bf16 %v11465_v25, %v11464_v24  ;;  %v10705_v24 = vld [vmem:[%s15834_s17 + $0x10] sm:$0xff] }
0x49e8   : > { %12922 = vmatprep.mubr.msk.f32.mxu1 %vm1007_vm4, %v10230_v33 }
0x49e9   : > { %12923 = vmatmul.mubr.msk.f32.vlgmr.msra.gmra.mrb[100].mxu1 %vm1007_vm4, %v10231_v34 }
0x49ea   : > { %13590 = vmatpush3.bf16.msra.mxu1 %v13587_v57 }
0x49eb   : > { %13592 = vmatprep.subr.bf16.mxu1 %v13591_v2 }
0x49ee   : > { %13594 = vmatpush3.bf16.msra.mxu1 %v13591_v2 }
0x49ef   : > { %13611 = vmatprep.subr.bf16.mxu1 %v13941_v30 }
0x4abc   : > { %v12924_v35 = vpop.f32.mrb[100].mxu1 }
0x4abd   : > { %v10304_v36 = vpop.f32.mrb[101].mxu1 }
0x4abe   : > { %12927 = vmatprep.mubr.msk.f32.mxu0 %vm915_vm1, %v10304_v36 }
0x4abf   : > { %12928 = vmatmul.mubr.msk.f32.vlgmr.msra.gmra.mrb[68].mxu0 %vm915_vm1, %v12924_v35 }
0x4ac0   : > { %13598 = vmatpush3.bf16.msra.mxu0 %v13595_v22 }
0x4ac1   : > { %13600 = vmatprep.subr.bf16.mxu0 %v13599_v28 }
0x4ac4   : > { %13602 = vmatpush3.bf16.msra.mxu0 %v13599_v28 }
0x4ac5   : > { %13604 = vmatprep.subr.bf16.mxu0 %v13603_v46 }
0x4ac8   : > { %13606 = vmatpush3.bf16.msra.mxu0 %v13603_v46 }
0x4ac9   : > { %13608 = vmatprep.subr.bf16.mxu0 %v13607_v26 }
0x4acc   : > { %13610 = vmatpush3.bf16.msra.mxu0 %v13607_v26  ;;  %v13943_v26 = vmov 0.0  }
0x4b92   : > { %v12929_v39 = vpop.f32.mrb[68].mxu0 }
0x4b93   : > { %v10399_v43 = vadd.f32 %v12929_v39, %v15346_v54  ;;  %v10387_v50 = vpop.f32.mrb[69].mxu0 }
0x4b94   : > { %v10398_v51 = vadd.f32 %v10387_v50, %v15348_v58 }
0x4b95   : > { %v10409_v44 = vadd.f32 %v11445_v42, %v10399_v43 }
0x4b96   : > { %v15691_v19 = vadd.f32 %v11445_v42, %v10398_v51 }
0x4b97   : > { %v10417_v37 = vsel %vm607_vm0, %v10409_v44, 0.0 }
0x4b98   : > { %10418 = vadd.xlane.f32.xlu1 %v10417_v37  ;;  %v10414_v45 = vsel %vm607_vm0, %v15691_v19, 0.0 }
0x4b99   : > { %10415 = vadd.xlane.f32.xlu0 %v10414_v45 }
0x4c25   : > { %v10419_v47 = vpop.xlane.xlu1 %10418 }
0x4c26   : > { %v10421_v48 = vmul.f32 0.03125, %v10419_v47  ;;  %v10416_v49 = vpop.xlane.xlu0 %10415 }
0x4c27   : > { %v10420_v52 = vmul.f32 0.03125, %v10416_v49 }
0x4c28   : > { %v10423_v53 = vsub.f32 %v10409_v44, %v10421_v48 }
0x4c29   : > { %v10422_v54 = vsub.f32 %v15691_v19, %v10420_v52 }
0x4c2a   : > { %v10425_v20 = vmul.f32 %v10423_v53, %v10423_v53 }
0x4c2b   : > { %v10424_v1 = vmul.f32 %v10422_v54, %v10422_v54 }
0x4c2c   : > { %v10429_v58 = vsel %vm607_vm0, %v10425_v20, 0.0 }
0x4c2d   : > { %10430 = vadd.xlane.f32.xlu1 %v10429_v58  ;;  %v10426_v59 = vsel %vm607_vm0, %v10424_v1, 0.0 }
0x4c2e   : > { %10427 = vadd.xlane.f32.xlu0 %v10426_v59 }
0x4cba   : > { %v10431_v38 = vpop.xlane.xlu1 %10430 }
0x4cbb   : > { %v10433_v55 = vmul.f32 0.03125, %v10431_v38  ;;  %v10428_v3 = vpop.xlane.xlu0 %10427 }
0x4cbc   : > { %v10432_v4 = vmul.f32 0.03125, %v10428_v3 }
0x4cbd   : > { %v10435_v5 = vadd.f32 1e-05, %v10433_v55 }
0x4cbe   : > { %v10434_v7 = vadd.f32 1e-05, %v10432_v4 }
0x4cbf   : > { %13864 = vrsqrt.f32 %v10435_v5 }
0x4cc0   : > { %13866 = vrsqrt.f32 %v10434_v7 }
0x4cc9   : > { %v13865_v56 = vpop.eup %13864 }
0x4cca   : > { %v13867_v40 = vpop.eup %13866  ;;  %v10439_v9 = vmul.f32 %v13865_v56, %v10423_v53 }
0x4ccb   : > { %v10438_v10 = vmul.f32 %v13867_v40, %v10422_v54 }
0x4ccc   : > { %v10447_v12 = vmul.f32 %v11448_v8, %v10439_v9 }
0x4ccd   : > { %v10446_v13 = vmul.f32 %v11448_v8, %v10438_v10 }
0x4cce   : > { %v10455_v14 = vadd.f32 %v11449_v11, %v10447_v12 }
0x4ccf   : > { %v10454_v15 = vadd.f32 %v11449_v11, %v10446_v13 }
0x4cd1   : > { %12938 = vmatprep.mubr.msk.f32.mxu1 %vm607_vm0, %v10454_v15 }
0x4cd2   : > { %12939 = vmatmul.mubr.msk.f32.vlgmr.msra.gmra.mrb[102].mxu1 %vm607_vm0, %v10455_v14 }
0x4cd3   : > { %13613 = vmatpush3.bf16.msra.mxu1 %v13612_v31  ;;  %12968 = vmatprep.mubr.msk.f32.mxu1 %vm13942_vm14, %v13943_v26 }
0x4cd4   : > { %13614 = vmatprep.subr.bf16.mxu1 %v13941_v30  ;;  %v11469_v30 = vld [vmem:[%s15833_s16 + $0x3] ss:$0 sm:$0xff] }
0x4da5   : > { %v12940_v32 = vpop.f32.mrb[102].mxu1 }
0x4da6   : > { %v10547_v33 = vadd.f32 %v12940_v32, %v11455_v61  ;;  %v10541_v34 = vpop.f32.mrb[103].mxu1  ;;  %v10707_v32 = vld [vmem:[%s15835_s18] sm:$0x1] }
0x4da7   : > { %v10542_v35 = vadd.f32 %v11455_v61, %v10541_v34 }
0x4da8   : > { %v10553_v36 = vmul.f32 0.70710677, %v10547_v33  ;;  %v10551_v23 = vmul.f32 0.5, %v10547_v33 }
0x4da9   : > { %v10552_v39 = vmul.f32 0.70710677, %v10542_v35  ;;  %v10550_v27 = vmul.f32 0.5, %v10542_v35 }
0x4daa   : > { %v10559_v42 = vand.u32 2147483647, %v10553_v36  ;;  %vm10555_vm12 = vcmp.ge.f32.partialorder %v10553_v36, 0.0 }
0x4dab   : > { %v10558_v43 = vand.u32 2147483647, %v10552_v39  ;;  %vm10554_vm13 = vcmp.ge.f32.partialorder %v10552_v39, 0.0  ;;  %v10557_v15 = vsel %vm10555_vm12, 1.0, %v13940_v18 }
0x4dac   : > { %v10561_v50 = vmul.f32 0.3275911, %v10559_v42  ;;  %v10587_v45 = vsub.f32 0.0, %v10559_v42  ;;  %v10556_v21 = vsel %vm10554_vm13, 1.0, %v13940_v18  ;;  %v10706_v18 = vld [vmem:[%s15834_s17 + $0x18] sm:$0xff] }
0x4dad   : > { %v10560_v51 = vmul.f32 0.3275911, %v10558_v43  ;;  %v10586_v47 = vsub.f32 0.0, %v10558_v43  ;;  %v13615_v25 = vpack.c.bf16 %v10706_v18, %v10705_v24 }
0x4dae   : > { %v10563_v44 = vadd.f32 1.0, %v10561_v50  ;;  %v10589_v49 = vmul.f32 %v10587_v45, %v10559_v42 }
0x4daf   : > { %v10562_v37 = vadd.f32 1.0, %v10560_v51  ;;  %v10588_v54 = vmul.f32 %v10586_v47, %v10558_v43  ;;  %13616 = vmatpush3.bf16.msra.mxu1 %v13615_v25 }
0x4db0   : > { %13868 = vrcp.f32 %v10563_v44  ;;  %v10592_v58 = vmul.f32 1.442695, %v10589_v49 }
0x4db1   : > { %13870 = vrcp.f32 %v10562_v37  ;;  %v10590_v62 = vmul.f32 1.442695, %v10588_v54 }
0x4db2   : > { %13872 = vpow2.f32 %v10592_v58 }
0x4db3   : > { %13874 = vpow2.f32 %v10590_v62 }
0x4dba   : > { %v13869_v48 = vpop.eup %13868 }
0x4dbb   : > { %v13871_v52 = vpop.eup %13870  ;;  %v10569_v53 = vmul.f32 1.0614054, %v13869_v48 }
0x4dbc   : > { %v10568_v20 = vmul.f32 1.0614054, %v13871_v52  ;;  %v13873_v40 = vpop.eup %13872 }
0x4dbd   : > { %v10571_v1 = vadd.f32 -1.4531521, %v10569_v53  ;;  %v13875_v10 = vpop.eup %13874 }
0x4dbe   : > { %v10570_v59 = vadd.f32 -1.4531521, %v10568_v20 }
0x4dbf   : > { %v10573_v0 = vmul.f32 %v13869_v48, %v10571_v1 }
0x4dc0   : > { %v10572_v57 = vmul.f32 %v13871_v52, %v10570_v59 }
0x4dc1   : > { %v10575_v6 = vadd.f32 1.4214138, %v10573_v0 }
0x4dc2   : > { %v10574_v41 = vadd.f32 1.4214138, %v10572_v57 }
0x4dc3   : > { %v10577_v2 = vmul.f32 %v13869_v48, %v10575_v6 }
0x4dc4   : > { %v10576_v38 = vmul.f32 %v13871_v52, %v10574_v41 }
0x4dc5   : > { %v10579_v55 = vadd.f32 -0.28449672, %v10577_v2 }
0x4dc6   : > { %v10578_v3 = vadd.f32 -0.28449672, %v10576_v38 }
0x4dc7   : > { %v10581_v4 = vmul.f32 %v13869_v48, %v10579_v55 }
0x4dc8   : > { %v10580_v5 = vmul.f32 %v13871_v52, %v10578_v3 }
0x4dc9   : > { %v10583_v7 = vadd.f32 0.2548296, %v10581_v4 }
0x4dca   : > { %v10582_v56 = vadd.f32 0.2548296, %v10580_v5 }
0x4dcb   : > { %v10585_v8 = vmul.f32 %v13869_v48, %v10583_v7 }
0x4dcc   : > { %v10584_v9 = vmul.f32 %v13871_v52, %v10582_v56 }
0x4dcd   : > { %v10595_v11 = vmul.f32 %v13873_v40, %v10585_v8 }
0x4dce   : > { %v10594_v12 = vmul.f32 %v13875_v10, %v10584_v9 }
0x4dcf   : > { %v10597_v13 = vsub.f32 1.0, %v10595_v11 }
0x4dd0   : > { %v10596_v14 = vsub.f32 1.0, %v10594_v12 }
0x4dd1   : > { %v10599_v16 = vmul.f32 %v10597_v13, %v10557_v15 }
0x4dd2   : > { %v10598_v22 = vmul.f32 %v10596_v14, %v10556_v21 }
0x4dd3   : > { %v10601_v63 = vadd.f32 1.0, %v10599_v16 }
0x4dd4   : > { %v10600_v28 = vadd.f32 1.0, %v10598_v22 }
0x4dd5   : > { %v10603_v46 = vmul.f32 %v10601_v63, %v10551_v23 }
0x4dd6   : > { %v10602_v60 = vmul.f32 %v10600_v28, %v10550_v27 }
0x4dd8   : > { %12957 = vmatprep.mubr.msk.f32.mxu0 %vm3029_vm7, %v10602_v60 }
0x4dd9   : > { %12958 = vmatmul.mubr.msk.f32.vlgmr.msra.gmra.mrb[78].mxu0 %vm3029_vm7, %v10603_v46 }
0x4eac   : > { %v12959_v17 = vpop.f32.mrb[78].mxu0 }
0x4ead   : > { %v10685_v29 = vpop.f32.mrb[79].mxu0 }
0x4eae   : > { %v10693_v31 = vadd.f32 %v10685_v29, %v15691_v19 }
0x4eb0   : > { %v10702_v61 = vadd.f32 %v11469_v30, %v10693_v31 }
0x4eb2   : > { %12969 = vmatmul.mubr.msk.f32.vlgmr.msra.gmra.mrb[104].mxu1 %vm607_vm0, %v10702_v61 }
0x4f85   : > { %v10777_v33 = vpop.f32.mrb[104].mxu1 }
0x4f86   : > { %v10778_v34 = vadd.f32 %v10777_v33, %v10707_v32  ;;  %v12970_v35 = vpop.f32.mrb[105].mxu1 }
0x4f88   : > { %10782 = vst.msk [vmem:[%s594_s23] sm:$0x1] %vm10781_vm15, %v10778_v34 }
0x4f89   : > { %13889 = shalt.err (!%p13886_p3)
}
0x4f8a   : > { %s13890_s20 = scalar_lea.hbm %s15775_s25, 16  ;;  %s13894_s27 = scalar_lea.hbm %s15836_s19, 32 }
0x4f8b   : > { %p13891_p4 = scmp.ne.s32.totalorder %s15775_s25, %s13890_s20  ;;  %p13895_p9 = scmp.lt.u32.totalorder %s15775_s25, %s15836_s19 }
0x4f8c   : > { %p13896_p10 = scmp.lt.u32.totalorder %s13894_s27, %s13890_s20  ;;  %p13898_p12 = scmp.lt.u32.totalorder %s13890_s20, %s15775_s25 }
0x4f8d   : > { %p13892_p7 = pnand %p13891_p4, %p14083_p5 }
0x4f8e   : > { %p13897_p11 = por %p13896_p10, %p13895_p9 }
0x4f8f   : > { %p13893_p8 = pneg %p13892_p7 }
0x4f90   : > { %p13899_p13 = por %p13898_p12, %p13897_p11 }
0x4f92   : > { %p13900_p0 = pnand %p13899_p13, %p13893_p8 }
0x4f94   : > { %13903 = shalt.err (!%p13900_p0)
}
0x4f95   : > { %13641 = dma.vmem_to_hbm [thread:$0]  (%p14083_p5), %s15777_s24, 16, %s15775_s25, %s10784_s0  }
0x4f96 PF: > { %s15868_s4 = sld [smem:[#allocation7_spill]]  ;;  %s15869_s26 = sld [smem:[#allocation5_spill]] }
0x4f9c   : > { %p13647_p1 = scmp.ge.s32.totalorder %s15868_s4, 2  ;;  %s10808_s21 = sand.u32 1, %s15869_s26  }
0x4f9d   : > { %s10809_s23 = scalar_lea.sflag [#allocation3], %s10808_s21 }
0x4f9e   : > { %p13644_p2 = pnand %p13647_p1, %p14087_p6 }
0x4fa0   : > { %13921 = dma.done.wait (!%p13644_p2), %s10809_s23, 16  }
0x4fa1   : > { %13923 = vsyncadd (!%p13644_p2), %s10809_s23, 4294967280  ;;  %s15871_s21 = sld [smem:[#allocation8_spill]]  ;;  %s15872_s20 = sld [smem:[#allocation6_spill]] }
0x4fa2   : > { %s15873_s27 = sld [smem:[#allocation9_spill]]  ;;  %s15874_s0 = smov %s13930_s30 }
0x4fa7   : > { %p29_p3 = scmp.ge.s32.totalorder %s15871_s21, 4   ;;  %s15875_s30 = smov %s15872_s20 }
0x4fa8   : > { %s15876_s20 = smov %s15873_s27 }
0x4fa9   :  { %31 = sbr.rel (!%p29_p3) target bundleno = 9 (0x9), region = 263 }
0x4fb0   :  { %10813 = vsyncpa [#allocation3], 1 }
0x4fb1   :  { %10815 = vsyncpa [#allocation3 + $0x1], 1 }

</bundles_post_ra>
